<compile_context>
chip_gen: v7x
topology: tpu7x:2x2x1
jax: 0.10.0
libtpu: 0.0.40
codegen_flags: <defaults>
</compile_context>

<pallas_src>
import numpy as np
import jax
import jax.numpy as jnp
from jax.experimental import pallas as pl
from jax.experimental.pallas import tpu as pltpu


# ---------------------------------------------------------------------------
# Static row-offset (sublane shift) sets per packed conv layer.  They are
# re-derived and asserted by the weight builder in init_params.
# ---------------------------------------------------------------------------
OFFS_STEM = (0,)                          # stem 1x1            (pin=2, stride=1)
OFFS_B12 = (-2, -1, 0, 1, 2)              # blocks 1-2 convs    (pin=2, stride=1)
OFFS_B3C1 = (-2, -1, 0, 1)                # block 3 conv1 + ds  (pin=2, stride=2)
OFFS_B3C2 = (-3, -2, -1, 0, 1, 2, 3)      # block 3 conv2       (pin=1, stride=1)
OFFS_B4C1 = (-1, 0, 1)                    # block 4 conv1 + ds  (pin=4, stride=2)
OFFS_B4C2 = (-2, -1, 0, 1, 2)             # block 4 conv2       (pin=2, stride=1)

_CP = pltpu.CompilerParams(
    dimension_semantics=("parallel",),
    # Sized for L ~ 3000 with generous headroom; well inside v7x's 64 MiB VMEM.
    vmem_limit_bytes=32 * 1024 * 1024,
)


# ---------------------------------------------------------------------------
# In-kernel helpers (operate on VMEM values)
# ---------------------------------------------------------------------------
def _silu(y):
    # f32 elementwise; the divide is routed through pl.reciprocal (EUP path).
    return y * pl.reciprocal(1.0 + jnp.exp(-y), approx=False)


def _shifted(x, d):
    """y[r, :] = x[r + d, :]; rows outside [0, R) read zero.  d is static."""
    if d == 0:
        return x
    R = x.shape[0]
    z = jnp.zeros((abs(d), x.shape[1]), x.dtype)
    if d > 0:
        return jnp.concatenate([x[d:, :], z], axis=0)
    return jnp.concatenate([z, x[:R + d, :]], axis=0)


def _pconv(x, w_ref, b_ref, offsets):
    """Packed fused conv:  bias + sum_d shift(x, d) @ W[d].

    x      : (R, pin*Cin_fused) f32 value
    w_ref  : (n_off, pin*Cin_fused, Cout_total) bf16 weight slab
    b_ref  : (1, Cout_total) f32 bias row
    """
    acc = None
    for di, d in enumerate(offsets):
        op = _shifted(x, d).astype(jnp.bfloat16)
        y = jnp.dot(op, w_ref[di], preferred_element_type=jnp.float32)
        acc = y if acc is None else acc + y
    return acc + b_ref[...]


# ---------------------------------------------------------------------------
# Kernel A : stem + blocks 1,2 + block 3 (all branches fused), grid=(B,)
#   input  (1, L/2, 2*Cin)  : 2-packed raw input
#   output (1, L/2, 72)     : block-3 activations, per step [b3(24) b5(24) b7(24)]
# ---------------------------------------------------------------------------
def _trunk_a_kernel(x_ref, stem_w, stem_b,
                    w11, b11, w12, b12, w21, b21, w22, b22,
                    w31, b31, w32, b32, o_ref):
    x = x_ref[0].astype(jnp.bfloat16)                          # (R1, 2*Cin)
    h = _silu(jnp.dot(x, stem_w[0], preferred_element_type=jnp.float32)
              + stem_b[...])                                   # (R1, 96): 2-packed, 48 fused ch
    for wc1, bc1, wc2, bc2 in ((w11, b11, w12, b12), (w21, b21, w22, b22)):
        t = _silu(_pconv(h, wc1, bc1, OFFS_B12))               # conv1+BN+SiLU
        h = _silu(_pconv(t, wc2, bc2, OFFS_B12) + h)           # conv2+BN + residual
    y = _pconv(h, w31, b31, OFFS_B3C1)                         # (R1, 144) = [conv1 | downsample]
    t = _silu(y[:, :72])
    h3 = _silu(_pconv(t, w32, b32, OFFS_B3C2) + y[:, 72:144])
    o_ref[0] = h3.astype(o_ref.dtype)


# ---------------------------------------------------------------------------
# Kernel B : block 4 (fused) + branch mean + AvgPool(2) + VQ, grid=(B,)
#   input  (1, L/8, 288) : 4-packed block-3 output (bf16)
#   outputs: z (1,L/8,32), z_q (1,L/8,32), one-hot (1,L/8,V), idx (1,L/8,1)
# ---------------------------------------------------------------------------
def _trunk_b_vq_kernel(xq_ref, w41, b41, w42, b42, e_ref, et_ref, esq_ref,
                       z_ref, zq_ref, oh_ref, idx_ref):
    xq = xq_ref[0].astype(jnp.float32)                         # (R2, 288)
    y = _pconv(xq, w41, b41, OFFS_B4C1)                        # (R2, 384) = [conv 2-packed | ds 2-packed]
    t = _silu(y[:, :192])
    h = _silu(_pconv(t, w42, b42, OFFS_B4C2) + y[:, 192:384])  # (R2, 192) = 2-packed, 96 fused ch
    # mean over the 3 branches (/3) and AvgPool1d(2) (/2) fold to a single *1/6
    z = (h[:, 0:32] + h[:, 32:64] + h[:, 64:96]
         + h[:, 96:128] + h[:, 128:160] + h[:, 160:192]) * jnp.float32(1.0 / 6.0)
    # nearest-codebook search; the ||z||^2 term is constant per row -> dropped
    scores = jnp.dot(z, et_ref[...], preferred_element_type=jnp.float32)   # (R2, Vp)
    d2 = esq_ref[...] - 2.0 * scores
    Vp = d2.shape[-1]
    iota = jax.lax.broadcasted_iota(jnp.int32, d2.shape, 1)
    dmin = jnp.min(d2, axis=-1, keepdims=True)
    idx = jnp.min(jnp.where(d2 <= dmin, iota, Vp), axis=-1, keepdims=True)  # first argmin
    oh = (iota == idx).astype(jnp.float32)
    zq = jnp.dot(oh, e_ref[...], preferred_element_type=jnp.float32)
    z_ref[0] = z
    zq_ref[0] = zq
    oh_ref[0] = oh[:, :oh_ref.shape[-1]]
    idx_ref[0] = idx


# ---------------------------------------------------------------------------
# pallas_call wrappers
# ---------------------------------------------------------------------------
_A_KEYS = ("stem_w", "stem_b",
           "l1c1_w", "l1c1_b", "l1c2_w", "l1c2_b",
           "l2c1_w", "l2c1_b", "l2c2_w", "l2c2_b",
           "l3c1_w", "l3c1_b", "l3c2_w", "l3c2_b")


def _const_index_map(nd):
    if nd == 2:
        return lambda b: (0, 0)
    return lambda b: (0, 0, 0)


def trunk_a(params, x2):
    B, R1, C = x2.shape
    ws = [params[k] for k in _A_KEYS]
    in_specs = [pl.BlockSpec((1, R1, C), lambda b: (b, 0, 0))]
    in_specs += [pl.BlockSpec(w.shape, _const_index_map(w.ndim)) for w in ws]
    return pl.pallas_call(
        _trunk_a_kernel,
        out_shape=jax.ShapeDtypeStruct((B, R1, 72), jnp.bfloat16),
        grid=(B,),
        in_specs=in_specs,
        out_specs=pl.BlockSpec((1, R1, 72), lambda b: (b, 0, 0)),
        compiler_params=_CP,
    )(x2, *ws)


def trunk_b_vq(params, xq):
    B, R2, C = xq.shape
    V, D = params["codebook"].shape
    assert D == 32
    Vp = ((V + 127) // 128) * 128                              # lane-dense codebook search
    e_pad = jnp.zeros((Vp, D), jnp.float32).at[:V].set(
        params["codebook"].astype(jnp.float32))
    et = e_pad.T
    esq = jnp.sum(e_pad * e_pad, axis=-1)
    esq = jnp.where(jnp.arange(Vp) < V, esq, jnp.float32(1e30)).reshape(1, Vp)
    ws = [params["l4c1_w"], params["l4c1_b"], params["l4c2_w"], params["l4c2_b"],
          e_pad, et, esq]
    in_specs = [pl.BlockSpec((1, R2, C), lambda b: (b, 0, 0))]
    in_specs += [pl.BlockSpec(w.shape, _const_index_map(w.ndim)) for w in ws]
    out_shape = (jax.ShapeDtypeStruct((B, R2, D), jnp.float32),
                 jax.ShapeDtypeStruct((B, R2, D), jnp.float32),
                 jax.ShapeDtypeStruct((B, R2, V), jnp.float32),
                 jax.ShapeDtypeStruct((B, R2, 1), jnp.int32))
    out_specs = (pl.BlockSpec((1, R2, D), lambda b: (b, 0, 0)),
                 pl.BlockSpec((1, R2, D), lambda b: (b, 0, 0)),
                 pl.BlockSpec((1, R2, V), lambda b: (b, 0, 0)),
                 pl.BlockSpec((1, R2, 1), lambda b: (b, 0, 0)))
    return pl.pallas_call(
        _trunk_b_vq_kernel,
        out_shape=out_shape,
        grid=(B,),
        in_specs=in_specs,
        out_specs=out_specs,
        compiler_params=_CP,
    )(xq, *ws)


# ---------------------------------------------------------------------------
# Forward pass
# ---------------------------------------------------------------------------
def encode(params, x_ncl):
    """(B, Cin, L) -> (z, z_q, one_hot, idx) at time resolution L // 8."""
    B, Cin, L = x_ncl.shape
    assert L % 8 == 0
    x = jnp.transpose(x_ncl, (0, 2, 1)).astype(jnp.float32)    # (B, L, Cin)
    x2 = x.reshape(B, L // 2, 2 * Cin)                         # free 2-packing
    h3 = trunk_a(params, x2)                                   # (B, L/2, 72) bf16
    xq = h3.reshape(B, L // 8, 4 * 72)                         # free 4-packing
    return trunk_b_vq(params, xq)


def forward(params, x_ncl, beta):
    B, _, L = x_ncl.shape
    L8 = L >> 3                                                # seq_len (3000>>3 in the module)
    z, zq, oh, idx = encode(params, x_ncl)
    mse = jnp.mean((zq - z) ** 2)
    embedding_loss = (1.0 + beta) * mse        # codebook + beta*commitment (forward value)
    min_encodings = oh.reshape(B * L8, -1)
    e_mean = jnp.mean(min_encodings, axis=0)
    perplexity = jnp.exp(-jnp.sum(e_mean * jnp.log(e_mean + 1e-10)))
    z_q = jnp.transpose(zq, (0, 2, 1))                         # (B, 32, seq_len)
    min_encoding_idx = idx.reshape(B * L8, 1)
    return embedding_loss, z_q, perplexity, min_encodings, min_encoding_idx


# ---------------------------------------------------------------------------
# Packed / branch-fused weight builder (runs once at init time, in numpy).
# ---------------------------------------------------------------------------
def _build_packed_layer(pin, stride, cin_step, streams):
    """Build one fused conv weight slab for the packed-time layout.

    Input rows hold `pin` consecutive time steps of a `cin_step`-wide fused
    channel vector (lanes: slot-major, branch-channel within slot).  The layer
    is evaluated in-kernel as   bias + sum_d shift(input, d) @ W[d].

    streams : list of output streams; each stream is a list of per-branch units
              {"w": (K, cin, cout) BN-folded f32, "b": (cout,), "in_off": input
              channel offset of the unit inside the fused per-step vector}.
    Output columns: stream-major, then output slot, then unit (branch).
    """
    pout = pin // stride
    offs = set()
    for stream in streams:
        for u in stream:
            K = u["w"].shape[0]
            P = (K - 1) // 2
            for so in range(pout):
                for k in range(K):
                    offs.add((stride * so + k - P) // pin)
    offsets = tuple(sorted(offs))
    cin_row = pin * cin_step
    stream_w = [pout * sum(u["w"].shape[2] for u in s) for s in streams]
    total = sum(stream_w)
    W = np.zeros((len(offsets), cin_row, total), np.float32)
    bias = np.zeros((total,), np.float32)
    cbase = 0
    for si, stream in enumerate(streams):
        slot_w = sum(u["w"].shape[2] for u in stream)
        for so in range(pout):
            c0 = cbase + so * slot_w
            for u in stream:
                wk = np.asarray(u["w"], np.float32)
                K, cin_u, cout_u = wk.shape
                P = (K - 1) // 2
                bias[c0:c0 + cout_u] = np.asarray(u["b"], np.float32)
                for k in range(K):
                    q = stride * so + k - P
                    d = q // pin                      # floor division (negatives ok)
                    s = q - d * pin
                    di = offsets.index(d)
                    r0 = s * cin_step + u["in_off"]
                    W[di, r0:r0 + cin_u, c0:c0 + cout_u] += wk[k]
                c0 += cout_u
        cbase += stream_w[si]
    return (offsets,
            jnp.asarray(W, dtype=jnp.bfloat16),
            jnp.asarray(bias.reshape(1, total), dtype=jnp.float32))


# ---------------------------------------------------------------------------
# Parameter construction (fresh init; eval-mode BN folded; conv weights built
# natively as (K, Cin, Cout) -- loading real PyTorch (Cout, Cin, K) checkpoints
# would need a transpose helper).
# ---------------------------------------------------------------------------
def init_params(key, in_channel, vocab_size, embedding_dim):
    assert embedding_dim == 32, "trunk output width is fixed at 32 channels"
    keys = iter(jax.random.split(key, 256))
    eps = 1e-5

    def bn(cout):
        gamma = 1.0 + 0.1 * jax.random.normal(next(keys), (cout,), jnp.float32)
        beta = 0.1 * jax.random.normal(next(keys), (cout,), jnp.float32)
        return gamma / jnp.sqrt(1.0 + eps), beta      # running_mean=0, running_var=1

    def conv_bn(cin, cout, K, conv_bias=False):
        w = 0.1 * jax.random.normal(next(keys), (K, cin, cout), jnp.float32)
        s, b = bn(cout)
        wf = w * s
        bias = b
        if conv_bias:
            cb = 0.1 * jax.random.normal(next(keys), (cout,), jnp.float32)
            bias = b + cb * s
        return wf, bias

    raw = {"stem": conv_bn(in_channel, 16, 1, conv_bias=True)}
    for K in (3, 5, 7):
        for blk in (1, 2):
            raw[f"b{K}_{blk}_1"] = conv_bn(16, 16, K)
            raw[f"b{K}_{blk}_2"] = conv_bn(16, 16, K)
        raw[f"b{K}_3_1"] = conv_bn(16, 24, K)
        raw[f"b{K}_3_2"] = conv_bn(24, 24, K)
        raw[f"b{K}_3_d"] = conv_bn(16, 24, 1)
        raw[f"b{K}_4_1"] = conv_bn(24, 32, K)
        raw[f"b{K}_4_2"] = conv_bn(32, 32, K)
        raw[f"b{K}_4_d"] = conv_bn(24, 32, 1)

    def unit(name, in_off):
        w, b = raw[name]
        return {"w": w, "b": b, "in_off": in_off}

    p = {}
    # stem: 1x1 conv, shared input, replicated into all 3 branch channel groups
    offs, p["stem_w"], p["stem_b"] = _build_packed_layer(
        2, 1, in_channel, [[unit("stem", 0)] * 3])
    assert offs == OFFS_STEM
    # blocks 1-2 (stride 1, 16->16 per branch, block-diagonal over branches)
    for blk in (1, 2):
        for c in (1, 2):
            offs, p[f"l{blk}c{c}_w"], p[f"l{blk}c{c}_b"] = _build_packed_layer(
                2, 1, 48,
                [[unit(f"b{K}_{blk}_{c}", 16 * j) for j, K in enumerate((3, 5, 7))]])
            assert offs == OFFS_B12
    # block 3: stride-2 conv1 with the 1x1/s2 downsample folded in, then conv2
    offs, p["l3c1_w"], p["l3c1_b"] = _build_packed_layer(
        2, 2, 48,
        [[unit(f"b{K}_3_1", 16 * j) for j, K in enumerate((3, 5, 7))],
         [unit(f"b{K}_3_d", 16 * j) for j, K in enumerate((3, 5, 7))]])
    assert offs == OFFS_B3C1
    offs, p["l3c2_w"], p["l3c2_b"] = _build_packed_layer(
        1, 1, 72,
        [[unit(f"b{K}_3_2", 24 * j) for j, K in enumerate((3, 5, 7))]])
    assert offs == OFFS_B3C2
    # block 4: stride-2 conv1 + downsample, then conv2
    offs, p["l4c1_w"], p["l4c1_b"] = _build_packed_layer(
        4, 2, 72,
        [[unit(f"b{K}_4_1", 24 * j) for j, K in enumerate((3, 5, 7))],
         [unit(f"b{K}_4_d", 24 * j) for j, K in enumerate((3, 5, 7))]])
    assert offs == OFFS_B4C1
    offs, p["l4c2_w"], p["l4c2_b"] = _build_packed_layer(
        2, 1, 96,
        [[unit(f"b{K}_4_2", 32 * j) for j, K in enumerate((3, 5, 7))]])
    assert offs == OFFS_B4C2

    p["codebook"] = (1.0 / vocab_size) * jax.random.normal(
        next(keys), (vocab_size, embedding_dim), jnp.float32)
    return p, raw


# ---------------------------------------------------------------------------
# Pure-JAX reference for the conv trunk (matches the kernels' numerics:
# bf16 matmul operands, f32 accumulation, bf16 store between the two kernels).
# ---------------------------------------------------------------------------
def _ref_silu(y):
    return y * (1.0 / (1.0 + jnp.exp(-y)))


def _ref_conv(x, w, b, stride):
    K, Cin, Cout = w.shape
    P = (K - 1) // 2
    B_, Lt, _ = x.shape
    Lo = Lt // stride
    xb = jnp.pad(x, ((0, 0), (P, P), (0, 0))).astype(jnp.bfloat16)
    wb = w.astype(jnp.bfloat16)
    y = jnp.zeros((B_, Lo, Cout), jnp.float32)
    for k in range(K):
        xs = xb[:, k:k + stride * (Lo - 1) + 1:stride, :]
        y = y + jnp.einsum("blc,cd->bld", xs, wb[k],
                           preferred_element_type=jnp.float32)
    return y + b


def reference_z(raw, x_ncl):
    """Reference quantizer input z = AvgPool(mean over branches of block-4 out)."""
    x = jnp.transpose(x_ncl, (0, 2, 1)).astype(jnp.float32)
    w, b = raw["stem"]
    x0 = _ref_silu(_ref_conv(x, w, b, 1))
    acc = None
    for K in (3, 5, 7):
        h = x0
        for blk in (1, 2):
            w1, b1 = raw[f"b{K}_{blk}_1"]
            w2, b2 = raw[f"b{K}_{blk}_2"]
            t = _ref_silu(_ref_conv(h, w1, b1, 1))
            h = _ref_silu(_ref_conv(t, w2, b2, 1) + h)
        w1, b1 = raw[f"b{K}_3_1"]
        w2, b2 = raw[f"b{K}_3_2"]
        wd, bd = raw[f"b{K}_3_d"]
        t = _ref_silu(_ref_conv(h, w1, b1, 2))
        h = _ref_silu(_ref_conv(t, w2, b2, 1) + _ref_conv(h, wd, bd, 2))
        h = h.astype(jnp.bfloat16).astype(jnp.float32)   # inter-kernel bf16 store
        w1, b1 = raw[f"b{K}_4_1"]
        w2, b2 = raw[f"b{K}_4_2"]
        wd, bd = raw[f"b{K}_4_d"]
        t = _ref_silu(_ref_conv(h, w1, b1, 2))
        h = _ref_silu(_ref_conv(t, w2, b2, 1) + _ref_conv(h, wd, bd, 2))
        acc = h if acc is None else acc + h
    m = acc * (1.0 / 3.0)                                 # mean over 3 branches
    B_, L4, C = m.shape
    return m.reshape(B_, L4 // 2, 2, C).mean(axis=2)      # AvgPool1d(2)


# ---------------------------------------------------------------------------
if __name__ == "__main__":
    B, Cin, L = 2, 4, 256                   # small shapes; L must be divisible by 8
    vocab_size, embedding_dim, beta = 64, 32, 0.25

    key = jax.random.PRNGKey(0)
    kx, kp = jax.random.split(key)
    x = jax.random.normal(kx, (B, Cin, L), jnp.float32)
    params, raw = init_params(kp, Cin, vocab_size, embedding_dim)

    # correctness: fused Pallas conv trunk vs plain-JAX reference
    z_kernel = jax.block_until_ready(
        jax.jit(lambda p, xx: encode(p, xx)[0])(params, x))
    z_ref = reference_z(raw, x)
    assert z_kernel.shape == (B, L // 8, 32)
    max_err = float(jnp.max(jnp.abs(z_kernel - z_ref)))
    assert bool(jnp.allclose(z_kernel, z_ref, atol=2e-2, rtol=2e-2)), max_err

    fwd = jax.jit(lambda p, xx: forward(p, xx, beta))
    outs = jax.block_until_ready(fwd(params, x))
    loss, z_q, perplexity, min_encodings, min_encoding_idx = outs

    assert z_q.shape == (B, 32, L >> 3)
    assert min_encodings.shape == (B * (L >> 3), vocab_size)
    assert min_encoding_idx.shape == (B * (L >> 3), 1)
    assert bool(jnp.allclose(jnp.sum(min_encodings, axis=-1), 1.0))
    assert int(jnp.min(min_encoding_idx)) >= 0
    assert int(jnp.max(min_encoding_idx)) < vocab_size
    assert bool(jnp.isfinite(loss)) and bool(jnp.isfinite(perplexity))
    print("KERNEL_OK")
</pallas_src>

<mosaic_0001>
module attributes {stable_mosaic.version = 11 : i64} {
  func.func @_trunk_a_kernel(%arg0: i32, %arg1: memref<1x128x8xf32, #tpu.memory_space<vmem>>, %arg2: memref<1x8x96xbf16, #tpu.memory_space<vmem>>, %arg3: memref<1x96xf32, #tpu.memory_space<vmem>>, %arg4: memref<5x96x96xbf16, #tpu.memory_space<vmem>>, %arg5: memref<1x96xf32, #tpu.memory_space<vmem>>, %arg6: memref<5x96x96xbf16, #tpu.memory_space<vmem>>, %arg7: memref<1x96xf32, #tpu.memory_space<vmem>>, %arg8: memref<5x96x96xbf16, #tpu.memory_space<vmem>>, %arg9: memref<1x96xf32, #tpu.memory_space<vmem>>, %arg10: memref<5x96x96xbf16, #tpu.memory_space<vmem>>, %arg11: memref<1x96xf32, #tpu.memory_space<vmem>>, %arg12: memref<4x96x144xbf16, #tpu.memory_space<vmem>>, %arg13: memref<1x144xf32, #tpu.memory_space<vmem>>, %arg14: memref<7x72x72xbf16, #tpu.memory_space<vmem>>, %arg15: memref<1x72xf32, #tpu.memory_space<vmem>>, %arg16: memref<1x128x72xbf16, #tpu.memory_space<vmem>>) attributes {dimension_semantics = [#tpu.dimension_semantics<parallel>], iteration_bounds = array<i64: 2>, scalar_prefetch = 0 : i64, scratch_operands = 0 : i64, tpu.core_type = #tpu.core_type<tc>, window_params = [{transform_indices = @transform_0, window_bounds = array<i64: 1, 128, 8>}, {pipeline_mode = #tpu.pipeline_mode<synchronous>, transform_indices = @transform_1, window_bounds = array<i64: 1, 8, 96>}, {pipeline_mode = #tpu.pipeline_mode<synchronous>, transform_indices = @transform_2, window_bounds = array<i64: 1, 96>}, {pipeline_mode = #tpu.pipeline_mode<synchronous>, transform_indices = @transform_3, window_bounds = array<i64: 5, 96, 96>}, {pipeline_mode = #tpu.pipeline_mode<synchronous>, transform_indices = @transform_4, window_bounds = array<i64: 1, 96>}, {pipeline_mode = #tpu.pipeline_mode<synchronous>, transform_indices = @transform_5, window_bounds = array<i64: 5, 96, 96>}, {pipeline_mode = #tpu.pipeline_mode<synchronous>, transform_indices = @transform_6, window_bounds = array<i64: 1, 96>}, {pipeline_mode = #tpu.pipeline_mode<synchronous>, transform_indices = @transform_7, window_bounds = array<i64: 5, 96, 96>}, {pipeline_mode = #tpu.pipeline_mode<synchronous>, transform_indices = @transform_8, window_bounds = array<i64: 1, 96>}, {pipeline_mode = #tpu.pipeline_mode<synchronous>, transform_indices = @transform_9, window_bounds = array<i64: 5, 96, 96>}, {pipeline_mode = #tpu.pipeline_mode<synchronous>, transform_indices = @transform_10, window_bounds = array<i64: 1, 96>}, {pipeline_mode = #tpu.pipeline_mode<synchronous>, transform_indices = @transform_11, window_bounds = array<i64: 4, 96, 144>}, {pipeline_mode = #tpu.pipeline_mode<synchronous>, transform_indices = @transform_12, window_bounds = array<i64: 1, 144>}, {pipeline_mode = #tpu.pipeline_mode<synchronous>, transform_indices = @transform_13, window_bounds = array<i64: 7, 72, 72>}, {pipeline_mode = #tpu.pipeline_mode<synchronous>, transform_indices = @transform_14, window_bounds = array<i64: 1, 72>}, {transform_indices = @transform_15, window_bounds = array<i64: 1, 128, 72>}]} {
    %c0 = arith.constant 0 : index
    %c0_0 = arith.constant 0 : index
    %c0_1 = arith.constant 0 : index
    %0 = vector.load %arg1[%c0, %c0_0, %c0_1] : memref<1x128x8xf32, #tpu.memory_space<vmem>>, vector<1x128x8xf32>
    %1 = vector.shape_cast %0 : vector<1x128x8xf32> to vector<128x8xf32>
    %2 = arith.truncf %1 : vector<128x8xf32> to vector<128x8xbf16>
    %c0_2 = arith.constant 0 : index
    %c0_3 = arith.constant 0 : index
    %c0_4 = arith.constant 0 : index
    %3 = vector.load %arg2[%c0_2, %c0_3, %c0_4] : memref<1x8x96xbf16, #tpu.memory_space<vmem>>, vector<1x8x96xbf16>
    %4 = vector.shape_cast %3 : vector<1x8x96xbf16> to vector<8x96xbf16>
    %cst = arith.constant dense<0.000000e+00> : vector<128x96xf32>
    %5 = tpu.matmul %2, %4, %cst {dimension_numbers = #tpu.dot_dimension_numbers<[1], [0], [0], [1], [0, 0, 1, 1], [], []>} : vector<128x8xbf16>, vector<8x96xbf16>, vector<128x96xf32> -> vector<128x96xf32>
    %c0_5 = arith.constant 0 : index
    %c0_6 = arith.constant 0 : index
    %6 = vector.load %arg3[%c0_5, %c0_6] : memref<1x96xf32, #tpu.memory_space<vmem>>, vector<1x96xf32>
    %7 = vector.broadcast %6 : vector<1x96xf32> to vector<128x96xf32>
    %8 = arith.addf %5, %7 : vector<128x96xf32>
    %cst_7 = arith.constant 0.000000e+00 : f32
    %9 = vector.broadcast %cst_7 : f32 to vector<128x96xf32>
    %10 = arith.subf %9, %8 : vector<128x96xf32>
    %11 = math.exp %10 : vector<128x96xf32>
    %cst_8 = arith.constant 1.000000e+00 : f32
    %12 = vector.broadcast %cst_8 : f32 to vector<128x96xf32>
    %13 = arith.addf %12, %11 : vector<128x96xf32>
    %14 = tpu.reciprocal %13 : vector<128x96xf32> -> vector<128x96xf32>
    %15 = arith.mulf %8, %14 : vector<128x96xf32>
    %cst_9 = arith.constant 0.000000e+00 : f32
    %16 = vector.broadcast %cst_9 : f32 to vector<2x96xf32>
    %17 = vector.extract_strided_slice %15 {offsets = [0, 0], sizes = [126, 96], strides = [1, 1]} : vector<128x96xf32> to vector<126x96xf32>
    %18 = tpu.concatenate %16, %17 in 0 : vector<2x96xf32>, vector<126x96xf32> -> vector<128x96xf32>
    %19 = arith.truncf %18 : vector<128x96xf32> to vector<128x96xbf16>
    %c0_10 = arith.constant 0 : index
    %c0_11 = arith.constant 0 : index
    %c0_12 = arith.constant 0 : index
    %20 = vector.load %arg4[%c0_10, %c0_11, %c0_12] : memref<5x96x96xbf16, #tpu.memory_space<vmem>>, vector<1x96x96xbf16>
    %21 = vector.shape_cast %20 : vector<1x96x96xbf16> to vector<96x96xbf16>
    %cst_13 = arith.constant dense<0.000000e+00> : vector<128x96xf32>
    %22 = tpu.matmul %19, %21, %cst_13 {dimension_numbers = #tpu.dot_dimension_numbers<[1], [0], [0], [1], [0, 0, 1, 1], [], []>} : vector<128x96xbf16>, vector<96x96xbf16>, vector<128x96xf32> -> vector<128x96xf32>
    %cst_14 = arith.constant 0.000000e+00 : f32
    %23 = vector.broadcast %cst_14 : f32 to vector<1x96xf32>
    %24 = vector.extract_strided_slice %15 {offsets = [0, 0], sizes = [127, 96], strides = [1, 1]} : vector<128x96xf32> to vector<127x96xf32>
    %25 = tpu.concatenate %23, %24 in 0 : vector<1x96xf32>, vector<127x96xf32> -> vector<128x96xf32>
    %26 = arith.truncf %25 : vector<128x96xf32> to vector<128x96xbf16>
    %c1 = arith.constant 1 : index
    %c0_15 = arith.constant 0 : index
    %c0_16 = arith.constant 0 : index
    %27 = vector.load %arg4[%c1, %c0_15, %c0_16] : memref<5x96x96xbf16, #tpu.memory_space<vmem>>, vector<1x96x96xbf16>
    %28 = vector.shape_cast %27 : vector<1x96x96xbf16> to vector<96x96xbf16>
    %cst_17 = arith.constant dense<0.000000e+00> : vector<128x96xf32>
    %29 = tpu.matmul %26, %28, %cst_17 {dimension_numbers = #tpu.dot_dimension_numbers<[1], [0], [0], [1], [0, 0, 1, 1], [], []>} : vector<128x96xbf16>, vector<96x96xbf16>, vector<128x96xf32> -> vector<128x96xf32>
    %30 = arith.addf %22, %29 : vector<128x96xf32>
    %31 = arith.truncf %15 : vector<128x96xf32> to vector<128x96xbf16>
    %c2 = arith.constant 2 : index
    %c0_18 = arith.constant 0 : index
    %c0_19 = arith.constant 0 : index
    %32 = vector.load %arg4[%c2, %c0_18, %c0_19] : memref<5x96x96xbf16, #tpu.memory_space<vmem>>, vector<1x96x96xbf16>
    %33 = vector.shape_cast %32 : vector<1x96x96xbf16> to vector<96x96xbf16>
    %cst_20 = arith.constant dense<0.000000e+00> : vector<128x96xf32>
    %34 = tpu.matmul %31, %33, %cst_20 {dimension_numbers = #tpu.dot_dimension_numbers<[1], [0], [0], [1], [0, 0, 1, 1], [], []>} : vector<128x96xbf16>, vector<96x96xbf16>, vector<128x96xf32> -> vector<128x96xf32>
    %35 = arith.addf %30, %34 : vector<128x96xf32>
    %cst_21 = arith.constant 0.000000e+00 : f32
    %36 = vector.broadcast %cst_21 : f32 to vector<1x96xf32>
    %37 = vector.extract_strided_slice %15 {offsets = [1, 0], sizes = [127, 96], strides = [1, 1]} : vector<128x96xf32> to vector<127x96xf32>
    %38 = tpu.concatenate %37, %36 in 0 : vector<127x96xf32>, vector<1x96xf32> -> vector<128x96xf32>
    %39 = arith.truncf %38 : vector<128x96xf32> to vector<128x96xbf16>
    %c3 = arith.constant 3 : index
    %c0_22 = arith.constant 0 : index
    %c0_23 = arith.constant 0 : index
    %40 = vector.load %arg4[%c3, %c0_22, %c0_23] : memref<5x96x96xbf16, #tpu.memory_space<vmem>>, vector<1x96x96xbf16>
    %41 = vector.shape_cast %40 : vector<1x96x96xbf16> to vector<96x96xbf16>
    %cst_24 = arith.constant dense<0.000000e+00> : vector<128x96xf32>
    %42 = tpu.matmul %39, %41, %cst_24 {dimension_numbers = #tpu.dot_dimension_numbers<[1], [0], [0], [1], [0, 0, 1, 1], [], []>} : vector<128x96xbf16>, vector<96x96xbf16>, vector<128x96xf32> -> vector<128x96xf32>
    %43 = arith.addf %35, %42 : vector<128x96xf32>
    %cst_25 = arith.constant 0.000000e+00 : f32
    %44 = vector.broadcast %cst_25 : f32 to vector<2x96xf32>
    %45 = vector.extract_strided_slice %15 {offsets = [2, 0], sizes = [126, 96], strides = [1, 1]} : vector<128x96xf32> to vector<126x96xf32>
    %46 = tpu.concatenate %45, %44 in 0 : vector<126x96xf32>, vector<2x96xf32> -> vector<128x96xf32>
    %47 = arith.truncf %46 : vector<128x96xf32> to vector<128x96xbf16>
    %c4 = arith.constant 4 : index
    %c0_26 = arith.constant 0 : index
    %c0_27 = arith.constant 0 : index
    %48 = vector.load %arg4[%c4, %c0_26, %c0_27] : memref<5x96x96xbf16, #tpu.memory_space<vmem>>, vector<1x96x96xbf16>
    %49 = vector.shape_cast %48 : vector<1x96x96xbf16> to vector<96x96xbf16>
    %cst_28 = arith.constant dense<0.000000e+00> : vector<128x96xf32>
    %50 = tpu.matmul %47, %49, %cst_28 {dimension_numbers = #tpu.dot_dimension_numbers<[1], [0], [0], [1], [0, 0, 1, 1], [], []>} : vector<128x96xbf16>, vector<96x96xbf16>, vector<128x96xf32> -> vector<128x96xf32>
    %51 = arith.addf %43, %50 : vector<128x96xf32>
    %c0_29 = arith.constant 0 : index
    %c0_30 = arith.constant 0 : index
    %52 = vector.load %arg5[%c0_29, %c0_30] : memref<1x96xf32, #tpu.memory_space<vmem>>, vector<1x96xf32>
    %53 = vector.broadcast %52 : vector<1x96xf32> to vector<128x96xf32>
    %54 = arith.addf %51, %53 : vector<128x96xf32>
    %cst_31 = arith.constant 0.000000e+00 : f32
    %55 = vector.broadcast %cst_31 : f32 to vector<128x96xf32>
    %56 = arith.subf %55, %54 : vector<128x96xf32>
    %57 = math.exp %56 : vector<128x96xf32>
    %cst_32 = arith.constant 1.000000e+00 : f32
    %58 = vector.broadcast %cst_32 : f32 to vector<128x96xf32>
    %59 = arith.addf %58, %57 : vector<128x96xf32>
    %60 = tpu.reciprocal %59 : vector<128x96xf32> -> vector<128x96xf32>
    %61 = arith.mulf %54, %60 : vector<128x96xf32>
    %cst_33 = arith.constant 0.000000e+00 : f32
    %62 = vector.broadcast %cst_33 : f32 to vector<2x96xf32>
    %63 = vector.extract_strided_slice %61 {offsets = [0, 0], sizes = [126, 96], strides = [1, 1]} : vector<128x96xf32> to vector<126x96xf32>
    %64 = tpu.concatenate %62, %63 in 0 : vector<2x96xf32>, vector<126x96xf32> -> vector<128x96xf32>
    %65 = arith.truncf %64 : vector<128x96xf32> to vector<128x96xbf16>
    %c0_34 = arith.constant 0 : index
    %c0_35 = arith.constant 0 : index
    %c0_36 = arith.constant 0 : index
    %66 = vector.load %arg6[%c0_34, %c0_35, %c0_36] : memref<5x96x96xbf16, #tpu.memory_space<vmem>>, vector<1x96x96xbf16>
    %67 = vector.shape_cast %66 : vector<1x96x96xbf16> to vector<96x96xbf16>
    %cst_37 = arith.constant dense<0.000000e+00> : vector<128x96xf32>
    %68 = tpu.matmul %65, %67, %cst_37 {dimension_numbers = #tpu.dot_dimension_numbers<[1], [0], [0], [1], [0, 0, 1, 1], [], []>} : vector<128x96xbf16>, vector<96x96xbf16>, vector<128x96xf32> -> vector<128x96xf32>
    %cst_38 = arith.constant 0.000000e+00 : f32
    %69 = vector.broadcast %cst_38 : f32 to vector<1x96xf32>
    %70 = vector.extract_strided_slice %61 {offsets = [0, 0], sizes = [127, 96], strides = [1, 1]} : vector<128x96xf32> to vector<127x96xf32>
    %71 = tpu.concatenate %69, %70 in 0 : vector<1x96xf32>, vector<127x96xf32> -> vector<128x96xf32>
    %72 = arith.truncf %71 : vector<128x96xf32> to vector<128x96xbf16>
    %c1_39 = arith.constant 1 : index
    %c0_40 = arith.constant 0 : index
    %c0_41 = arith.constant 0 : index
    %73 = vector.load %arg6[%c1_39, %c0_40, %c0_41] : memref<5x96x96xbf16, #tpu.memory_space<vmem>>, vector<1x96x96xbf16>
    %74 = vector.shape_cast %73 : vector<1x96x96xbf16> to vector<96x96xbf16>
    %cst_42 = arith.constant dense<0.000000e+00> : vector<128x96xf32>
    %75 = tpu.matmul %72, %74, %cst_42 {dimension_numbers = #tpu.dot_dimension_numbers<[1], [0], [0], [1], [0, 0, 1, 1], [], []>} : vector<128x96xbf16>, vector<96x96xbf16>, vector<128x96xf32> -> vector<128x96xf32>
    %76 = arith.addf %68, %75 : vector<128x96xf32>
    %77 = arith.truncf %61 : vector<128x96xf32> to vector<128x96xbf16>
    %c2_43 = arith.constant 2 : index
    %c0_44 = arith.constant 0 : index
    %c0_45 = arith.constant 0 : index
    %78 = vector.load %arg6[%c2_43, %c0_44, %c0_45] : memref<5x96x96xbf16, #tpu.memory_space<vmem>>, vector<1x96x96xbf16>
    %79 = vector.shape_cast %78 : vector<1x96x96xbf16> to vector<96x96xbf16>
    %cst_46 = arith.constant dense<0.000000e+00> : vector<128x96xf32>
    %80 = tpu.matmul %77, %79, %cst_46 {dimension_numbers = #tpu.dot_dimension_numbers<[1], [0], [0], [1], [0, 0, 1, 1], [], []>} : vector<128x96xbf16>, vector<96x96xbf16>, vector<128x96xf32> -> vector<128x96xf32>
    %81 = arith.addf %76, %80 : vector<128x96xf32>
    %cst_47 = arith.constant 0.000000e+00 : f32
    %82 = vector.broadcast %cst_47 : f32 to vector<1x96xf32>
    %83 = vector.extract_strided_slice %61 {offsets = [1, 0], sizes = [127, 96], strides = [1, 1]} : vector<128x96xf32> to vector<127x96xf32>
    %84 = tpu.concatenate %83, %82 in 0 : vector<127x96xf32>, vector<1x96xf32> -> vector<128x96xf32>
    %85 = arith.truncf %84 : vector<128x96xf32> to vector<128x96xbf16>
    %c3_48 = arith.constant 3 : index
    %c0_49 = arith.constant 0 : index
    %c0_50 = arith.constant 0 : index
    %86 = vector.load %arg6[%c3_48, %c0_49, %c0_50] : memref<5x96x96xbf16, #tpu.memory_space<vmem>>, vector<1x96x96xbf16>
    %87 = vector.shape_cast %86 : vector<1x96x96xbf16> to vector<96x96xbf16>
    %cst_51 = arith.constant dense<0.000000e+00> : vector<128x96xf32>
    %88 = tpu.matmul %85, %87, %cst_51 {dimension_numbers = #tpu.dot_dimension_numbers<[1], [0], [0], [1], [0, 0, 1, 1], [], []>} : vector<128x96xbf16>, vector<96x96xbf16>, vector<128x96xf32> -> vector<128x96xf32>
    %89 = arith.addf %81, %88 : vector<128x96xf32>
    %cst_52 = arith.constant 0.000000e+00 : f32
    %90 = vector.broadcast %cst_52 : f32 to vector<2x96xf32>
    %91 = vector.extract_strided_slice %61 {offsets = [2, 0], sizes = [126, 96], strides = [1, 1]} : vector<128x96xf32> to vector<126x96xf32>
    %92 = tpu.concatenate %91, %90 in 0 : vector<126x96xf32>, vector<2x96xf32> -> vector<128x96xf32>
    %93 = arith.truncf %92 : vector<128x96xf32> to vector<128x96xbf16>
    %c4_53 = arith.constant 4 : index
    %c0_54 = arith.constant 0 : index
    %c0_55 = arith.constant 0 : index
    %94 = vector.load %arg6[%c4_53, %c0_54, %c0_55] : memref<5x96x96xbf16, #tpu.memory_space<vmem>>, vector<1x96x96xbf16>
    %95 = vector.shape_cast %94 : vector<1x96x96xbf16> to vector<96x96xbf16>
    %cst_56 = arith.constant dense<0.000000e+00> : vector<128x96xf32>
    %96 = tpu.matmul %93, %95, %cst_56 {dimension_numbers = #tpu.dot_dimension_numbers<[1], [0], [0], [1], [0, 0, 1, 1], [], []>} : vector<128x96xbf16>, vector<96x96xbf16>, vector<128x96xf32> -> vector<128x96xf32>
    %97 = arith.addf %89, %96 : vector<128x96xf32>
    %c0_57 = arith.constant 0 : index
    %c0_58 = arith.constant 0 : index
    %98 = vector.load %arg7[%c0_57, %c0_58] : memref<1x96xf32, #tpu.memory_space<vmem>>, vector<1x96xf32>
    %99 = vector.broadcast %98 : vector<1x96xf32> to vector<128x96xf32>
    %100 = arith.addf %97, %99 : vector<128x96xf32>
    %101 = arith.addf %100, %15 : vector<128x96xf32>
    %cst_59 = arith.constant 0.000000e+00 : f32
    %102 = vector.broadcast %cst_59 : f32 to vector<128x96xf32>
    %103 = arith.subf %102, %101 : vector<128x96xf32>
    %104 = math.exp %103 : vector<128x96xf32>
    %cst_60 = arith.constant 1.000000e+00 : f32
    %105 = vector.broadcast %cst_60 : f32 to vector<128x96xf32>
    %106 = arith.addf %105, %104 : vector<128x96xf32>
    %107 = tpu.reciprocal %106 : vector<128x96xf32> -> vector<128x96xf32>
    %108 = arith.mulf %101, %107 : vector<128x96xf32>
    %cst_61 = arith.constant 0.000000e+00 : f32
    %109 = vector.broadcast %cst_61 : f32 to vector<2x96xf32>
    %110 = vector.extract_strided_slice %108 {offsets = [0, 0], sizes = [126, 96], strides = [1, 1]} : vector<128x96xf32> to vector<126x96xf32>
    %111 = tpu.concatenate %109, %110 in 0 : vector<2x96xf32>, vector<126x96xf32> -> vector<128x96xf32>
    %112 = arith.truncf %111 : vector<128x96xf32> to vector<128x96xbf16>
    %c0_62 = arith.constant 0 : index
    %c0_63 = arith.constant 0 : index
    %c0_64 = arith.constant 0 : index
    %113 = vector.load %arg8[%c0_62, %c0_63, %c0_64] : memref<5x96x96xbf16, #tpu.memory_space<vmem>>, vector<1x96x96xbf16>
    %114 = vector.shape_cast %113 : vector<1x96x96xbf16> to vector<96x96xbf16>
    %cst_65 = arith.constant dense<0.000000e+00> : vector<128x96xf32>
    %115 = tpu.matmul %112, %114, %cst_65 {dimension_numbers = #tpu.dot_dimension_numbers<[1], [0], [0], [1], [0, 0, 1, 1], [], []>} : vector<128x96xbf16>, vector<96x96xbf16>, vector<128x96xf32> -> vector<128x96xf32>
    %cst_66 = arith.constant 0.000000e+00 : f32
    %116 = vector.broadcast %cst_66 : f32 to vector<1x96xf32>
    %117 = vector.extract_strided_slice %108 {offsets = [0, 0], sizes = [127, 96], strides = [1, 1]} : vector<128x96xf32> to vector<127x96xf32>
    %118 = tpu.concatenate %116, %117 in 0 : vector<1x96xf32>, vector<127x96xf32> -> vector<128x96xf32>
    %119 = arith.truncf %118 : vector<128x96xf32> to vector<128x96xbf16>
    %c1_67 = arith.constant 1 : index
    %c0_68 = arith.constant 0 : index
    %c0_69 = arith.constant 0 : index
    %120 = vector.load %arg8[%c1_67, %c0_68, %c0_69] : memref<5x96x96xbf16, #tpu.memory_space<vmem>>, vector<1x96x96xbf16>
    %121 = vector.shape_cast %120 : vector<1x96x96xbf16> to vector<96x96xbf16>
    %cst_70 = arith.constant dense<0.000000e+00> : vector<128x96xf32>
    %122 = tpu.matmul %119, %121, %cst_70 {dimension_numbers = #tpu.dot_dimension_numbers<[1], [0], [0], [1], [0, 0, 1, 1], [], []>} : vector<128x96xbf16>, vector<96x96xbf16>, vector<128x96xf32> -> vector<128x96xf32>
    %123 = arith.addf %115, %122 : vector<128x96xf32>
    %124 = arith.truncf %108 : vector<128x96xf32> to vector<128x96xbf16>
    %c2_71 = arith.constant 2 : index
    %c0_72 = arith.constant 0 : index
    %c0_73 = arith.constant 0 : index
    %125 = vector.load %arg8[%c2_71, %c0_72, %c0_73] : memref<5x96x96xbf16, #tpu.memory_space<vmem>>, vector<1x96x96xbf16>
    %126 = vector.shape_cast %125 : vector<1x96x96xbf16> to vector<96x96xbf16>
    %cst_74 = arith.constant dense<0.000000e+00> : vector<128x96xf32>
    %127 = tpu.matmul %124, %126, %cst_74 {dimension_numbers = #tpu.dot_dimension_numbers<[1], [0], [0], [1], [0, 0, 1, 1], [], []>} : vector<128x96xbf16>, vector<96x96xbf16>, vector<128x96xf32> -> vector<128x96xf32>
    %128 = arith.addf %123, %127 : vector<128x96xf32>
    %cst_75 = arith.constant 0.000000e+00 : f32
    %129 = vector.broadcast %cst_75 : f32 to vector<1x96xf32>
    %130 = vector.extract_strided_slice %108 {offsets = [1, 0], sizes = [127, 96], strides = [1, 1]} : vector<128x96xf32> to vector<127x96xf32>
    %131 = tpu.concatenate %130, %129 in 0 : vector<127x96xf32>, vector<1x96xf32> -> vector<128x96xf32>
    %132 = arith.truncf %131 : vector<128x96xf32> to vector<128x96xbf16>
    %c3_76 = arith.constant 3 : index
    %c0_77 = arith.constant 0 : index
    %c0_78 = arith.constant 0 : index
    %133 = vector.load %arg8[%c3_76, %c0_77, %c0_78] : memref<5x96x96xbf16, #tpu.memory_space<vmem>>, vector<1x96x96xbf16>
    %134 = vector.shape_cast %133 : vector<1x96x96xbf16> to vector<96x96xbf16>
    %cst_79 = arith.constant dense<0.000000e+00> : vector<128x96xf32>
    %135 = tpu.matmul %132, %134, %cst_79 {dimension_numbers = #tpu.dot_dimension_numbers<[1], [0], [0], [1], [0, 0, 1, 1], [], []>} : vector<128x96xbf16>, vector<96x96xbf16>, vector<128x96xf32> -> vector<128x96xf32>
    %136 = arith.addf %128, %135 : vector<128x96xf32>
    %cst_80 = arith.constant 0.000000e+00 : f32
    %137 = vector.broadcast %cst_80 : f32 to vector<2x96xf32>
    %138 = vector.extract_strided_slice %108 {offsets = [2, 0], sizes = [126, 96], strides = [1, 1]} : vector<128x96xf32> to vector<126x96xf32>
    %139 = tpu.concatenate %138, %137 in 0 : vector<126x96xf32>, vector<2x96xf32> -> vector<128x96xf32>
    %140 = arith.truncf %139 : vector<128x96xf32> to vector<128x96xbf16>
    %c4_81 = arith.constant 4 : index
    %c0_82 = arith.constant 0 : index
    %c0_83 = arith.constant 0 : index
    %141 = vector.load %arg8[%c4_81, %c0_82, %c0_83] : memref<5x96x96xbf16, #tpu.memory_space<vmem>>, vector<1x96x96xbf16>
    %142 = vector.shape_cast %141 : vector<1x96x96xbf16> to vector<96x96xbf16>
    %cst_84 = arith.constant dense<0.000000e+00> : vector<128x96xf32>
    %143 = tpu.matmul %140, %142, %cst_84 {dimension_numbers = #tpu.dot_dimension_numbers<[1], [0], [0], [1], [0, 0, 1, 1], [], []>} : vector<128x96xbf16>, vector<96x96xbf16>, vector<128x96xf32> -> vector<128x96xf32>
    %144 = arith.addf %136, %143 : vector<128x96xf32>
    %c0_85 = arith.constant 0 : index
    %c0_86 = arith.constant 0 : index
    %145 = vector.load %arg9[%c0_85, %c0_86] : memref<1x96xf32, #tpu.memory_space<vmem>>, vector<1x96xf32>
    %146 = vector.broadcast %145 : vector<1x96xf32> to vector<128x96xf32>
    %147 = arith.addf %144, %146 : vector<128x96xf32>
    %cst_87 = arith.constant 0.000000e+00 : f32
    %148 = vector.broadcast %cst_87 : f32 to vector<128x96xf32>
    %149 = arith.subf %148, %147 : vector<128x96xf32>
    %150 = math.exp %149 : vector<128x96xf32>
    %cst_88 = arith.constant 1.000000e+00 : f32
    %151 = vector.broadcast %cst_88 : f32 to vector<128x96xf32>
    %152 = arith.addf %151, %150 : vector<128x96xf32>
    %153 = tpu.reciprocal %152 : vector<128x96xf32> -> vector<128x96xf32>
    %154 = arith.mulf %147, %153 : vector<128x96xf32>
    %cst_89 = arith.constant 0.000000e+00 : f32
    %155 = vector.broadcast %cst_89 : f32 to vector<2x96xf32>
    %156 = vector.extract_strided_slice %154 {offsets = [0, 0], sizes = [126, 96], strides = [1, 1]} : vector<128x96xf32> to vector<126x96xf32>
    %157 = tpu.concatenate %155, %156 in 0 : vector<2x96xf32>, vector<126x96xf32> -> vector<128x96xf32>
    %158 = arith.truncf %157 : vector<128x96xf32> to vector<128x96xbf16>
    %c0_90 = arith.constant 0 : index
    %c0_91 = arith.constant 0 : index
    %c0_92 = arith.constant 0 : index
    %159 = vector.load %arg10[%c0_90, %c0_91, %c0_92] : memref<5x96x96xbf16, #tpu.memory_space<vmem>>, vector<1x96x96xbf16>
    %160 = vector.shape_cast %159 : vector<1x96x96xbf16> to vector<96x96xbf16>
    %cst_93 = arith.constant dense<0.000000e+00> : vector<128x96xf32>
    %161 = tpu.matmul %158, %160, %cst_93 {dimension_numbers = #tpu.dot_dimension_numbers<[1], [0], [0], [1], [0, 0, 1, 1], [], []>} : vector<128x96xbf16>, vector<96x96xbf16>, vector<128x96xf32> -> vector<128x96xf32>
    %cst_94 = arith.constant 0.000000e+00 : f32
    %162 = vector.broadcast %cst_94 : f32 to vector<1x96xf32>
    %163 = vector.extract_strided_slice %154 {offsets = [0, 0], sizes = [127, 96], strides = [1, 1]} : vector<128x96xf32> to vector<127x96xf32>
    %164 = tpu.concatenate %162, %163 in 0 : vector<1x96xf32>, vector<127x96xf32> -> vector<128x96xf32>
    %165 = arith.truncf %164 : vector<128x96xf32> to vector<128x96xbf16>
    %c1_95 = arith.constant 1 : index
    %c0_96 = arith.constant 0 : index
    %c0_97 = arith.constant 0 : index
    %166 = vector.load %arg10[%c1_95, %c0_96, %c0_97] : memref<5x96x96xbf16, #tpu.memory_space<vmem>>, vector<1x96x96xbf16>
    %167 = vector.shape_cast %166 : vector<1x96x96xbf16> to vector<96x96xbf16>
    %cst_98 = arith.constant dense<0.000000e+00> : vector<128x96xf32>
    %168 = tpu.matmul %165, %167, %cst_98 {dimension_numbers = #tpu.dot_dimension_numbers<[1], [0], [0], [1], [0, 0, 1, 1], [], []>} : vector<128x96xbf16>, vector<96x96xbf16>, vector<128x96xf32> -> vector<128x96xf32>
    %169 = arith.addf %161, %168 : vector<128x96xf32>
    %170 = arith.truncf %154 : vector<128x96xf32> to vector<128x96xbf16>
    %c2_99 = arith.constant 2 : index
    %c0_100 = arith.constant 0 : index
    %c0_101 = arith.constant 0 : index
    %171 = vector.load %arg10[%c2_99, %c0_100, %c0_101] : memref<5x96x96xbf16, #tpu.memory_space<vmem>>, vector<1x96x96xbf16>
    %172 = vector.shape_cast %171 : vector<1x96x96xbf16> to vector<96x96xbf16>
    %cst_102 = arith.constant dense<0.000000e+00> : vector<128x96xf32>
    %173 = tpu.matmul %170, %172, %cst_102 {dimension_numbers = #tpu.dot_dimension_numbers<[1], [0], [0], [1], [0, 0, 1, 1], [], []>} : vector<128x96xbf16>, vector<96x96xbf16>, vector<128x96xf32> -> vector<128x96xf32>
    %174 = arith.addf %169, %173 : vector<128x96xf32>
    %cst_103 = arith.constant 0.000000e+00 : f32
    %175 = vector.broadcast %cst_103 : f32 to vector<1x96xf32>
    %176 = vector.extract_strided_slice %154 {offsets = [1, 0], sizes = [127, 96], strides = [1, 1]} : vector<128x96xf32> to vector<127x96xf32>
    %177 = tpu.concatenate %176, %175 in 0 : vector<127x96xf32>, vector<1x96xf32> -> vector<128x96xf32>
    %178 = arith.truncf %177 : vector<128x96xf32> to vector<128x96xbf16>
    %c3_104 = arith.constant 3 : index
    %c0_105 = arith.constant 0 : index
    %c0_106 = arith.constant 0 : index
    %179 = vector.load %arg10[%c3_104, %c0_105, %c0_106] : memref<5x96x96xbf16, #tpu.memory_space<vmem>>, vector<1x96x96xbf16>
    %180 = vector.shape_cast %179 : vector<1x96x96xbf16> to vector<96x96xbf16>
    %cst_107 = arith.constant dense<0.000000e+00> : vector<128x96xf32>
    %181 = tpu.matmul %178, %180, %cst_107 {dimension_numbers = #tpu.dot_dimension_numbers<[1], [0], [0], [1], [0, 0, 1, 1], [], []>} : vector<128x96xbf16>, vector<96x96xbf16>, vector<128x96xf32> -> vector<128x96xf32>
    %182 = arith.addf %174, %181 : vector<128x96xf32>
    %cst_108 = arith.constant 0.000000e+00 : f32
    %183 = vector.broadcast %cst_108 : f32 to vector<2x96xf32>
    %184 = vector.extract_strided_slice %154 {offsets = [2, 0], sizes = [126, 96], strides = [1, 1]} : vector<128x96xf32> to vector<126x96xf32>
    %185 = tpu.concatenate %184, %183 in 0 : vector<126x96xf32>, vector<2x96xf32> -> vector<128x96xf32>
    %186 = arith.truncf %185 : vector<128x96xf32> to vector<128x96xbf16>
    %c4_109 = arith.constant 4 : index
    %c0_110 = arith.constant 0 : index
    %c0_111 = arith.constant 0 : index
    %187 = vector.load %arg10[%c4_109, %c0_110, %c0_111] : memref<5x96x96xbf16, #tpu.memory_space<vmem>>, vector<1x96x96xbf16>
    %188 = vector.shape_cast %187 : vector<1x96x96xbf16> to vector<96x96xbf16>
    %cst_112 = arith.constant dense<0.000000e+00> : vector<128x96xf32>
    %189 = tpu.matmul %186, %188, %cst_112 {dimension_numbers = #tpu.dot_dimension_numbers<[1], [0], [0], [1], [0, 0, 1, 1], [], []>} : vector<128x96xbf16>, vector<96x96xbf16>, vector<128x96xf32> -> vector<128x96xf32>
    %190 = arith.addf %182, %189 : vector<128x96xf32>
    %c0_113 = arith.constant 0 : index
    %c0_114 = arith.constant 0 : index
    %191 = vector.load %arg11[%c0_113, %c0_114] : memref<1x96xf32, #tpu.memory_space<vmem>>, vector<1x96xf32>
    %192 = vector.broadcast %191 : vector<1x96xf32> to vector<128x96xf32>
    %193 = arith.addf %190, %192 : vector<128x96xf32>
    %194 = arith.addf %193, %108 : vector<128x96xf32>
    %cst_115 = arith.constant 0.000000e+00 : f32
    %195 = vector.broadcast %cst_115 : f32 to vector<128x96xf32>
    %196 = arith.subf %195, %194 : vector<128x96xf32>
    %197 = math.exp %196 : vector<128x96xf32>
    %cst_116 = arith.constant 1.000000e+00 : f32
    %198 = vector.broadcast %cst_116 : f32 to vector<128x96xf32>
    %199 = arith.addf %198, %197 : vector<128x96xf32>
    %200 = tpu.reciprocal %199 : vector<128x96xf32> -> vector<128x96xf32>
    %201 = arith.mulf %194, %200 : vector<128x96xf32>
    %cst_117 = arith.constant 0.000000e+00 : f32
    %202 = vector.broadcast %cst_117 : f32 to vector<2x96xf32>
    %203 = vector.extract_strided_slice %201 {offsets = [0, 0], sizes = [126, 96], strides = [1, 1]} : vector<128x96xf32> to vector<126x96xf32>
    %204 = tpu.concatenate %202, %203 in 0 : vector<2x96xf32>, vector<126x96xf32> -> vector<128x96xf32>
    %205 = arith.truncf %204 : vector<128x96xf32> to vector<128x96xbf16>
    %c0_118 = arith.constant 0 : index
    %c0_119 = arith.constant 0 : index
    %c0_120 = arith.constant 0 : index
    %206 = vector.load %arg12[%c0_118, %c0_119, %c0_120] : memref<4x96x144xbf16, #tpu.memory_space<vmem>>, vector<1x96x144xbf16>
    %207 = vector.shape_cast %206 : vector<1x96x144xbf16> to vector<96x144xbf16>
    %cst_121 = arith.constant dense<0.000000e+00> : vector<128x144xf32>
    %208 = tpu.matmul %205, %207, %cst_121 {dimension_numbers = #tpu.dot_dimension_numbers<[1], [0], [0], [1], [0, 0, 1, 1], [], []>} : vector<128x96xbf16>, vector<96x144xbf16>, vector<128x144xf32> -> vector<128x144xf32>
    %cst_122 = arith.constant 0.000000e+00 : f32
    %209 = vector.broadcast %cst_122 : f32 to vector<1x96xf32>
    %210 = vector.extract_strided_slice %201 {offsets = [0, 0], sizes = [127, 96], strides = [1, 1]} : vector<128x96xf32> to vector<127x96xf32>
    %211 = tpu.concatenate %209, %210 in 0 : vector<1x96xf32>, vector<127x96xf32> -> vector<128x96xf32>
    %212 = arith.truncf %211 : vector<128x96xf32> to vector<128x96xbf16>
    %c1_123 = arith.constant 1 : index
    %c0_124 = arith.constant 0 : index
    %c0_125 = arith.constant 0 : index
    %213 = vector.load %arg12[%c1_123, %c0_124, %c0_125] : memref<4x96x144xbf16, #tpu.memory_space<vmem>>, vector<1x96x144xbf16>
    %214 = vector.shape_cast %213 : vector<1x96x144xbf16> to vector<96x144xbf16>
    %cst_126 = arith.constant dense<0.000000e+00> : vector<128x144xf32>
    %215 = tpu.matmul %212, %214, %cst_126 {dimension_numbers = #tpu.dot_dimension_numbers<[1], [0], [0], [1], [0, 0, 1, 1], [], []>} : vector<128x96xbf16>, vector<96x144xbf16>, vector<128x144xf32> -> vector<128x144xf32>
    %216 = arith.addf %208, %215 : vector<128x144xf32>
    %217 = arith.truncf %201 : vector<128x96xf32> to vector<128x96xbf16>
    %c2_127 = arith.constant 2 : index
    %c0_128 = arith.constant 0 : index
    %c0_129 = arith.constant 0 : index
    %218 = vector.load %arg12[%c2_127, %c0_128, %c0_129] : memref<4x96x144xbf16, #tpu.memory_space<vmem>>, vector<1x96x144xbf16>
    %219 = vector.shape_cast %218 : vector<1x96x144xbf16> to vector<96x144xbf16>
    %cst_130 = arith.constant dense<0.000000e+00> : vector<128x144xf32>
    %220 = tpu.matmul %217, %219, %cst_130 {dimension_numbers = #tpu.dot_dimension_numbers<[1], [0], [0], [1], [0, 0, 1, 1], [], []>} : vector<128x96xbf16>, vector<96x144xbf16>, vector<128x144xf32> -> vector<128x144xf32>
    %221 = arith.addf %216, %220 : vector<128x144xf32>
    %cst_131 = arith.constant 0.000000e+00 : f32
    %222 = vector.broadcast %cst_131 : f32 to vector<1x96xf32>
    %223 = vector.extract_strided_slice %201 {offsets = [1, 0], sizes = [127, 96], strides = [1, 1]} : vector<128x96xf32> to vector<127x96xf32>
    %224 = tpu.concatenate %223, %222 in 0 : vector<127x96xf32>, vector<1x96xf32> -> vector<128x96xf32>
    %225 = arith.truncf %224 : vector<128x96xf32> to vector<128x96xbf16>
    %c3_132 = arith.constant 3 : index
    %c0_133 = arith.constant 0 : index
    %c0_134 = arith.constant 0 : index
    %226 = vector.load %arg12[%c3_132, %c0_133, %c0_134] : memref<4x96x144xbf16, #tpu.memory_space<vmem>>, vector<1x96x144xbf16>
    %227 = vector.shape_cast %226 : vector<1x96x144xbf16> to vector<96x144xbf16>
    %cst_135 = arith.constant dense<0.000000e+00> : vector<128x144xf32>
    %228 = tpu.matmul %225, %227, %cst_135 {dimension_numbers = #tpu.dot_dimension_numbers<[1], [0], [0], [1], [0, 0, 1, 1], [], []>} : vector<128x96xbf16>, vector<96x144xbf16>, vector<128x144xf32> -> vector<128x144xf32>
    %229 = arith.addf %221, %228 : vector<128x144xf32>
    %c0_136 = arith.constant 0 : index
    %c0_137 = arith.constant 0 : index
    %230 = vector.load %arg13[%c0_136, %c0_137] : memref<1x144xf32, #tpu.memory_space<vmem>>, vector<1x144xf32>
    %231 = vector.broadcast %230 : vector<1x144xf32> to vector<128x144xf32>
    %232 = arith.addf %229, %231 : vector<128x144xf32>
    %233 = vector.extract_strided_slice %232 {offsets = [0, 0], sizes = [128, 72], strides = [1, 1]} : vector<128x144xf32> to vector<128x72xf32>
    %cst_138 = arith.constant 0.000000e+00 : f32
    %234 = vector.broadcast %cst_138 : f32 to vector<128x72xf32>
    %235 = arith.subf %234, %233 : vector<128x72xf32>
    %236 = math.exp %235 : vector<128x72xf32>
    %cst_139 = arith.constant 1.000000e+00 : f32
    %237 = vector.broadcast %cst_139 : f32 to vector<128x72xf32>
    %238 = arith.addf %237, %236 : vector<128x72xf32>
    %239 = tpu.reciprocal %238 : vector<128x72xf32> -> vector<128x72xf32>
    %240 = arith.mulf %233, %239 : vector<128x72xf32>
    %cst_140 = arith.constant 0.000000e+00 : f32
    %241 = vector.broadcast %cst_140 : f32 to vector<3x72xf32>
    %242 = vector.extract_strided_slice %240 {offsets = [0, 0], sizes = [125, 72], strides = [1, 1]} : vector<128x72xf32> to vector<125x72xf32>
    %243 = tpu.concatenate %241, %242 in 0 : vector<3x72xf32>, vector<125x72xf32> -> vector<128x72xf32>
    %244 = arith.truncf %243 : vector<128x72xf32> to vector<128x72xbf16>
    %c0_141 = arith.constant 0 : index
    %c0_142 = arith.constant 0 : index
    %c0_143 = arith.constant 0 : index
    %245 = vector.load %arg14[%c0_141, %c0_142, %c0_143] : memref<7x72x72xbf16, #tpu.memory_space<vmem>>, vector<1x72x72xbf16>
    %246 = vector.shape_cast %245 : vector<1x72x72xbf16> to vector<72x72xbf16>
    %cst_144 = arith.constant dense<0.000000e+00> : vector<128x72xf32>
    %247 = tpu.matmul %244, %246, %cst_144 {dimension_numbers = #tpu.dot_dimension_numbers<[1], [0], [0], [1], [0, 0, 1, 1], [], []>} : vector<128x72xbf16>, vector<72x72xbf16>, vector<128x72xf32> -> vector<128x72xf32>
    %cst_145 = arith.constant 0.000000e+00 : f32
    %248 = vector.broadcast %cst_145 : f32 to vector<2x72xf32>
    %249 = vector.extract_strided_slice %240 {offsets = [0, 0], sizes = [126, 72], strides = [1, 1]} : vector<128x72xf32> to vector<126x72xf32>
    %250 = tpu.concatenate %248, %249 in 0 : vector<2x72xf32>, vector<126x72xf32> -> vector<128x72xf32>
    %251 = arith.truncf %250 : vector<128x72xf32> to vector<128x72xbf16>
    %c1_146 = arith.constant 1 : index
    %c0_147 = arith.constant 0 : index
    %c0_148 = arith.constant 0 : index
    %252 = vector.load %arg14[%c1_146, %c0_147, %c0_148] : memref<7x72x72xbf16, #tpu.memory_space<vmem>>, vector<1x72x72xbf16>
    %253 = vector.shape_cast %252 : vector<1x72x72xbf16> to vector<72x72xbf16>
    %cst_149 = arith.constant dense<0.000000e+00> : vector<128x72xf32>
    %254 = tpu.matmul %251, %253, %cst_149 {dimension_numbers = #tpu.dot_dimension_numbers<[1], [0], [0], [1], [0, 0, 1, 1], [], []>} : vector<128x72xbf16>, vector<72x72xbf16>, vector<128x72xf32> -> vector<128x72xf32>
    %255 = arith.addf %247, %254 : vector<128x72xf32>
    %cst_150 = arith.constant 0.000000e+00 : f32
    %256 = vector.broadcast %cst_150 : f32 to vector<1x72xf32>
    %257 = vector.extract_strided_slice %240 {offsets = [0, 0], sizes = [127, 72], strides = [1, 1]} : vector<128x72xf32> to vector<127x72xf32>
    %258 = tpu.concatenate %256, %257 in 0 : vector<1x72xf32>, vector<127x72xf32> -> vector<128x72xf32>
    %259 = arith.truncf %258 : vector<128x72xf32> to vector<128x72xbf16>
    %c2_151 = arith.constant 2 : index
    %c0_152 = arith.constant 0 : index
    %c0_153 = arith.constant 0 : index
    %260 = vector.load %arg14[%c2_151, %c0_152, %c0_153] : memref<7x72x72xbf16, #tpu.memory_space<vmem>>, vector<1x72x72xbf16>
    %261 = vector.shape_cast %260 : vector<1x72x72xbf16> to vector<72x72xbf16>
    %cst_154 = arith.constant dense<0.000000e+00> : vector<128x72xf32>
    %262 = tpu.matmul %259, %261, %cst_154 {dimension_numbers = #tpu.dot_dimension_numbers<[1], [0], [0], [1], [0, 0, 1, 1], [], []>} : vector<128x72xbf16>, vector<72x72xbf16>, vector<128x72xf32> -> vector<128x72xf32>
    %263 = arith.addf %255, %262 : vector<128x72xf32>
    %264 = arith.truncf %240 : vector<128x72xf32> to vector<128x72xbf16>
    %c3_155 = arith.constant 3 : index
    %c0_156 = arith.constant 0 : index
    %c0_157 = arith.constant 0 : index
    %265 = vector.load %arg14[%c3_155, %c0_156, %c0_157] : memref<7x72x72xbf16, #tpu.memory_space<vmem>>, vector<1x72x72xbf16>
    %266 = vector.shape_cast %265 : vector<1x72x72xbf16> to vector<72x72xbf16>
    %cst_158 = arith.constant dense<0.000000e+00> : vector<128x72xf32>
    %267 = tpu.matmul %264, %266, %cst_158 {dimension_numbers = #tpu.dot_dimension_numbers<[1], [0], [0], [1], [0, 0, 1, 1], [], []>} : vector<128x72xbf16>, vector<72x72xbf16>, vector<128x72xf32> -> vector<128x72xf32>
    %268 = arith.addf %263, %267 : vector<128x72xf32>
    %cst_159 = arith.constant 0.000000e+00 : f32
    %269 = vector.broadcast %cst_159 : f32 to vector<1x72xf32>
    %270 = vector.extract_strided_slice %240 {offsets = [1, 0], sizes = [127, 72], strides = [1, 1]} : vector<128x72xf32> to vector<127x72xf32>
    %271 = tpu.concatenate %270, %269 in 0 : vector<127x72xf32>, vector<1x72xf32> -> vector<128x72xf32>
    %272 = arith.truncf %271 : vector<128x72xf32> to vector<128x72xbf16>
    %c4_160 = arith.constant 4 : index
    %c0_161 = arith.constant 0 : index
    %c0_162 = arith.constant 0 : index
    %273 = vector.load %arg14[%c4_160, %c0_161, %c0_162] : memref<7x72x72xbf16, #tpu.memory_space<vmem>>, vector<1x72x72xbf16>
    %274 = vector.shape_cast %273 : vector<1x72x72xbf16> to vector<72x72xbf16>
    %cst_163 = arith.constant dense<0.000000e+00> : vector<128x72xf32>
    %275 = tpu.matmul %272, %274, %cst_163 {dimension_numbers = #tpu.dot_dimension_numbers<[1], [0], [0], [1], [0, 0, 1, 1], [], []>} : vector<128x72xbf16>, vector<72x72xbf16>, vector<128x72xf32> -> vector<128x72xf32>
    %276 = arith.addf %268, %275 : vector<128x72xf32>
    %cst_164 = arith.constant 0.000000e+00 : f32
    %277 = vector.broadcast %cst_164 : f32 to vector<2x72xf32>
    %278 = vector.extract_strided_slice %240 {offsets = [2, 0], sizes = [126, 72], strides = [1, 1]} : vector<128x72xf32> to vector<126x72xf32>
    %279 = tpu.concatenate %278, %277 in 0 : vector<126x72xf32>, vector<2x72xf32> -> vector<128x72xf32>
    %280 = arith.truncf %279 : vector<128x72xf32> to vector<128x72xbf16>
    %c5 = arith.constant 5 : index
    %c0_165 = arith.constant 0 : index
    %c0_166 = arith.constant 0 : index
    %281 = vector.load %arg14[%c5, %c0_165, %c0_166] : memref<7x72x72xbf16, #tpu.memory_space<vmem>>, vector<1x72x72xbf16>
    %282 = vector.shape_cast %281 : vector<1x72x72xbf16> to vector<72x72xbf16>
    %cst_167 = arith.constant dense<0.000000e+00> : vector<128x72xf32>
    %283 = tpu.matmul %280, %282, %cst_167 {dimension_numbers = #tpu.dot_dimension_numbers<[1], [0], [0], [1], [0, 0, 1, 1], [], []>} : vector<128x72xbf16>, vector<72x72xbf16>, vector<128x72xf32> -> vector<128x72xf32>
    %284 = arith.addf %276, %283 : vector<128x72xf32>
    %cst_168 = arith.constant 0.000000e+00 : f32
    %285 = vector.broadcast %cst_168 : f32 to vector<3x72xf32>
    %286 = vector.extract_strided_slice %240 {offsets = [3, 0], sizes = [125, 72], strides = [1, 1]} : vector<128x72xf32> to vector<125x72xf32>
    %287 = tpu.concatenate %286, %285 in 0 : vector<125x72xf32>, vector<3x72xf32> -> vector<128x72xf32>
    %288 = arith.truncf %287 : vector<128x72xf32> to vector<128x72xbf16>
    %c6 = arith.constant 6 : index
    %c0_169 = arith.constant 0 : index
    %c0_170 = arith.constant 0 : index
    %289 = vector.load %arg14[%c6, %c0_169, %c0_170] : memref<7x72x72xbf16, #tpu.memory_space<vmem>>, vector<1x72x72xbf16>
    %290 = vector.shape_cast %289 : vector<1x72x72xbf16> to vector<72x72xbf16>
    %cst_171 = arith.constant dense<0.000000e+00> : vector<128x72xf32>
    %291 = tpu.matmul %288, %290, %cst_171 {dimension_numbers = #tpu.dot_dimension_numbers<[1], [0], [0], [1], [0, 0, 1, 1], [], []>} : vector<128x72xbf16>, vector<72x72xbf16>, vector<128x72xf32> -> vector<128x72xf32>
    %292 = arith.addf %284, %291 : vector<128x72xf32>
    %c0_172 = arith.constant 0 : index
    %c0_173 = arith.constant 0 : index
    %293 = vector.load %arg15[%c0_172, %c0_173] : memref<1x72xf32, #tpu.memory_space<vmem>>, vector<1x72xf32>
    %294 = vector.broadcast %293 : vector<1x72xf32> to vector<128x72xf32>
    %295 = arith.addf %292, %294 : vector<128x72xf32>
    %296 = vector.extract_strided_slice %232 {offsets = [0, 72], sizes = [128, 72], strides = [1, 1]} : vector<128x144xf32> to vector<128x72xf32>
    %297 = arith.addf %295, %296 : vector<128x72xf32>
    %cst_174 = arith.constant 0.000000e+00 : f32
    %298 = vector.broadcast %cst_174 : f32 to vector<128x72xf32>
    %299 = arith.subf %298, %297 : vector<128x72xf32>
    %300 = math.exp %299 : vector<128x72xf32>
    %cst_175 = arith.constant 1.000000e+00 : f32
    %301 = vector.broadcast %cst_175 : f32 to vector<128x72xf32>
    %302 = arith.addf %301, %300 : vector<128x72xf32>
    %303 = tpu.reciprocal %302 : vector<128x72xf32> -> vector<128x72xf32>
    %304 = arith.mulf %297, %303 : vector<128x72xf32>
    %305 = arith.truncf %304 : vector<128x72xf32> to vector<128x72xbf16>
    %c0_176 = arith.constant 0 : index
    %c0_177 = arith.constant 0 : index
    %c0_178 = arith.constant 0 : index
    %306 = vector.load %arg16[%c0_176, %c0_177, %c0_178] : memref<1x128x72xbf16, #tpu.memory_space<vmem>>, vector<1x128x72xbf16>
    %307 = vector.shape_cast %306 : vector<1x128x72xbf16> to vector<128x72xbf16>
    %308 = vector.shape_cast %305 : vector<128x72xbf16> to vector<1x128x72xbf16>
    tpu.vector_store %arg16[%c0_176, %c0_177, %c0_178], %308 {strides = array<i32>} : memref<1x128x72xbf16, #tpu.memory_space<vmem>>, vector<1x128x72xbf16>,
    return
  }
  func.func @transform_0(%arg0: i32) -> (i32, i32, i32) {
    %c0_i32 = arith.constant 0 : i32
    %c0_i32_0 = arith.constant 0 : i32
    %c0_i32_1 = arith.constant 0 : i32
    return %arg0, %c0_i32, %c0_i32_0 : i32, i32, i32
  }
  func.func @transform_1(%arg0: i32) -> (i32, i32, i32) {
    %c0_i32 = arith.constant 0 : i32
    %c0_i32_0 = arith.constant 0 : i32
    %c0_i32_1 = arith.constant 0 : i32
    %c0_i32_2 = arith.constant 0 : i32
    return %c0_i32, %c0_i32_0, %c0_i32_1 : i32, i32, i32
  }
  func.func @transform_2(%arg0: i32) -> (i32, i32) {
    %c0_i32 = arith.constant 0 : i32
    %c0_i32_0 = arith.constant 0 : i32
    %c0_i32_1 = arith.constant 0 : i32
    return %c0_i32, %c0_i32_0 : i32, i32
  }
  func.func @transform_3(%arg0: i32) -> (i32, i32, i32) {
    %c0_i32 = arith.constant 0 : i32
    %c0_i32_0 = arith.constant 0 : i32
    %c0_i32_1 = arith.constant 0 : i32
    %c0_i32_2 = arith.constant 0 : i32
    return %c0_i32, %c0_i32_0, %c0_i32_1 : i32, i32, i32
  }
  func.func @transform_4(%arg0: i32) -> (i32, i32) {
    %c0_i32 = arith.constant 0 : i32
    %c0_i32_0 = arith.constant 0 : i32
    %c0_i32_1 = arith.constant 0 : i32
    return %c0_i32, %c0_i32_0 : i32, i32
  }
  func.func @transform_5(%arg0: i32) -> (i32, i32, i32) {
    %c0_i32 = arith.constant 0 : i32
    %c0_i32_0 = arith.constant 0 : i32
    %c0_i32_1 = arith.constant 0 : i32
    %c0_i32_2 = arith.constant 0 : i32
    return %c0_i32, %c0_i32_0, %c0_i32_1 : i32, i32, i32
  }
  func.func @transform_6(%arg0: i32) -> (i32, i32) {
    %c0_i32 = arith.constant 0 : i32
    %c0_i32_0 = arith.constant 0 : i32
    %c0_i32_1 = arith.constant 0 : i32
    return %c0_i32, %c0_i32_0 : i32, i32
  }
  func.func @transform_7(%arg0: i32) -> (i32, i32, i32) {
    %c0_i32 = arith.constant 0 : i32
    %c0_i32_0 = arith.constant 0 : i32
    %c0_i32_1 = arith.constant 0 : i32
    %c0_i32_2 = arith.constant 0 : i32
    return %c0_i32, %c0_i32_0, %c0_i32_1 : i32, i32, i32
  }
  func.func @transform_8(%arg0: i32) -> (i32, i32) {
    %c0_i32 = arith.constant 0 : i32
    %c0_i32_0 = arith.constant 0 : i32
    %c0_i32_1 = arith.constant 0 : i32
    return %c0_i32, %c0_i32_0 : i32, i32
  }
  func.func @transform_9(%arg0: i32) -> (i32, i32, i32) {
    %c0_i32 = arith.constant 0 : i32
    %c0_i32_0 = arith.constant 0 : i32
    %c0_i32_1 = arith.constant 0 : i32
    %c0_i32_2 = arith.constant 0 : i32
    return %c0_i32, %c0_i32_0, %c0_i32_1 : i32, i32, i32
  }
  func.func @transform_10(%arg0: i32) -> (i32, i32) {
    %c0_i32 = arith.constant 0 : i32
    %c0_i32_0 = arith.constant 0 : i32
    %c0_i32_1 = arith.constant 0 : i32
    return %c0_i32, %c0_i32_0 : i32, i32
  }
  func.func @transform_11(%arg0: i32) -> (i32, i32, i32) {
    %c0_i32 = arith.constant 0 : i32
    %c0_i32_0 = arith.constant 0 : i32
    %c0_i32_1 = arith.constant 0 : i32
    %c0_i32_2 = arith.constant 0 : i32
    return %c0_i32, %c0_i32_0, %c0_i32_1 : i32, i32, i32
  }
  func.func @transform_12(%arg0: i32) -> (i32, i32) {
    %c0_i32 = arith.constant 0 : i32
    %c0_i32_0 = arith.constant 0 : i32
    %c0_i32_1 = arith.constant 0 : i32
    return %c0_i32, %c0_i32_0 : i32, i32
  }
  func.func @transform_13(%arg0: i32) -> (i32, i32, i32) {
    %c0_i32 = arith.constant 0 : i32
    %c0_i32_0 = arith.constant 0 : i32
    %c0_i32_1 = arith.constant 0 : i32
    %c0_i32_2 = arith.constant 0 : i32
    return %c0_i32, %c0_i32_0, %c0_i32_1 : i32, i32, i32
  }
  func.func @transform_14(%arg0: i32) -> (i32, i32) {
    %c0_i32 = arith.constant 0 : i32
    %c0_i32_0 = arith.constant 0 : i32
    %c0_i32_1 = arith.constant 0 : i32
    return %c0_i32, %c0_i32_0 : i32, i32
  }
  func.func @transform_15(%arg0: i32) -> (i32, i32, i32) {
    %c0_i32 = arith.constant 0 : i32
    %c0_i32_0 = arith.constant 0 : i32
    %c0_i32_1 = arith.constant 0 : i32
    return %arg0, %c0_i32, %c0_i32_0 : i32, i32, i32
  }
}

module attributes {stable_mosaic.version = 11 : i64} {
  func.func @_trunk_b_vq_kernel(%arg0: i32, %arg1: memref<1x32x288xbf16, #tpu.memory_space<vmem>>, %arg2: memref<3x288x384xbf16, #tpu.memory_space<vmem>>, %arg3: memref<1x384xf32, #tpu.memory_space<vmem>>, %arg4: memref<5x192x192xbf16, #tpu.memory_space<vmem>>, %arg5: memref<1x192xf32, #tpu.memory_space<vmem>>, %arg6: memref<128x32xf32, #tpu.memory_space<vmem>>, %arg7: memref<32x128xf32, #tpu.memory_space<vmem>>, %arg8: memref<1x128xf32, #tpu.memory_space<vmem>>, %arg9: memref<1x32x32xf32, #tpu.memory_space<vmem>>, %arg10: memref<1x32x32xf32, #tpu.memory_space<vmem>>, %arg11: memref<1x32x64xf32, #tpu.memory_space<vmem>>, %arg12: memref<1x32x1xi32, #tpu.memory_space<vmem>>) attributes {dimension_semantics = [#tpu.dimension_semantics<parallel>], iteration_bounds = array<i64: 2>, scalar_prefetch = 0 : i64, scratch_operands = 0 : i64, tpu.core_type = #tpu.core_type<tc>, window_params = [{transform_indices = @transform_0, window_bounds = array<i64: 1, 32, 288>}, {pipeline_mode = #tpu.pipeline_mode<synchronous>, transform_indices = @transform_1, window_bounds = array<i64: 3, 288, 384>}, {pipeline_mode = #tpu.pipeline_mode<synchronous>, transform_indices = @transform_2, window_bounds = array<i64: 1, 384>}, {pipeline_mode = #tpu.pipeline_mode<synchronous>, transform_indices = @transform_3, window_bounds = array<i64: 5, 192, 192>}, {pipeline_mode = #tpu.pipeline_mode<synchronous>, transform_indices = @transform_4, window_bounds = array<i64: 1, 192>}, {pipeline_mode = #tpu.pipeline_mode<synchronous>, transform_indices = @transform_5, window_bounds = array<i64: 128, 32>}, {pipeline_mode = #tpu.pipeline_mode<synchronous>, transform_indices = @transform_6, window_bounds = array<i64: 32, 128>}, {pipeline_mode = #tpu.pipeline_mode<synchronous>, transform_indices = @transform_7, window_bounds = array<i64: 1, 128>}, {transform_indices = @transform_8, window_bounds = array<i64: 1, 32, 32>}, {transform_indices = @transform_9, window_bounds = array<i64: 1, 32, 32>}, {transform_indices = @transform_10, window_bounds = array<i64: 1, 32, 64>}, {transform_indices = @transform_11, window_bounds = array<i64: 1, 32, 1>}]} {
    %c0 = arith.constant 0 : index
    %c0_0 = arith.constant 0 : index
    %c0_1 = arith.constant 0 : index
    %0 = vector.load %arg1[%c0, %c0_0, %c0_1] : memref<1x32x288xbf16, #tpu.memory_space<vmem>>, vector<1x32x288xbf16>
    %1 = vector.shape_cast %0 : vector<1x32x288xbf16> to vector<32x288xbf16>
    %2 = arith.extf %1 : vector<32x288xbf16> to vector<32x288xf32>
    %cst = arith.constant 0.000000e+00 : f32
    %3 = vector.broadcast %cst : f32 to vector<1x288xf32>
    %4 = vector.extract_strided_slice %2 {offsets = [0, 0], sizes = [31, 288], strides = [1, 1]} : vector<32x288xf32> to vector<31x288xf32>
    %5 = tpu.concatenate %3, %4 in 0 : vector<1x288xf32>, vector<31x288xf32> -> vector<32x288xf32>
    %6 = arith.truncf %5 : vector<32x288xf32> to vector<32x288xbf16>
    %c0_2 = arith.constant 0 : index
    %c0_3 = arith.constant 0 : index
    %c0_4 = arith.constant 0 : index
    %7 = vector.load %arg2[%c0_2, %c0_3, %c0_4] : memref<3x288x384xbf16, #tpu.memory_space<vmem>>, vector<1x288x384xbf16>
    %8 = vector.shape_cast %7 : vector<1x288x384xbf16> to vector<288x384xbf16>
    %cst_5 = arith.constant dense<0.000000e+00> : vector<32x384xf32>
    %9 = tpu.matmul %6, %8, %cst_5 {dimension_numbers = #tpu.dot_dimension_numbers<[1], [0], [0], [1], [0, 0, 1, 1], [], []>} : vector<32x288xbf16>, vector<288x384xbf16>, vector<32x384xf32> -> vector<32x384xf32>
    %10 = arith.truncf %2 : vector<32x288xf32> to vector<32x288xbf16>
    %c1 = arith.constant 1 : index
    %c0_6 = arith.constant 0 : index
    %c0_7 = arith.constant 0 : index
    %11 = vector.load %arg2[%c1, %c0_6, %c0_7] : memref<3x288x384xbf16, #tpu.memory_space<vmem>>, vector<1x288x384xbf16>
    %12 = vector.shape_cast %11 : vector<1x288x384xbf16> to vector<288x384xbf16>
    %cst_8 = arith.constant dense<0.000000e+00> : vector<32x384xf32>
    %13 = tpu.matmul %10, %12, %cst_8 {dimension_numbers = #tpu.dot_dimension_numbers<[1], [0], [0], [1], [0, 0, 1, 1], [], []>} : vector<32x288xbf16>, vector<288x384xbf16>, vector<32x384xf32> -> vector<32x384xf32>
    %14 = arith.addf %9, %13 : vector<32x384xf32>
    %cst_9 = arith.constant 0.000000e+00 : f32
    %15 = vector.broadcast %cst_9 : f32 to vector<1x288xf32>
    %16 = vector.extract_strided_slice %2 {offsets = [1, 0], sizes = [31, 288], strides = [1, 1]} : vector<32x288xf32> to vector<31x288xf32>
    %17 = tpu.concatenate %16, %15 in 0 : vector<31x288xf32>, vector<1x288xf32> -> vector<32x288xf32>
    %18 = arith.truncf %17 : vector<32x288xf32> to vector<32x288xbf16>
    %c2 = arith.constant 2 : index
    %c0_10 = arith.constant 0 : index
    %c0_11 = arith.constant 0 : index
    %19 = vector.load %arg2[%c2, %c0_10, %c0_11] : memref<3x288x384xbf16, #tpu.memory_space<vmem>>, vector<1x288x384xbf16>
    %20 = vector.shape_cast %19 : vector<1x288x384xbf16> to vector<288x384xbf16>
    %cst_12 = arith.constant dense<0.000000e+00> : vector<32x384xf32>
    %21 = tpu.matmul %18, %20, %cst_12 {dimension_numbers = #tpu.dot_dimension_numbers<[1], [0], [0], [1], [0, 0, 1, 1], [], []>} : vector<32x288xbf16>, vector<288x384xbf16>, vector<32x384xf32> -> vector<32x384xf32>
    %22 = arith.addf %14, %21 : vector<32x384xf32>
    %c0_13 = arith.constant 0 : index
    %c0_14 = arith.constant 0 : index
    %23 = vector.load %arg3[%c0_13, %c0_14] : memref<1x384xf32, #tpu.memory_space<vmem>>, vector<1x384xf32>
    %24 = vector.broadcast %23 : vector<1x384xf32> to vector<32x384xf32>
    %25 = arith.addf %22, %24 : vector<32x384xf32>
    %26 = vector.extract_strided_slice %25 {offsets = [0, 0], sizes = [32, 192], strides = [1, 1]} : vector<32x384xf32> to vector<32x192xf32>
    %cst_15 = arith.constant 0.000000e+00 : f32
    %27 = vector.broadcast %cst_15 : f32 to vector<32x192xf32>
    %28 = arith.subf %27, %26 : vector<32x192xf32>
    %29 = math.exp %28 : vector<32x192xf32>
    %cst_16 = arith.constant 1.000000e+00 : f32
    %30 = vector.broadcast %cst_16 : f32 to vector<32x192xf32>
    %31 = arith.addf %30, %29 : vector<32x192xf32>
    %32 = tpu.reciprocal %31 : vector<32x192xf32> -> vector<32x192xf32>
    %33 = arith.mulf %26, %32 : vector<32x192xf32>
    %cst_17 = arith.constant 0.000000e+00 : f32
    %34 = vector.broadcast %cst_17 : f32 to vector<2x192xf32>
    %35 = vector.extract_strided_slice %33 {offsets = [0, 0], sizes = [30, 192], strides = [1, 1]} : vector<32x192xf32> to vector<30x192xf32>
    %36 = tpu.concatenate %34, %35 in 0 : vector<2x192xf32>, vector<30x192xf32> -> vector<32x192xf32>
    %37 = arith.truncf %36 : vector<32x192xf32> to vector<32x192xbf16>
    %c0_18 = arith.constant 0 : index
    %c0_19 = arith.constant 0 : index
    %c0_20 = arith.constant 0 : index
    %38 = vector.load %arg4[%c0_18, %c0_19, %c0_20] : memref<5x192x192xbf16, #tpu.memory_space<vmem>>, vector<1x192x192xbf16>
    %39 = vector.shape_cast %38 : vector<1x192x192xbf16> to vector<192x192xbf16>
    %cst_21 = arith.constant dense<0.000000e+00> : vector<32x192xf32>
    %40 = tpu.matmul %37, %39, %cst_21 {dimension_numbers = #tpu.dot_dimension_numbers<[1], [0], [0], [1], [0, 0, 1, 1], [], []>} : vector<32x192xbf16>, vector<192x192xbf16>, vector<32x192xf32> -> vector<32x192xf32>
    %cst_22 = arith.constant 0.000000e+00 : f32
    %41 = vector.broadcast %cst_22 : f32 to vector<1x192xf32>
    %42 = vector.extract_strided_slice %33 {offsets = [0, 0], sizes = [31, 192], strides = [1, 1]} : vector<32x192xf32> to vector<31x192xf32>
    %43 = tpu.concatenate %41, %42 in 0 : vector<1x192xf32>, vector<31x192xf32> -> vector<32x192xf32>
    %44 = arith.truncf %43 : vector<32x192xf32> to vector<32x192xbf16>
    %c1_23 = arith.constant 1 : index
    %c0_24 = arith.constant 0 : index
    %c0_25 = arith.constant 0 : index
    %45 = vector.load %arg4[%c1_23, %c0_24, %c0_25] : memref<5x192x192xbf16, #tpu.memory_space<vmem>>, vector<1x192x192xbf16>
    %46 = vector.shape_cast %45 : vector<1x192x192xbf16> to vector<192x192xbf16>
    %cst_26 = arith.constant dense<0.000000e+00> : vector<32x192xf32>
    %47 = tpu.matmul %44, %46, %cst_26 {dimension_numbers = #tpu.dot_dimension_numbers<[1], [0], [0], [1], [0, 0, 1, 1], [], []>} : vector<32x192xbf16>, vector<192x192xbf16>, vector<32x192xf32> -> vector<32x192xf32>
    %48 = arith.addf %40, %47 : vector<32x192xf32>
    %49 = arith.truncf %33 : vector<32x192xf32> to vector<32x192xbf16>
    %c2_27 = arith.constant 2 : index
    %c0_28 = arith.constant 0 : index
    %c0_29 = arith.constant 0 : index
    %50 = vector.load %arg4[%c2_27, %c0_28, %c0_29] : memref<5x192x192xbf16, #tpu.memory_space<vmem>>, vector<1x192x192xbf16>
    %51 = vector.shape_cast %50 : vector<1x192x192xbf16> to vector<192x192xbf16>
    %cst_30 = arith.constant dense<0.000000e+00> : vector<32x192xf32>
    %52 = tpu.matmul %49, %51, %cst_30 {dimension_numbers = #tpu.dot_dimension_numbers<[1], [0], [0], [1], [0, 0, 1, 1], [], []>} : vector<32x192xbf16>, vector<192x192xbf16>, vector<32x192xf32> -> vector<32x192xf32>
    %53 = arith.addf %48, %52 : vector<32x192xf32>
    %cst_31 = arith.constant 0.000000e+00 : f32
    %54 = vector.broadcast %cst_31 : f32 to vector<1x192xf32>
    %55 = vector.extract_strided_slice %33 {offsets = [1, 0], sizes = [31, 192], strides = [1, 1]} : vector<32x192xf32> to vector<31x192xf32>
    %56 = tpu.concatenate %55, %54 in 0 : vector<31x192xf32>, vector<1x192xf32> -> vector<32x192xf32>
    %57 = arith.truncf %56 : vector<32x192xf32> to vector<32x192xbf16>
    %c3 = arith.constant 3 : index
    %c0_32 = arith.constant 0 : index
    %c0_33 = arith.constant 0 : index
    %58 = vector.load %arg4[%c3, %c0_32, %c0_33] : memref<5x192x192xbf16, #tpu.memory_space<vmem>>, vector<1x192x192xbf16>
    %59 = vector.shape_cast %58 : vector<1x192x192xbf16> to vector<192x192xbf16>
    %cst_34 = arith.constant dense<0.000000e+00> : vector<32x192xf32>
    %60 = tpu.matmul %57, %59, %cst_34 {dimension_numbers = #tpu.dot_dimension_numbers<[1], [0], [0], [1], [0, 0, 1, 1], [], []>} : vector<32x192xbf16>, vector<192x192xbf16>, vector<32x192xf32> -> vector<32x192xf32>
    %61 = arith.addf %53, %60 : vector<32x192xf32>
    %cst_35 = arith.constant 0.000000e+00 : f32
    %62 = vector.broadcast %cst_35 : f32 to vector<2x192xf32>
    %63 = vector.extract_strided_slice %33 {offsets = [2, 0], sizes = [30, 192], strides = [1, 1]} : vector<32x192xf32> to vector<30x192xf32>
    %64 = tpu.concatenate %63, %62 in 0 : vector<30x192xf32>, vector<2x192xf32> -> vector<32x192xf32>
    %65 = arith.truncf %64 : vector<32x192xf32> to vector<32x192xbf16>
    %c4 = arith.constant 4 : index
    %c0_36 = arith.constant 0 : index
    %c0_37 = arith.constant 0 : index
    %66 = vector.load %arg4[%c4, %c0_36, %c0_37] : memref<5x192x192xbf16, #tpu.memory_space<vmem>>, vector<1x192x192xbf16>
    %67 = vector.shape_cast %66 : vector<1x192x192xbf16> to vector<192x192xbf16>
    %cst_38 = arith.constant dense<0.000000e+00> : vector<32x192xf32>
    %68 = tpu.matmul %65, %67, %cst_38 {dimension_numbers = #tpu.dot_dimension_numbers<[1], [0], [0], [1], [0, 0, 1, 1], [], []>} : vector<32x192xbf16>, vector<192x192xbf16>, vector<32x192xf32> -> vector<32x192xf32>
    %69 = arith.addf %61, %68 : vector<32x192xf32>
    %c0_39 = arith.constant 0 : index
    %c0_40 = arith.constant 0 : index
    %70 = vector.load %arg5[%c0_39, %c0_40] : memref<1x192xf32, #tpu.memory_space<vmem>>, vector<1x192xf32>
    %71 = vector.broadcast %70 : vector<1x192xf32> to vector<32x192xf32>
    %72 = arith.addf %69, %71 : vector<32x192xf32>
    %73 = vector.extract_strided_slice %25 {offsets = [0, 192], sizes = [32, 192], strides = [1, 1]} : vector<32x384xf32> to vector<32x192xf32>
    %74 = arith.addf %72, %73 : vector<32x192xf32>
    %cst_41 = arith.constant 0.000000e+00 : f32
    %75 = vector.broadcast %cst_41 : f32 to vector<32x192xf32>
    %76 = arith.subf %75, %74 : vector<32x192xf32>
    %77 = math.exp %76 : vector<32x192xf32>
    %cst_42 = arith.constant 1.000000e+00 : f32
    %78 = vector.broadcast %cst_42 : f32 to vector<32x192xf32>
    %79 = arith.addf %78, %77 : vector<32x192xf32>
    %80 = tpu.reciprocal %79 : vector<32x192xf32> -> vector<32x192xf32>
    %81 = arith.mulf %74, %80 : vector<32x192xf32>
    %82 = vector.extract_strided_slice %81 {offsets = [0, 0], sizes = [32, 32], strides = [1, 1]} : vector<32x192xf32> to vector<32x32xf32>
    %83 = vector.extract_strided_slice %81 {offsets = [0, 32], sizes = [32, 32], strides = [1, 1]} : vector<32x192xf32> to vector<32x32xf32>
    %84 = arith.addf %82, %83 : vector<32x32xf32>
    %85 = vector.extract_strided_slice %81 {offsets = [0, 64], sizes = [32, 32], strides = [1, 1]} : vector<32x192xf32> to vector<32x32xf32>
    %86 = arith.addf %84, %85 : vector<32x32xf32>
    %87 = vector.extract_strided_slice %81 {offsets = [0, 96], sizes = [32, 32], strides = [1, 1]} : vector<32x192xf32> to vector<32x32xf32>
    %88 = arith.addf %86, %87 : vector<32x32xf32>
    %89 = vector.extract_strided_slice %81 {offsets = [0, 128], sizes = [32, 32], strides = [1, 1]} : vector<32x192xf32> to vector<32x32xf32>
    %90 = arith.addf %88, %89 : vector<32x32xf32>
    %91 = vector.extract_strided_slice %81 {offsets = [0, 160], sizes = [32, 32], strides = [1, 1]} : vector<32x192xf32> to vector<32x32xf32>
    %92 = arith.addf %90, %91 : vector<32x32xf32>
    %cst_43 = arith.constant 0.166666672 : f32
    %93 = vector.broadcast %cst_43 : f32 to vector<32x32xf32>
    %94 = arith.mulf %92, %93 : vector<32x32xf32>
    %c0_44 = arith.constant 0 : index
    %c0_45 = arith.constant 0 : index
    %95 = vector.load %arg7[%c0_44, %c0_45] : memref<32x128xf32, #tpu.memory_space<vmem>>, vector<32x128xf32>
    %cst_46 = arith.constant dense<0.000000e+00> : vector<32x128xf32>
    %96 = tpu.matmul %94, %95, %cst_46 {dimension_numbers = #tpu.dot_dimension_numbers<[1], [0], [0], [1], [0, 0, 1, 1], [], []>} : vector<32x32xf32>, vector<32x128xf32>, vector<32x128xf32> -> vector<32x128xf32>
    %c0_47 = arith.constant 0 : index
    %c0_48 = arith.constant 0 : index
    %97 = vector.load %arg8[%c0_47, %c0_48] : memref<1x128xf32, #tpu.memory_space<vmem>>, vector<1x128xf32>
    %cst_49 = arith.constant 2.000000e+00 : f32
    %98 = vector.broadcast %cst_49 : f32 to vector<32x128xf32>
    %99 = arith.mulf %98, %96 : vector<32x128xf32>
    %100 = vector.broadcast %97 : vector<1x128xf32> to vector<32x128xf32>
    %101 = arith.subf %100, %99 : vector<32x128xf32>
    %102 = tpu.iota {dimensions = array<i32: 1>} : vector<32x128xi32>
    %cst_50 = arith.constant dense<0x7F800000> : vector<32xf32>
    %103 = vector.multi_reduction <minimumf>, %101, %cst_50 [1] : vector<32x128xf32> to vector<32xf32>
    %104 = vector.shape_cast %103 : vector<32xf32> to vector<32x1xf32>
    %105 = vector.broadcast %104 : vector<32x1xf32> to vector<32x128xf32>
    %106 = arith.cmpf ole, %101, %105 : vector<32x128xf32>
    %c128_i32 = arith.constant 128 : i32
    %107 = vector.broadcast %c128_i32 : i32 to vector<32x128xi32>
    %108 = arith.select %106, %102, %107 : vector<32x128xi1>, vector<32x128xi32>
    %cst_51 = arith.constant dense<2147483647> : vector<32xi32>
    %109 = vector.multi_reduction <minsi>, %108, %cst_51 [1] : vector<32x128xi32> to vector<32xi32>
    %110 = vector.shape_cast %109 : vector<32xi32> to vector<32x1xi32>
    %111 = vector.broadcast %110 : vector<32x1xi32> to vector<32x128xi32>
    %112 = arith.cmpi eq, %102, %111 : vector<32x128xi32>
    %113 = arith.extui %112 : vector<32x128xi1> to vector<32x128xi32>
    %114 = arith.sitofp %113 : vector<32x128xi32> to vector<32x128xf32>
    %c0_52 = arith.constant 0 : index
    %c0_53 = arith.constant 0 : index
    %115 = vector.load %arg6[%c0_52, %c0_53] : memref<128x32xf32, #tpu.memory_space<vmem>>, vector<128x32xf32>
    %cst_54 = arith.constant dense<0.000000e+00> : vector<32x32xf32>
    %116 = tpu.matmul %114, %115, %cst_54 {dimension_numbers = #tpu.dot_dimension_numbers<[1], [0], [0], [1], [0, 0, 1, 1], [], []>} : vector<32x128xf32>, vector<128x32xf32>, vector<32x32xf32> -> vector<32x32xf32>
    %c0_55 = arith.constant 0 : index
    %c0_56 = arith.constant 0 : index
    %c0_57 = arith.constant 0 : index
    %117 = vector.load %arg9[%c0_55, %c0_56, %c0_57] : memref<1x32x32xf32, #tpu.memory_space<vmem>>, vector<1x32x32xf32>
    %118 = vector.shape_cast %117 : vector<1x32x32xf32> to vector<32x32xf32>
    %119 = vector.shape_cast %94 : vector<32x32xf32> to vector<1x32x32xf32>
    tpu.vector_store %arg9[%c0_55, %c0_56, %c0_57], %119 {strides = array<i32>} : memref<1x32x32xf32, #tpu.memory_space<vmem>>, vector<1x32x32xf32>,
    %c0_58 = arith.constant 0 : index
    %c0_59 = arith.constant 0 : index
    %c0_60 = arith.constant 0 : index
    %120 = vector.load %arg10[%c0_58, %c0_59, %c0_60] : memref<1x32x32xf32, #tpu.memory_space<vmem>>, vector<1x32x32xf32>
    %121 = vector.shape_cast %120 : vector<1x32x32xf32> to vector<32x32xf32>
    %122 = vector.shape_cast %116 : vector<32x32xf32> to vector<1x32x32xf32>
    tpu.vector_store %arg10[%c0_58, %c0_59, %c0_60], %122 {strides = array<i32>} : memref<1x32x32xf32, #tpu.memory_space<vmem>>, vector<1x32x32xf32>,
    %123 = vector.extract_strided_slice %114 {offsets = [0, 0], sizes = [32, 64], strides = [1, 1]} : vector<32x128xf32> to vector<32x64xf32>
    %c0_61 = arith.constant 0 : index
    %c0_62 = arith.constant 0 : index
    %c0_63 = arith.constant 0 : index
    %124 = vector.load %arg11[%c0_61, %c0_62, %c0_63] : memref<1x32x64xf32, #tpu.memory_space<vmem>>, vector<1x32x64xf32>
    %125 = vector.shape_cast %124 : vector<1x32x64xf32> to vector<32x64xf32>
    %126 = vector.shape_cast %123 : vector<32x64xf32> to vector<1x32x64xf32>
    tpu.vector_store %arg11[%c0_61, %c0_62, %c0_63], %126 {strides = array<i32>} : memref<1x32x64xf32, #tpu.memory_space<vmem>>, vector<1x32x64xf32>,
    %c0_64 = arith.constant 0 : index
    %c0_65 = arith.constant 0 : index
    %c0_66 = arith.constant 0 : index
    %127 = vector.load %arg12[%c0_64, %c0_65, %c0_66] : memref<1x32x1xi32, #tpu.memory_space<vmem>>, vector<1x32x1xi32>
    %128 = vector.shape_cast %127 : vector<1x32x1xi32> to vector<32x1xi32>
    %129 = vector.shape_cast %110 : vector<32x1xi32> to vector<1x32x1xi32>
    tpu.vector_store %arg12[%c0_64, %c0_65, %c0_66], %129 {strides = array<i32>} : memref<1x32x1xi32, #tpu.memory_space<vmem>>, vector<1x32x1xi32>,
    return
  }
  func.func @transform_0(%arg0: i32) -> (i32, i32, i32) {
    %c0_i32 = arith.constant 0 : i32
    %c0_i32_0 = arith.constant 0 : i32
    %c0_i32_1 = arith.constant 0 : i32
    return %arg0, %c0_i32, %c0_i32_0 : i32, i32, i32
  }
  func.func @transform_1(%arg0: i32) -> (i32, i32, i32) {
    %c0_i32 = arith.constant 0 : i32
    %c0_i32_0 = arith.constant 0 : i32
    %c0_i32_1 = arith.constant 0 : i32
    %c0_i32_2 = arith.constant 0 : i32
    return %c0_i32, %c0_i32_0, %c0_i32_1 : i32, i32, i32
  }
  func.func @transform_2(%arg0: i32) -> (i32, i32) {
    %c0_i32 = arith.constant 0 : i32
    %c0_i32_0 = arith.constant 0 : i32
    %c0_i32_1 = arith.constant 0 : i32
    return %c0_i32, %c0_i32_0 : i32, i32
  }
  func.func @transform_3(%arg0: i32) -> (i32, i32, i32) {
    %c0_i32 = arith.constant 0 : i32
    %c0_i32_0 = arith.constant 0 : i32
    %c0_i32_1 = arith.constant 0 : i32
    %c0_i32_2 = arith.constant 0 : i32
    return %c0_i32, %c0_i32_0, %c0_i32_1 : i32, i32, i32
  }
  func.func @transform_4(%arg0: i32) -> (i32, i32) {
    %c0_i32 = arith.constant 0 : i32
    %c0_i32_0 = arith.constant 0 : i32
    %c0_i32_1 = arith.constant 0 : i32
    return %c0_i32, %c0_i32_0 : i32, i32
  }
  func.func @transform_5(%arg0: i32) -> (i32, i32) {
    %c0_i32 = arith.constant 0 : i32
    %c0_i32_0 = arith.constant 0 : i32
    %c0_i32_1 = arith.constant 0 : i32
    return %c0_i32, %c0_i32_0 : i32, i32
  }
  func.func @transform_6(%arg0: i32) -> (i32, i32) {
    %c0_i32 = arith.constant 0 : i32
    %c0_i32_0 = arith.constant 0 : i32
    %c0_i32_1 = arith.constant 0 : i32
    return %c0_i32, %c0_i32_0 : i32, i32
  }
  func.func @transform_7(%arg0: i32) -> (i32, i32) {
    %c0_i32 = arith.constant 0 : i32
    %c0_i32_0 = arith.constant 0 : i32
    %c0_i32_1 = arith.constant 0 : i32
    return %c0_i32, %c0_i32_0 : i32, i32
  }
  func.func @transform_8(%arg0: i32) -> (i32, i32, i32) {
    %c0_i32 = arith.constant 0 : i32
    %c0_i32_0 = arith.constant 0 : i32
    %c0_i32_1 = arith.constant 0 : i32
    return %arg0, %c0_i32, %c0_i32_0 : i32, i32, i32
  }
  func.func @transform_9(%arg0: i32) -> (i32, i32, i32) {
    %c0_i32 = arith.constant 0 : i32
    %c0_i32_0 = arith.constant 0 : i32
    %c0_i32_1 = arith.constant 0 : i32
    return %arg0, %c0_i32, %c0_i32_0 : i32, i32, i32
  }
  func.func @transform_10(%arg0: i32) -> (i32, i32, i32) {
    %c0_i32 = arith.constant 0 : i32
    %c0_i32_0 = arith.constant 0 : i32
    %c0_i32_1 = arith.constant 0 : i32
    return %arg0, %c0_i32, %c0_i32_0 : i32, i32, i32
  }
  func.func @transform_11(%arg0: i32) -> (i32, i32, i32) {
    %c0_i32 = arith.constant 0 : i32
    %c0_i32_0 = arith.constant 0 : i32
    %c0_i32_1 = arith.constant 0 : i32
    return %arg0, %c0_i32, %c0_i32_0 : i32, i32, i32
  }
}

</mosaic_0001>

<bundles_post_ra>
// kernel: _lambda_.3
= control target key start
LH: loop header
LB: loop body
LE: loop exit
PB: predicated region body
PF: predicated region fallthrough
CT: control target
= control target key end

     0   :  { %s7742_s0 = inlined_call_operand.vmem [shape: bf16[2,32,288], index: 0, kind: input, shape index: {}]   ;;  %s7743_s1 = inlined_call_operand.vmem [shape: bf16[3,288,384], index: 1, kind: input, shape index: {}]   ;;  %s7744_s2 = inlined_call_operand.vmem [shape: f32[1,384], index: 2, kind: input, shape index: {}]   ;;  %s7745_s3 = inlined_call_operand.vmem [shape: bf16[5,192,192], index: 3, kind: input, shape index: {}]   ;;  %s7746_s4 = inlined_call_operand.vmem [shape: f32[1,192], index: 4, kind: input, shape index: {}]   ;;  %s7747_s5 = inlined_call_operand.vmem [shape: f32[128,32], index: 5, kind: input, shape index: {}]   ;;  %s7748_s6 = inlined_call_operand.vmem [shape: f32[32,128], index: 6, kind: input, shape index: {}]   ;;  %s7749_s7 = inlined_call_operand.vmem [shape: f32[1,128], index: 7, kind: input, shape index: {}]   ;;  %s7750_s8 = inlined_call_operand.hbm [shape: f32[2,32,32], index: 8, kind: output, shape index: {0}]   ;;  %s7751_s9 = inlined_call_operand.hbm [shape: f32[2,32,32], index: 9, kind: output, shape index: {1}]   ;;  %s7752_s10 = inlined_call_operand.hbm [shape: f32[2,32,64], index: 10, kind: output, shape index: {2}]   ;;  %s7753_s11 = inlined_call_operand.hbm [shape: s32[2,32,1], index: 11, kind: output, shape index: {3}]  }
   0x1   :  { %7756 = sst [smem:[#allocation14_spill]] %s7742_s0 }
   0x2   :  { %7757 = sst [smem:[#allocation15_spill]] %s7743_s1 }
   0x3   :  { %7758 = sst [smem:[#allocation16_spill]] %s7744_s2 }
   0x4   :  { %7759 = sst [smem:[#allocation17_spill]] %s7745_s3 }
   0x5   :  { %7760 = sst [smem:[#allocation18_spill]] %s7746_s4 }
   0x6   :  { %7761 = sst [smem:[#allocation19_spill]] %s7747_s5 }
   0x7   :  { %17 = vsyncpa [#allocation3], 0 }
   0x8   :  { %19 = vsyncpa [#allocation3 + $0x1], 0 }
   0x9   :  { %20 = vsyncpa [#allocation5], 0 }
   0xa   :  { %22 = vsyncpa [#allocation5 + $0x1], 0 }
   0xb   :  { %23 = vsyncpa [#allocation8], 0 }
   0xc   :  { %25 = vsyncpa [#allocation8 + $0x1], 0  ;;  %s6001_s17 = smov 0   ;;  %s6003_s18 = smov 0  }
   0xd   :  { %s6005_s19 = smov 0   ;;  %s6007_s20 = smov 0  }
   0xe LB: > { %7762 = sst [smem:[#allocation12_spill]] %s5922_s19  ;;  %s6022_s21 = sadd.s32 4294967295, %s5926_s20   ;;  %s5926_s20 = sphi %s6007_s20, %s7789_s20   ;;  %s5922_s19 = sphi %s6005_s19, %s7786_s19   ;;  %s5918_s18 = sphi %s6003_s18, %s7788_s18   ;;  %s5914_s17 = sphi %s6001_s17, %s7787_s17  }
   0xf   : > { %s7754_s22 = sadd.s32 4294967294, %s5926_s20   ;;  %s6026_s23 = sadd.s32 1, %s5926_s20  }
  0x10   : > { %s211_s24 = sadd.s32 1, %s5922_s19  ;;  %s208_s25 = ssub.s32 %s5926_s20, %s6026_s23 }
  0x11   : > { %p221_p0 = scmp.ne.s32.totalorder %s5922_s19, %s5918_s18  ;;  %p209_p1 = scmp.eq.s32.totalorder %s208_s25, 0 }
  0x12   : > { %p222_p2 = scmp.eq.s32.totalorder %s6022_s21, 1  ;;  %p227_p3 = scmp.ne.s32.totalorder %s5918_s18, %s5914_s17 }
  0x13   : > { %p228_p4 = scmp.eq.s32.totalorder %s7754_s22, 1  ;;  %p4281_p7 = scmp.ge.s32.totalorder %s5926_s20, 1 }
  0x14   : > { %s6039_s26 = scalar_select %p209_p1, %s5922_s19, %s211_s24  }
  0x15   : > { %p6041_p5 = por %p222_p2, %p221_p0  ;;  %p6045_p6 = por %p228_p4, %p227_p3 }
  0x16   : > { %7763 = sst [smem:[#allocation13_spill]] %s6039_s26  ;;  %p353_p8 = scmp.lt.s32.totalorder %s5926_s20, 3 }
  0x18   : > { %p354_p9 = pnand %p4281_p7, %p353_p8 }
  0x19   : > { %s7766_s1 = sld [smem:[#allocation15_spill]] (!%p354_p9)  ;;  %p408_p10 = scmp.lt.s32.totalorder (!%p354_p9), %s6022_s21, 1  ;;  %vm446_vm0 = vcmask (!%p354_p9), 1040384   ;;  %vm952_vm1 = vcmask (!%p354_p9), 261120   ;;  %vm5929_vm3 = vmmov (!%p354_p9), 1   ;;  %vm1661_vm5 = vcmask (!%p354_p9), 1046528  }
  0x1a   : > { %357 = sbr.rel (%p354_p9) target bundleno = 1974 (0x7b6), region = 52  ;;  %s7767_s0 = sld [smem:[#allocation14_spill]] (!%p354_p9)  ;;  %vm6286_vm2 = vmneg (!%p354_p9), %vm446_vm0  ;;  %vm2598_vm7 = vcmask (!%p354_p9), 523264   ;;  %vm2372_vm8 = vcmask (!%p354_p9), 1041408   ;;  %vm3293_vm10 = vcmask (!%p354_p9), 1045504  }
  0x1b   : > { %vm6325_vm4 = vmpackc.low (!%p354_p9), %vm5929_vm3, %vm6286_vm2  ;;  %s7774_s3 = sld [smem:[#allocation17_spill]] (!%p354_p9)  ;;  %s7775_s2 = sld [smem:[#allocation16_spill]] (!%p354_p9) }
  0x1c   : > { %vm6588_vm6 = vmpackc.low (!%p354_p9), %vm1661_vm5, %vm5929_vm3  ;;  %s5930_s25 = smov (!%p354_p9), 64   ;;  %s7780_s4 = sld [smem:[#allocation18_spill]] (!%p354_p9) }
  0x1d   : > { %vm6999_vm9 = vmneg (!%p354_p9), %vm2372_vm8  ;;  %s5931_s19 = smov (!%p354_p9), 32   ;;  %s7781_s5 = sld [smem:[#allocation19_spill]] (!%p354_p9) }
  0x1e   : > { %vm7020_vm11 = vmpackc.low (!%p354_p9), %vm5929_vm3, %vm6999_vm9  ;;  %s7573_s24 = sshll.u32 (!%p354_p9), %s6022_s21, 9 }
  0x1f   : > { %v5306_v0 = vld [vmem:[%s7766_s1 + $0x1b4] ss:$12 sps:$4 sm:$0xff] (!%p354_p9)   ;;  %v5308_v1 = vld [vmem:[%s7766_s1 + $0x1b0] ss:$12 sps:$4 sm:$0xff] (!%p354_p9)   ;;  %v5309_v2 = vld [vmem:[%s7766_s1 + $0x1cc] ss:$12 sps:$4 sm:$0xff] (!%p354_p9)   ;;  %s7582_s26 = scalar_lea.hbm (!%p354_p9), %s7750_s8, %s7573_s24 }
  0x20   : > { %959 = vmatprep.subr.bf16.mxu0 (!%p354_p9), %v5306_v0  ;;  %v5311_v3 = vld [vmem:[%s7766_s1 + $0x1c8] ss:$12 sps:$4 sm:$0xff] (!%p354_p9)   ;;  %v5312_v4 = vld [vmem:[%s7766_s1 + $0x1e4] ss:$12 sps:$4 sm:$0xff] (!%p354_p9)   ;;  %v5314_v5 = vld [vmem:[%s7766_s1 + $0x1e0] ss:$12 sps:$4 sm:$0xff] (!%p354_p9)  }
  0x21   : > { %960 = vmatpush1.bf16.msra.mxu0 %v5308_v1  ;;  %v5315_v6 = vld [vmem:[%s7766_s1 + $0x1fc] ss:$12 sps:$4 sm:$0xff]   ;;  %s409_s15 = scalar_select %p408_p10, %s6022_s21, 1  ;;  %v5317_v7 = vld [vmem:[%s7766_s1 + $0x1f8] ss:$12 sps:$4 sm:$0xff]   ;;  %vm4876_vm12 = vmpackc.low %vm3293_vm10, %vm5929_vm3 }
  0x22   : > { %961 = vmatprep.subr.bf16.mxu0 %v5309_v2  ;;  %v5318_v8 = vld [vmem:[%s7766_s1 + $0x214] ss:$12 sps:$4 sm:$0xff]   ;;  %v5320_v9 = vld [vmem:[%s7766_s1 + $0x210] ss:$12 sps:$4 sm:$0xff]   ;;  %v5321_v10 = vld [vmem:[%s7766_s1 + $0x22c] ss:$12 sps:$4 sm:$0xff]  }
  0x23   : > { %s5242_s22 = smul.u32 48, %s409_s15  ;;  %v5323_v11 = vld [vmem:[%s7766_s1 + $0x228] ss:$12 sps:$4 sm:$0xff]   ;;  %v5324_v12 = vld [vmem:[%s7766_s1 + $0x244] ss:$12 sps:$4 sm:$0xff]  }
  0x24   : > { %v5326_v17 = vld [vmem:[%s7766_s1 + $0x240] ss:$12 sps:$4 sm:$0xff]   ;;  %v5327_v19 = vld [vmem:[%s7766_s1 + $0x25c] ss:$12 sps:$4 sm:$0xff]   ;;  %v5329_v23 = vld [vmem:[%s7766_s1 + $0x258] ss:$12 sps:$4 sm:$0xff]  }
  0x25   : > { %962 = vmatpush1.bf16.msra.mxu0 %v5311_v3  ;;  %s6089_s16 = scalar_lea.vmem %s7767_s0, %s5242_s22  ;;  %v5330_v25 = vld [vmem:[%s7766_s1 + $0x274] ss:$12 sps:$4 sm:$0xff]   ;;  %v5332_v26 = vld [vmem:[%s7766_s1 + $0x270] ss:$12 sps:$4 sm:$0xff]   ;;  %v5333_v27 = vld [vmem:[%s7766_s1 + $0x28c] ss:$12 sps:$4 sm:$0xff]  }
  0x26   : > { %963 = vmatprep.subr.bf16.mxu0 %v5312_v4  ;;  %v6098_v13 = vld [vmem:[%s6089_s16] sm:$0xff]  ;;  %v6101_v14 = vld [vmem:[%s6089_s16 + $0xc] sm:$0xff]  ;;  %v5335_v30 = vld [vmem:[%s7766_s1 + $0x288] ss:$12 sps:$4 sm:$0xff]   ;;  %s5932_s22 = smov 96  }
  0x27   : > { %v422_v15 = vunpack.c.l.bf16 %v6098_v13  ;;  %v425_v16 = vunpack.c.l.bf16 %v6101_v14  ;;  %v4360_v18 = vcombine.high %v6098_v13, %v6101_v14  ;;  %v5374_v28 = vld [vmem:[%s7766_s1 + $0x278] ss:$12 sps:$4 sm:$0xff]   ;;  %v5379_v31 = vld [vmem:[%s7766_s1 + $0x290] ss:$12 sps:$4 sm:$0xff]   ;;  %v5384_v34 = vld [vmem:[%s7766_s1 + $0x2a8] ss:$12 sps:$4 sm:$0xff]   ;;  %v4359_v61 = vcombine.low %v6098_v13, %v6101_v14 }
  0x28   : > { %v5375_v29 = vld [vmem:[%s7766_s1 + $0x1b8] ss:$12 sps:$4 sm:$0xff]   ;;  %4910 = vmatprep.subr.bf16.mxu1 %v5374_v28  ;;  %v5380_v32 = vld [vmem:[%s7766_s1 + $0x1d0] ss:$12 sps:$4 sm:$0xff]   ;;  %v5385_v35 = vld [vmem:[%s7766_s1 + $0x1e8] ss:$12 sps:$4 sm:$0xff]  }
  0x29   : > { %964 = vmatpush1.bf16.msra.mxu0 %v5314_v5  ;;  %v447_v20 = vrot.slane %v422_v15, 7  ;;  %v6117_v21 = vrot.slane %v425_v16, 7  ;;  %991 = vmatprep.mubr.bf16.mxu0 %v4360_v18  ;;  %v5336_v33 = vld [vmem:[%s7766_s1 + $0x2a4] ss:$12 sps:$4 sm:$0xff]   ;;  %v5338_v36 = vld [vmem:[%s7766_s1 + $0x2a0] ss:$12 sps:$4 sm:$0xff]  }
  0x2a   : > { %965 = vmatprep.subr.bf16.mxu0 %v5315_v6  ;;  %1097 = vmatprep.mubr.bf16.mxu1 %v4360_v18  ;;  %v5339_v37 = vld [vmem:[%s7766_s1 + $0x2bc] ss:$12 sps:$4 sm:$0xff]   ;;  %v5389_v38 = vld [vmem:[%s7766_s1 + $0x2c0] ss:$12 sps:$4 sm:$0xff]   ;;  %v5341_v40 = vld [vmem:[%s7766_s1 + $0x2b8] ss:$12 sps:$4 sm:$0xff]  }
  0x2b   : > { %v451_v22 = vsel %vm446_vm0, %v447_v20, %v6117_v21  ;;  %4911 = vmatpush3.bf16.msra.mxu1 %v5375_v29  ;;  %v5390_v39 = vld [vmem:[%s7766_s1 + $0x200] ss:$12 sps:$4 sm:$0xff]   ;;  %v5394_v42 = vld [vmem:[%s7766_s1 + $0x2d8] ss:$12 sps:$4 sm:$0xff]   ;;  %v5344_v43 = vld [vmem:[%s7766_s1 + $0x2d0] ss:$12 sps:$4 sm:$0xff]  }
  0x2c   : > { %v6124_v24 = vpack.c.bf16 %v451_v22, %v447_v20  ;;  %4912 = vmatprep.subr.bf16.mxu1 %v5379_v31  ;;  %v5342_v41 = vld [vmem:[%s7766_s1 + $0x2d4] ss:$12 sps:$4 sm:$0xff]   ;;  %v5395_v44 = vld [vmem:[%s7766_s1 + $0x218] ss:$12 sps:$4 sm:$0xff]   ;;  %v5399_v45 = vld [vmem:[%s7766_s1 + $0x2f0] ss:$12 sps:$4 sm:$0xff]  }
  0x2d   : > { %966 = vmatpush1.bf16.msra.mxu0 %v5317_v7  ;;  %v5345_v46 = vld [vmem:[%s7766_s1 + $0x2ec] ss:$12 sps:$4 sm:$0xff]   ;;  %v5347_v47 = vld [vmem:[%s7766_s1 + $0x2e8] ss:$12 sps:$4 sm:$0xff]   ;;  %v5400_v48 = vld [vmem:[%s7766_s1 + $0x230] ss:$12 sps:$4 sm:$0xff]  }
  0x2e   : > { %967 = vmatprep.subr.bf16.mxu0 %v5318_v8  ;;  %v5404_v49 = vld [vmem:[%s7766_s1 + $0x308] ss:$12 sps:$4 sm:$0xff]   ;;  %v5348_v50 = vld [vmem:[%s7766_s1 + $0x304] ss:$12 sps:$4 sm:$0xff]   ;;  %v5350_v51 = vld [vmem:[%s7766_s1 + $0x300] ss:$12 sps:$4 sm:$0xff]   ;;  %v423_v8 = vunpack.c.h.bf16 %v6098_v13 }
  0x2f   : > { %4913 = vmatpush3.bf16.msra.mxu1 %v5380_v32  ;;  %v5405_v52 = vld [vmem:[%s7766_s1 + $0x248] ss:$12 sps:$4 sm:$0xff]   ;;  %v5409_v53 = vld [vmem:[%s7766_s1 + $0x320] ss:$12 sps:$4 sm:$0xff]   ;;  %v5353_v55 = vld [vmem:[%s7766_s1 + $0x318] ss:$12 sps:$4 sm:$0xff]  }
  0x30   : > { %4914 = vmatprep.subr.bf16.mxu1 %v5384_v34  ;;  %v5351_v54 = vld [vmem:[%s7766_s1 + $0x31c] ss:$12 sps:$4 sm:$0xff]   ;;  %v5358_v56 = vld [vmem:[%s7766_s1 + $0x334] ss:$12 sps:$4 sm:$0xff]   ;;  %v5420_v60 = vld [vmem:[%s7766_s1 + $0x338] ss:$12 sps:$4 sm:$0xff]  }
  0x31   : > { %968 = vmatpush1.bf16.msra.mxu0 %v5320_v9  ;;  %v5410_v57 = vld [vmem:[%s7766_s1 + $0x260] ss:$12 sps:$4 sm:$0xff]   ;;  %v6226_v58 = vld [vmem:[%s6089_s16 + $0x18] sm:$0xff]  ;;  %v6229_v59 = vld [vmem:[%s6089_s16 + $0x24] sm:$0xff]  ;;  %v426_v9 = vunpack.c.h.bf16 %v6101_v14  ;;  %v1662_v34 = vrot.slane %v422_v15, 1 }
  0x32   : > { %969 = vmatprep.subr.bf16.mxu0 %v5321_v10  ;;  %v5356_v62 = vld [vmem:[%s7766_s1 + $0x330] ss:$12 sps:$4 sm:$0xff]   ;;  %v4363_v63 = vcombine.high %v6226_v58, %v6229_v59  ;;  %v5363_v0 = vld [vmem:[%s7766_s1 + $0x34c] ss:$12 sps:$4 sm:$0xff]   ;;  %v5361_v2 = vld [vmem:[%s7766_s1 + $0x348] ss:$12 sps:$4 sm:$0xff]   ;;  %v4362_v7 = vcombine.low %v6226_v58, %v6229_v59 }
  0x33   : > { %4915 = vmatpush3.bf16.msra.mxu1 %v5385_v35  ;;  %v5424_v1 = vld [vmem:[%s7766_s1 + $0x350] ss:$12 sps:$4 sm:$0xff]   ;;  %v6254_v4 = vld [vmem:[%s6089_s16 + $0x8] sm:$0xf]  ;;  %v6257_v5 = vld [vmem:[%s6089_s16 + $0x14] sm:$0xf] }
  0x34   : > { %4916 = vmatprep.subr.bf16.mxu1 %v5389_v38  ;;  %v5366_v3 = vld [vmem:[%s7766_s1 + $0x4] ss:$12 sps:$4 sm:$0xff]   ;;  %v5429_v6 = vld [vmem:[%s7766_s1 + $0xc8] ss:$12 sps:$4 sm:$0xff]   ;;  %v4361_v10 = vcombine.low %v6254_v4, %v6257_v5  ;;  %v6278_v18 = vld [vmem:[%s6089_s16 + $0x2c] sm:$0xf] }
  0x35   : > { %970 = vmatpush1.bf16.msra.mxu0 %v5323_v11  ;;  %v5928_v11 = vmov 0   ;;  %v5364_v20 = vld [vmem:[%s7766_s1] ss:$12 sps:$4 sm:$0xff]   ;;  %v5368_v29 = vld [vmem:[%s7766_s1 + $0x18] ss:$12 sps:$4 sm:$0xff]   ;;  %v1663_v35 = vrot.slane %v425_v16, 1  ;;  %v428_v16 = vunpack.c.l.bf16 %v6226_v58 }
  0x36   : > { %971 = vmatprep.subr.bf16.mxu0 %v5324_v12  ;;  %v6271_v12 = vld [vmem:[%s6089_s16 + $0x20] sm:$0xf]  ;;  %v5440_v15 = vld [vmem:[%s7766_s1 + $0x38] ss:$12 sps:$4 sm:$0xff]   ;;  %v5414_v13 = vld [vmem:[%s7766_s1 + $0x108] ss:$12 sps:$4 sm:$0xff]  }
  0x37   : > { %4917 = vmatpush3.bf16.msra.mxu1 %v5390_v39  ;;  %v5435_v31 = vld [vmem:[%s7766_s1 + $0x20] ss:$12 sps:$4 sm:$0xff]   ;;  %v5441_v39 = vld [vmem:[%s7766_s1 + $0x110] ss:$12 sps:$4 sm:$0xff]  }
  0x38   : > { %4918 = vmatprep.subr.bf16.mxu1 %v5394_v42  ;;  %v5378_v38 = vld [vmem:[%s7766_s1 + $0x4c] ss:$12 sps:$4 sm:$0xff]   ;;  %v5376_v42 = vld [vmem:[%s7766_s1 + $0x48] ss:$12 sps:$4 sm:$0xff]  }
  0x39   : > { %972 = vmatpush1.bf16.msra.mxu0 %v5326_v17  ;;  %v6275_v17 = vrot.slane %v426_v9, 7 }
  0x3a   : > { %973 = vmatprep.subr.bf16.mxu0 %v5327_v19  ;;  %v448_v19 = vrot.slane %v423_v8, 7 }
  0x3b   : > { %4919 = vmatpush3.bf16.msra.mxu1 %v5395_v44 }
  0x3c   : > { %4920 = vmatprep.subr.bf16.mxu1 %v5399_v45  ;;  %v453_v28 = vsel %vm446_vm0, %v448_v19, %v6275_v17  ;;  %v5446_v45 = vld [vmem:[%s7766_s1 + $0x128] ss:$12 sps:$4 sm:$0xff]  }
  0x3d   : > { %974 = vmatpush1.bf16.msra.mxu0 %v5329_v23  ;;  %v5430_v23 = vld [vmem:[%s7766_s1 + $0x8] ss:$12 sps:$4 sm:$0xff]   ;;  %v4479_v32 = vpack.c.bf16 %v453_v28, %v448_v19  ;;  %v427_v19 = vunpack.c.l.bf16 %v6257_v5 }
  0x3e   : > { %975 = vmatprep.subr.bf16.mxu0 %v5330_v25  ;;  %v5370_v25 = vld [vmem:[%s7766_s1 + $0x1c] ss:$12 sps:$4 sm:$0xff]  }
  0x3f   : > { %4921 = vmatpush3.bf16.msra.mxu1 %v5400_v48  ;;  %v5381_v48 = vld [vmem:[%s7766_s1 + $0x60] ss:$12 sps:$4 sm:$0xff]  }
  0x40   : > { %4922 = vmatprep.subr.bf16.mxu1 %v5404_v49  ;;  %v5447_v49 = vld [vmem:[%s7766_s1 + $0x68] ss:$12 sps:$4 sm:$0xff]  }
  0x41   : > { %976 = vmatpush1.bf16.msra.mxu0 %v5332_v26  ;;  %v4364_v26 = vcombine.low %v6271_v12, %v6278_v18 }
  0x42   : > { %977 = vmatprep.subr.bf16.mxu0 %v5333_v27  ;;  %v5434_v27 = vld [vmem:[%s7766_s1 + $0xe0] ss:$12 sps:$4 sm:$0xff]  }
  0x43   : > { %4923 = vmatpush3.bf16.msra.mxu1 %v5405_v52  ;;  %v5386_v52 = vld [vmem:[%s7766_s1 + $0x78] ss:$12 sps:$4 sm:$0xff]  }
  0x44   : > { %4924 = vmatprep.subr.bf16.mxu1 %v5409_v53  ;;  %v5449_v53 = vld [vmem:[%s7766_s1 + $0x80] ss:$12 sps:$4 sm:$0xff]  }
  0x45   : > { %978 = vmatpush1.bf16.msra.mxu0 %v5335_v30  ;;  %v5373_v30 = vld [vmem:[%s7766_s1 + $0x34] ss:$12 sps:$4 sm:$0xff]  }
  0x46   : > { %979 = vmatprep.subr.bf16.mxu0 %v5336_v33  ;;  %v5439_v33 = vld [vmem:[%s7766_s1 + $0xf8] ss:$12 sps:$4 sm:$0xff]  }
  0x47   : > { %4925 = vmatpush3.bf16.msra.mxu1 %v5410_v57  ;;  %v432_v57 = vunpack.c.h.bf16 %v6229_v59 }
  0x48   : > { %5034 = vmatprep.subr.bf16.mxu1 %v5420_v60 }
  0x49   : > { %980 = vmatpush1.bf16.msra.mxu0 %v5338_v36 }
  0x4a   : > { %981 = vmatprep.subr.bf16.mxu0 %v5339_v37  ;;  %1098 = vmatmul.mubr.bf16.vlgmr.msra.gmra.mrb[0].mxu1 %v4359_v61  ;;  %v5371_v37 = vld [vmem:[%s7766_s1 + $0x30] ss:$12 sps:$4 sm:$0xff]  }
  0x4b   : > { %1105 = vmatprep.mubr.bf16.mxu1 %v4363_v63  ;;  %5035 = vmatpush3.bf16.msra.mxu1 %v5420_v60  ;;  %v5454_v60 = vld [vmem:[%s7766_s1 + $0x98] ss:$12 sps:$4 sm:$0xff]  }
  0x4c   : > { %5036 = vmatprep.subr.bf16.mxu1 %v5424_v1 }
  0x4d   : > { %982 = vmatpush1.bf16.msra.mxu0 %v5341_v40  ;;  %v1664_v40 = vsel %vm1661_vm5, %v1662_v34, %v1663_v35  ;;  %v5477_v34 = vld [vmem:[%s7766_s1 + $0x428] ss:$12 sps:$4 sm:$0xff]  }
  0x4e   : > { %983 = vmatprep.subr.bf16.mxu0 %v5342_v41  ;;  %v6345_v41 = vrot.slane %v428_v16, 1 }
  0x4f   : > { %5037 = vmatpush3.bf16.msra.mxu1 %v5424_v1  ;;  %v5396_v1 = vld [vmem:[%s7766_s1 + $0xa8] ss:$12 sps:$4 sm:$0xff]  }
  0x50   : > { %4942 = vmatprep.subr.bf16.mxu1 %v5429_v6  ;;  %v1672_v44 = vsel %vm1661_vm5, %v1663_v35, %v6345_v41  ;;  %v424_v6 = vunpack.c.l.bf16 %v6254_v4  ;;  %v5413_v35 = vld [vmem:[%s7766_s1 + $0xf4] ss:$12 sps:$4 sm:$0xff]  }
  0x51   : > { %984 = vmatpush1.bf16.msra.mxu0 %v5344_v43  ;;  %v5442_v43 = vld [vmem:[%s7766_s1 + $0x50] ss:$12 sps:$4 sm:$0xff]  }
  0x52   : > { %985 = vmatprep.subr.bf16.mxu0 %v5345_v46  ;;  %1106 = vmatmul.mubr.bf16.gmra.mrb[4].mxu1 %v4362_v7  ;;  %v6361_v46 = vpack.c.bf16 %v1672_v44, %v1664_v40  ;;  %v1666_v44 = vrot.slane %v426_v9, 1  ;;  %v5419_v9 = vld [vmem:[%s7766_s1 + $0x124] ss:$12 sps:$4 sm:$0xff]  }
  0x53   : > { %5038 = vmatprep.mubr.msk.bf16.mxu1 %vm952_vm1, %v4361_v10 }
  0x55   : > { %986 = vmatpush1.bf16.msra.mxu0 %v5347_v47  ;;  %v5383_v47 = vld [vmem:[%s7766_s1 + $0x64] ss:$12 sps:$4 sm:$0xff]  }
  0x56   : > { %987 = vmatprep.subr.bf16.mxu0 %v5348_v50  ;;  %v5448_v50 = vld [vmem:[%s7766_s1 + $0x140] ss:$12 sps:$4 sm:$0xff]  }
  0x59   : > { %988 = vmatpush1.bf16.msra.mxu0 %v5350_v51  ;;  %v5388_v51 = vld [vmem:[%s7766_s1 + $0x7c] ss:$12 sps:$4 sm:$0xff]  }
  0x5a   : > { %989 = vmatprep.subr.bf16.mxu0 %v5351_v54  ;;  %5039 = vmatmul.mubr.msk.bf16.vlgmr.msra.gmra.mrb[8].mxu1 %vm952_vm1, %v4364_v26  ;;  %v5453_v54 = vld [vmem:[%s7766_s1 + $0x158] ss:$12 sps:$4 sm:$0xff]  }
  0x5b   : > { %4943 = vmatpush3.bf16.msra.mxu1 %v5430_v23  ;;  %4490 = vmatprep.mubr.msk.bf16.mxu1 %vm6325_vm4, %v4479_v32  ;;  %v456_v23 = vrot.slane %v428_v16, 7 }
  0x5c   : > { %4944 = vmatprep.subr.bf16.mxu1 %v5434_v27  ;;  %v5408_v27 = vld [vmem:[%s7766_s1 + $0xdc] ss:$12 sps:$4 sm:$0xff]  }
  0x5d   : > { %990 = vmatpush1.bf16.msra.mxu0 %v5353_v55  ;;  %v5393_v55 = vld [vmem:[%s7766_s1 + $0x94] ss:$12 sps:$4 sm:$0xff]  }
  0x5e   : > { %1012 = vmatprep.subr.bf16.mxu0 %v5358_v56  ;;  %v429_v56 = vunpack.c.h.bf16 %v6226_v58  ;;  %v5398_v58 = vld [vmem:[%s7766_s1 + $0xac] ss:$12 sps:$4 sm:$0xff]  }
  0x5f   : > { %4945 = vmatpush3.bf16.msra.mxu1 %v5435_v31  ;;  %v5406_v31 = vld [vmem:[%s7766_s1 + $0xd8] ss:$12 sps:$4 sm:$0xff]  }
  0x60   : > { %992 = vmatmul.mubr.bf16.vlgmr.msra.gmra.mrb[0].mxu0 %v4359_v61  ;;  %4946 = vmatprep.subr.bf16.mxu1 %v5439_v33  ;;  %v5391_v61 = vld [vmem:[%s7766_s1 + $0x90] ss:$12 sps:$4 sm:$0xff]   ;;  %v433_v33 = vunpack.c.l.bf16 %v6278_v18  ;;  %v5463_v18 = vld [vmem:[%s7766_s1 + $0x3a8] ss:$12 sps:$4 sm:$0xff]  }
  0x61   : > { %1013 = vmatpush1.bf16.msra.mxu0 %v5356_v62  ;;  %1001 = vmatprep.mubr.bf16.mxu0 %v4363_v63  ;;  %v5458_v62 = vld [vmem:[%s7766_s1 + $0x170] ss:$12 sps:$4 sm:$0xff]   ;;  %v458_v63 = vrot.slane %v429_v56, 7 }
  0x62   : > { %1014 = vmatprep.subr.bf16.mxu0 %v5363_v0  ;;  %v464_v0 = vrot.slane %v432_v57, 7 }
  0x63   : > { %4947 = vmatpush3.bf16.msra.mxu1 %v5440_v15 }
  0x64   : > { %4948 = vmatprep.subr.bf16.mxu1 %v5441_v39  ;;  %v465_v22 = vsel %vm446_vm0, %v458_v63, %v464_v0  ;;  %v5426_v0 = vld [vmem:[%s7766_s1 + $0x150] ss:$12 sps:$4 sm:$0xff]  }
  0x65   : > { %1015 = vmatpush1.bf16.msra.mxu0 %v5361_v2  ;;  %v5459_v2 = vld [vmem:[%s7766_s1 + $0xb0] ss:$12 sps:$4 sm:$0xff]  }
  0x66   : > { %1457 = vmatprep.subr.bf16.mxu0 %v5366_v3  ;;  %v5469_v3 = vld [vmem:[%s7766_s1 + $0x188] ss:$12 sps:$4 sm:$0xff]  }
  0x67   : > { %4949 = vmatpush3.bf16.msra.mxu1 %v5442_v43 }
  0x68   : > { %1002 = vmatmul.mubr.bf16.gmra.mrb[4].mxu0 %v4362_v7  ;;  %4950 = vmatprep.subr.bf16.mxu1 %v5446_v45  ;;  %v5403_v7 = vld [vmem:[%s7766_s1 + $0xc4] ss:$12 sps:$4 sm:$0xff]   ;;  %v6474_v45 = vrot.slane %v429_v56, 1  ;;  %v5423_v56 = vld [vmem:[%s7766_s1 + $0x13c] ss:$12 sps:$4 sm:$0xff]  }
  0x69   : > { %1044 = vmatprep.mubr.bf16.mxu0 %v5928_v11 }
  0x6b   : > { %4951 = vmatpush3.bf16.msra.mxu1 %v5447_v49 }
  0x6c   : > { %4952 = vmatprep.subr.bf16.mxu1 %v5448_v50 }
  0x6f   : > { %4953 = vmatpush3.bf16.msra.mxu1 %v5449_v53  ;;  %v5478_v53 = vld [vmem:[%s7766_s1 + $0x368] ss:$12 sps:$4 sm:$0xff]  }
  0x70   : > { %4419 = vmatmul.mubr.msk.bf16.vlgmr.msra.gmra.mrb[0].mxu0 %vm952_vm1, %v4361_v10  ;;  %4954 = vmatprep.subr.bf16.mxu1 %v5453_v54  ;;  %v431_v10 = vunpack.c.l.bf16 %v6229_v59  ;;  %v5462_v59 = vld [vmem:[%s7766_s1 + $0x394] ss:$12 sps:$4 sm:$0xff]  }
  0x71   : > { %1458 = vmatpush1.bf16.msra.mxu0 %v5364_v20  ;;  %1054 = vmatprep.mubr.bf16.mxu0 %v5928_v11  ;;  %v459_v20 = vsel %vm446_vm0, %v6275_v17, %v458_v63  ;;  %v5488_v63 = vld [vmem:[%s7766_s1 + $0x398] ss:$12 sps:$4 sm:$0xff]  }
  0x72   : > { %1459 = vmatprep.subr.bf16.mxu0 %v5370_v25  ;;  %v5401_v25 = vld [vmem:[%s7766_s1 + $0xc0] ss:$12 sps:$4 sm:$0xff]   ;;  %v6433_v17 = vpack.c.bf16 %v465_v22, %v459_v20  ;;  %v462_v28 = vrot.slane %v431_v10, 7  ;;  %v5497_v20 = vld [vmem:[%s7766_s1 + $0x488] ss:$12 sps:$4 sm:$0xff]  }
  0x73   : > { %4955 = vmatpush3.bf16.msra.mxu1 %v5454_v60  ;;  %v5421_v60 = vld [vmem:[%s7766_s1 + $0x138] ss:$12 sps:$4 sm:$0xff]  }
  0x74   : > { %4956 = vmatprep.subr.bf16.mxu1 %v5458_v62  ;;  %v463_v15 = vsel %vm446_vm0, %v456_v23, %v462_v28  ;;  %v5487_v62 = vld [vmem:[%s7766_s1 + $0x458] ss:$12 sps:$4 sm:$0xff]   ;;  %v5503_v28 = vld [vmem:[%s7766_s1 + $0x3e0] ss:$12 sps:$4 sm:$0xff]  }
  0x75   : > { %1460 = vmatpush1.bf16.msra.mxu0 %v5368_v29  ;;  %v449_v29 = vrot.slane %v424_v6, 7  ;;  %v5438_v22 = vld [vmem:[%s7766_s1 + $0x184] ss:$12 sps:$4 sm:$0xff]  }
  0x76   : > { %1461 = vmatprep.subr.bf16.mxu0 %v5373_v30  ;;  %v454_v30 = vrot.slane %v427_v19, 7 }
  0x77   : > { %4957 = vmatpush3.bf16.msra.mxu1 %v5459_v2  ;;  %v482_v16 = vsel %vm446_vm0, 0.0, %v449_v29  ;;  %v5433_v2 = vld [vmem:[%s7766_s1 + $0x16c] ss:$12 sps:$4 sm:$0xff]  }
  0x78   : > { %4420 = vmatmul.mubr.msk.bf16.gmra.mrb[4].mxu0 %vm952_vm1, %v4364_v26  ;;  %5042 = vmatprep.subr.bf16.mxu1 %v5469_v3  ;;  %v5473_v26 = vld [vmem:[%s7766_s1 + $0x1a0] ss:$12 sps:$4 sm:$0xff]   ;;  %v455_v39 = vsel %vm446_vm0, %v449_v29, %v454_v30  ;;  %v5443_v29 = vld [vmem:[%s7766_s1 + $0x198] ss:$12 sps:$4 sm:$0xff]  }
  0x79   : > { %1462 = vmatpush1.bf16.msra.mxu0 %v5371_v37  ;;  %4480 = vmatprep.mubr.msk.bf16.mxu0 %vm6325_vm4, %v4479_v32  ;;  %v430_v32 = vunpack.c.l.bf16 %v6271_v12  ;;  %v457_v37 = vsel %vm446_vm0, %v6117_v21, %v456_v23  ;;  %v1665_v21 = vrot.slane %v423_v8, 1  ;;  %v1674_v8 = vsel %vm1661_vm5, %v1666_v44, %v6474_v45  ;;  %v5498_v23 = vld [vmem:[%s7766_s1 + $0x3c8] ss:$12 sps:$4 sm:$0xff]  }
  0x7a   : > { %1463 = vmatprep.subr.bf16.mxu0 %v5378_v38  ;;  %4494 = vmatmul.mubr.msk.bf16.vlgmr.msra.gmra.mrb[12].mxu1 %vm6325_vm4, %v6124_v24  ;;  %v5411_v38 = vld [vmem:[%s7766_s1 + $0xf0] ss:$12 sps:$4 sm:$0xff]   ;;  %v6468_v43 = vpack.c.bf16 %v463_v15, %v457_v37  ;;  %v5523_v15 = vld [vmem:[%s7766_s1 + $0x4e8] ss:$12 sps:$4 sm:$0xff]  }
  0x7b   : > { %1603 = vmatprep.mubr.bf16.mxu1 %v6433_v17  ;;  %5043 = vmatpush3.bf16.msra.mxu1 %v5469_v3  ;;  %v460_v40 = vrot.slane %v430_v32, 7  ;;  %v1667_v14 = vsel %vm1661_vm5, %v1665_v21, %v1666_v44  ;;  %v5493_v3 = vld [vmem:[%s7766_s1 + $0x3b0] ss:$12 sps:$4 sm:$0xff]   ;;  %v1668_v21 = vrot.slane %v424_v6, 1  ;;  %v1669_v44 = vrot.slane %v427_v19, 1 }
  0x7c   : > { %5044 = vmatprep.subr.bf16.mxu1 %v5473_v26  ;;  %v6503_v54 = vpack.c.bf16 %v1674_v8, %v1667_v14  ;;  %v5513_v37 = vld [vmem:[%s7766_s1 + $0x410] ss:$12 sps:$4 sm:$0xff]   ;;  %v1681_v19 = vrot.slane %v433_v33, 1  ;;  %v5470_v14 = vld [vmem:[%s7766_s1 + $0x3d8] ss:$12 sps:$4 sm:$0xff]  }
  0x7d   : > { %1464 = vmatpush1.bf16.msra.mxu0 %v5376_v42  ;;  %v466_v42 = vrot.slane %v433_v33, 7  ;;  %v461_v49 = vsel %vm446_vm0, %v454_v30, %v460_v40  ;;  %v5507_v30 = vld [vmem:[%s7766_s1 + $0x4b8] ss:$12 sps:$4 sm:$0xff]   ;;  %v1670_v5 = vsel %vm1661_vm5, %v1668_v21, %v1669_v44  ;;  %v5460_v6 = vld [vmem:[%s7766_s1 + $0x390] ss:$12 sps:$4 sm:$0xff]  }
  0x7e   : > { %1465 = vmatprep.subr.bf16.mxu0 %v5383_v47  ;;  %v5416_v47 = vld [vmem:[%s7766_s1 + $0x10c] ss:$12 sps:$4 sm:$0xff]   ;;  %v5468_v33 = vld [vmem:[%s7766_s1 + $0x3c4] ss:$12 sps:$4 sm:$0xff]   ;;  %v5476_v8 = vld [vmem:[%s7766_s1 + $0x3f4] ss:$12 sps:$4 sm:$0xff]  }
  0x7f   : > { %5045 = vmatpush3.bf16.msra.mxu1 %v5473_v26  ;;  %v467_v50 = vsel %vm446_vm0, %v460_v40, %v466_v42  ;;  %v5445_v26 = vld [vmem:[%s7766_s1 + $0x19c] ss:$12 sps:$4 sm:$0xff]   ;;  %v1677_v40 = vrot.slane %v431_v10, 1  ;;  %v1675_v42 = vrot.slane %v430_v32, 1 }
  0x80   : > { %4974 = vmatprep.subr.bf16.mxu1 %v5477_v34  ;;  %v5508_v34 = vld [vmem:[%s7766_s1 + $0x3f8] ss:$12 sps:$4 sm:$0xff]  }
  0x81   : > { %1466 = vmatpush1.bf16.msra.mxu0 %v5381_v48  ;;  %v6479_v48 = vpack.c.bf16 %v455_v39, %v482_v16  ;;  %v5450_v16 = vld [vmem:[%s7766_s1 + $0x360] ss:$12 sps:$4 sm:$0xff]   ;;  %v1678_v4 = vsel %vm1661_vm5, %v6345_v41, %v1677_v40  ;;  %v1676_v12 = vsel %vm1661_vm5, %v1669_v44, %v1675_v42 }
  0x82   : > { %1467 = vmatprep.subr.bf16.mxu0 %v5388_v51  ;;  %1604 = vmatmul.mubr.bf16.gmra.mrb[16].mxu1 %v6468_v43  ;;  %v6495_v51 = vpack.c.bf16 %v467_v50, %v461_v49  ;;  %v6641_v10 = vpack.c.bf16 %v1677_v40, %v1678_v4  ;;  %v5465_v41 = vld [vmem:[%s7766_s1 + $0x3ac] ss:$12 sps:$4 sm:$0xff]   ;;  %v6648_v32 = vpack.c.bf16 %v1676_v12, %v1670_v5  ;;  %v5540_v5 = vld [vmem:[%s7774_s3 + $0x20] ss:$8 sps:$4 sm:$0xff]  }
  0x83   : > { %5046 = vmatprep.mubr.msk.bf16.mxu1 %vm952_vm1, %v6479_v48  ;;  %v5466_v50 = vld [vmem:[%s7766_s1 + $0x3c0] ss:$12 sps:$4 sm:$0xff]  }
  0x84   : > { %v5545_v12 = vld [vmem:[%s7774_s3 + $0xe4] ss:$8 sps:$4 sm:$0xff]  }
  0x85   : > { %1468 = vmatpush1.bf16.msra.mxu0 %v5386_v52  ;;  %v5417_v52 = vld [vmem:[%s7766_s1 + $0x120] ss:$12 sps:$4 sm:$0xff]  }
  0x86   : > { %1469 = vmatprep.subr.bf16.mxu0 %v5393_v55  ;;  %v5482_v55 = vld [vmem:[%s7766_s1 + $0x440] ss:$12 sps:$4 sm:$0xff]  }
  0x89   : > { %1470 = vmatpush1.bf16.msra.mxu0 %v5391_v61  ;;  %v5483_v61 = vld [vmem:[%s7766_s1 + $0x380] ss:$12 sps:$4 sm:$0xff]  }
  0x8a   : > { %1471 = vmatprep.subr.bf16.mxu0 %v5398_v58  ;;  %5047 = vmatmul.mubr.msk.bf16.vlgmr.msra.gmra.mrb[8].mxu1 %vm952_vm1, %v6495_v51  ;;  %v5428_v58 = vld [vmem:[%s7766_s1 + $0x154] ss:$12 sps:$4 sm:$0xff]  }
  0x8b   : > { %4975 = vmatpush3.bf16.msra.mxu1 %v5478_v53  ;;  %2209 = vmatprep.mubr.bf16.mxu1 %v6503_v54  ;;  %v5486_v53 = vld [vmem:[%s7766_s1 + $0x424] ss:$12 sps:$4 sm:$0xff]  }
  0x8c   : > { %4976 = vmatprep.subr.bf16.mxu1 %v5482_v55  ;;  %v5491_v55 = vld [vmem:[%s7766_s1 + $0x43c] ss:$12 sps:$4 sm:$0xff]  }
  0x8d   : > { %1472 = vmatpush1.bf16.msra.mxu0 %v5396_v1  ;;  %v5492_v1 = vld [vmem:[%s7766_s1 + $0x470] ss:$12 sps:$4 sm:$0xff]  }
  0x8e   : > { %1473 = vmatprep.subr.bf16.mxu0 %v5403_v7  ;;  %v5431_v7 = vld [vmem:[%s7766_s1 + $0x168] ss:$12 sps:$4 sm:$0xff]  }
  0x8f   : > { %4977 = vmatpush3.bf16.msra.mxu1 %v5483_v61  ;;  %v5494_v61 = vld [vmem:[%s7766_s1 + $0x450] ss:$12 sps:$4 sm:$0xff]  }
  0x90   : > { %4978 = vmatprep.subr.bf16.mxu1 %v5487_v62  ;;  %v5501_v62 = vld [vmem:[%s7766_s1 + $0x46c] ss:$12 sps:$4 sm:$0xff]  }
  0x91   : > { %1474 = vmatpush1.bf16.msra.mxu0 %v5401_v25  ;;  %v5436_v25 = vld [vmem:[%s7766_s1 + $0x180] ss:$12 sps:$4 sm:$0xff]  }
  0x92   : > { %1475 = vmatprep.subr.bf16.mxu0 %v5408_v27  ;;  %v5502_v27 = vld [vmem:[%s7766_s1 + $0x4a0] ss:$12 sps:$4 sm:$0xff]  }
  0x93   : > { %4979 = vmatpush3.bf16.msra.mxu1 %v5488_v63  ;;  %v5506_v63 = vld [vmem:[%s7766_s1 + $0x484] ss:$12 sps:$4 sm:$0xff]  }
  0x94   : > { %4980 = vmatprep.subr.bf16.mxu1 %v5492_v1  ;;  %v5511_v1 = vld [vmem:[%s7766_s1 + $0x49c] ss:$12 sps:$4 sm:$0xff]  }
  0x95   : > { %1476 = vmatpush1.bf16.msra.mxu0 %v5406_v31  ;;  %v5452_v31 = vld [vmem:[%s7766_s1 + $0x364] ss:$12 sps:$4 sm:$0xff]  }
  0x96   : > { %1477 = vmatprep.subr.bf16.mxu0 %v5413_v35  ;;  %v5512_v35 = vld [vmem:[%s7766_s1 + $0x4d0] ss:$12 sps:$4 sm:$0xff]  }
  0x97   : > { %4981 = vmatpush3.bf16.msra.mxu1 %v5493_v3  ;;  %v5516_v3 = vld [vmem:[%s7766_s1 + $0x4b4] ss:$12 sps:$4 sm:$0xff]  }
  0x98   : > { %4982 = vmatprep.subr.bf16.mxu1 %v5497_v20  ;;  %v5519_v20 = vld [vmem:[%s7766_s1 + $0x4cc] ss:$12 sps:$4 sm:$0xff]  }
  0x99   : > { %1478 = vmatpush1.bf16.msra.mxu0 %v5411_v38  ;;  %v5457_v38 = vld [vmem:[%s7766_s1 + $0x37c] ss:$12 sps:$4 sm:$0xff]  }
  0x9a   : > { %1479 = vmatprep.subr.bf16.mxu0 %v5416_v47  ;;  %v1682_v47 = vsel %vm1661_vm5, %v1675_v42, %v1681_v19 }
  0x9b   : > { %4983 = vmatpush3.bf16.msra.mxu1 %v5498_v23  ;;  %v5522_v23 = vld [vmem:[%s7766_s1 + $0x4e4] ss:$12 sps:$4 sm:$0xff]  }
  0x9c   : > { %4984 = vmatprep.subr.bf16.mxu1 %v5502_v27  ;;  %v5525_v27 = vld [vmem:[%s7766_s1 + $0x4f8] ss:$12 sps:$4 sm:$0xff]  }
  0x9d   : > { %1480 = vmatpush1.bf16.msra.mxu0 %v5414_v13  ;;  %v5472_v13 = vld [vmem:[%s7766_s1 + $0x3dc] ss:$12 sps:$4 sm:$0xff]  }
  0x9e   : > { %1481 = vmatprep.subr.bf16.mxu0 %v5419_v9  ;;  %v5474_v9 = vld [vmem:[%s7766_s1 + $0x3f0] ss:$12 sps:$4 sm:$0xff]  }
  0x9f   : > { %4985 = vmatpush3.bf16.msra.mxu1 %v5503_v28  ;;  %v5530_v28 = vld [vmem:[%s7774_s3 + $0x4] ss:$8 sps:$4 sm:$0xff]  }
  0xa0   : > { %4986 = vmatprep.subr.bf16.mxu1 %v5507_v30  ;;  %v5533_v30 = vld [vmem:[%s7774_s3 + $0xc4] ss:$8 sps:$4 sm:$0xff]  }
  0xa1   : > { %1482 = vmatpush1.bf16.msra.mxu0 %v5417_v52  ;;  %v5479_v52 = vld [vmem:[%s7766_s1 + $0x408] ss:$12 sps:$4 sm:$0xff]  }
  0xa2   : > { %1483 = vmatprep.subr.bf16.mxu0 %v5423_v56  ;;  %v5489_v56 = vld [vmem:[%s7766_s1 + $0x438] ss:$12 sps:$4 sm:$0xff]  }
  0xa3   : > { %4987 = vmatpush3.bf16.msra.mxu1 %v5508_v34  ;;  %v5537_v34 = vld [vmem:[%s7774_s3 + $0xd0] ss:$8 sps:$4 sm:$0xff]  }
  0xa4   : > { %4988 = vmatprep.subr.bf16.mxu1 %v5512_v35  ;;  %v5539_v35 = vld [vmem:[%s7774_s3 + $0xd4] ss:$8 sps:$4 sm:$0xff]  }
  0xa5   : > { %1484 = vmatpush1.bf16.msra.mxu0 %v5421_v60  ;;  %v5496_v60 = vld [vmem:[%s7766_s1 + $0x454] ss:$12 sps:$4 sm:$0xff]  }
  0xa6   : > { %1485 = vmatprep.subr.bf16.mxu0 %v5428_v58  ;;  %v5499_v58 = vld [vmem:[%s7766_s1 + $0x468] ss:$12 sps:$4 sm:$0xff]  }
  0xa7   : > { %4989 = vmatpush3.bf16.msra.mxu1 %v5513_v37 }
  0xa8   : > { %5050 = vmatprep.subr.bf16.mxu1 %v5523_v15 }
  0xa9   : > { %1486 = vmatpush1.bf16.msra.mxu0 %v5426_v0  ;;  %v5504_v0 = vld [vmem:[%s7766_s1 + $0x480] ss:$12 sps:$4 sm:$0xff]  }
  0xaa   : > { %1487 = vmatprep.subr.bf16.mxu0 %v5433_v2  ;;  %2210 = vmatmul.mubr.bf16.vlgmr.msra.gmra.mrb[20].mxu1 %v6361_v46  ;;  %v5509_v2 = vld [vmem:[%s7766_s1 + $0x498] ss:$12 sps:$4 sm:$0xff]  }
  0xab   : > { %5051 = vmatpush3.bf16.msra.mxu1 %v5523_v15 }
  0xad   : > { %1488 = vmatpush1.bf16.msra.mxu0 %v5431_v7  ;;  %v5514_v7 = vld [vmem:[%s7766_s1 + $0x4b0] ss:$12 sps:$4 sm:$0xff]  }
  0xae   : > { %1510 = vmatprep.subr.bf16.mxu0 %v5438_v22  ;;  %v5517_v22 = vld [vmem:[%s7766_s1 + $0x4c8] ss:$12 sps:$4 sm:$0xff]  }
  0xb0   : > { %4484 = vmatmul.mubr.msk.bf16.vlgmr.msra.gmra.mrb[0].mxu0 %vm6325_vm4, %v6124_v24  ;;  %v1679_v24 = vrot.slane %v432_v57, 1 }
  0xb1   : > { %1511 = vmatpush1.bf16.msra.mxu0 %v5436_v25  ;;  %1499 = vmatprep.mubr.bf16.mxu0 %v6433_v17  ;;  %v5520_v25 = vld [vmem:[%s7766_s1 + $0x4e0] ss:$12 sps:$4 sm:$0xff]  }
  0xb2   : > { %1512 = vmatprep.subr.bf16.mxu0 %v5445_v26  ;;  %v1680_v57 = vsel %vm1661_vm5, %v6474_v45, %v1679_v24  ;;  %v5455_v45 = vld [vmem:[%s7766_s1 + $0x378] ss:$12 sps:$4 sm:$0xff]   ;;  %v5527_v26 = vld [vmem:[%s7766_s1 + $0x4fc] ss:$12 sps:$4 sm:$0xff]  }
  0xb3   : > { %v6608_v39 = vpack.c.bf16 %v1679_v24, %v1680_v57  ;;  %v5684_v17 = vld [vmem:[%s7774_s3 + $0x340] ss:$8 sps:$4 sm:$0xff]  }
  0xb5   : > { %1513 = vmatpush1.bf16.msra.mxu0 %v5443_v29  ;;  %4633 = vmatprep.mubr.msk.bf16.mxu1 %vm6588_vm6, %v6608_v39  ;;  %v5531_v29 = vld [vmem:[%s7774_s3 + $0xc0] ss:$8 sps:$4 sm:$0xff]  }
  0xb6   : > { %2071 = vmatprep.subr.bf16.mxu0 %v5452_v31  ;;  %4636 = vmatmul.mubr.msk.bf16.gmra.mrb[24].mxu1 %vm6588_vm6, %v6641_v10  ;;  %v5536_v31 = vld [vmem:[%s7774_s3 + $0x14] ss:$8 sps:$4 sm:$0xff]  }
  0xb7   : > { %5054 = vmatprep.mubr.msk.bf16.mxu1 %vm952_vm1, %v6648_v32 }
  0xb8   : > { %1500 = vmatmul.mubr.bf16.gmra.mrb[4].mxu0 %v6468_v43  ;;  %v5524_v43 = vld [vmem:[%s7766_s1 + $0x500] ss:$12 sps:$4 sm:$0xff]  }
  0xb9   : > { %1542 = vmatprep.mubr.bf16.mxu0 %v5928_v11  ;;  %5052 = vmatprep.subr.bf16.mxu1 %v5524_v43 }
  0xba   : > { %5053 = vmatpush3.bf16.msra.mxu1 %v5524_v43 }
  0xbb   : > { %2784 = vmatprep.subr.bf16.mxu1 %v5530_v28  ;;  %v5579_v28 = vld [vmem:[%s7774_s3 + $0x140] ss:$8 sps:$4 sm:$0xff]  }
  0xc0   : > { %4485 = vmatmul.mubr.msk.bf16.vlgmr.msra.gmra.mrb[0].mxu0 %vm952_vm1, %v6479_v48  ;;  %v1697_v48 = vsel %vm1661_vm5, %v1681_v19, 0.0  ;;  %v5543_v19 = vld [vmem:[%s7774_s3 + $0xe0] ss:$8 sps:$4 sm:$0xff]  }
  0xc1   : > { %2072 = vmatpush1.bf16.msra.mxu0 %v5450_v16  ;;  %1552 = vmatprep.mubr.bf16.mxu0 %v5928_v11  ;;  %v6666_v49 = vpack.c.bf16 %v1697_v48, %v1682_v47  ;;  %v5548_v48 = vld [vmem:[%s7774_s3 + $0x34] ss:$8 sps:$4 sm:$0xff]  }
  0xc2   : > { %2073 = vmatprep.subr.bf16.mxu0 %v5457_v38 }
  0xc3   : > { %5055 = vmatmul.mubr.msk.bf16.vlgmr.msra.gmra.mrb[8].mxu1 %vm952_vm1, %v6666_v49 }
  0xc5   : > { %2074 = vmatpush1.bf16.msra.mxu0 %v5455_v45 }
  0xc6   : > { %2075 = vmatprep.subr.bf16.mxu0 %v5462_v59  ;;  %v5542_v59 = vld [vmem:[%s7774_s3 + $0x24] ss:$8 sps:$4 sm:$0xff]  }
  0xc8   : > { %4486 = vmatmul.mubr.msk.bf16.gmra.mrb[4].mxu0 %vm952_vm1, %v6495_v51  ;;  %v5481_v51 = vld [vmem:[%s7766_s1 + $0x40c] ss:$12 sps:$4 sm:$0xff]  }
  0xc9   : > { %2076 = vmatpush1.bf16.msra.mxu0 %v5460_v6  ;;  %2103 = vmatprep.mubr.bf16.mxu0 %v6503_v54  ;;  %v5484_v54 = vld [vmem:[%s7766_s1 + $0x420] ss:$12 sps:$4 sm:$0xff]  }
  0xca   : > { %2077 = vmatprep.subr.bf16.mxu0 %v5465_v41 }
  0xcd   : > { %2078 = vmatpush1.bf16.msra.mxu0 %v5463_v18  ;;  %v5546_v18 = vld [vmem:[%s7774_s3 + $0x30] ss:$8 sps:$4 sm:$0xff]  }
  0xce   : > { %2079 = vmatprep.subr.bf16.mxu0 %v5468_v33  ;;  %v5551_v33 = vld [vmem:[%s7774_s3 + $0xf4] ss:$8 sps:$4 sm:$0xff]  }
  0xd1   : > { %2080 = vmatpush1.bf16.msra.mxu0 %v5466_v50  ;;  %v5549_v50 = vld [vmem:[%s7774_s3 + $0xf0] ss:$8 sps:$4 sm:$0xff]  }
  0xd2   : > { %2081 = vmatprep.subr.bf16.mxu0 %v5472_v13 }
  0xd5   : > { %2082 = vmatpush1.bf16.msra.mxu0 %v5470_v14  ;;  %v5554_v14 = vld [vmem:[%s7774_s3 + $0x44] ss:$8 sps:$4 sm:$0xff]  }
  0xd6   : > { %2083 = vmatprep.subr.bf16.mxu0 %v5476_v8 }
  0xd9   : > { %2084 = vmatpush1.bf16.msra.mxu0 %v5474_v9  ;;  %v5552_v9 = vld [vmem:[%s7774_s3 + $0x40] ss:$8 sps:$4 sm:$0xff]  }
  0xda   : > { %2085 = vmatprep.subr.bf16.mxu0 %v5481_v51  ;;  %v5557_v51 = vld [vmem:[%s7774_s3 + $0x104] ss:$8 sps:$4 sm:$0xff]  }
  0xdd   : > { %2086 = vmatpush1.bf16.msra.mxu0 %v5479_v52 }
  0xde   : > { %2087 = vmatprep.subr.bf16.mxu0 %v5486_v53 }
  0xe1   : > { %2088 = vmatpush1.bf16.msra.mxu0 %v5484_v54  ;;  %v5555_v54 = vld [vmem:[%s7774_s3 + $0x100] ss:$8 sps:$4 sm:$0xff]  }
  0xe2   : > { %2089 = vmatprep.subr.bf16.mxu0 %v5491_v55 }
  0xe5   : > { %2090 = vmatpush1.bf16.msra.mxu0 %v5489_v56 }
  0xe6   : > { %2091 = vmatprep.subr.bf16.mxu0 %v5496_v60 }
  0xe9   : > { %2092 = vmatpush1.bf16.msra.mxu0 %v5494_v61  ;;  %v5560_v61 = vld [vmem:[%s7774_s3 + $0x54] ss:$8 sps:$4 sm:$0xff]  }
  0xea   : > { %2093 = vmatprep.subr.bf16.mxu0 %v5501_v62  ;;  %v5558_v62 = vld [vmem:[%s7774_s3 + $0x50] ss:$8 sps:$4 sm:$0xff]  }
  0xed   : > { %2094 = vmatpush1.bf16.msra.mxu0 %v5499_v58  ;;  %v5563_v58 = vld [vmem:[%s7774_s3 + $0x114] ss:$8 sps:$4 sm:$0xff]  }
  0xee   : > { %2095 = vmatprep.subr.bf16.mxu0 %v5506_v63 }
  0xf1   : > { %2096 = vmatpush1.bf16.msra.mxu0 %v5504_v0  ;;  %v5561_v0 = vld [vmem:[%s7774_s3 + $0x110] ss:$8 sps:$4 sm:$0xff]  }
  0xf2   : > { %2097 = vmatprep.subr.bf16.mxu0 %v5511_v1  ;;  %v5566_v1 = vld [vmem:[%s7774_s3 + $0x64] ss:$8 sps:$4 sm:$0xff]  }
  0xf5   : > { %2098 = vmatpush1.bf16.msra.mxu0 %v5509_v2  ;;  %v5564_v2 = vld [vmem:[%s7774_s3 + $0x60] ss:$8 sps:$4 sm:$0xff]  }
  0xf6   : > { %2099 = vmatprep.subr.bf16.mxu0 %v5516_v3  ;;  %v5569_v3 = vld [vmem:[%s7774_s3 + $0x124] ss:$8 sps:$4 sm:$0xff]  }
  0xf9   : > { %2100 = vmatpush1.bf16.msra.mxu0 %v5514_v7  ;;  %v5567_v7 = vld [vmem:[%s7774_s3 + $0x120] ss:$8 sps:$4 sm:$0xff]  }
  0xfa   : > { %2101 = vmatprep.subr.bf16.mxu0 %v5519_v20  ;;  %v5572_v20 = vld [vmem:[%s7774_s3 + $0x74] ss:$8 sps:$4 sm:$0xff]  }
  0xfd   : > { %2102 = vmatpush1.bf16.msra.mxu0 %v5517_v22  ;;  %v5570_v22 = vld [vmem:[%s7774_s3 + $0x70] ss:$8 sps:$4 sm:$0xff]  }
  0xfe   : > { %2124 = vmatprep.subr.bf16.mxu0 %v5522_v23  ;;  %v5575_v23 = vld [vmem:[%s7774_s3 + $0x134] ss:$8 sps:$4 sm:$0xff]  }
 0x100   : > { %2104 = vmatmul.mubr.bf16.vlgmr.msra.gmra.mrb[0].mxu0 %v6361_v46  ;;  %v5528_v46 = vld [vmem:[%s7774_s3] ss:$8 sps:$4 sm:$0xff]  }
 0x101   : > { %2125 = vmatpush1.bf16.msra.mxu0 %v5520_v25  ;;  %4625 = vmatprep.mubr.msk.bf16.mxu0 %vm6588_vm6, %v6608_v39  ;;  %v5573_v25 = vld [vmem:[%s7774_s3 + $0x130] ss:$8 sps:$4 sm:$0xff]  }
 0x102   : > { %2126 = vmatprep.subr.bf16.mxu0 %v5527_v26  ;;  %2785 = vmatpush1.bf16.msra.mxu1 %v5528_v46  ;;  %v5578_v26 = vld [vmem:[%s7774_s3 + $0x84] ss:$8 sps:$4 sm:$0xff]  }
 0x103   : > { %2786 = vmatprep.subr.bf16.mxu1 %v5536_v31  ;;  %v5581_v46 = vld [vmem:[%s7774_s3 + $0x144] ss:$8 sps:$4 sm:$0xff]   ;;  %v5585_v31 = vld [vmem:[%s7774_s3 + $0x150] ss:$8 sps:$4 sm:$0xff]  }
 0x105   : > { %2127 = vmatpush1.bf16.msra.mxu0 %v5525_v27  ;;  %v5576_v27 = vld [vmem:[%s7774_s3 + $0x80] ss:$8 sps:$4 sm:$0xff]  }
 0x106   : > { %2605 = vmatprep.subr.bf16.mxu0 %v5533_v30  ;;  %v5582_v30 = vld [vmem:[%s7774_s3 + $0x90] ss:$8 sps:$4 sm:$0xff]  }
 0x108   : > { %4628 = vmatmul.mubr.msk.bf16.gmra.mrb[4].mxu0 %vm6588_vm6, %v6641_v10 }
 0x109   : > { %2156 = vmatprep.mubr.bf16.mxu0 %v5928_v11 }
 0x110   : > { %4629 = vmatmul.mubr.msk.bf16.vlgmr.msra.gmra.mrb[0].mxu0 %vm952_vm1, %v6648_v32 }
 0x111   : > { %2166 = vmatprep.mubr.bf16.mxu0 %v5928_v11  ;;  %2606 = vmatpush1.bf16.msra.mxu0 %v5531_v29  ;;  %v5534_v11 = vld [vmem:[%s7774_s3 + $0x10] ss:$8 sps:$4 sm:$0xff]   ;;  %v5584_v29 = vld [vmem:[%s7774_s3 + $0x94] ss:$8 sps:$4 sm:$0xff]  }
 0x112   : > { %2787 = vmatpush1.bf16.msra.mxu1 %v5534_v11  ;;  %2607 = vmatprep.subr.bf16.mxu0 %v5539_v35  ;;  %v5587_v11 = vld [vmem:[%s7774_s3 + $0x154] ss:$8 sps:$4 sm:$0xff]   ;;  %v5588_v35 = vld [vmem:[%s7774_s3 + $0xa0] ss:$8 sps:$4 sm:$0xff]  }
 0x113   : > { %2788 = vmatprep.subr.bf16.mxu1 %v5542_v59 }
 0x115   : > { %2608 = vmatpush1.bf16.msra.mxu0 %v5537_v34  ;;  %v5590_v34 = vld [vmem:[%s7774_s3 + $0xa4] ss:$8 sps:$4 sm:$0xff]  }
 0x116   : > { %2789 = vmatpush1.bf16.msra.mxu1 %v5540_v5  ;;  %2609 = vmatprep.subr.bf16.mxu0 %v5545_v12 }
 0x117   : > { %2790 = vmatprep.subr.bf16.mxu1 %v5548_v48 }
 0x118   : > { %4630 = vmatmul.mubr.msk.bf16.gmra.mrb[4].mxu0 %vm952_vm1, %v6666_v49 }
 0x119   : > { %2610 = vmatpush1.bf16.msra.mxu0 %v5543_v19 }
 0x11a   : > { %2611 = vmatprep.subr.bf16.mxu0 %v5551_v33  ;;  %2791 = vmatpush1.bf16.msra.mxu1 %v5546_v18 }
 0x11b   : > { %2792 = vmatprep.subr.bf16.mxu1 %v5554_v14 }
 0x11d   : > { %v4926_v24 = vpop.f32.mrb[0].mxu1  ;;  %2612 = vmatpush1.bf16.msra.mxu0 %v5549_v50  ;;  %v2287_v50 = vld [vmem:[%s7775_s2] sm:$0x7] }
 0x11e   : > { %v4927_v37 = vpop.f32.mrb[1].mxu1  ;;  %2613 = vmatprep.subr.bf16.mxu0 %v5557_v51  ;;  %2793 = vmatpush1.bf16.msra.mxu1 %v5552_v9 }
 0x11f   : > { %v4928_v15 = vadd.f32 %v4927_v37, %v4926_v24  ;;  %v4929_v57 = vpop.f32.mrb[2].mxu1  ;;  %2794 = vmatprep.subr.bf16.mxu1 %v5560_v61  ;;  %v5593_v24 = vld [vmem:[%s7774_s3 + $0x164] ss:$8 sps:$4 sm:$0xff]   ;;  %v5591_v37 = vld [vmem:[%s7774_s3 + $0x160] ss:$8 sps:$4 sm:$0xff]  }
 0x120   : > { %v4930_v16 = vpop.f32.mrb[3].mxu1 }
 0x121   : > { %v4931_v38 = vadd.f32 %v4930_v16, %v4929_v57  ;;  %2614 = vmatpush1.bf16.msra.mxu0 %v5555_v54  ;;  %v5594_v57 = vld [vmem:[%s7774_s3 + $0xb0] ss:$8 sps:$4 sm:$0xff]   ;;  %v5599_v16 = vld [vmem:[%s7774_s3 + $0x174] ss:$8 sps:$4 sm:$0xff]  }
 0x122   : > { %2615 = vmatprep.subr.bf16.mxu0 %v5563_v58  ;;  %2795 = vmatpush1.bf16.msra.mxu1 %v5558_v62 }
 0x123   : > { %2796 = vmatprep.subr.bf16.mxu1 %v5566_v1 }
 0x125   : > { %v4932_v39 = vpop.f32.mrb[4].mxu1  ;;  %2616 = vmatpush1.bf16.msra.mxu0 %v5561_v0 }
 0x126   : > { %v4933_v40 = vpop.f32.mrb[5].mxu1  ;;  %2617 = vmatprep.subr.bf16.mxu0 %v5569_v3  ;;  %2797 = vmatpush1.bf16.msra.mxu1 %v5564_v2 }
 0x127   : > { %v4934_v42 = vadd.f32 %v4933_v40, %v4932_v39  ;;  %v4935_v43 = vpop.f32.mrb[6].mxu1  ;;  %2798 = vmatprep.subr.bf16.mxu1 %v5572_v20  ;;  %v5602_v39 = vld [vmem:[%s7774_s3 + $0x184] ss:$8 sps:$4 sm:$0xff]  }
 0x128   : > { %v4936_v21 = vpop.f32.mrb[7].mxu1 }
 0x129   : > { %v4937_v44 = vadd.f32 %v4936_v21, %v4935_v43  ;;  %2618 = vmatpush1.bf16.msra.mxu0 %v5567_v7 }
 0x12a   : > { %2619 = vmatprep.subr.bf16.mxu0 %v5575_v23  ;;  %2799 = vmatpush1.bf16.msra.mxu1 %v5570_v22 }
 0x12b   : > { %2800 = vmatprep.subr.bf16.mxu1 %v5578_v26 }
 0x12d   : > { %2620 = vmatpush1.bf16.msra.mxu0 %v5573_v25 }
 0x12e   : > { %2621 = vmatprep.subr.bf16.mxu0 %v5581_v46  ;;  %2801 = vmatpush1.bf16.msra.mxu1 %v5576_v27 }
 0x12f   : > { %2802 = vmatprep.subr.bf16.mxu1 %v5584_v29 }
 0x131   : > { %2622 = vmatpush1.bf16.msra.mxu0 %v5579_v28 }
 0x132   : > { %2623 = vmatprep.subr.bf16.mxu0 %v5587_v11  ;;  %2803 = vmatpush1.bf16.msra.mxu1 %v5582_v30 }
 0x133   : > { %2804 = vmatprep.subr.bf16.mxu1 %v5590_v34 }
 0x135   : > { %2624 = vmatpush1.bf16.msra.mxu0 %v5585_v31 }
 0x136   : > { %2625 = vmatprep.subr.bf16.mxu0 %v5593_v24  ;;  %2805 = vmatpush1.bf16.msra.mxu1 %v5588_v35 }
 0x139   : > { %2626 = vmatpush1.bf16.msra.mxu0 %v5591_v37 }
 0x13a   : > { %2627 = vmatprep.subr.bf16.mxu0 %v5599_v16 }
 0x14d   : > { %v4958_v45 = vpop.f32.mrb[12].mxu1 }
 0x14e   : > { %v4959_v4 = vpop.f32.mrb[13].mxu1 }
 0x14f   : > { %v4960_v6 = vadd.f32 %v4959_v4, %v4958_v45  ;;  %v4961_v10 = vpop.f32.mrb[14].mxu1  ;;  %v2289_v45 = vlaneseq }
 0x150   : > { %v4962_v41 = vpop.f32.mrb[15].mxu1 }
 0x151   : > { %v6800_v32 = vadd.f32 %v4960_v6, %v4928_v15  ;;  %v4963_v47 = vadd.f32 %v4962_v41, %v4961_v10  ;;  %v5596_v15 = vld [vmem:[%s7774_s3 + $0xb4] ss:$8 sps:$4 sm:$0xff]   ;;  %v6922_v12 = vshrl.u32 %v2289_v45, 7 }
 0x152   : > { %2806 = vmatprep.subr.bf16.mxu1 %v5596_v15 }
 0x153   : > { %v6811_v49 = vadd.f32 %v4963_v47, %v4931_v38  ;;  %v5597_v38 = vld [vmem:[%s7774_s3 + $0x170] ss:$8 sps:$4 sm:$0xff]   ;;  %2807 = vmatpush1.bf16.msra.mxu1 %v5594_v57  ;;  %v2299_v48 = vsub.s32 2, %v6922_v12  ;;  %v2291_v62 = vsub.s32 0, %v6922_v12  ;;  %v2295_v58 = vsub.s32 1, %v6922_v12 }
 0x154   : > { %2628 = vmatpush1.bf16.msra.mxu0 %v5597_v38  ;;  %2992 = vmatprep.subr.bf16.mxu1 %v5602_v39 }
 0x155   : > { %v4964_v13 = vpop.f32.mrb[16].mxu1  ;;  %v2296_v0 = vrot.slane %v2287_v50, %v2295_v58 }
 0x156   : > { %v4965_v8 = vpop.f32.mrb[17].mxu1 }
 0x157   : > { %v4966_v52 = vadd.f32 %v4965_v8, %v4964_v13  ;;  %v4967_v53 = vpop.f32.mrb[18].mxu1 }
 0x158   : > { %v4968_v55 = vpop.f32.mrb[19].mxu1 }
 0x159   : > { %v6828_v56 = vadd.f32 %v4966_v52, %v4934_v42  ;;  %v4969_v60 = vadd.f32 %v4968_v55, %v4967_v53 }
 0x15b   : > { %v6839_v63 = vadd.f32 %v4969_v60, %v4937_v44 }
 0x17d   : > { %v4990_v40 = vpop.f32.mrb[20].mxu1 }
 0x17e   : > { %v4991_v42 = vpop.f32.mrb[21].mxu1 }
 0x17f   : > { %v4992_v43 = vadd.f32 %v4991_v42, %v4990_v40  ;;  %v4993_v21 = vpop.f32.mrb[22].mxu1 }
 0x180   : > { %v4994_v44 = vpop.f32.mrb[23].mxu1 }
 0x181   : > { %v4995_v59 = vadd.f32 %v4994_v44, %v4993_v21  ;;  %v5154_v4 = vadd.f32 %v6800_v32, %v4992_v43 }
 0x183   : > { %v5160_v5 = vadd.f32 %v6811_v49, %v4995_v59  ;;  %v2300_v49 = vrot.slane %v2287_v50, %v2299_v48 }
 0x189   : > { %v4996_v6 = vpop.f32.mrb[24].mxu1 }
 0x18a   : > { %v4997_v10 = vpop.f32.mrb[25].mxu1 }
 0x18b   : > { %v4998_v19 = vadd.f32 %v4997_v10, %v4996_v6  ;;  %v4999_v41 = vpop.f32.mrb[26].mxu1 }
 0x18c   : > { %v5000_v47 = vpop.f32.mrb[27].mxu1 }
 0x18d   : > { %v5001_v18 = vadd.f32 %v5000_v47, %v4999_v41  ;;  %v5151_v33 = vadd.f32 %v6828_v56, %v4998_v19 }
 0x18f   : > { %v5157_v32 = vadd.f32 %v6839_v63, %v5001_v18  ;;  %v2292_v63 = vrot.slane %v2287_v50, %v2291_v62 }
 0x196   : > { %v5056_v13 = vpop.f32.mrb[8].mxu1 }
 0x197   : > { %v5152_v14 = vadd.f32 %v5151_v33, %v5056_v13  ;;  %v2260_v8 = vpop.f32.mrb[9].mxu1 }
 0x198   : > { %v5155_v9 = vadd.f32 %v5154_v4, %v2260_v8  ;;  %v5057_v51 = vpop.f32.mrb[10].mxu1 }
 0x199   : > { %v5158_v52 = vadd.f32 %v5157_v32, %v5057_v51  ;;  %v2263_v53 = vpop.f32.mrb[11].mxu1  ;;  %v2312_v54 = vadd.f32 %v5152_v14, %v2300_v49 }
 0x19a   : > { %v5161_v55 = vadd.f32 %v5160_v5, %v2263_v53  ;;  %v2306_v60 = vadd.f32 %v5155_v9, %v2300_v49 }
 0x19b   : > { %v2315_v61 = vadd.f32 %v5158_v52, %v2300_v49  ;;  %3572 = vrot.lane.b32.xlu1 %v2312_v54, %s5930_s25 }
 0x19c   : > { %v2309_v56 = vadd.f32 %v5161_v55, %v2300_v49  ;;  %3564 = vrot.lane.b32.xlu0 %v2306_v60, %s5930_s25 }
 0x19f   : > { %3568 = vrot.lane.b32.xlu1 %v2309_v56, %s5930_s25 }
 0x1e3   : > { %v2158_v1 = vpop.f32.mrb[0].mxu0 }
 0x1e4   : > { %v6939_v2 = vadd.f32 %v2292_v63, %v2158_v1  ;;  %v2160_v3 = vpop.f32.mrb[1].mxu0 }
 0x1e5   : > { %v6941_v7 = vadd.f32 %v2296_v0, %v2160_v3  ;;  %v2162_v20 = vpop.f32.mrb[2].mxu0 }
 0x1e6   : > { %v2316_v22 = vsub.f32 0.0, %v6939_v2  ;;  %v6944_v23 = vadd.f32 %v2292_v63, %v2162_v20  ;;  %v2164_v25 = vpop.f32.mrb[3].mxu0 }
 0x1e7   : > { %v2317_v26 = vsub.f32 0.0, %v6941_v7  ;;  %v6947_v27 = vadd.f32 %v2296_v0, %v2164_v25  ;;  %3562 = vrot.lane.b32.xlu0 %v6941_v7, %s5930_s25 }
 0x1e8   : > { %v2324_v46 = vmul.f32 1.442695, %v2316_v22  ;;  %v2318_v28 = vsub.f32 0.0, %v6944_v23 }
 0x1e9   : > { %v2326_v29 = vmul.f32 1.442695, %v2317_v26  ;;  %v2319_v30 = vsub.f32 0.0, %v6947_v27  ;;  %3566 = vrot.lane.b32.xlu1 %v6947_v27, %s5930_s25 }
 0x1ea   : > { %5708 = vpow2.f32 %v2324_v46  ;;  %v2328_v11 = vmul.f32 1.442695, %v2318_v28 }
 0x1eb   : > { %5710 = vpow2.f32 %v2326_v29  ;;  %v2330_v31 = vmul.f32 1.442695, %v2319_v30  ;;  %v2168_v34 = vpop.f32.mrb[4].mxu0 }
 0x1ec   : > { %5712 = vpow2.f32 %v2328_v11  ;;  %v6955_v35 = vadd.f32 %v2292_v63, %v2168_v34  ;;  %v2170_v24 = vpop.f32.mrb[5].mxu0 }
 0x1ed   : > { %5714 = vpow2.f32 %v2330_v31  ;;  %v6957_v37 = vadd.f32 %v2296_v0, %v2170_v24  ;;  %v2172_v15 = vpop.f32.mrb[6].mxu0  ;;  %3576 = vrot.lane.b32.xlu1 %v2315_v61, %s5930_s25 }
 0x1ee   : > { %v2320_v57 = vsub.f32 0.0, %v6955_v35  ;;  %v6961_v16 = vadd.f32 %v2292_v63, %v2172_v15  ;;  %v2174_v38 = vpop.f32.mrb[7].mxu0 }
 0x1ef   : > { %v2321_v39 = vsub.f32 0.0, %v6957_v37  ;;  %v6964_v40 = vadd.f32 %v2296_v0, %v2174_v38  ;;  %3570 = vrot.lane.b32.xlu0 %v6957_v37, %s5930_s25 }
 0x1f0   : > { %v2332_v42 = vmul.f32 1.442695, %v2320_v57  ;;  %v2322_v43 = vsub.f32 0.0, %v6961_v16 }
 0x1f1   : > { %v2334_v21 = vmul.f32 1.442695, %v2321_v39  ;;  %v2323_v44 = vsub.f32 0.0, %v6964_v40 }
 0x1f2   : > { %5716 = vpow2.f32 %v2332_v42  ;;  %v2336_v59 = vmul.f32 1.442695, %v2322_v43 }
 0x1f3   : > { %5718 = vpow2.f32 %v2334_v21  ;;  %v2338_v4 = vmul.f32 1.442695, %v2323_v44  ;;  %3574 = vrot.lane.b32.xlu0 %v6964_v40, %s5930_s25 }
 0x1f4   : > { %v5709_v5 = vpop.eup %5708  ;;  %5720 = vpow2.f32 %v2336_v59  ;;  %v5600_v59 = vld [vmem:[%s7774_s3 + $0x180] ss:$8 sps:$4 sm:$0xff]  }
 0x1f5   : > { %v5711_v6 = vpop.eup %5710  ;;  %v2340_v10 = vadd.f32 1.0, %v5709_v5  ;;  %5722 = vpow2.f32 %v2338_v4 }
 0x1f6   : > { %v5713_v19 = vpop.eup %5712  ;;  %v2341_v41 = vadd.f32 1.0, %v5711_v6 }
 0x1f7   : > { %v5715_v47 = vpop.eup %5714  ;;  %5724 = vrcp.f32 %v2340_v10  ;;  %v2342_v48 = vadd.f32 1.0, %v5713_v19 }
 0x1f8   : > { %5726 = vrcp.f32 %v2341_v41  ;;  %v2343_v18 = vadd.f32 1.0, %v5715_v47 }
 0x1f9   : > { %5728 = vrcp.f32 %v2342_v48 }
 0x1fa   : > { %5730 = vrcp.f32 %v2343_v18 }
 0x1fc   : > { %v5717_v33 = vpop.eup %5716 }
 0x1fd   : > { %v5719_v50 = vpop.eup %5718  ;;  %v2344_v32 = vadd.f32 1.0, %v5717_v33 }
 0x1fe   : > { %v5721_v49 = vpop.eup %5720  ;;  %v2345_v13 = vadd.f32 1.0, %v5719_v50 }
 0x1ff   : > { %v5723_v14 = vpop.eup %5722  ;;  %5732 = vrcp.f32 %v2344_v32  ;;  %v2346_v8 = vadd.f32 1.0, %v5721_v49 }
 0x200   : > { %5734 = vrcp.f32 %v2345_v13  ;;  %v2347_v9 = vadd.f32 1.0, %v5723_v14  ;;  %v5603_v14 = vld [vmem:[%s7774_s3 + $0x190] ss:$8 sps:$4 sm:$0xff]  }
 0x201   : > { %v5725_v51 = vpop.eup %5724  ;;  %5736 = vrcp.f32 %v2346_v8 }
 0x202   : > { %v5727_v52 = vpop.eup %5726  ;;  %v6973_v53 = vmul.f32 %v5725_v51, %v6939_v2  ;;  %5738 = vrcp.f32 %v2347_v9 }
 0x203   : > { %v5729_v54 = vpop.eup %5728  ;;  %v6976_v55 = vmul.f32 %v5727_v52, %v6941_v7 }
 0x204   : > { %v5731_v60 = vpop.eup %5730  ;;  %v2425_v61 = vrot.slane %v6973_v53, 7  ;;  %v3053_v56 = vrot.slane %v6973_v53, 1  ;;  %v3294_v63 = vrot.slane %v6973_v53, 2  ;;  %v6982_v0 = vmul.f32 %v5729_v54, %v6944_v23 }
 0x205   : > { %v6985_v1 = vmul.f32 %v5731_v60, %v6947_v27  ;;  %v2426_v2 = vrot.slane %v6976_v55, 7  ;;  %v2374_v3 = vrot.slane %v6976_v55, 6  ;;  %v2373_v7 = vrot.slane %v6973_v53, 6 }
 0x206   : > { %v2375_v20 = vrot.slane %v6982_v0, 6  ;;  %v2427_v22 = vrot.slane %v6982_v0, 7  ;;  %v3054_v25 = vrot.slane %v6982_v0, 1  ;;  %v3295_v26 = vrot.slane %v6982_v0, 2 }
 0x207   : > { %v2429_v23 = vrot.slane %v6985_v1, 7  ;;  %v2448_v46 = vsel %vm446_vm0, 0.0, %v2426_v2  ;;  %v2377_v27 = vrot.slane %v6985_v1, 6  ;;  %v2396_v28 = vsel %vm2372_vm8, 0.0, %v2374_v3 }
 0x208   : > { %v2428_v30 = vsel %vm446_vm0, %v2425_v61, %v2427_v22  ;;  %v2376_v11 = vsel %vm2372_vm8, %v2373_v7, %v2375_v20  ;;  %v2838_v31 = vpack.c.bf16 %v6985_v1, %v6976_v55  ;;  %v2837_v34 = vpack.c.bf16 %v6982_v0, %v6973_v53  ;;  %v5642_v53 = vld [vmem:[%s7774_s3 + $0x260] ss:$8 sps:$4 sm:$0xff]   ;;  %v5647_v0 = vld [vmem:[%s7774_s3 + $0x274] ss:$8 sps:$4 sm:$0xff]  }
 0x209   : > { %v5733_v24 = vpop.eup %5732  ;;  %v2430_v15 = vsel %vm446_vm0, %v2426_v2, %v2429_v23  ;;  %v2378_v57 = vsel %vm2372_vm8, %v2374_v3, %v2377_v27  ;;  %v4690_v38 = vpack.c.bf16 %v2428_v30, %v2425_v61  ;;  %v4720_v39 = vpack.c.bf16 %v2376_v11, %v2373_v7  ;;  %v5608_v61 = vld [vmem:[%s7774_s3 + $0x1a4] ss:$8 sps:$4 sm:$0xff]   ;;  %v5606_v30 = vld [vmem:[%s7774_s3 + $0x1a0] ss:$8 sps:$4 sm:$0xff]  }
 0x20a   : > { %v5735_v42 = vpop.eup %5734  ;;  %v7012_v43 = vmul.f32 %v5733_v24, %v6955_v35  ;;  %v2450_v21 = vpack.c.bf16 %v2430_v15, %v2448_v46  ;;  %v2398_v44 = vpack.c.bf16 %v2378_v57, %v2396_v28  ;;  %v3056_v5 = vrot.slane %v6976_v55, 1  ;;  %v5605_v35 = vld [vmem:[%s7774_s3 + $0x194] ss:$8 sps:$4 sm:$0xff]  }
 0x20b   : > { %v5737_v6 = vpop.eup %5736  ;;  %v7026_v10 = vmul.f32 %v5735_v42, %v6957_v37  ;;  %v3057_v19 = vrot.slane %v6985_v1, 1  ;;  %v7035_v41 = vsel %vm1661_vm5, %v3053_v56, %v3054_v25  ;;  %v3297_v47 = vrot.slane %v6976_v55, 2  ;;  %v5611_v24 = vld [vmem:[%s7774_s3 + $0x1b4] ss:$8 sps:$4 sm:$0xff]  }
 0x20c   : > { %v5739_v48 = vpop.eup %5738  ;;  %v3059_v18 = vrot.slane %v7012_v43, 1  ;;  %v3300_v33 = vrot.slane %v7012_v43, 2  ;;  %v7041_v37 = vmul.f32 %v5737_v6, %v6961_v16  ;;  %4687 = vmatprep.mubr.msk.bf16.mxu0 %vm2598_vm7, %v2450_v21  ;;  %4717 = vmatprep.mubr.msk.bf16.mxu1 %vm2598_vm7, %v2398_v44  ;;  %v2431_v50 = vrot.slane %v7012_v43, 7 }
 0x20d   : > { %v7047_v32 = vmul.f32 %v5739_v48, %v6964_v40  ;;  %4691 = vmatmul.mubr.msk.bf16.vlgmr.msra.gmra.mrb[8].mxu0 %vm6325_vm4, %v4690_v38  ;;  %4721 = vmatmul.mubr.msk.bf16.vlgmr.msra.gmra.mrb[28].mxu1 %vm7020_vm11, %v4720_v39  ;;  %v2433_v49 = vrot.slane %v7026_v10, 7  ;;  %v2381_v16 = vrot.slane %v7026_v10, 6  ;;  %v2379_v13 = vrot.slane %v7012_v43, 6 }
 0x20e   : > { %2993 = vmatpush1.bf16.msra.mxu1 %v5600_v59  ;;  %v2432_v40 = vsel %vm446_vm0, %v2427_v22, %v2431_v50  ;;  %v2435_v8 = vrot.slane %v7041_v37, 7  ;;  %v2383_v36 = vrot.slane %v7041_v37, 6  ;;  %v2839_v9 = vpack.c.bf16 %v7041_v37, %v7012_v43  ;;  %v5648_v43 = vld [vmem:[%s7774_s3 + $0x280] ss:$8 sps:$4 sm:$0xff]  }
 0x20f   : > { %2994 = vmatprep.subr.bf16.mxu1 %v5605_v35  ;;  %v2434_v51 = vsel %vm446_vm0, %v2429_v23, %v2433_v49  ;;  %v2437_v52 = vrot.slane %v7047_v32, 7  ;;  %v2382_v54 = vsel %vm2372_vm8, %v2377_v27, %v2381_v16  ;;  %v2385_v60 = vrot.slane %v7047_v32, 6 }
 0x210   : > { %v2436_v56 = vsel %vm446_vm0, %v2431_v50, %v2435_v8  ;;  %v2380_v2 = vsel %vm2372_vm8, %v2375_v20, %v2379_v13  ;;  %v2384_v3 = vsel %vm2372_vm8, %v2379_v13, %v2383_v36  ;;  %v2840_v7 = vpack.c.bf16 %v7047_v32, %v7026_v10  ;;  %v5617_v36 = vld [vmem:[%s7774_s3 + $0x1d4] ss:$8 sps:$4 sm:$0xff]  }
 0x211   : > { %v2438_v22 = vsel %vm446_vm0, %v2433_v49, %v2437_v52  ;;  %v2386_v23 = vsel %vm2372_vm8, %v2381_v16, %v2385_v60  ;;  %v2451_v46 = vpack.c.bf16 %v2436_v56, %v2432_v40  ;;  %v2399_v27 = vpack.c.bf16 %v2384_v3, %v2380_v2  ;;  %v5612_v40 = vld [vmem:[%s7774_s3 + $0x1c0] ss:$8 sps:$4 sm:$0xff]   ;;  %v5621_v60 = vld [vmem:[%s7774_s3 + $0x1f0] ss:$8 sps:$4 sm:$0xff]   ;;  %v5629_v2 = vld [vmem:[%s7774_s3 + $0x214] ss:$8 sps:$4 sm:$0xff]  }
 0x212   : > { %2995 = vmatpush1.bf16.msra.mxu1 %v5603_v14  ;;  %v2452_v28 = vpack.c.bf16 %v2438_v22, %v2434_v51  ;;  %v2400_v29 = vpack.c.bf16 %v2386_v23, %v2382_v54  ;;  %v7082_v20 = vsel %vm1661_vm5, %v3056_v5, %v3057_v19  ;;  %v3061_v11 = vrot.slane %v7026_v10, 1  ;;  %v5615_v51 = vld [vmem:[%s7774_s3 + $0x1d0] ss:$8 sps:$4 sm:$0xff]   ;;  %v5618_v52 = vld [vmem:[%s7774_s3 + $0x1e0] ss:$8 sps:$4 sm:$0xff]  }
 0x213   : > { %2996 = vmatprep.subr.bf16.mxu1 %v5608_v61  ;;  %v7091_v15 = vsel %vm1661_vm5, %v3054_v25, %v3059_v18  ;;  %v3065_v57 = vrot.slane %v7047_v32, 1  ;;  %v3063_v38 = vrot.slane %v7041_v37, 1  ;;  %v3298_v39 = vrot.slane %v6985_v1, 2  ;;  %v5614_v1 = vld [vmem:[%s7774_s3 + $0x1c4] ss:$8 sps:$4 sm:$0xff]  }
 0x214   : > { %4692 = vmatprep.mubr.msk.bf16.mxu0 %vm2598_vm7, %v2452_v28  ;;  %4722 = vmatprep.mubr.msk.bf16.mxu1 %vm2598_vm7, %v2400_v29  ;;  %v7099_v42 = vsel %vm1661_vm5, %v3057_v19, %v3061_v11  ;;  %v3077_v21 = vpack.c.bf16 %v7091_v15, %v7035_v41  ;;  %v3302_v44 = vrot.slane %v7026_v10, 2  ;;  %v7109_v25 = vsel %vm3293_vm10, %v3294_v63, %v3295_v26  ;;  %v5609_v63 = vld [vmem:[%s7774_s3 + $0x1b0] ss:$8 sps:$4 sm:$0xff]   ;;  %v5623_v54 = vld [vmem:[%s7774_s3 + $0x1f4] ss:$8 sps:$4 sm:$0xff]  }
 0x215   : > { %2648 = vmatmul.mubr.bf16.gmra.mrb[12].mxu0 %v2451_v46  ;;  %2827 = vmatmul.mubr.bf16.gmra.mrb[32].mxu1 %v2399_v27  ;;  %v3078_v59 = vpack.c.bf16 %v7099_v42, %v7082_v20  ;;  %v7114_v4 = vsel %vm1661_vm5, %v3061_v11, %v3065_v57  ;;  %v7117_v5 = vsel %vm1661_vm5, %v3065_v57, 0.0  ;;  %v3064_v6 = vsel %vm1661_vm5, %v3059_v18, %v3063_v38  ;;  %v5626_v61 = vld [vmem:[%s7774_s3 + $0x204] ss:$8 sps:$4 sm:$0xff]   ;;  %v5624_v56 = vld [vmem:[%s7774_s3 + $0x200] ss:$8 sps:$4 sm:$0xff]  }
 0x216   : > { %2997 = vmatpush1.bf16.msra.mxu1 %v5606_v30  ;;  %4771 = vmatprep.mubr.msk.bf16.mxu1 %vm2598_vm7, %v2838_v31  ;;  %v3080_v35 = vpack.c.bf16 %v7117_v5, %v7114_v4  ;;  %v7129_v19 = vpack.c.bf16 %v3063_v38, %v3064_v6  ;;  %v7134_v48 = vsel %vm3293_vm10, %v3297_v47, %v3298_v39  ;;  %v3306_v18 = vrot.slane %v7047_v32, 2  ;;  %v5627_v3 = vld [vmem:[%s7774_s3 + $0x210] ss:$8 sps:$4 sm:$0xff]   ;;  %v5632_v22 = vld [vmem:[%s7774_s3 + $0x224] ss:$8 sps:$4 sm:$0xff]  }
 0x217   : > { %2998 = vmatprep.subr.bf16.mxu1 %v5611_v24  ;;  %v7141_v31 = vsel %vm3293_vm10, %v3298_v39, %v3302_v44  ;;  %v7148_v50 = vsel %vm3293_vm10, %v3295_v26, %v3300_v33  ;;  %v3304_v55 = vrot.slane %v7041_v37, 2  ;;  %v5630_v23 = vld [vmem:[%s7774_s3 + $0x220] ss:$8 sps:$4 sm:$0xff]   ;;  %v5635_v46 = vld [vmem:[%s7774_s3 + $0x234] ss:$8 sps:$4 sm:$0xff]  }
 0x218   : > { %v3319_v47 = vpack.c.bf16 %v7141_v31, %v7134_v48  ;;  %v3318_v49 = vpack.c.bf16 %v7148_v50, %v7109_v25  ;;  %v7156_v16 = vsel %vm3293_vm10, %v3302_v44, %v3306_v18  ;;  %v7159_v13 = vsel %vm3293_vm10, %v3306_v18, 0.0  ;;  %v5633_v27 = vld [vmem:[%s7774_s3 + $0x230] ss:$8 sps:$4 sm:$0xff]   ;;  %v5638_v28 = vld [vmem:[%s7774_s3 + $0x244] ss:$8 sps:$4 sm:$0xff]   ;;  %v3573_v25 = vpop.permute.xlu1 %3572  ;;  %v3565_v50 = vpop.permute.xlu0 %3564 }
 0x219   : > { %v3321_v14 = vpack.c.bf16 %v7159_v13, %v7156_v16  ;;  %v3305_v26 = vsel %vm3293_vm10, %v3300_v33, %v3304_v55  ;;  %v5620_v33 = vld [vmem:[%s7774_s3 + $0x1e4] ss:$8 sps:$4 sm:$0xff]   ;;  %v5636_v29 = vld [vmem:[%s7774_s3 + $0x240] ss:$8 sps:$4 sm:$0xff]   ;;  %v5641_v30 = vld [vmem:[%s7774_s3 + $0x254] ss:$8 sps:$4 sm:$0xff]  }
 0x21a   : > { %2999 = vmatpush1.bf16.msra.mxu1 %v5609_v63  ;;  %v7169_v8 = vpack.c.bf16 %v3304_v55, %v3305_v26  ;;  %v5639_v11 = vld [vmem:[%s7774_s3 + $0x250] ss:$8 sps:$4 sm:$0xff]   ;;  %v5644_v24 = vld [vmem:[%s7774_s3 + $0x264] ss:$8 sps:$4 sm:$0xff]   ;;  %v5653_v37 = vld [vmem:[%s7774_s3 + $0x294] ss:$8 sps:$4 sm:$0xff]  }
 0x21b   : > { %3000 = vmatprep.subr.bf16.mxu1 %v5614_v1  ;;  %v5650_v10 = vld [vmem:[%s7774_s3 + $0x284] ss:$8 sps:$4 sm:$0xff]   ;;  %v5651_v32 = vld [vmem:[%s7774_s3 + $0x290] ss:$8 sps:$4 sm:$0xff]   ;;  %v5659_v20 = vld [vmem:[%s7774_s3 + $0x2b4] ss:$8 sps:$4 sm:$0xff]  }
 0x21c   : > { %v5657_v57 = vld [vmem:[%s7774_s3 + $0x2b0] ss:$8 sps:$4 sm:$0xff]   ;;  %v5662_v38 = vld [vmem:[%s7774_s3 + $0x2c4] ss:$8 sps:$4 sm:$0xff]   ;;  %v5660_v39 = vld [vmem:[%s7774_s3 + $0x2c0] ss:$8 sps:$4 sm:$0xff]   ;;  %v3569_v16 = vpop.permute.xlu1 %3568 }
 0x21d   : > { %v5665_v42 = vld [vmem:[%s7774_s3 + $0x2d4] ss:$8 sps:$4 sm:$0xff]   ;;  %v5663_v44 = vld [vmem:[%s7774_s3 + $0x2d0] ss:$8 sps:$4 sm:$0xff]   ;;  %v5666_v6 = vld [vmem:[%s7774_s3 + $0x2e0] ss:$8 sps:$4 sm:$0xff]  }
 0x21e   : > { %3001 = vmatpush1.bf16.msra.mxu1 %v5612_v40  ;;  %v5671_v63 = vld [vmem:[%s7774_s3 + $0x2f4] ss:$8 sps:$4 sm:$0xff]   ;;  %v5669_v18 = vld [vmem:[%s7774_s3 + $0x2f0] ss:$8 sps:$4 sm:$0xff]   ;;  %v5674_v1 = vld [vmem:[%s7774_s3 + $0x304] ss:$8 sps:$4 sm:$0xff]  }
 0x21f   : > { %3002 = vmatprep.subr.bf16.mxu1 %v5617_v36  ;;  %v5672_v55 = vld [vmem:[%s7774_s3 + $0x300] ss:$8 sps:$4 sm:$0xff]   ;;  %v5677_v26 = vld [vmem:[%s7774_s3 + $0x314] ss:$8 sps:$4 sm:$0xff]   ;;  %v5675_v40 = vld [vmem:[%s7774_s3 + $0x310] ss:$8 sps:$4 sm:$0xff]  }
 0x220   : > { %v5680_v36 = vld [vmem:[%s7774_s3 + $0x324] ss:$8 sps:$4 sm:$0xff]   ;;  %v5678_v41 = vld [vmem:[%s7774_s3 + $0x320] ss:$8 sps:$4 sm:$0xff]   ;;  %v5683_v15 = vld [vmem:[%s7774_s3 + $0x334] ss:$8 sps:$4 sm:$0xff]  }
 0x221   : > { %v5686_v4 = vld [vmem:[%s7774_s3 + $0x344] ss:$8 sps:$4 sm:$0xff]   ;;  %v5689_v5 = vld [vmem:[%s7774_s3 + $0x354] ss:$8 sps:$4 sm:$0xff]   ;;  %v5690_v48 = vld [vmem:[%s7774_s3 + $0x360] ss:$8 sps:$4 sm:$0xff]  }
 0x222   : > { %3003 = vmatpush1.bf16.msra.mxu1 %v5615_v51  ;;  %v5695_v31 = vld [vmem:[%s7774_s3 + $0x374] ss:$8 sps:$4 sm:$0xff]   ;;  %v5698_v51 = vld [vmem:[%s7774_s3 + $0x384] ss:$8 sps:$4 sm:$0xff]  }
 0x223   : > { %3004 = vmatprep.subr.bf16.mxu1 %v5620_v33  ;;  %v5696_v33 = vld [vmem:[%s7774_s3 + $0x380] ss:$8 sps:$4 sm:$0xff]  }
 0x226   : > { %3005 = vmatpush1.bf16.msra.mxu1 %v5618_v52  ;;  %v5701_v52 = vld [vmem:[%s7774_s3 + $0x394] ss:$8 sps:$4 sm:$0xff]  }
 0x227   : > { %3006 = vmatprep.subr.bf16.mxu1 %v5623_v54  ;;  %v5699_v54 = vld [vmem:[%s7774_s3 + $0x390] ss:$8 sps:$4 sm:$0xff]  }
 0x22a   : > { %3007 = vmatpush1.bf16.msra.mxu1 %v5621_v60  ;;  %v5704_v60 = vld [vmem:[%s7774_s3 + $0x3a4] ss:$8 sps:$4 sm:$0xff]  }
 0x22b   : > { %3008 = vmatprep.subr.bf16.mxu1 %v5626_v61  ;;  %v5702_v61 = vld [vmem:[%s7774_s3 + $0x3a0] ss:$8 sps:$4 sm:$0xff]  }
 0x22e   : > { %3009 = vmatpush1.bf16.msra.mxu1 %v5624_v56  ;;  %v5707_v56 = vld [vmem:[%s7774_s3 + $0x3b4] ss:$8 sps:$4 sm:$0xff]  }
 0x22f   : > { %3010 = vmatprep.subr.bf16.mxu1 %v5629_v2  ;;  %v5705_v2 = vld [vmem:[%s7774_s3 + $0x3b0] ss:$8 sps:$4 sm:$0xff]  }
 0x232   : > { %3011 = vmatpush1.bf16.msra.mxu1 %v5627_v3 }
 0x233   : > { %3012 = vmatprep.subr.bf16.mxu1 %v5632_v22 }
 0x236   : > { %3013 = vmatpush1.bf16.msra.mxu1 %v5630_v23 }
 0x237   : > { %3014 = vmatprep.subr.bf16.mxu1 %v5635_v46 }
 0x23a   : > { %3015 = vmatpush1.bf16.msra.mxu1 %v5633_v27 }
 0x23b   : > { %3232 = vmatprep.subr.bf16.mxu1 %v5638_v28 }
 0x23d   : > { %3025 = vmatmul.mubr.bf16.vlgmr.msra.gmra.mrb[28].mxu1 %v2837_v34  ;;  %v5645_v34 = vld [vmem:[%s7774_s3 + $0x270] ss:$8 sps:$4 sm:$0xff]  }
 0x23e   : > { %4772 = vmatprep.mubr.msk.bf16.mxu1 %vm2598_vm7, %v2840_v7  ;;  %3233 = vmatpush1.bf16.msra.mxu1 %v5636_v29  ;;  %v5654_v7 = vld [vmem:[%s7774_s3 + $0x2a0] ss:$8 sps:$4 sm:$0xff]  }
 0x23f   : > { %3234 = vmatprep.subr.bf16.mxu1 %v5641_v30 }
 0x242   : > { %3235 = vmatpush1.bf16.msra.mxu1 %v5639_v11 }
 0x243   : > { %3236 = vmatprep.subr.bf16.mxu1 %v5644_v24 }
 0x245   : > { %3035 = vmatmul.mubr.bf16.gmra.mrb[32].mxu1 %v2839_v9  ;;  %v5656_v9 = vld [vmem:[%s7774_s3 + $0x2a4] ss:$8 sps:$4 sm:$0xff]  }
 0x246   : > { %3237 = vmatpush1.bf16.msra.mxu1 %v5642_v53  ;;  %4821 = vmatprep.mubr.msk.bf16.mxu1 %vm2598_vm7, %v3078_v59  ;;  %v5668_v59 = vld [vmem:[%s7774_s3 + $0x2e4] ss:$8 sps:$4 sm:$0xff]  }
 0x247   : > { %3238 = vmatprep.subr.bf16.mxu1 %v5647_v0 }
 0x24a   : > { %3239 = vmatpush1.bf16.msra.mxu1 %v5645_v34 }
 0x24b   : > { %3240 = vmatprep.subr.bf16.mxu1 %v5650_v10 }
 0x24e   : > { %3241 = vmatpush1.bf16.msra.mxu1 %v5648_v43 }
 0x24f   : > { %3242 = vmatprep.subr.bf16.mxu1 %v5653_v37 }
 0x252   : > { %3243 = vmatpush1.bf16.msra.mxu1 %v5651_v32 }
 0x253   : > { %3244 = vmatprep.subr.bf16.mxu1 %v5656_v9 }
 0x256   : > { %3245 = vmatpush1.bf16.msra.mxu1 %v5654_v7 }
 0x257   : > { %3246 = vmatprep.subr.bf16.mxu1 %v5659_v20 }
 0x259   : > { %v3563_v11 = vpop.permute.xlu0 %3562 }
 0x25a   : > { %3247 = vmatpush1.bf16.msra.mxu1 %v5657_v57  ;;  %v3578_v9 = vsel %vm2598_vm7, %v3563_v11, %v3565_v50 }
 0x25b   : > { %3248 = vmatprep.subr.bf16.mxu1 %v5662_v38  ;;  %v3567_v10 = vpop.permute.xlu1 %3566 }
 0x25c   : > { %v3579_v12 = vsel %vm2598_vm7, %v3567_v10, %v3569_v16 }
 0x25e   : > { %3249 = vmatpush1.bf16.msra.mxu1 %v5660_v39 }
 0x25f   : > { %3250 = vmatprep.subr.bf16.mxu1 %v5665_v42 }
 0x261   : > { %v3571_v57 = vpop.permute.xlu0 %3570 }
 0x262   : > { %3251 = vmatpush1.bf16.msra.mxu1 %v5663_v44 }
 0x263   : > { %3252 = vmatprep.subr.bf16.mxu1 %v5668_v59 }
 0x266   : > { %3253 = vmatpush1.bf16.msra.mxu1 %v5666_v6 }
 0x267   : > { %3254 = vmatprep.subr.bf16.mxu1 %v5671_v63 }
 0x26a   : > { %3255 = vmatpush1.bf16.msra.mxu1 %v5669_v18 }
 0x26b   : > { %3473 = vmatprep.subr.bf16.mxu1 %v5674_v1 }
 0x26d   : > { %3265 = vmatmul.mubr.bf16.vlgmr.msra.gmra.mrb[28].mxu1 %v3077_v21  ;;  %v5681_v21 = vld [vmem:[%s7774_s3 + $0x330] ss:$8 sps:$4 sm:$0xff]  }
 0x26e   : > { %4822 = vmatprep.mubr.msk.bf16.mxu1 %vm2598_vm7, %v3080_v35  ;;  %3474 = vmatpush1.bf16.msra.mxu1 %v5672_v55  ;;  %v5687_v35 = vld [vmem:[%s7774_s3 + $0x350] ss:$8 sps:$4 sm:$0xff]   ;;  %v3577_v55 = vpop.permute.xlu1 %3576 }
 0x26f   : > { %3475 = vmatprep.subr.bf16.mxu1 %v5677_v26 }
 0x272   : > { %3476 = vmatpush1.bf16.msra.mxu1 %v5675_v40 }
 0x273   : > { %3477 = vmatprep.subr.bf16.mxu1 %v5680_v36 }
 0x275   : > { %4825 = vmatmul.mubr.msk.bf16.gmra.mrb[32].mxu1 %vm6588_vm6, %v7129_v19  ;;  %v5692_v19 = vld [vmem:[%s7774_s3 + $0x364] ss:$8 sps:$4 sm:$0xff]   ;;  %vm4041_vm6 = vcmask 7168  }
 0x276   : > { %3478 = vmatpush1.bf16.msra.mxu1 %v5678_v41  ;;  %4874 = vmatprep.mubr.msk.bf16.mxu1 %vm2598_vm7, %v3319_v47  ;;  %v5693_v47 = vld [vmem:[%s7774_s3 + $0x370] ss:$8 sps:$4 sm:$0xff]   ;;  %v3575_v41 = vpop.permute.xlu0 %3574 }
 0x277   : > { %3479 = vmatprep.subr.bf16.mxu1 %v5683_v15 }
 0x27a   : > { %3480 = vmatpush1.bf16.msra.mxu1 %v5681_v21 }
 0x27b   : > { %3481 = vmatprep.subr.bf16.mxu1 %v5686_v4 }
 0x27e   : > { %3482 = vmatpush1.bf16.msra.mxu1 %v5684_v17 }
 0x27f   : > { %3483 = vmatprep.subr.bf16.mxu1 %v5689_v5  ;;  %v3580_v5 = vsel %vm2598_vm7, %v3571_v57, %v3573_v25 }
 0x282   : > { %3484 = vmatpush1.bf16.msra.mxu1 %v5687_v35 }
 0x283   : > { %3485 = vmatprep.subr.bf16.mxu1 %v5692_v19 }
 0x286   : > { %3486 = vmatpush1.bf16.msra.mxu1 %v5690_v48 }
 0x287   : > { %3487 = vmatprep.subr.bf16.mxu1 %v5695_v31 }
 0x28a   : > { %3488 = vmatpush1.bf16.msra.mxu1 %v5693_v47  ;;  %v3581_v47 = vsel %vm2598_vm7, %v3575_v41, %v3577_v55 }
 0x28b   : > { %3489 = vmatprep.subr.bf16.mxu1 %v5698_v51 }
 0x28e   : > { %3490 = vmatpush1.bf16.msra.mxu1 %v5696_v33 }
 0x28f   : > { %3491 = vmatprep.subr.bf16.mxu1 %v5701_v52 }
 0x292   : > { %3492 = vmatpush1.bf16.msra.mxu1 %v5699_v54 }
 0x293   : > { %3493 = vmatprep.subr.bf16.mxu1 %v5704_v60 }
 0x296   : > { %3494 = vmatpush1.bf16.msra.mxu1 %v5702_v61 }
 0x297   : > { %3495 = vmatprep.subr.bf16.mxu1 %v5707_v56 }
 0x29a   : > { %3496 = vmatpush1.bf16.msra.mxu1 %v5705_v2 }
 0x29d   : > { %3506 = vmatmul.mubr.bf16.vlgmr.msra.gmra.mrb[28].mxu1 %v3318_v49  ;;  %v3534_v49 = vld [vmem:[%s7780_s4] sm:$0x3] }
 0x29e   : > { %4875 = vmatprep.mubr.msk.bf16.mxu1 %vm2598_vm7, %v3321_v14  ;;  %v3539_v13 = vrot.slane %v3534_v49, %v2291_v62 }
 0x2a5   : > { %4878 = vmatmul.mubr.msk.bf16.gmra.mrb[32].mxu1 %vm4876_vm12, %v7169_v8  ;;  %v3543_v8 = vrot.slane %v3534_v49, %v2295_v58 }
 0x2e0   : > { %v2639_v3 = vpop.f32.mrb[8].mxu0 }
 0x2e1   : > { %v2641_v22 = vpop.f32.mrb[9].mxu0 }
 0x2e2   : > { %v2643_v23 = vpop.f32.mrb[10].mxu0 }
 0x2e3   : > { %v2645_v46 = vpop.f32.mrb[11].mxu0 }
 0x2e8   : > { %v2649_v27 = vpop.f32.mrb[12].mxu0 }
 0x2e9   : > { %v2651_v28 = vpop.f32.mrb[13].mxu0 }
 0x2ea   : > { %v2653_v29 = vpop.f32.mrb[14].mxu0 }
 0x2eb   : > { %v2655_v30 = vpop.f32.mrb[15].mxu0 }
 0x370   : > { %v3507_v14 = vpop.f32.mrb[28].mxu1 }
 0x371   : > { %v5162_v24 = vadd.f32 %v3507_v14, %v2639_v3  ;;  %v3509_v53 = vpop.f32.mrb[29].mxu1 }
 0x372   : > { %v5163_v0 = vadd.f32 %v3509_v53, %v2641_v22  ;;  %v3511_v34 = vpop.f32.mrb[30].mxu1 }
 0x373   : > { %v3546_v43 = vadd.f32 %v5162_v24, %v3539_v13  ;;  %v5164_v37 = vadd.f32 %v3511_v34, %v2643_v23  ;;  %v3513_v32 = vpop.f32.mrb[31].mxu1 }
 0x374   : > { %v3547_v7 = vadd.f32 %v5163_v0, %v3543_v8  ;;  %v5165_v20 = vadd.f32 %v3513_v32, %v2645_v46 }
 0x375   : > { %v7403_v38 = vadd.f32 %v3578_v9, %v3546_v43  ;;  %v3548_v62 = vadd.f32 %v5164_v37, %v3539_v13  ;;  %v3726_v43 = vld [vmem:[%s7748_s6] sm:$0xff]  ;;  %v3727_v37 = vld [vmem:[%s7748_s6 + $0x8] sm:$0xff] }
 0x376   : > { %v7406_v58 = vadd.f32 %v3565_v50, %v3547_v7  ;;  %v3549_v19 = vadd.f32 %v5165_v20, %v3543_v8  ;;  %v5110_v7 = vpack.c.bf16 %v3727_v37, %v3726_v43 }
 0x377   : > { %v3598_v39 = vsub.f32 0.0, %v7403_v38  ;;  %v7409_v42 = vadd.f32 %v3579_v12, %v3548_v62 }
 0x378   : > { %v3599_v44 = vsub.f32 0.0, %v7406_v58  ;;  %v3517_v59 = vpop.f32.mrb[32].mxu1  ;;  %v7417_v54 = vadd.f32 %v3569_v16, %v3549_v19  ;;  %5111 = vmatprep.subr.bf16.mxu0 %v5110_v7 }
 0x379   : > { %v3606_v6 = vmul.f32 1.442695, %v3598_v39  ;;  %v3600_v63 = vsub.f32 0.0, %v7409_v42  ;;  %v5166_v18 = vadd.f32 %v3517_v59, %v2649_v27  ;;  %v3519_v1 = vpop.f32.mrb[33].mxu1  ;;  %5113 = vmatpush3.bf16.msra.mxu0 %v5110_v7  ;;  %v3729_v59 = vld [vmem:[%s7748_s6 + $0x18] sm:$0xff] }
 0x37a   : > { %v3608_v26 = vmul.f32 1.442695, %v3599_v44  ;;  %v5167_v40 = vadd.f32 %v3519_v1, %v2651_v28  ;;  %v3521_v36 = vpop.f32.mrb[34].mxu1  ;;  %v3601_v22 = vsub.f32 0.0, %v7417_v54 }
 0x37b   : > { %5740 = vpow2.f32 %v3606_v6  ;;  %v3610_v15 = vmul.f32 1.442695, %v3600_v63  ;;  %v3550_v21 = vadd.f32 %v5166_v18, %v3539_v13  ;;  %v5168_v4 = vadd.f32 %v3521_v36, %v2653_v29  ;;  %v3523_v17 = vpop.f32.mrb[35].mxu1 }
 0x37c   : > { %5742 = vpow2.f32 %v3608_v26  ;;  %v5169_v35 = vadd.f32 %v3523_v17, %v2655_v30  ;;  %v3551_v33 = vadd.f32 %v5167_v40, %v3543_v8  ;;  %v3612_v49 = vmul.f32 1.442695, %v3601_v22 }
 0x37d   : > { %5744 = vpow2.f32 %v3610_v15  ;;  %v3594_v48 = vadd.f32 %v3580_v5, %v3550_v21  ;;  %v3552_v31 = vadd.f32 %v5168_v4, %v3539_v13 }
 0x37e   : > { %v3553_v56 = vadd.f32 %v5169_v35, %v3543_v8  ;;  %v7420_v2 = vadd.f32 %v3573_v25, %v3551_v33 }
 0x37f   : > { %v3602_v51 = vsub.f32 0.0, %v3594_v48  ;;  %v7415_v52 = vadd.f32 %v3581_v47, %v3552_v31 }
 0x380   : > { %v7423_v46 = vadd.f32 %v3577_v55, %v3553_v56  ;;  %v3603_v50 = vsub.f32 0.0, %v7420_v2 }
 0x381   : > { %v3614_v60 = vmul.f32 1.442695, %v3602_v51  ;;  %v3604_v61 = vsub.f32 0.0, %v7415_v52 }
 0x382   : > { %v3605_v16 = vsub.f32 0.0, %v7423_v46  ;;  %v3616_v13 = vmul.f32 1.442695, %v3603_v50 }
 0x383   : > { %5746 = vpow2.f32 %v3614_v60  ;;  %v3618_v23 = vmul.f32 1.442695, %v3604_v61 }
 0x384   : > { %v3620_v8 = vmul.f32 1.442695, %v3605_v16 }
 0x385   : > { %v5741_v3 = vpop.eup %5740 }
 0x386   : > { %v5743_v27 = vpop.eup %5742  ;;  %v3622_v28 = vadd.f32 1.0, %v5741_v3 }
 0x387   : > { %v5745_v29 = vpop.eup %5744  ;;  %v3623_v30 = vadd.f32 1.0, %v5743_v27 }
 0x388   : > { %5748 = vrcp.f32 %v3622_v28  ;;  %v3624_v25 = vadd.f32 1.0, %v5745_v29 }
 0x389   : > { %5750 = vpow2.f32 %v3618_v23 }
 0x38a   : > { %5752 = vrcp.f32 %v3623_v30 }
 0x38b   : > { %5754 = vpow2.f32 %v3612_v49 }
 0x38c   : > { %5756 = vrcp.f32 %v3624_v25 }
 0x38d   : > { %v5747_v14 = vpop.eup %5746  ;;  %5758 = vpow2.f32 %v3616_v13 }
 0x38e   : > { %v3626_v11 = vadd.f32 1.0, %v5747_v14 }
 0x390   : > { %5760 = vrcp.f32 %v3626_v11 }
 0x391   : > { %5762 = vpow2.f32 %v3620_v8 }
 0x392   : > { %v5749_v24 = vpop.eup %5748 }
 0x393   : > { %v5751_v53 = vpop.eup %5750  ;;  %v3638_v0 = vmul.f32 %v5749_v24, %v7403_v38 }
 0x394   : > { %v5753_v34 = vpop.eup %5752  ;;  %v3628_v10 = vadd.f32 1.0, %v5751_v53 }
 0x395   : > { %3682 = vrot.lane.b32.xlu1 %v3638_v0, %s5931_s19  ;;  %3650 = vrot.lane.b32.xlu0 %v3638_v0, %s5932_s22  ;;  %v5755_v32 = vpop.eup %5754  ;;  %v3639_v9 = vmul.f32 %v5753_v34, %v7406_v58  ;;  %v3728_v58 = vld [vmem:[%s7748_s6 + $0x10] sm:$0xff] }
 0x396   : > { %v5757_v20 = vpop.eup %5756  ;;  %v3625_v62 = vadd.f32 1.0, %v5755_v32  ;;  %5764 = vrcp.f32 %v3628_v10  ;;  %v5114_v63 = vpack.c.bf16 %v3729_v59, %v3728_v58 }
 0x397   : > { %v5759_v57 = vpop.eup %5758  ;;  %v3640_v39 = vmul.f32 %v5757_v20, %v7409_v42 }
 0x398   : > { %v3627_v6 = vadd.f32 1.0, %v5759_v57  ;;  %5766 = vrcp.f32 %v3625_v62  ;;  %5115 = vmatprep.subr.bf16.mxu0 %v5114_v63 }
 0x399   : > { %3666 = vrot.lane.b32.xlu0 %v3638_v0, %s5930_s25  ;;  %3706 = vrot.lane.b32.xlu1 %v3639_v9, %s5932_s22 }
 0x39a   : > { %v5761_v38 = vpop.eup %5760  ;;  %5117 = vmatpush3.bf16.msra.mxu0 %v5114_v63  ;;  %5768 = vrcp.f32 %v3627_v6  ;;  %v7487_v63 = vand.u32 127, %v2289_v45 }
 0x39b   : > { %v5763_v12 = vpop.eup %5762  ;;  %v3642_v44 = vmul.f32 %v5761_v38, %v3594_v48 }
 0x39c   : > { %v3629_v18 = vadd.f32 1.0, %v5763_v12 }
 0x39d   : > { %3652 = vrot.lane.b32.xlu1 %v3640_v39, %s5932_s22  ;;  %3654 = vrot.lane.b32.xlu0 %v3642_v44, %s5932_s22 }
 0x39e   : > { %5770 = vrcp.f32 %v3629_v18 }
 0x3a0   : > { %v5765_v42 = vpop.eup %5764 }
 0x3a1   : > { %3668 = vrot.lane.b32.xlu1 %v3640_v39, %s5930_s25  ;;  %3670 = vrot.lane.b32.xlu0 %v3642_v44, %s5930_s25  ;;  %v3644_v1 = vmul.f32 %v5765_v42, %v7415_v52 }
 0x3a2   : > { %v5767_v55 = vpop.eup %5766 }
 0x3a3   : > { %v3641_v40 = vmul.f32 %v5767_v55, %v7417_v54 }
 0x3a4   : > { %v5769_v26 = vpop.eup %5768 }
 0x3a5   : > { %3684 = vrot.lane.b32.xlu1 %v3640_v39, %s5931_s19  ;;  %3686 = vrot.lane.b32.xlu0 %v3642_v44, %s5931_s19  ;;  %v3643_v41 = vmul.f32 %v5769_v26, %v7420_v2 }
 0x3a8   : > { %v5771_v36 = vpop.eup %5770 }
 0x3a9   : > { %3672 = vrot.lane.b32.xlu1 %v3644_v1, %s5930_s25  ;;  %3656 = vrot.lane.b32.xlu0 %v3644_v1, %s5932_s22  ;;  %v3645_v15 = vmul.f32 %v5771_v36, %v7423_v46  ;;  %s7463_s25 = sand.u32 1, %s5918_s18  }
 0x3aa   : > { %s7466_s29 = sshll.u32 %s7463_s25, 5 }
 0x3ab   : > { %s7543_s12 = scalar_lea.vmem [#allocation7], %s7466_s29  ;;  %s7553_s13 = scalar_lea.vmem [#allocation6], %s7466_s29 }
 0x3ad   : > { %3708 = vrot.lane.b32.xlu1 %v3641_v40, %s5932_s22  ;;  %3688 = vrot.lane.b32.xlu0 %v3644_v1, %s5931_s19  ;;  %s7469_s19 = scalar_lea.vmem [#allocation2], %s7466_s29 }
 0x3ae   : > { %s4075_s14 = sshll.u32 %s7469_s19, 4  ;;  %s7575_s14 = int_to_ptr.vmem [resolvable:$true] %s4075_s14 }
 0x3af   : > { %s5772_s16 = scalar_lea.vmem %s7575_s14, 512 }
 0x3b0   : > { %p5773_p11 = scmp.ne.s32.totalorder %s7575_s14, %s5772_s16 }
 0x3b1   : > { %3710 = vrot.lane.b32.xlu0 %v3643_v41, %s5932_s22  ;;  %3712 = vrot.lane.b32.xlu1 %v3645_v15, %s5932_s22 }
 0x3b2   : > { %p5774_p12 = pnand %p5773_p11, %p6041_p5 }
 0x3b4   : > { %p5775_p13 = pneg %p5774_p12 }
 0x407   : > { %v3683_v21 = vpop.permute.xlu1 %3682  ;;  %v3651_v4 = vpop.permute.xlu0 %3650 }
 0x408   : > { %v3662_v17 = vadd.f32 %v3651_v4, %v3638_v0 }
 0x40b   : > { %v3667_v5 = vpop.permute.xlu0 %3666  ;;  %v3707_v35 = vpop.permute.xlu1 %3706 }
 0x40c   : > { %v3678_v19 = vadd.f32 %v3667_v5, %v3662_v17 }
 0x40e   : > { %v3694_v48 = vadd.f32 %v3683_v21, %v3678_v19 }
 0x40f   : > { %v3653_v31 = vpop.permute.xlu1 %3652  ;;  %v3655_v47 = vpop.permute.xlu0 %3654 }
 0x410   : > { %v3698_v51 = vadd.f32 %v3694_v48, %v3639_v9  ;;  %v3663_v61 = vadd.f32 %v3653_v31, %v3640_v39  ;;  %v3664_v22 = vadd.f32 %v3655_v47, %v3642_v44  ;;  %v4883_v9 = vld [vmem:[%s7749_s7] ss:$0 sm:$0xff]  ;;  %v3929_v31 = vld [vmem:[%s7781_s5 + $0x8] sm:$0xff]  ;;  %v3930_v47 = vld [vmem:[%s7781_s5 + $0x10] sm:$0xff] }
 0x411   : > { %v3928_v48 = vld [vmem:[%s7781_s5] sm:$0xff] }
 0x412   : > { %v3718_v33 = vadd.f32 %v3707_v35, %v3698_v51  ;;  %v5118_v51 = vpack.c.bf16 %v3929_v31, %v3928_v48 }
 0x413   : > { %v3669_v52 = vpop.permute.xlu1 %3668  ;;  %v3671_v54 = vpop.permute.xlu0 %3670 }
 0x414   : > { %v3722_v60 = vmul.f32 0.16666667, %v3718_v33  ;;  %v3679_v3 = vadd.f32 %v3669_v52, %v3663_v61  ;;  %v3680_v28 = vadd.f32 %v3671_v54, %v3664_v22  ;;  %v3931_v33 = vld [vmem:[%s7781_s5 + $0x18] sm:$0xff]  ;;  %v3932_v54 = vld [vmem:[%s7781_s5 + $0x20] sm:$0xff]  ;;  %5119 = vmatprep.subr.bf16.mxu0 %v5118_v51 }
 0x415   : > { %v5122_v52 = vpack.c.bf16 %v3931_v33, %v3930_v47  ;;  %v3936_v22 = vld [vmem:[%s7781_s5 + $0x40] sm:$0xff] }
 0x416   : > { %4029 = vst.msk [vmem:[%s7469_s19] sm:$0xff] %vm952_vm1, %v3722_v60  ;;  %5066 = vmatprep.mubr.msk.f32.mxu0 %vm952_vm1, %v3722_v60  ;;  %v3933_v60 = vld [vmem:[%s7781_s5 + $0x28] sm:$0xff] }
 0x417   : > { %v3685_v56 = vpop.permute.xlu1 %3684  ;;  %v3687_v2 = vpop.permute.xlu0 %3686  ;;  %v5126_v61 = vpack.c.bf16 %v3933_v60, %v3932_v54 }
 0x418   : > { %v3695_v23 = vadd.f32 %v3685_v56, %v3679_v3  ;;  %v3696_v30 = vadd.f32 %v3687_v2, %v3680_v28  ;;  %v3934_v56 = vld [vmem:[%s7781_s5 + $0x30] sm:$0xff]  ;;  %v3935_v2 = vld [vmem:[%s7781_s5 + $0x38] sm:$0xff] }
 0x419   : > { %v5130_v3 = vpack.c.bf16 %v3935_v2, %v3934_v56  ;;  %v3939_v28 = vld [vmem:[%s7781_s5 + $0x58] sm:$0xff] }
 0x41a   : > { %v3699_v50 = vadd.f32 %v3695_v23, %v3641_v40  ;;  %v3700_v11 = vadd.f32 %v3696_v30, %v3643_v41  ;;  %v3937_v23 = vld [vmem:[%s7781_s5 + $0x48] sm:$0xff]  ;;  %v3940_v30 = vld [vmem:[%s7781_s5 + $0x60] sm:$0xff] }
 0x41b   : > { %v3673_v46 = vpop.permute.xlu1 %3672  ;;  %v3657_v27 = vpop.permute.xlu0 %3656 }
 0x41c   : > { %v3665_v29 = vadd.f32 %v3657_v27, %v3644_v1  ;;  %v3938_v27 = vld [vmem:[%s7781_s5 + $0x50] sm:$0xff] }
 0x41e   : > { %v3681_v49 = vadd.f32 %v3673_v46, %v3665_v29  ;;  %v5134_v46 = vpack.c.bf16 %v3937_v23, %v3936_v22  ;;  %v5138_v29 = vpack.c.bf16 %v3939_v28, %v3938_v27 }
 0x41f   : > { %v3709_v16 = vpop.permute.xlu1 %3708  ;;  %v3689_v25 = vpop.permute.xlu0 %3688 }
 0x420   : > { %v3719_v13 = vadd.f32 %v3709_v16, %v3699_v50  ;;  %v3697_v14 = vadd.f32 %v3689_v25, %v3681_v49  ;;  %v3941_v50 = vld [vmem:[%s7781_s5 + $0x68] sm:$0xff] }
 0x421   : > { %v5142_v49 = vpack.c.bf16 %v3941_v50, %v3940_v30 }
 0x422   : > { %v3723_v8 = vmul.f32 0.16666667, %v3719_v13  ;;  %v3701_v24 = vadd.f32 %v3697_v14, %v3645_v15 }
 0x423   : > { %v3711_v53 = vpop.permute.xlu0 %3710  ;;  %v3713_v0 = vpop.permute.xlu1 %3712 }
 0x424   : > { %4030 = vst.msk [vmem:[%s7469_s19 + $0x8] sm:$0xff] %vm952_vm1, %v3723_v8  ;;  %v3720_v34 = vadd.f32 %v3711_v53, %v3700_v11  ;;  %v3721_v10 = vadd.f32 %v3713_v0, %v3701_v24  ;;  %5067 = vmatmul.mubr.msk.f32.vlgmr.msra.gmra.mrb[16].mxu0 %vm952_vm1, %v3723_v8 }
 0x425   : > { %5121 = vmatpush3.bf16.msra.mxu0 %v5118_v51 }
 0x426   : > { %v3724_v43 = vmul.f32 0.16666667, %v3720_v34  ;;  %v3725_v37 = vmul.f32 0.16666667, %v3721_v10  ;;  %5123 = vmatprep.subr.bf16.mxu0 %v5122_v52 }
 0x428   : > { %4031 = vst.msk [vmem:[%s7469_s19 + $0x10] sm:$0xff] %vm952_vm1, %v3724_v43  ;;  %4032 = vst.msk [vmem:[%s7469_s19 + $0x18] sm:$0xff] %vm952_vm1, %v3725_v37  ;;  %5069 = vmatprep.mubr.msk.f32.mxu0 %vm952_vm1, %v3724_v43  ;;  %s5935_s19 = smov [#allocation2]  }
 0x429   : > { %5070 = vmatmul.mubr.msk.f32.gmra.mrb[18].mxu0 %vm952_vm1, %v3725_v37  ;;  %s5776_s1 = sshll.u32 %s5935_s19, 4  ;;  %s5777_s1 = int_to_ptr.vmem [resolvable:$false] %s5776_s1 }
 0x42a   : > { %5125 = vmatpush3.bf16.msra.mxu0 %v5122_v52  ;;  %s5778_s2 = scalar_lea.vmem %s5777_s1, 1024  ;;  %p5779_p0 = scmp.lt.s32.totalorder %s7575_s14, %s5777_s1 }
 0x42b   : > { %5127 = vmatprep.subr.bf16.mxu0 %v5126_v61  ;;  %p5780_p1 = scmp.lt.s32.totalorder %s5778_s2, %s5772_s16 }
 0x42d   : > { %p5781_p2 = por %p5780_p1, %p5779_p0 }
 0x42e   : > { %5129 = vmatpush3.bf16.msra.mxu0 %v5126_v61 }
 0x42f   : > { %5131 = vmatprep.subr.bf16.mxu0 %v5130_v3  ;;  %p5782_p3 = pnand %p5781_p2, %p5775_p13 }
 0x432   : > { %5133 = vmatpush3.bf16.msra.mxu0 %v5130_v3 }
 0x433   : > { %5135 = vmatprep.subr.bf16.mxu0 %v5134_v46 }
 0x436   : > { %5137 = vmatpush3.bf16.msra.mxu0 %v5134_v46 }
 0x437   : > { %5139 = vmatprep.subr.bf16.mxu0 %v5138_v29 }
 0x43a   : > { %5141 = vmatpush3.bf16.msra.mxu0 %v5138_v29 }
 0x43b   : > { %5143 = vmatprep.subr.bf16.mxu0 %v5142_v49 }
 0x43e   : > { %5145 = vmatpush3.bf16.msra.mxu0 %v5142_v49 }
 0x4f7   : > { %v5068_v32 = vpop.f32.mrb[16].mxu0 }
 0x4f8   : > { %v3829_v7 = vmul.f32 2.0, %v5068_v32  ;;  %v3808_v20 = vpop.f32.mrb[17].mxu0 }
 0x4f9   : > { %v3828_v57 = vmul.f32 2.0, %v3808_v20  ;;  %v3942_v20 = vld [vmem:[%s7781_s5 + $0x70] sm:$0xff] }
 0x4fa   : > { %v3839_v38 = vsub.f32 %v4883_v9, %v3829_v7 }
 0x4fb   : > { %v3838_v62 = vsub.f32 %v4883_v9, %v3828_v57  ;;  %v3943_v57 = vld [vmem:[%s7781_s5 + $0x78] sm:$0xff] }
 0x4fc   : > { %3846 = vmin.xlane.f32.xlu1 %v3839_v38  ;;  %v5071_v12 = vpop.f32.mrb[18].mxu0 }
 0x4fd   : > { %3844 = vmin.xlane.f32.xlu0 %v3838_v62  ;;  %v3818_v39 = vpop.f32.mrb[19].mxu0  ;;  %v3831_v58 = vmul.f32 2.0, %v5071_v12 }
 0x4fe   : > { %v3830_v44 = vmul.f32 2.0, %v3818_v39 }
 0x4ff   : > { %v3841_v6 = vsub.f32 %v4883_v9, %v3831_v58 }
 0x500   : > { %v3840_v59 = vsub.f32 %v4883_v9, %v3830_v44 }
 0x502   : > { %3848 = vmin.xlane.f32.xlu0 %v3840_v59 }
 0x506   : > { %3850 = vmin.xlane.f32.xlu0 %v3841_v6 }
 0x589   : > { %v3847_v18 = vpop.xlane.xlu1 %3846 }
 0x58a   : > { %vm3853_vm13 = vcmp.le.f32.partialorder %v3839_v38, %v3847_v18  ;;  %v3845_v42 = vpop.xlane.xlu0 %3844  ;;  %v5146_v38 = vpack.c.bf16 %v3943_v57, %v3942_v20 }
 0x58b   : > { %v3857_v1 = vsel %vm3853_vm13, %v7487_v63, 128  ;;  %vm3852_vm14 = vcmp.le.f32.partialorder %v3838_v62, %v3845_v42 }
 0x58c   : > { %v3856_v55 = vsel %vm3852_vm14, %v7487_v63, 128  ;;  %v3875_v26 = vshra.s32 %v3857_v1, 16  ;;  %v3874_v16 = vand.u32 65535, %v3857_v1  ;;  %5147 = vmatprep.subr.bf16.mxu0 %v5146_v38 }
 0x58d   : > { %v3861_v40 = vshra.s32 %v3856_v55, 16  ;;  %v3860_v25 = vand.u32 65535, %v3856_v55  ;;  %5149 = vmatpush3.bf16.msra.mxu0 %v5146_v38 }
 0x58e   : > { %v3877_v36 = vcvt.s32.f32 %v3875_v26  ;;  %v3876_v14 = vcvt.s32.f32 %v3874_v16  ;;  %v5933_v26 = vmov 0.0  }
 0x58f   : > { %v3849_v41 = vpop.xlane.xlu0 %3848  ;;  %v3863_v15 = vcvt.s32.f32 %v3861_v40  ;;  %v3862_v11 = vcvt.s32.f32 %v3860_v25 }
 0x590   : > { %vm3854_vm15 = vcmp.le.f32.partialorder %v3840_v59, %v3849_v41  ;;  %3878 = vmin.xlane.f32.xlu0 %v3877_v36 }
 0x591   : > { %v3858_v21 = vsel %vm3854_vm15, %v7487_v63, 128  ;;  %3864 = vmin.xlane.f32.xlu1 %v3863_v15 }
 0x592   : > { %v3889_v45 = vshra.s32 %v3858_v21, 16  ;;  %v3888_v24 = vand.u32 65535, %v3858_v21 }
 0x593   : > { %v3851_v4 = vpop.xlane.xlu0 %3850 }
 0x594   : > { %vm3855_vm0 = vcmp.le.f32.partialorder %v3841_v6, %v3851_v4  ;;  %v3891_v17 = vcvt.s32.f32 %v3889_v45  ;;  %v3890_v43 = vcvt.s32.f32 %v3888_v24  ;;  %v5934_v4 = vmov 1.0  }
 0x595   : > { %v3859_v5 = vsel %vm3855_vm0, %v7487_v63, 128 }
 0x596   : > { %3892 = vmin.xlane.f32.xlu1 %v3891_v17  ;;  %v3903_v35 = vshra.s32 %v3859_v5, 16  ;;  %v3902_v34 = vand.u32 65535, %v3859_v5 }
 0x598   : > { %v3905_v19 = vcvt.s32.f32 %v3903_v35  ;;  %v3904_v9 = vcvt.s32.f32 %v3902_v34 }
 0x59a   : > { %3906 = vmin.xlane.f32.xlu0 %v3905_v19 }
 0x61d   : > { %v3879_v13 = vpop.xlane.xlu0 %3878 }
 0x61e   : > { %v3865_v8 = vpop.xlane.xlu1 %3864  ;;  %vm3880_vm2 = vcmp.eq.f32.partialorder %v3877_v36, %v3879_v13  ;;  %v3885_v62 = vcvt.f32.s32 %v3879_v13 }
 0x61f   : > { %v3881_v53 = vsel %vm3880_vm2, %v3876_v14, inf  ;;  %vm3866_vm3 = vcmp.eq.f32.partialorder %v3863_v15, %v3865_v8  ;;  %v3871_v12 = vcvt.f32.s32 %v3865_v8 }
 0x620   : > { %3882 = vmin.xlane.f32.xlu0 %v3881_v53  ;;  %v3867_v0 = vsel %vm3866_vm3, %v3862_v11, inf  ;;  %v3886_v44 = vshll.u32 %v3885_v62, 16 }
 0x621   : > { %3868 = vmin.xlane.f32.xlu1 %v3867_v0  ;;  %v3872_v6 = vshll.u32 %v3871_v12, 16 }
 0x623   : > { %v3893_v10 = vpop.xlane.xlu1 %3892 }
 0x624   : > { %vm3894_vm4 = vcmp.eq.f32.partialorder %v3891_v17, %v3893_v10  ;;  %v3899_v42 = vcvt.f32.s32 %v3893_v10 }
 0x625   : > { %v3895_v37 = vsel %vm3894_vm4, %v3890_v43, inf }
 0x626   : > { %3896 = vmin.xlane.f32.xlu1 %v3895_v37  ;;  %v3900_v41 = vshll.u32 %v3899_v42, 16 }
 0x627   : > { %v3907_v32 = vpop.xlane.xlu0 %3906 }
 0x628   : > { %vm3908_vm5 = vcmp.eq.f32.partialorder %v3905_v19, %v3907_v32  ;;  %v3913_v15 = vcvt.f32.s32 %v3907_v32 }
 0x629   : > { %v3909_v7 = vsel %vm3908_vm5, %v3904_v9, inf }
 0x62a   : > { %3910 = vmin.xlane.f32.xlu0 %v3909_v7  ;;  %v3914_v35 = vshll.u32 %v3913_v15, 16 }
 0x6ad   : > { %v3883_v39 = vpop.xlane.xlu0 %3882 }
 0x6ae   : > { %v3884_v58 = vcvt.f32.s32 %v3883_v39  ;;  %v3869_v59 = vpop.xlane.xlu1 %3868 }
 0x6af   : > { %v3870_v18 = vcvt.f32.s32 %v3869_v59 }
 0x6b0   : > { %v3887_v1 = vadd.s32 %v3886_v44, %v3884_v58 }
 0x6b1   : > { %v3873_v55 = vadd.s32 %v3872_v6, %v3870_v18 }
 0x6b2   : > { %vm3917_vm8 = vcmp.eq.s32.totalorder %v7487_v63, %v3887_v1  ;;  %4043 = vst.msk [vmem:[%s7543_s12 + $0x8] sm:$0xff] %vm4041_vm6, %v3887_v1 }
 0x6b3   : > { %v4885_v40 = vsel %vm3917_vm8, 1.0, %v5933_v26  ;;  %4042 = vst.msk [vmem:[%s7543_s12] sm:$0xff] %vm4041_vm6, %v3873_v55  ;;  %v3897_v36 = vpop.xlane.xlu1 %3896  ;;  %vm3916_vm9 = vcmp.eq.s32.totalorder %v7487_v63, %v3873_v55 }
 0x6b4   : > { %4038 = vst.msk [vmem:[%s7553_s13 + $0x8] sm:$0xff] %vm2598_vm7, %v4885_v40  ;;  %v3898_v21 = vcvt.f32.s32 %v3897_v36  ;;  %v4884_v45 = vsel %vm3916_vm9, 1.0, %v5933_v26  ;;  %5104 = vmatprep.mubr.msk.f32.mxu0 %vm3916_vm9, %v5934_v4 }
 0x6b5   : > { %4037 = vst.msk [vmem:[%s7553_s13] sm:$0xff] %vm2598_vm7, %v4884_v45  ;;  %5105 = vmatmul.mubr.msk.f32.vlgmr.msra.gmra.mrb[20].mxu0 %vm3917_vm8, %v5934_v4 }
 0x6b6   : > { %v3901_v17 = vadd.s32 %v3900_v41, %v3898_v21 }
 0x6b7   : > { %v3911_v5 = vpop.xlane.xlu0 %3910 }
 0x6b8   : > { %4044 = vst.msk [vmem:[%s7543_s12 + $0x10] sm:$0xff] %vm4041_vm6, %v3901_v17  ;;  %v3912_v19 = vcvt.f32.s32 %v3911_v5  ;;  %vm3918_vm10 = vcmp.eq.s32.totalorder %v7487_v63, %v3901_v17 }
 0x6b9   : > { %v4886_v48 = vsel %vm3918_vm10, 1.0, %v5933_v26  ;;  %5107 = vmatprep.mubr.msk.f32.mxu0 %vm3918_vm10, %v5934_v4 }
 0x6ba   : > { %v3915_v31 = vadd.s32 %v3914_v35, %v3912_v19  ;;  %4039 = vst.msk [vmem:[%s7553_s13 + $0x10] sm:$0xff] %vm2598_vm7, %v4886_v48 }
 0x6bc   : > { %4045 = vst.msk [vmem:[%s7543_s12 + $0x18] sm:$0xff] %vm4041_vm6, %v3915_v31  ;;  %vm3919_vm11 = vcmp.eq.s32.totalorder %v7487_v63, %v3915_v31 }
 0x6bd   : > { %v4887_v47 = vsel %vm3919_vm11, 1.0, %v5933_v26  ;;  %5108 = vmatmul.mubr.msk.f32.gmra.mrb[22].mxu0 %vm3919_vm11, %v5934_v4 }
 0x6be   : > { %4040 = vst.msk [vmem:[%s7553_s13 + $0x18] sm:$0xff] %vm2598_vm7, %v4887_v47 }
 0x6bf   : > { %5785 = shalt.err (!%p5782_p3)
}
 0x6c0   : > { %s5786_s15 = scalar_lea.hbm %s7582_s26, 512  ;;  %s5790_s19 = scalar_lea.hbm %s7750_s8, 1024 }
 0x6c1   : > { %p5787_p4 = scmp.ne.s32.totalorder %s7582_s26, %s5786_s15  ;;  %p5791_p9 = scmp.lt.u32.totalorder %s7582_s26, %s7750_s8 }
 0x6c2   : > { %p5792_p10 = scmp.lt.u32.totalorder %s5790_s19, %s5786_s15  ;;  %p5794_p12 = scmp.lt.u32.totalorder %s5786_s15, %s7582_s26 }
 0x6c3   : > { %p5788_p7 = pnand %p5787_p4, %p6041_p5 }
 0x6c4   : > { %p5793_p11 = por %p5792_p10, %p5791_p9 }
 0x6c5   : > { %p5789_p8 = pneg %p5788_p7 }
 0x6c6   : > { %p5795_p13 = por %p5794_p12, %p5793_p11 }
 0x6c8   : > { %p5796_p0 = pnand %p5795_p13, %p5789_p8 }
 0x6ca   : > { %5799 = shalt.err (!%p5796_p0)
}
 0x6cb   : > { %s5936_s2 = smov 128   ;;  %s5937_s0 = smov 8  }
 0x6cc   : > { %s7782_s30 = scalar_lea.sflag [#allocation3], %s7463_s25  ;;  %s7615_s22 = scalar_lea.hbm %s7753_s11, %s7573_s24 }
 0x6cd   : > { %5243 = dma.vmem_to_hbm [thread:$0]  (%p6041_p5), %s7575_s14, 512, %s7582_s26, %s7782_s30, %s5936_s2, %s5936_s2, %s5937_s0  }
 0x6ce   : > { %s7783_s19 = sshll.u32 %s7543_s12, 4  ;;  %s4062_s1 = scalar_lea.sflag [#allocation8], %s7463_s25  ;;  %s7619_s19 = int_to_ptr.vmem [resolvable:$true] %s7783_s19 }
 0x6cf   : > { %s5800_s3 = scalar_lea.vmem %s7619_s19, 512  ;;  %s5938_s4 = smov [#allocation7]  }
 0x6d0   : > { %p5801_p1 = scmp.ne.s32.totalorder %s7619_s19, %s5800_s3  ;;  %s5804_s5 = sshll.u32 %s5938_s4, 4  ;;  %s5805_s5 = int_to_ptr.vmem [resolvable:$false] %s5804_s5 }
 0x6d1   : > { %s5806_s14 = scalar_lea.vmem %s5805_s5, 1024  ;;  %p5807_p4 = scmp.lt.s32.totalorder %s7619_s19, %s5805_s5 }
 0x6d2   : > { %p5802_p2 = pnand %p5801_p1, %p6041_p5  ;;  %p5808_p7 = scmp.lt.s32.totalorder %s5806_s14, %s5800_s3 }
 0x6d4   : > { %p5803_p3 = pneg %p5802_p2  ;;  %p5809_p8 = por %p5808_p7, %p5807_p4 }
 0x6d6   : > { %p5810_p9 = pnand %p5809_p8, %p5803_p3 }
 0x6d8   : > { %5813 = shalt.err (!%p5810_p9)
}
 0x6d9   : > { %s5814_s12 = scalar_lea.hbm %s7615_s22, 512  ;;  %s5818_s4 = scalar_lea.hbm %s7753_s11, 1024 }
 0x6da   : > { %p5815_p10 = scmp.ne.s32.totalorder %s7615_s22, %s5814_s12  ;;  %p5819_p13 = scmp.lt.u32.totalorder %s7615_s22, %s7753_s11 }
 0x6db   : > { %p5820_p0 = scmp.lt.u32.totalorder %s5818_s4, %s5814_s12  ;;  %p5822_p2 = scmp.lt.u32.totalorder %s5814_s12, %s7615_s22 }
 0x6dc   : > { %p5816_p11 = pnand %p5815_p10, %p6041_p5 }
 0x6dd   : > { %p5821_p1 = por %p5820_p0, %p5819_p13 }
 0x6de   : > { %p5817_p12 = pneg %p5816_p11 }
 0x6df   : > { %p5823_p3 = por %p5822_p2, %p5821_p1 }
 0x6e1   : > { %p5824_p4 = pnand %p5823_p3, %p5817_p12 }
 0x6e3   : > { %5827 = shalt.err (!%p5824_p4)
}
 0x6e4   : > { %5246 = dma.vmem_to_hbm [thread:$0]  (%p6041_p5), %s7619_s19, 512, %s7615_s22, %s4062_s1, %s5936_s2, %s5936_s2, %s5937_s0  }
 0x6e5   : > { %s393_s3 = scalar_lea.vmem [#allocation4], %s7466_s29  ;;  %s4051_s14 = sand.u32 1, %s6022_s21  }
 0x6e6   : > { %s4091_s15 = sshll.u32 %s393_s3, 4  ;;  %s4107_s12 = sshll.u32 %s7553_s13, 4  ;;  %s7653_s15 = int_to_ptr.vmem [resolvable:$true] %s4091_s15  ;;  %s7661_s12 = int_to_ptr.vmem [resolvable:$true] %s4107_s12 }
 0x6e7   : > { %s7659_s22 = scalar_lea.hbm %s7751_s9, %s7573_s24  ;;  %s7668_s21 = scalar_lea.hbm %s7752_s10, %s7573_s24 }
 0x6e8   : > { %s7671_s13 = scalar_lea.sflag [#allocation5], %s4051_s14  ;;  %s5828_s1 = scalar_lea.vmem %s7653_s15, 512 }
 0x6e9   : > { %p5829_p7 = scmp.ne.s32.totalorder %s7653_s15, %s5828_s1  ;;  %s5939_s30 = smov [#allocation4]  }
 0x6ea   : > { %s5832_s4 = sshll.u32 %s5939_s30, 4  ;;  %s5833_s4 = int_to_ptr.vmem [resolvable:$false] %s5832_s4 }
 0x6eb   : > { %p5830_p8 = pnand %p5829_p7, %p6041_p5  ;;  %s5834_s16 = scalar_lea.vmem %s5833_s4, 1024 }
 0x6ec   : > { %p5835_p10 = scmp.lt.s32.totalorder %s7653_s15, %s5833_s4  ;;  %p5836_p11 = scmp.lt.s32.totalorder %s5834_s16, %s5828_s1 }
 0x6ed   : > { %p5831_p9 = pneg %p5830_p8 }
 0x6ee   : > { %p5837_p12 = por %p5836_p11, %p5835_p10 }
 0x6f0   : > { %p5838_p13 = pnand %p5837_p12, %p5831_p9 }
 0x788   : > { %v5106_v63 = vpop.f32.mrb[20].mxu0 }
 0x789   : > { %4034 = vst.msk [vmem:[%s393_s3 + $0x8] sm:$0xff] %vm952_vm1, %v5106_v63  ;;  %v4010_v51 = vpop.f32.mrb[21].mxu0 }
 0x78a   : > { %4033 = vst.msk [vmem:[%s393_s3] sm:$0xff] %vm952_vm1, %v4010_v51 }
 0x790   : > { %v5109_v33 = vpop.f32.mrb[22].mxu0 }
 0x791   : > { %4036 = vst.msk [vmem:[%s393_s3 + $0x18] sm:$0xff] %vm952_vm1, %v5109_v33  ;;  %v4020_v52 = vpop.f32.mrb[23].mxu0 }
 0x792   : > { %4035 = vst.msk [vmem:[%s393_s3 + $0x10] sm:$0xff] %vm952_vm1, %v4020_v52 }
 0x793   : > { %5841 = shalt.err (!%p5838_p13)
}
 0x794   : > { %s5842_s24 = scalar_lea.hbm %s7659_s22, 512  ;;  %s5846_s14 = scalar_lea.hbm %s7751_s9, 1024 }
 0x795   : > { %p5843_p0 = scmp.ne.s32.totalorder %s7659_s22, %s5842_s24  ;;  %p5847_p3 = scmp.lt.u32.totalorder %s7659_s22, %s7751_s9 }
 0x796   : > { %p5848_p4 = scmp.lt.u32.totalorder %s5846_s14, %s5842_s24  ;;  %p5850_p8 = scmp.lt.u32.totalorder %s5842_s24, %s7659_s22 }
 0x797   : > { %p5844_p1 = pnand %p5843_p0, %p6041_p5 }
 0x798   : > { %p5849_p7 = por %p5848_p4, %p5847_p3 }
 0x799   : > { %p5845_p2 = pneg %p5844_p1 }
 0x79a   : > { %p5851_p9 = por %p5850_p8, %p5849_p7 }
 0x79c   : > { %p5852_p10 = pnand %p5851_p9, %p5845_p2 }
 0x79e   : > { %5855 = shalt.err (!%p5852_p10)
}
 0x79f   : > { %5244 = dma.vmem_to_hbm [thread:$0]  (%p6041_p5), %s7653_s15, 512, %s7659_s22, %s7671_s13, %s5936_s2, %s5936_s2, %s5937_s0  }
 0x7a0   : > { %s5856_s29 = scalar_lea.vmem %s7661_s12, 512  ;;  %s5940_s19 = smov [#allocation6]  }
 0x7a1   : > { %p5857_p11 = scmp.ne.s32.totalorder %s7661_s12, %s5856_s29  ;;  %s5860_s1 = sshll.u32 %s5940_s19, 4  ;;  %s5861_s1 = int_to_ptr.vmem [resolvable:$false] %s5860_s1 }
 0x7a2   : > { %s5862_s30 = scalar_lea.vmem %s5861_s1, 1024  ;;  %p5863_p0 = scmp.lt.s32.totalorder %s7661_s12, %s5861_s1 }
 0x7a3   : > { %p5858_p12 = pnand %p5857_p11, %p6041_p5  ;;  %p5864_p1 = scmp.lt.s32.totalorder %s5862_s30, %s5856_s29 }
 0x7a5   : > { %p5859_p13 = pneg %p5858_p12  ;;  %p5865_p2 = por %p5864_p1, %p5863_p0 }
 0x7a7   : > { %p5866_p3 = pnand %p5865_p2, %p5859_p13 }
 0x7a9   : > { %5869 = shalt.err (!%p5866_p3)
}
 0x7aa   : > { %s5870_s15 = scalar_lea.hbm %s7668_s21, 512  ;;  %s5874_s16 = scalar_lea.hbm %s7752_s10, 1024 }
 0x7ab   : > { %p5871_p4 = scmp.ne.s32.totalorder %s7668_s21, %s5870_s15  ;;  %p5875_p9 = scmp.lt.u32.totalorder %s7668_s21, %s7752_s10 }
 0x7ac   : > { %p5876_p10 = scmp.lt.u32.totalorder %s5874_s16, %s5870_s15  ;;  %p5878_p12 = scmp.lt.u32.totalorder %s5870_s15, %s7668_s21 }
 0x7ad   : > { %p5872_p7 = pnand %p5871_p4, %p6041_p5 }
 0x7ae   : > { %p5877_p11 = por %p5876_p10, %p5875_p9 }
 0x7af   : > { %p5873_p8 = pneg %p5872_p7 }
 0x7b0   : > { %p5879_p13 = por %p5878_p12, %p5877_p11 }
 0x7b2   : > { %p5880_p0 = pnand %p5879_p13, %p5873_p8 }
 0x7b4   : > { %5883 = shalt.err (!%p5880_p0)
}
 0x7b5   : > { %5245 = dma.vmem_to_hbm [thread:$0]  (%p6041_p5), %s7661_s12, 512, %s7668_s21, %s7671_s13, %s5936_s2, %s5936_s2, %s5937_s0  }
 0x7b6 PF: > { %p5264_p1 = scmp.ge.s32.totalorder %s5926_s20, 2  ;;  %s4138_s3 = sand.u32 1, %s5914_s17  }
 0x7b7   : > { %s4139_s14 = scalar_lea.sflag [#allocation3], %s4138_s3 }
 0x7b8   : > { %p5252_p2 = pnand %p5264_p1, %p6045_p6 }
 0x7ba   : > { %5901 = dma.done.wait (!%p5252_p2), %s4139_s14, 512  }
 0x7bb   : > { %5903 = vsyncadd (!%p5252_p2), %s4139_s14, 4294966784  ;;  %s7784_s27 = sadd.s32 4294967294, %s5926_s20  }
 0x7bc   : > { %s4147_s25 = sand.u32 1, %s7784_s27  }
 0x7bd   : > { %s4148_s26 = scalar_lea.sflag [#allocation5], %s4147_s25 }
 0x7be   : > { %5905 = dma.done.wait (!%p5252_p2), %s4148_s26, 1024  }
 0x7bf   : > { %5907 = vsyncadd (!%p5252_p2), %s4148_s26, 4294966272  ;;  %s4166_s29 = scalar_lea.sflag [#allocation8], %s4138_s3 }
 0x7c0   : > { %5909 = dma.done.wait (!%p5252_p2), %s4166_s29, 512  }
 0x7c1   : > { %5911 = vsyncadd (!%p5252_p2), %s4166_s29, 4294966784  ;;  %s7785_s2 = sld [smem:[#allocation12_spill]]  ;;  %s7786_s19 = sld [smem:[#allocation13_spill]] }
 0x7c2   : > { %p28_p5 = scmp.ge.s32.totalorder %s6026_s23, 4   ;;  %s7787_s17 = smov %s5918_s18 }
 0x7c3   : > { %s7789_s20 = smov %s6026_s23 }
 0x7c4   :  { %30 = sbr.rel (!%p28_p5) target bundleno = 14 (0xe), region = 142 }
 0x7c7   : > { %s7788_s18 = smov %s7785_s2 }
 0x7cb   :  { %4171 = vsyncpa [#allocation3], 1 }
 0x7cc   :  { %4173 = vsyncpa [#allocation3 + $0x1], 1 }
 0x7cd   :  { %4174 = vsyncpa [#allocation5], 1 }
 0x7ce   :  { %4176 = vsyncpa [#allocation5 + $0x1], 1 }
 0x7cf   :  { %4177 = vsyncpa [#allocation8], 1 }
 0x7d0   :  { %4179 = vsyncpa [#allocation8 + $0x1], 1 }

// kernel: _lambda_.2
= control target key start
LH: loop header
LB: loop body
LE: loop exit
PB: predicated region body
PF: predicated region fallthrough
CT: control target
= control target key end

     0   :  { %s12210_s18 = smov 0   ;;  %s16152_s0 = inlined_call_operand.vmem [shape: f32[2,128,8], index: 0, kind: input, shape index: {}]   ;;  %s16153_s1 = inlined_call_operand.vmem [shape: bf16[1,8,96], index: 1, kind: input, shape index: {}]   ;;  %s16154_s2 = inlined_call_operand.vmem [shape: f32[1,96], index: 2, kind: input, shape index: {}]   ;;  %s16155_s3 = inlined_call_operand.vmem [shape: bf16[5,96,96], index: 3, kind: input, shape index: {}]   ;;  %s16156_s4 = inlined_call_operand.vmem [shape: f32[1,96], index: 4, kind: input, shape index: {}]   ;;  %s16157_s5 = inlined_call_operand.vmem [shape: bf16[5,96,96], index: 5, kind: input, shape index: {}]   ;;  %s16158_s6 = inlined_call_operand.vmem [shape: f32[1,96], index: 6, kind: input, shape index: {}]   ;;  %s16159_s7 = inlined_call_operand.vmem [shape: bf16[5,96,96], index: 7, kind: input, shape index: {}]   ;;  %s16160_s8 = inlined_call_operand.vmem [shape: f32[1,96], index: 8, kind: input, shape index: {}]   ;;  %s16161_s9 = inlined_call_operand.vmem [shape: bf16[5,96,96], index: 9, kind: input, shape index: {}]   ;;  %s16162_s10 = inlined_call_operand.vmem [shape: f32[1,96], index: 10, kind: input, shape index: {}]   ;;  %s16163_s11 = inlined_call_operand.vmem [shape: bf16[4,96,144], index: 11, kind: input, shape index: {}]   ;;  %s16164_s12 = inlined_call_operand.vmem [shape: f32[1,144], index: 12, kind: input, shape index: {}]   ;;  %s16165_s13 = inlined_call_operand.vmem [shape: bf16[7,72,72], index: 13, kind: input, shape index: {}]   ;;  %s16166_s14 = inlined_call_operand.vmem [shape: f32[1,72], index: 14, kind: input, shape index: {}]   ;;  %s16167_s15 = inlined_call_operand.vmem [shape: bf16[2,128,72], index: 15, kind: output, shape index: {}]  }
   0x1 LB: > { %s9047_s19 = sadd.s32 4294967295, %s12126_s18   ;;  %p9051_p0 = scmp.ge.s32.totalorder %s12126_s18, 1  ;;  %s12126_s18 = sphi %s12210_s18, %s25_s18  }
   0x2   : > { %p437_p1 = scmp.lt.s32.totalorder %s12126_s18, 3 }
   0x4   : > { %p438_p2 = pnand %p9051_p0, %p437_p1 }
   0x6   : > { %441 = sbr.rel (%p438_p2) target bundleno = 2750 (0xabe), region = 80 }
   0xd   : > { %v520_v0 = vld [vmem:[%s16153_s1] sm:$0xf]  ;;  %vm553_vm0 = vcmask 1043456   ;;  %p485_p3 = scmp.lt.s32.totalorder %s9047_s19, 1  ;;  %vm528_vm1 = vcmask 64512   ;;  %v11445_v26 = vld [vmem:[%s16155_s3 + $0x30] sm:$0xff]  }
   0xe   : > { %11427 = vmatprep.subr.msk.bf16.mxu0 %vm553_vm0, %v520_v0  ;;  %v555_v1 = vsel %vm553_vm0, %v520_v0, 0  ;;  %10237 = vmatprep.subr.bf16.mxu1 %v11445_v26  ;;  %v11446_v27 = vld [vmem:[%s16155_s3 + $0x38] sm:$0xff]   ;;  %v11447_v28 = vld [vmem:[%s16155_s3 + $0x40] sm:$0xff]   ;;  %v11448_v29 = vld [vmem:[%s16155_s3 + $0x48] sm:$0xff]   ;;  %vm835_vm2 = vcmask 1040384   ;;  %vm941_vm3 = vcmask 785408  }
   0xf   : > { %10220 = vmatpush3.bf16.msra.mxu0 %v555_v1  ;;  %s16495_s19 = smov (!%p485_p3, %s9047_s19), 1  ;;  %10238 = vmatpush3.bf16.msra.mxu1 %v11445_v26  ;;  %v11449_v30 = vld [vmem:[%s16155_s3 + $0x50] sm:$0xff]   ;;  %v11450_v31 = vld [vmem:[%s16155_s3 + $0x58] sm:$0xff]   ;;  %v12258_v32 = vld [vmem:[%s16155_s3] sm:$0xff]   ;;  %vm766_vm4 = vcmask 1041408   ;;  %vm1414_vm5 = vcmask 1046528  }
  0x10   : > { %s9821_s22 = sshll.u32 %s16495_s19, 7  ;;  %10239 = vmatprep.subr.bf16.mxu1 %v11446_v27  ;;  %v12264_v33 = vld [vmem:[%s16154_s2] ss:$0 sm:$0xff]  ;;  %vm1657_vm6 = vcmask 1045504   ;;  %vm7253_vm7 = vcmask 588800   ;;  %vm7094_vm8 = vcmask 1042432  }
  0x11   : > { %s489_s25 = scalar_lea.vmem %s16152_s0, %s9821_s22  ;;  %s12129_s22 = smov 56   ;;  %vm8413_vm9 = vcmask 1044480   ;;  %vm8766_vm10 = vcmask 457728   ;;  %vm8975_vm11 = vcmask 584704  }
  0x12   : > { %v496_v2 = vld [vmem:[%s489_s25] sm:$0xff]  ;;  %v497_v3 = vld [vmem:[%s489_s25 + $0x8] sm:$0xff]  ;;  %v498_v4 = vld [vmem:[%s489_s25 + $0x10] sm:$0xff]  ;;  %s9822_s16 = sshll.u32 %s16495_s19, 6 }
  0x13   : > { %v512_v5 = vpack.c.bf16 %v497_v3, %v496_v2  ;;  %v499_v6 = vld [vmem:[%s489_s25 + $0x18] sm:$0xff]  ;;  %v500_v7 = vld [vmem:[%s489_s25 + $0x20] sm:$0xff]  ;;  %v501_v8 = vld [vmem:[%s489_s25 + $0x28] sm:$0xff]  ;;  %10240 = vmatpush3.bf16.msra.mxu1 %v11446_v27  ;;  %s16100_s19 = scalar_lea.vmem %s16167_s15, %s9822_s16 }
  0x14   : > { %v513_v9 = vpack.c.bf16 %v499_v6, %v498_v4  ;;  %v514_v10 = vpack.c.bf16 %v501_v8, %v500_v7  ;;  %v502_v11 = vld [vmem:[%s489_s25 + $0x30] sm:$0xff]  ;;  %v503_v12 = vld [vmem:[%s489_s25 + $0x38] sm:$0xff]  ;;  %v504_v13 = vld [vmem:[%s489_s25 + $0x40] sm:$0xff]  ;;  %10241 = vmatprep.subr.bf16.mxu1 %v11447_v28 }
  0x15   : > { %10221 = vmatprep.mubr.msk.bf16.mxu0 %vm528_vm1, %v512_v5  ;;  %v505_v14 = vld [vmem:[%s489_s25 + $0x48] sm:$0xff]  ;;  %v515_v15 = vpack.c.bf16 %v503_v12, %v502_v11  ;;  %v506_v17 = vld [vmem:[%s489_s25 + $0x50] sm:$0xff]  ;;  %v507_v18 = vld [vmem:[%s489_s25 + $0x58] sm:$0xff] }
  0x16   : > { %10222 = vmatmul.mubr.msk.bf16.vlgmr.msra.gmra.mrb[0].mxu0 %vm528_vm1, %v513_v9  ;;  %v516_v16 = vpack.c.bf16 %v505_v14, %v504_v13  ;;  %v508_v19 = vld [vmem:[%s489_s25 + $0x60] sm:$0xff]  ;;  %v509_v20 = vld [vmem:[%s489_s25 + $0x68] sm:$0xff]  ;;  %v517_v21 = vpack.c.bf16 %v507_v18, %v506_v17  ;;  %v510_v23 = vld [vmem:[%s489_s25 + $0x70] sm:$0xff] }
  0x17   : > { %10225 = vmatprep.mubr.msk.bf16.mxu0 %vm528_vm1, %v514_v10  ;;  %v518_v22 = vpack.c.bf16 %v509_v20, %v508_v19  ;;  %v511_v24 = vld [vmem:[%s489_s25 + $0x78] sm:$0xff]  ;;  %10242 = vmatpush3.bf16.msra.mxu1 %v11447_v28 }
  0x18   : > { %v519_v25 = vpack.c.bf16 %v511_v24, %v510_v23  ;;  %10243 = vmatprep.subr.bf16.mxu1 %v11448_v29 }
  0x1b   : > { %10244 = vmatpush3.bf16.msra.mxu1 %v11448_v29 }
  0x1c   : > { %10245 = vmatprep.subr.bf16.mxu1 %v11449_v30 }
  0x1e   : > { %10226 = vmatmul.mubr.msk.bf16.gmra.mrb[4].mxu0 %vm528_vm1, %v515_v15 }
  0x1f   : > { %10229 = vmatprep.mubr.msk.bf16.mxu0 %vm528_vm1, %v516_v16  ;;  %10246 = vmatpush3.bf16.msra.mxu1 %v11449_v30 }
  0x20   : > { %10247 = vmatprep.subr.bf16.mxu1 %v11450_v31 }
  0x23   : > { %10248 = vmatpush3.bf16.msra.mxu1 %v11450_v31 }
  0x24   : > { %10265 = vmatprep.subr.bf16.mxu1 %v12258_v32 }
  0x26   : > { %10230 = vmatmul.mubr.msk.bf16.gmra.mrb[8].mxu0 %vm528_vm1, %v517_v21 }
  0x27   : > { %10233 = vmatprep.mubr.msk.bf16.mxu0 %vm528_vm1, %v518_v22 }
  0x2e   : > { %10234 = vmatmul.mubr.msk.bf16.gmra.mrb[12].mxu0 %vm528_vm1, %v519_v25 }
  0xe9   : > { %v10223_v34 = vpop.f32.mrb[0].mxu0 }
  0xea   : > { %v12267_v35 = vadd.f32 %v10223_v34, %v12264_v33  ;;  %v591_v36 = vpop.f32.mrb[1].mxu0 }
  0xeb   : > { %v12270_v37 = vadd.f32 %v12264_v33, %v591_v36  ;;  %v10224_v38 = vpop.f32.mrb[2].mxu0 }
  0xec   : > { %v656_v39 = vsub.f32 0.0, %v12267_v35  ;;  %v12274_v40 = vadd.f32 %v10224_v38, %v12264_v33  ;;  %v594_v41 = vpop.f32.mrb[3].mxu0 }
  0xed   : > { %v654_v42 = vsub.f32 0.0, %v12270_v37  ;;  %v12278_v43 = vadd.f32 %v12264_v33, %v594_v41 }
  0xee   : > { %v674_v44 = vmul.f32 1.442695, %v656_v39  ;;  %v657_v45 = vsub.f32 0.0, %v12274_v40 }
  0xef   : > { %v670_v46 = vmul.f32 1.442695, %v654_v42  ;;  %v655_v47 = vsub.f32 0.0, %v12278_v43 }
  0xf0   : > { %11672 = vpow2.f32 %v674_v44  ;;  %v676_v48 = vmul.f32 1.442695, %v657_v45 }
  0xf1   : > { %11674 = vpow2.f32 %v670_v46  ;;  %v672_v49 = vmul.f32 1.442695, %v655_v47  ;;  %v10227_v50 = vpop.f32.mrb[4].mxu0 }
  0xf2   : > { %11676 = vpow2.f32 %v676_v48  ;;  %v12283_v51 = vadd.f32 %v10227_v50, %v12264_v33  ;;  %v607_v52 = vpop.f32.mrb[5].mxu0 }
  0xf3   : > { %11678 = vpow2.f32 %v672_v49  ;;  %v12286_v53 = vadd.f32 %v12264_v33, %v607_v52  ;;  %v10228_v54 = vpop.f32.mrb[6].mxu0 }
  0xf4   : > { %v660_v55 = vsub.f32 0.0, %v12283_v51  ;;  %v12290_v56 = vadd.f32 %v10228_v54, %v12264_v33  ;;  %v610_v57 = vpop.f32.mrb[7].mxu0 }
  0xf5   : > { %v658_v58 = vsub.f32 0.0, %v12286_v53  ;;  %v12294_v59 = vadd.f32 %v12264_v33, %v610_v57 }
  0xf6   : > { %v682_v60 = vmul.f32 1.442695, %v660_v55  ;;  %v661_v61 = vsub.f32 0.0, %v12290_v56 }
  0xf7   : > { %v678_v62 = vmul.f32 1.442695, %v658_v58  ;;  %v659_v63 = vsub.f32 0.0, %v12294_v59 }
  0xf8   : > { %11680 = vpow2.f32 %v682_v60  ;;  %v684_v0 = vmul.f32 1.442695, %v661_v61 }
  0xf9   : > { %11682 = vpow2.f32 %v678_v62  ;;  %v680_v1 = vmul.f32 1.442695, %v659_v63  ;;  %v10231_v2 = vpop.f32.mrb[8].mxu0 }
  0xfa   : > { %v11673_v3 = vpop.eup %11672  ;;  %11684 = vpow2.f32 %v684_v0  ;;  %v12299_v4 = vadd.f32 %v10231_v2, %v12264_v33  ;;  %v623_v5 = vpop.f32.mrb[9].mxu0 }
  0xfb   : > { %v11675_v6 = vpop.eup %11674  ;;  %v704_v7 = vadd.f32 1.0, %v11673_v3  ;;  %11686 = vpow2.f32 %v680_v1  ;;  %v12302_v8 = vadd.f32 %v12264_v33, %v623_v5  ;;  %v10232_v9 = vpop.f32.mrb[10].mxu0 }
  0xfc   : > { %v11677_v10 = vpop.eup %11676  ;;  %v702_v11 = vadd.f32 1.0, %v11675_v6  ;;  %v664_v12 = vsub.f32 0.0, %v12299_v4  ;;  %v12306_v13 = vadd.f32 %v10232_v9, %v12264_v33  ;;  %v626_v14 = vpop.f32.mrb[11].mxu0 }
  0xfd   : > { %v11679_v15 = vpop.eup %11678  ;;  %11688 = vrcp.f32 %v704_v7  ;;  %v705_v16 = vadd.f32 1.0, %v11677_v10  ;;  %v662_v17 = vsub.f32 0.0, %v12302_v8  ;;  %v12310_v18 = vadd.f32 %v12264_v33, %v626_v14 }
  0xfe   : > { %11690 = vrcp.f32 %v702_v11  ;;  %v703_v19 = vadd.f32 1.0, %v11679_v15  ;;  %v690_v20 = vmul.f32 1.442695, %v664_v12  ;;  %v665_v21 = vsub.f32 0.0, %v12306_v13 }
  0xff   : > { %11692 = vrcp.f32 %v705_v16  ;;  %v686_v22 = vmul.f32 1.442695, %v662_v17  ;;  %v663_v23 = vsub.f32 0.0, %v12310_v18 }
 0x100   : > { %11694 = vrcp.f32 %v703_v19  ;;  %v692_v24 = vmul.f32 1.442695, %v665_v21 }
 0x101   : > { %11696 = vpow2.f32 %v690_v20  ;;  %v688_v25 = vmul.f32 1.442695, %v663_v23  ;;  %v10235_v26 = vpop.f32.mrb[12].mxu0 }
 0x102   : > { %v11681_v27 = vpop.eup %11680  ;;  %11698 = vpow2.f32 %v686_v22  ;;  %v12315_v28 = vadd.f32 %v10235_v26, %v12264_v33  ;;  %v639_v29 = vpop.f32.mrb[13].mxu0  ;;  %v11452_v26 = vld [vmem:[%s16155_s3 + $0x8] sm:$0xff]  }
 0x103   : > { %v11683_v30 = vpop.eup %11682  ;;  %v708_v31 = vadd.f32 1.0, %v11681_v27  ;;  %11700 = vpow2.f32 %v692_v24  ;;  %v12318_v34 = vadd.f32 %v12264_v33, %v639_v29  ;;  %v10236_v36 = vpop.f32.mrb[14].mxu0 }
 0x104   : > { %v11685_v38 = vpop.eup %11684  ;;  %v706_v39 = vadd.f32 1.0, %v11683_v30  ;;  %11702 = vpow2.f32 %v688_v25  ;;  %v668_v41 = vsub.f32 0.0, %v12315_v28  ;;  %v12322_v42 = vadd.f32 %v10236_v36, %v12264_v33  ;;  %v642_v44 = vpop.f32.mrb[15].mxu0 }
 0x105   : > { %v11687_v45 = vpop.eup %11686  ;;  %11704 = vrcp.f32 %v708_v31  ;;  %v709_v46 = vadd.f32 1.0, %v11685_v38  ;;  %v666_v47 = vsub.f32 0.0, %v12318_v34  ;;  %v12326_v48 = vadd.f32 %v12264_v33, %v642_v44 }
 0x106   : > { %11706 = vrcp.f32 %v706_v39  ;;  %v707_v49 = vadd.f32 1.0, %v11687_v45  ;;  %v698_v50 = vmul.f32 1.442695, %v668_v41  ;;  %v669_v52 = vsub.f32 0.0, %v12322_v42 }
 0x107   : > { %v11689_v54 = vpop.eup %11688  ;;  %11708 = vrcp.f32 %v709_v46  ;;  %v694_v55 = vmul.f32 1.442695, %v666_v47  ;;  %v667_v57 = vsub.f32 0.0, %v12326_v48 }
 0x108   : > { %v11691_v58 = vpop.eup %11690  ;;  %11710 = vrcp.f32 %v707_v49  ;;  %v700_v60 = vmul.f32 1.442695, %v669_v52  ;;  %v12331_v62 = vmul.f32 %v11689_v54, %v12267_v35 }
 0x109   : > { %v11693_v61 = vpop.eup %11692  ;;  %v12334_v33 = vmul.f32 %v11691_v58, %v12270_v37  ;;  %11712 = vpow2.f32 %v698_v50  ;;  %v696_v63 = vmul.f32 1.442695, %v667_v57 }
 0x10a   : > { %16235 = vst [vmem:[#allocation2_spill] sm:$0xff] %v12331_v62  ;;  %v11695_v0 = vpop.eup %11694  ;;  %v12337_v1 = vmul.f32 %v11693_v61, %v12274_v40  ;;  %11714 = vpow2.f32 %v694_v55  ;;  %v839_v40 = vrot.slane %v12331_v62, 7  ;;  %v11454_v61 = vld [vmem:[%s16155_s3 + $0x18] sm:$0xff]  }
 0x10b   : > { %16236 = vst [vmem:[#allocation3_spill] sm:$0xff] %v12334_v33  ;;  %v11697_v2 = vpop.eup %11696  ;;  %v12340_v3 = vmul.f32 %v11695_v0, %v12278_v43  ;;  %11716 = vpow2.f32 %v700_v60  ;;  %v836_v5 = vrot.slane %v12334_v33, 7 }
 0x10c   : > { %16237 = vst [vmem:[#allocation4_spill] sm:$0xff] %v12337_v1  ;;  %v11699_v35 = vpop.eup %11698  ;;  %v712_v6 = vadd.f32 1.0, %v11697_v2  ;;  %11718 = vpow2.f32 %v696_v63  ;;  %v841_v12 = vrot.slane %v12337_v1, 7 }
 0x10d   : > { %16238 = vst [vmem:[#allocation5_spill] sm:$0xff] %v12340_v3  ;;  %v11701_v37 = vpop.eup %11700  ;;  %v710_v7 = vadd.f32 1.0, %v11699_v35  ;;  %v837_v9 = vrot.slane %v12340_v3, 7  ;;  %v883_v43 = vsel %vm835_vm2, 0.0, %v836_v5 }
 0x10e   : > { %v11703_v10 = vpop.eup %11702  ;;  %11720 = vrcp.f32 %v712_v6  ;;  %v713_v11 = vadd.f32 1.0, %v11701_v37  ;;  %v842_v22 = vsel %vm835_vm2, %v839_v40, %v841_v12  ;;  %v11455_v37 = vld [vmem:[%s16155_s3 + $0x20] sm:$0xff]  }
 0x10f   : > { %v11705_v14 = vpop.eup %11704  ;;  %11722 = vrcp.f32 %v710_v7  ;;  %v711_v15 = vadd.f32 1.0, %v11703_v10  ;;  %v838_v16 = vsel %vm835_vm2, %v836_v5, %v837_v9  ;;  %v840_v17 = vsel %vm835_vm2, %v837_v9, %v839_v40 }
 0x110   : > { %v11707_v19 = vpop.eup %11706  ;;  %v12350_v20 = vmul.f32 %v11705_v14, %v12283_v51  ;;  %11724 = vrcp.f32 %v713_v11  ;;  %v884_v21 = vpack.c.bf16 %v838_v16, %v883_v43  ;;  %v885_v25 = vpack.c.bf16 %v842_v22, %v840_v17  ;;  %v11456_v17 = vld [vmem:[%s16155_s3 + $0x28] sm:$0xff]  }
 0x111   : > { %v11709_v23 = vpop.eup %11708  ;;  %v12354_v24 = vmul.f32 %v11707_v19, %v12286_v53  ;;  %11726 = vrcp.f32 %v711_v15 }
 0x112   : > { %16239 = vst [vmem:[#allocation6_spill] sm:$0xff] %v12350_v20  ;;  %v11711_v27 = vpop.eup %11710  ;;  %v12360_v29 = vmul.f32 %v11709_v23, %v12290_v56  ;;  %10249 = vmatprep.mubr.msk.bf16.mxu1 %vm941_vm3, %v884_v21  ;;  %v847_v38 = vrot.slane %v12350_v20, 7 }
 0x113   : > { %16240 = vst [vmem:[#allocation7_spill] sm:$0xff] %v12354_v24  ;;  %v11713_v51 = vpop.eup %11712  ;;  %v12364_v30 = vmul.f32 %v11711_v27, %v12294_v59  ;;  %10250 = vmatmul.mubr.msk.bf16.vlgmr.msra.gmra.mrb[0].mxu1 %vm941_vm3, %v885_v25  ;;  %v843_v53 = vrot.slane %v12354_v24, 7  ;;  %v11453_v59 = vld [vmem:[%s16155_s3 + $0x10] sm:$0xff]  }
 0x114   : > { %16241 = vst [vmem:[#allocation8_spill] sm:$0xff] %v12360_v29  ;;  %v11715_v31 = vpop.eup %11714  ;;  %v716_v36 = vadd.f32 1.0, %v11713_v51  ;;  %10266 = vmatpush3.bf16.msra.mxu1 %v12258_v32  ;;  %v849_v39 = vrot.slane %v12360_v29, 7  ;;  %v767_v51 = vrot.slane %v12334_v33, 6 }
 0x115   : > { %16242 = vst [vmem:[#allocation9_spill] sm:$0xff] %v12364_v30  ;;  %v11717_v56 = vpop.eup %11716  ;;  %v714_v41 = vadd.f32 1.0, %v11715_v31  ;;  %10267 = vmatprep.subr.bf16.mxu1 %v11452_v26  ;;  %v845_v44 = vrot.slane %v12364_v30, 7  ;;  %v844_v32 = vsel %vm835_vm2, %v841_v12, %v843_v53 }
 0x116   : > { %11728 = vrcp.f32 %v716_v36  ;;  %v717_v45 = vadd.f32 1.0, %v11717_v56  ;;  %v850_v46 = vsel %vm835_vm2, %v847_v38, %v849_v39  ;;  %v11719_v47 = vpop.eup %11718  ;;  %v814_v56 = vsel %vm766_vm4, 0.0, %v767_v51 }
 0x117   : > { %11730 = vrcp.f32 %v714_v41  ;;  %v846_v49 = vsel %vm835_vm2, %v843_v53, %v845_v44  ;;  %v848_v50 = vsel %vm835_vm2, %v845_v44, %v847_v38  ;;  %v715_v54 = vadd.f32 1.0, %v11719_v47 }
 0x118   : > { %v11721_v52 = vpop.eup %11720  ;;  %11732 = vrcp.f32 %v717_v45  ;;  %10268 = vmatpush3.bf16.msra.mxu1 %v11452_v26  ;;  %v886_v55 = vpack.c.bf16 %v846_v49, %v844_v32  ;;  %v887_v57 = vpack.c.bf16 %v850_v46, %v848_v50  ;;  %v772_v41 = vrot.slane %v12337_v1, 6 }
 0x119   : > { %v11723_v58 = vpop.eup %11722  ;;  %v12380_v60 = vmul.f32 %v11721_v52, %v12299_v4  ;;  %10269 = vmatprep.subr.bf16.mxu1 %v11453_v59  ;;  %11734 = vrcp.f32 %v715_v54  ;;  %v770_v45 = vrot.slane %v12331_v62, 6  ;;  %v774_v46 = vrot.slane %v12354_v24, 6  ;;  %v11458_v54 = vld [vmem:[%s16155_s3 + $0x68] sm:$0xff]  }
 0x11a   : > { %v11725_v63 = vpop.eup %11724  ;;  %v12386_v0 = vmul.f32 %v11723_v58, %v12302_v8  ;;  %10253 = vmatprep.mubr.msk.bf16.mxu1 %vm941_vm3, %v886_v55 }
 0x11b   : > { %16243 = vst [vmem:[#allocation10_spill] sm:$0xff] %v12380_v60  ;;  %v11727_v2 = vpop.eup %11726  ;;  %v12390_v5 = vmul.f32 %v11725_v63, %v12306_v13  ;;  %10254 = vmatmul.mubr.msk.bf16.gmra.mrb[4].mxu1 %vm941_vm3, %v887_v57  ;;  %v855_v6 = vrot.slane %v12380_v60, 7  ;;  %v773_v32 = vsel %vm766_vm4, %v770_v45, %v772_v41  ;;  %v775_v52 = vsel %vm766_vm4, %v772_v41, %v774_v46  ;;  %v11466_v41 = vld [vmem:[%s16155_s3 + $0xa8] sm:$0xff]  }
 0x11c   : > { %16244 = vst [vmem:[#allocation11_spill] sm:$0xff] %v12386_v0  ;;  %v12394_v4 = vmul.f32 %v11727_v2, %v12310_v18  ;;  %10270 = vmatpush3.bf16.msra.mxu1 %v11453_v59  ;;  %v851_v35 = vrot.slane %v12386_v0, 7  ;;  %v776_v59 = vrot.slane %v12364_v30, 6  ;;  %v780_v57 = vrot.slane %v12360_v29, 6  ;;  %v11459_v2 = vld [vmem:[%s16155_s3 + $0x70] sm:$0xff]  }
 0x11d   : > { %16245 = vst [vmem:[#allocation12_spill] sm:$0xff] %v12390_v5  ;;  %10271 = vmatprep.subr.bf16.mxu1 %v11454_v61  ;;  %v857_v8 = vrot.slane %v12390_v5, 7  ;;  %v782_v63 = vrot.slane %v12386_v0, 6 }
 0x11e   : > { %16246 = vst [vmem:[#allocation13_spill] sm:$0xff] %v12394_v4  ;;  %v853_v13 = vrot.slane %v12394_v4, 7  ;;  %v852_v18 = vsel %vm835_vm2, %v849_v39, %v851_v35  ;;  %v777_v49 = vsel %vm766_vm4, %v774_v46, %v776_v59  ;;  %v784_v58 = vrot.slane %v12394_v4, 6  ;;  %v11468_v46 = vld [vmem:[%s16155_s3 + $0xb8] sm:$0xff]  }
 0x11f   : > { %v858_v7 = vsel %vm835_vm2, %v855_v6, %v857_v8  ;;  %v817_v55 = vpack.c.bf16 %v777_v49, %v775_v52  ;;  %v1415_v49 = vrot.slane %v12334_v33, 1  ;;  %v11469_v52 = vld [vmem:[%s16155_s3 + $0xc0] sm:$0xff]  }
 0x120   : > { %v11729_v9 = vpop.eup %11728  ;;  %v854_v40 = vsel %vm835_vm2, %v851_v35, %v853_v13  ;;  %v856_v10 = vsel %vm835_vm2, %v853_v13, %v855_v6  ;;  %10272 = vmatpush3.bf16.msra.mxu1 %v11454_v61  ;;  %v778_v61 = vrot.slane %v12350_v20, 6  ;;  %v783_v13 = vsel %vm766_vm4, %v780_v57, %v782_v63 }
 0x121   : > { %v11731_v11 = vpop.eup %11730  ;;  %v12408_v43 = vmul.f32 %v11729_v9, %v12315_v28  ;;  %v888_v12 = vpack.c.bf16 %v854_v40, %v852_v18  ;;  %v889_v14 = vpack.c.bf16 %v858_v7, %v856_v10  ;;  %10273 = vmatprep.subr.bf16.mxu1 %v11455_v37  ;;  %v768_v28 = vrot.slane %v12340_v3, 6  ;;  %v11460_v7 = vld [vmem:[%s16155_s3 + $0x78] sm:$0xff]  }
 0x122   : > { %v11733_v15 = vpop.eup %11732  ;;  %v12411_v16 = vmul.f32 %v11731_v11, %v12318_v34  ;;  %v779_v35 = vsel %vm766_vm4, %v776_v59, %v778_v61  ;;  %v781_v6 = vsel %vm766_vm4, %v778_v61, %v780_v57  ;;  %v788_v18 = vrot.slane %v12390_v5, 6  ;;  %v11467_v59 = vld [vmem:[%s16155_s3 + $0xb0] sm:$0xff]  }
 0x123   : > { %16247 = vst [vmem:[#allocation14_spill] sm:$0xff] %v12408_v43  ;;  %v12417_v19 = vmul.f32 %v11733_v15, %v12322_v42  ;;  %10257 = vmatprep.mubr.msk.bf16.mxu1 %vm941_vm3, %v888_v12  ;;  %v11735_v21 = vpop.eup %11734  ;;  %v863_v23 = vrot.slane %v12408_v43, 7  ;;  %v11457_v42 = vld [vmem:[%s16155_s3 + $0x60] sm:$0xff]   ;;  %v769_v36 = vsel %vm766_vm4, %v767_v51, %v768_v28  ;;  %v771_v47 = vsel %vm766_vm4, %v768_v28, %v770_v45 }
 0x124   : > { %16248 = vst [vmem:[#allocation15_spill] sm:$0xff] %v12411_v16  ;;  %10258 = vmatmul.mubr.msk.bf16.gmra.mrb[8].mxu1 %vm941_vm3, %v889_v14  ;;  %v12423_v22 = vmul.f32 %v11735_v21, %v12326_v48  ;;  %v859_v34 = vrot.slane %v12411_v16, 7  ;;  %v815_v44 = vpack.c.bf16 %v769_v36, %v814_v56  ;;  %v816_v50 = vpack.c.bf16 %v773_v32, %v771_v47  ;;  %v11461_v12 = vld [vmem:[%s16155_s3 + $0x80] sm:$0xff]   ;;  %v11464_v36 = vld [vmem:[%s16155_s3 + $0x98] sm:$0xff]  }
 0x125   : > { %16249 = vst [vmem:[#allocation16_spill] sm:$0xff] %v12417_v19  ;;  %10274 = vmatpush3.bf16.msra.mxu1 %v11455_v37  ;;  %v865_v25 = vrot.slane %v12417_v19, 7  ;;  %v818_v37 = vpack.c.bf16 %v781_v6, %v779_v35  ;;  %v786_v10 = vrot.slane %v12380_v60, 6  ;;  %v790_v11 = vrot.slane %v12411_v16, 6 }
 0x126   : > { %16250 = vst [vmem:[#allocation17_spill] sm:$0xff] %v12423_v22  ;;  %10275 = vmatprep.subr.bf16.mxu1 %v11456_v17  ;;  %v861_v26 = vrot.slane %v12423_v22, 7  ;;  %v860_v48 = vsel %vm835_vm2, %v857_v8, %v859_v34  ;;  %v785_v8 = vsel %vm766_vm4, %v782_v63, %v784_v58  ;;  %v792_v40 = vrot.slane %v12423_v22, 6 }
 0x127   : > { %v866_v27 = vsel %vm835_vm2, %v863_v23, %v865_v25  ;;  %v819_v9 = vpack.c.bf16 %v785_v8, %v783_v13  ;;  %v787_v14 = vsel %vm766_vm4, %v784_v58, %v786_v10  ;;  %v789_v15 = vsel %vm766_vm4, %v786_v10, %v788_v18 }
 0x128   : > { %v862_v53 = vsel %vm835_vm2, %v859_v34, %v861_v26  ;;  %v864_v31 = vsel %vm835_vm2, %v861_v26, %v863_v23  ;;  %v820_v21 = vpack.c.bf16 %v789_v15, %v787_v14  ;;  %v791_v28 = vsel %vm766_vm4, %v788_v18, %v790_v11  ;;  %v11462_v34 = vld [vmem:[%s16155_s3 + $0x88] sm:$0xff]   ;;  %v11463_v26 = vld [vmem:[%s16155_s3 + $0x90] sm:$0xff]  }
 0x129   : > { %10276 = vmatpush3.bf16.msra.mxu1 %v11456_v17  ;;  %v890_v38 = vpack.c.bf16 %v862_v53, %v860_v48  ;;  %v891_v39 = vpack.c.bf16 %v866_v27, %v864_v31  ;;  %v793_v17 = vsel %vm766_vm4, %v790_v11, %v792_v40  ;;  %v796_v25 = vrot.slane %v12417_v19, 6  ;;  %v11471_v14 = vld [vmem:[%s16155_s3 + $0xd0] sm:$0xff]  }
 0x12a   : > { %10293 = vmatprep.subr.bf16.mxu1 %v11457_v42  ;;  %v821_v23 = vpack.c.bf16 %v793_v17, %v791_v28  ;;  %v1220_v53 = vpack.c.bf16 %v12340_v3, %v12334_v33  ;;  %v1221_v31 = vpack.c.bf16 %v12337_v1, %v12331_v62  ;;  %v1223_v56 = vpack.c.bf16 %v12360_v29, %v12350_v20 }
 0x12b   : > { %10261 = vmatprep.mubr.msk.bf16.mxu1 %vm941_vm3, %v890_v38  ;;  %v1222_v38 = vpack.c.bf16 %v12364_v30, %v12354_v24  ;;  %v1225_v45 = vpack.c.bf16 %v12390_v5, %v12380_v60  ;;  %v1226_v47 = vpack.c.bf16 %v12423_v22, %v12411_v16  ;;  %v1416_v32 = vrot.slane %v12340_v3, 1 }
 0x12c   : > { %10262 = vmatmul.mubr.msk.bf16.gmra.mrb[12].mxu1 %vm941_vm3, %v891_v39  ;;  %v11465_v39 = vld [vmem:[%s16155_s3 + $0xa0] sm:$0xff]   ;;  %v1227_v57 = vpack.c.bf16 %v12417_v19, %v12408_v43  ;;  %v1422_v58 = vrot.slane %v12354_v24, 1  ;;  %v1424_v63 = vrot.slane %v12364_v30, 1  ;;  %v1426_v35 = vrot.slane %v12350_v20, 1 }
 0x12d   : > { %10277 = vmatprep.mubr.msk.bf16.mxu1 %vm941_vm3, %v815_v44  ;;  %v1224_v44 = vpack.c.bf16 %v12394_v4, %v12386_v0  ;;  %v1432_v10 = vrot.slane %v12394_v4, 1  ;;  %v1428_v11 = vrot.slane %v12360_v29, 1 }
 0x12e   : > { %v1425_v8 = vsel %vm1414_vm5, %v1422_v58, %v1424_v63 }
 0x12f   : > { %v1429_v28 = vsel %vm1414_vm5, %v1426_v35, %v1428_v11 }
 0x134   : > { %10278 = vmatmul.mubr.msk.bf16.vlgmr.msra.gmra.mrb[0].mxu1 %vm941_vm3, %v816_v50  ;;  %v1418_v50 = vrot.slane %v12331_v62, 1 }
 0x135   : > { %10294 = vmatpush3.bf16.msra.mxu1 %v11457_v42  ;;  %10281 = vmatprep.mubr.msk.bf16.mxu1 %vm941_vm3, %v817_v55  ;;  %v794_v42 = vrot.slane %v12408_v43, 6 }
 0x136   : > { %10295 = vmatprep.subr.bf16.mxu1 %v11458_v54  ;;  %v1419_v55 = vsel %vm1414_vm5, %v1416_v32, %v1418_v50 }
 0x137   : > { %v795_v27 = vsel %vm766_vm4, %v792_v40, %v794_v42  ;;  %v797_v51 = vsel %vm766_vm4, %v794_v42, %v796_v25  ;;  %v1430_v40 = vrot.slane %v12386_v0, 1  ;;  %v1438_v42 = vrot.slane %v12411_v16, 1 }
 0x138   : > { %v822_v48 = vpack.c.bf16 %v797_v51, %v795_v27  ;;  %v1436_v27 = vrot.slane %v12390_v5, 1  ;;  %v1442_v51 = vrot.slane %v12408_v43, 1 }
 0x139   : > { %10296 = vmatpush3.bf16.msra.mxu1 %v11458_v54  ;;  %v1417_v54 = vsel %vm1414_vm5, %v1415_v49, %v1416_v32  ;;  %v1431_v15 = vsel %vm1414_vm5, %v1428_v11, %v1430_v40  ;;  %v1433_v17 = vsel %vm1414_vm5, %v1430_v40, %v1432_v10 }
 0x13a   : > { %10297 = vmatprep.subr.bf16.mxu1 %v11459_v2  ;;  %v1463_v61 = vpack.c.bf16 %v1419_v55, %v1417_v54  ;;  %v1665_v54 = vrot.slane %v12354_v24, 2 }
 0x13c   : > { %10282 = vmatmul.mubr.msk.bf16.gmra.mrb[4].mxu1 %vm941_vm3, %v818_v37  ;;  %v1427_v37 = vsel %vm1414_vm5, %v1424_v63, %v1426_v35 }
 0x13d   : > { %10285 = vmatprep.mubr.msk.bf16.mxu1 %vm941_vm3, %v819_v9  ;;  %10298 = vmatpush3.bf16.msra.mxu1 %v11459_v2  ;;  %v1420_v2 = vrot.slane %v12337_v1, 1  ;;  %v11470_v9 = vld [vmem:[%s16155_s3 + $0xc8] sm:$0xff]   ;;  %v1465_v18 = vpack.c.bf16 %v1427_v37, %v1425_v8 }
 0x13e   : > { %10299 = vmatprep.subr.bf16.mxu1 %v11460_v7 }
 0x13f   : > { %v1423_v6 = vsel %vm1414_vm5, %v1420_v2, %v1422_v58  ;;  %v1421_v13 = vsel %vm1414_vm5, %v1418_v50, %v1420_v2  ;;  %v1663_v58 = vrot.slane %v12337_v1, 2 }
 0x141   : > { %10300 = vmatpush3.bf16.msra.mxu1 %v11460_v7  ;;  %v1464_v7 = vpack.c.bf16 %v1423_v6, %v1421_v13  ;;  %v1666_v63 = vsel %vm1657_vm6, %v1663_v58, %v1665_v54  ;;  %v1673_v13 = vrot.slane %v12386_v0, 2 }
 0x142   : > { %10301 = vmatprep.subr.bf16.mxu1 %v11461_v12 }
 0x144   : > { %10286 = vmatmul.mubr.msk.bf16.gmra.mrb[8].mxu1 %vm941_vm3, %v820_v21 }
 0x145   : > { %10289 = vmatprep.mubr.msk.bf16.mxu1 %vm941_vm3, %v821_v23  ;;  %10302 = vmatpush3.bf16.msra.mxu1 %v11461_v12  ;;  %v1434_v12 = vrot.slane %v12380_v60, 1  ;;  %v11472_v23 = vld [vmem:[%s16155_s3 + $0xd8] sm:$0xff]  }
 0x146   : > { %10303 = vmatprep.subr.bf16.mxu1 %v11462_v34 }
 0x147   : > { %v1435_v21 = vsel %vm1414_vm5, %v1432_v10, %v1434_v12 }
 0x148   : > { %v1467_v25 = vpack.c.bf16 %v1435_v21, %v1433_v17  ;;  %v1681_v17 = vrot.slane %v12411_v16, 2  ;;  %v1683_v21 = vrot.slane %v12423_v22, 2 }
 0x149   : > { %10304 = vmatpush3.bf16.msra.mxu1 %v11462_v34  ;;  %v1466_v34 = vpack.c.bf16 %v1431_v15, %v1429_v28  ;;  %v1679_v28 = vrot.slane %v12390_v5, 2 }
 0x14a   : > { %10321 = vmatprep.subr.bf16.mxu1 %v11463_v26 }
 0x14c   : > { %10290 = vmatmul.mubr.msk.bf16.gmra.mrb[12].mxu1 %vm941_vm3, %v822_v48  ;;  %v11473_v48 = vld [vmem:[%s16155_s3 + $0xe0] sm:$0xff]  }
 0x14d   : > { %10305 = vmatprep.mubr.msk.bf16.mxu1 %vm941_vm3, %v1220_v53  ;;  %v1439_v53 = vsel %vm1414_vm5, %v1436_v27, %v1438_v42 }
 0x154   : > { %10306 = vmatmul.mubr.msk.bf16.vlgmr.msra.gmra.mrb[0].mxu1 %vm941_vm3, %v1221_v31 }
 0x155   : > { %10322 = vmatpush3.bf16.msra.mxu1 %v11463_v26  ;;  %10309 = vmatprep.mubr.msk.bf16.mxu1 %vm941_vm3, %v1222_v38  ;;  %v1440_v26 = vrot.slane %v12423_v22, 1  ;;  %v1437_v38 = vsel %vm1414_vm5, %v1434_v12, %v1436_v27 }
 0x156   : > { %10323 = vmatprep.subr.bf16.mxu1 %v11464_v36 }
 0x157   : > { %v1441_v31 = vsel %vm1414_vm5, %v1438_v42, %v1440_v26 }
 0x159   : > { %10324 = vmatpush3.bf16.msra.mxu1 %v11464_v36  ;;  %v1443_v36 = vsel %vm1414_vm5, %v1440_v26, %v1442_v51 }
 0x15a   : > { %10325 = vmatprep.subr.bf16.mxu1 %v11465_v39 }
 0x15c   : > { %10310 = vmatmul.mubr.msk.bf16.gmra.mrb[4].mxu1 %vm941_vm3, %v1223_v56  ;;  %v11474_v56 = vld [vmem:[%s16155_s3 + $0xe8] sm:$0xff]  }
 0x15d   : > { %10313 = vmatprep.mubr.msk.bf16.mxu1 %vm941_vm3, %v1224_v44  ;;  %10326 = vmatpush3.bf16.msra.mxu1 %v11465_v39  ;;  %v1468_v39 = vpack.c.bf16 %v1439_v53, %v1437_v38  ;;  %v1444_v44 = vrot.slane %v12417_v19, 1  ;;  %v11475_v38 = vld [vmem:[%s16157_s5 + $0x30] sm:$0xff]  }
 0x15e   : > { %10327 = vmatprep.subr.bf16.mxu1 %v11466_v41  ;;  %10377 = vmatprep.subr.bf16.mxu0 %v11475_v38 }
 0x15f   : > { %v1462_v32 = vsel %vm1414_vm5, %v1444_v44, 0.0  ;;  %10378 = vmatpush3.bf16.msra.mxu0 %v11475_v38 }
 0x161   : > { %10328 = vmatpush3.bf16.msra.mxu1 %v11466_v41  ;;  %v1469_v41 = vpack.c.bf16 %v1443_v36, %v1441_v31 }
 0x162   : > { %10329 = vmatprep.subr.bf16.mxu1 %v11467_v59 }
 0x164   : > { %10314 = vmatmul.mubr.msk.bf16.gmra.mrb[8].mxu1 %vm941_vm3, %v1225_v45  ;;  %v1658_v45 = vrot.slane %v12334_v33, 2 }
 0x165   : > { %10317 = vmatprep.mubr.msk.bf16.mxu1 %vm941_vm3, %v1226_v47  ;;  %10330 = vmatpush3.bf16.msra.mxu1 %v11467_v59  ;;  %v1659_v59 = vrot.slane %v12340_v3, 2  ;;  %v1445_v47 = vsel %vm1414_vm5, %v1442_v51, %v1444_v44  ;;  %v11479_v44 = vld [vmem:[%s16157_s5 + $0x50] sm:$0xff]  }
 0x166   : > { %10331 = vmatprep.subr.bf16.mxu1 %v11468_v46 }
 0x167   : > { %v1660_v49 = vsel %vm1657_vm6, %v1658_v45, %v1659_v59  ;;  %v12653_v45 = vld [vmem:[%s16157_s5] sm:$0xff]  }
 0x169   : > { %10332 = vmatpush3.bf16.msra.mxu1 %v11468_v46  ;;  %v1661_v46 = vrot.slane %v12331_v62, 2 }
 0x16a   : > { %10349 = vmatprep.subr.bf16.mxu1 %v11469_v52 }
 0x16b   : > { %v1662_v50 = vsel %vm1657_vm6, %v1659_v59, %v1661_v46  ;;  %v1664_v6 = vsel %vm1657_vm6, %v1661_v46, %v1663_v58  ;;  %v11480_v59 = vld [vmem:[%s16157_s5 + $0x58] sm:$0xff]   ;;  %v12659_v46 = vld [vmem:[%s16156_s4] ss:$0 sm:$0xff] }
 0x16c   : > { %10318 = vmatmul.mubr.msk.bf16.gmra.mrb[12].mxu1 %vm941_vm3, %v1227_v57  ;;  %v1706_v55 = vpack.c.bf16 %v1662_v50, %v1660_v49  ;;  %v1667_v57 = vrot.slane %v12364_v30, 2  ;;  %v1707_v8 = vpack.c.bf16 %v1666_v63, %v1664_v6  ;;  %v11488_v30 = vld [vmem:[%s16157_s5 + $0x68] sm:$0xff]  }
 0x16d   : > { %10333 = vmatprep.mubr.msk.bf16.mxu1 %vm941_vm3, %v1463_v61  ;;  %v1669_v61 = vrot.slane %v12350_v20, 2 }
 0x16e   : > { %v1668_v2 = vsel %vm1657_vm6, %v1665_v54, %v1667_v57 }
 0x16f   : > { %v1670_v35 = vsel %vm1657_vm6, %v1667_v57, %v1669_v61 }
 0x170   : > { %v1708_v37 = vpack.c.bf16 %v1670_v35, %v1668_v2 }
 0x174   : > { %10334 = vmatmul.mubr.msk.bf16.vlgmr.msra.gmra.mrb[0].mxu1 %vm941_vm3, %v1464_v7  ;;  %v1675_v7 = vrot.slane %v12394_v4, 2 }
 0x175   : > { %10350 = vmatpush3.bf16.msra.mxu1 %v11469_v52  ;;  %10337 = vmatprep.mubr.msk.bf16.mxu1 %vm941_vm3, %v1465_v18  ;;  %v1470_v52 = vpack.c.bf16 %v1462_v32, %v1445_v47  ;;  %v1677_v18 = vrot.slane %v12380_v60, 2 }
 0x176   : > { %10351 = vmatprep.subr.bf16.mxu1 %v11470_v9  ;;  %v1676_v10 = vsel %vm1657_vm6, %v1673_v13, %v1675_v7 }
 0x177   : > { %v1678_v11 = vsel %vm1657_vm6, %v1675_v7, %v1677_v18  ;;  %v1680_v26 = vsel %vm1657_vm6, %v1677_v18, %v1679_v28 }
 0x178   : > { %v1710_v15 = vpack.c.bf16 %v1678_v11, %v1676_v10 }
 0x179   : > { %10352 = vmatpush3.bf16.msra.mxu1 %v11470_v9  ;;  %v1671_v9 = vrot.slane %v12360_v29, 2 }
 0x17a   : > { %10353 = vmatprep.subr.bf16.mxu1 %v11471_v14 }
 0x17b   : > { %v1674_v40 = vsel %vm1657_vm6, %v1671_v9, %v1673_v13  ;;  %v1672_v12 = vsel %vm1657_vm6, %v1669_v61, %v1671_v9 }
 0x17c   : > { %10338 = vmatmul.mubr.msk.bf16.gmra.mrb[4].mxu1 %vm941_vm3, %v1466_v34  ;;  %v1685_v34 = vrot.slane %v12408_v43, 2 }
 0x17d   : > { %10341 = vmatprep.mubr.msk.bf16.mxu1 %vm941_vm3, %v1467_v25  ;;  %10354 = vmatpush3.bf16.msra.mxu1 %v11471_v14  ;;  %v1709_v14 = vpack.c.bf16 %v1674_v40, %v1672_v12  ;;  %v1684_v25 = vsel %vm1657_vm6, %v1681_v17, %v1683_v21 }
 0x17e   : > { %10355 = vmatprep.subr.bf16.mxu1 %v11472_v23  ;;  %v1686_v42 = vsel %vm1657_vm6, %v1683_v21, %v1685_v34 }
 0x17f   : > { %v1712_v51 = vpack.c.bf16 %v1686_v42, %v1684_v25 }
 0x181   : > { %10356 = vmatpush3.bf16.msra.mxu1 %v11472_v23  ;;  %v1682_v23 = vsel %vm1657_vm6, %v1679_v28, %v1681_v17 }
 0x182   : > { %10357 = vmatprep.subr.bf16.mxu1 %v11473_v48  ;;  %v1711_v27 = vpack.c.bf16 %v1682_v23, %v1680_v26 }
 0x184   : > { %10342 = vmatmul.mubr.msk.bf16.gmra.mrb[8].mxu1 %vm941_vm3, %v1468_v39  ;;  %v11476_v39 = vld [vmem:[%s16157_s5 + $0x38] sm:$0xff]  }
 0x185   : > { %10345 = vmatprep.mubr.msk.bf16.mxu1 %vm941_vm3, %v1469_v41  ;;  %10358 = vmatpush3.bf16.msra.mxu1 %v11473_v48  ;;  %v1687_v48 = vrot.slane %v12417_v19, 2  ;;  %v11478_v41 = vld [vmem:[%s16157_s5 + $0x48] sm:$0xff]  }
 0x186   : > { %10359 = vmatprep.subr.bf16.mxu1 %v11474_v56  ;;  %10379 = vmatprep.subr.bf16.mxu0 %v11476_v39 }
 0x187   : > { %v1688_v53 = vsel %vm1657_vm6, %v1685_v34, %v1687_v48  ;;  %v1705_v31 = vsel %vm1657_vm6, %v1687_v48, 0.0  ;;  %10380 = vmatpush3.bf16.msra.mxu0 %v11476_v39 }
 0x188   : > { %v1713_v36 = vpack.c.bf16 %v1705_v31, %v1688_v53 }
 0x189   : > { %10360 = vmatpush3.bf16.msra.mxu1 %v11474_v56  ;;  %v11477_v56 = vld [vmem:[%s16157_s5 + $0x40] sm:$0xff]  }
 0x18a   : > { %10381 = vmatprep.subr.bf16.mxu0 %v11477_v56 }
 0x18b   : > { %10382 = vmatpush3.bf16.msra.mxu0 %v11477_v56 }
 0x18c   : > { %10346 = vmatmul.mubr.msk.bf16.gmra.mrb[12].mxu1 %vm941_vm3, %v1470_v52  ;;  %10383 = vmatprep.subr.bf16.mxu0 %v11478_v41 }
 0x18d   : > { %10361 = vmatprep.mubr.msk.bf16.mxu1 %vm941_vm3, %v1706_v55 }
 0x18f   : > { %10384 = vmatpush3.bf16.msra.mxu0 %v11478_v41 }
 0x190   : > { %10385 = vmatprep.subr.bf16.mxu0 %v11479_v44 }
 0x193   : > { %10386 = vmatpush3.bf16.msra.mxu0 %v11479_v44 }
 0x194   : > { %10362 = vmatmul.mubr.msk.bf16.vlgmr.msra.gmra.mrb[0].mxu1 %vm941_vm3, %v1707_v8  ;;  %10387 = vmatprep.subr.bf16.mxu0 %v11480_v59 }
 0x195   : > { %10365 = vmatprep.mubr.msk.bf16.mxu1 %vm941_vm3, %v1708_v37 }
 0x197   : > { %10388 = vmatpush3.bf16.msra.mxu0 %v11480_v59 }
 0x198   : > { %10405 = vmatprep.subr.bf16.mxu0 %v12653_v45 }
 0x19c   : > { %10366 = vmatmul.mubr.msk.bf16.gmra.mrb[4].mxu1 %vm941_vm3, %v1709_v14 }
 0x19d   : > { %10369 = vmatprep.mubr.msk.bf16.mxu1 %vm941_vm3, %v1710_v15 }
 0x1a4   : > { %10370 = vmatmul.mubr.msk.bf16.gmra.mrb[8].mxu1 %vm941_vm3, %v1711_v27 }
 0x1a5   : > { %10373 = vmatprep.mubr.msk.bf16.mxu1 %vm941_vm3, %v1712_v51 }
 0x1ac   : > { %10374 = vmatmul.mubr.msk.bf16.gmra.mrb[12].mxu1 %vm941_vm3, %v1713_v36 }
 0x267   : > { %v10363_v47 = vpop.f32.mrb[0].mxu1 }
 0x268   : > { %v12662_v32 = vadd.f32 %v10363_v47, %v12659_v46  ;;  %v1821_v49 = vpop.f32.mrb[1].mxu1 }
 0x269   : > { %v12665_v50 = vadd.f32 %v12659_v46, %v1821_v49  ;;  %v10364_v52 = vpop.f32.mrb[2].mxu1 }
 0x26a   : > { %v1925_v54 = vsub.f32 0.0, %v12662_v32  ;;  %v12669_v55 = vadd.f32 %v10364_v52, %v12659_v46  ;;  %v1824_v57 = vpop.f32.mrb[3].mxu1 }
 0x26b   : > { %v1923_v58 = vsub.f32 0.0, %v12665_v50  ;;  %v12673_v61 = vadd.f32 %v12659_v46, %v1824_v57 }
 0x26c   : > { %v1943_v63 = vmul.f32 1.442695, %v1925_v54  ;;  %v1926_v2 = vsub.f32 0.0, %v12669_v55 }
 0x26d   : > { %v1939_v35 = vmul.f32 1.442695, %v1923_v58  ;;  %v1924_v6 = vsub.f32 0.0, %v12673_v61 }
 0x26e   : > { %11736 = vpow2.f32 %v1943_v63  ;;  %v1945_v8 = vmul.f32 1.442695, %v1926_v2 }
 0x26f   : > { %11738 = vpow2.f32 %v1939_v35  ;;  %v1941_v37 = vmul.f32 1.442695, %v1924_v6  ;;  %v10367_v13 = vpop.f32.mrb[4].mxu1 }
 0x270   : > { %11740 = vpow2.f32 %v1945_v8  ;;  %v12678_v7 = vadd.f32 %v10367_v13, %v12659_v46  ;;  %v1837_v9 = vpop.f32.mrb[5].mxu1 }
 0x271   : > { %11742 = vpow2.f32 %v1941_v37  ;;  %v12681_v18 = vadd.f32 %v12659_v46, %v1837_v9  ;;  %v10368_v40 = vpop.f32.mrb[6].mxu1 }
 0x272   : > { %v1929_v10 = vsub.f32 0.0, %v12678_v7  ;;  %v12685_v11 = vadd.f32 %v10368_v40, %v12659_v46  ;;  %v1840_v12 = vpop.f32.mrb[7].mxu1 }
 0x273   : > { %v1927_v14 = vsub.f32 0.0, %v12681_v18  ;;  %v12689_v15 = vadd.f32 %v12659_v46, %v1840_v12 }
 0x274   : > { %v1951_v17 = vmul.f32 1.442695, %v1929_v10  ;;  %v1930_v21 = vsub.f32 0.0, %v12685_v11 }
 0x275   : > { %v1947_v28 = vmul.f32 1.442695, %v1927_v14  ;;  %v1928_v34 = vsub.f32 0.0, %v12689_v15 }
 0x276   : > { %11744 = vpow2.f32 %v1951_v17  ;;  %v1953_v23 = vmul.f32 1.442695, %v1930_v21 }
 0x277   : > { %11746 = vpow2.f32 %v1947_v28  ;;  %v1949_v25 = vmul.f32 1.442695, %v1928_v34  ;;  %v10371_v42 = vpop.f32.mrb[8].mxu1 }
 0x278   : > { %v11737_v26 = vpop.eup %11736  ;;  %11748 = vpow2.f32 %v1953_v23  ;;  %v12694_v27 = vadd.f32 %v10371_v42, %v12659_v46  ;;  %v1853_v51 = vpop.f32.mrb[9].mxu1 }
 0x279   : > { %v11739_v48 = vpop.eup %11738  ;;  %v1973_v53 = vadd.f32 1.0, %v11737_v26  ;;  %11750 = vpow2.f32 %v1949_v25  ;;  %v12697_v31 = vadd.f32 %v12659_v46, %v1853_v51  ;;  %v10372_v36 = vpop.f32.mrb[10].mxu1 }
 0x27a   : > { %v11741_v38 = vpop.eup %11740  ;;  %v1971_v39 = vadd.f32 1.0, %v11739_v48  ;;  %v1933_v56 = vsub.f32 0.0, %v12694_v27  ;;  %v12701_v41 = vadd.f32 %v10372_v36, %v12659_v46  ;;  %v1856_v44 = vpop.f32.mrb[11].mxu1 }
 0x27b   : > { %v11743_v59 = vpop.eup %11742  ;;  %11752 = vrcp.f32 %v1973_v53  ;;  %v1974_v47 = vadd.f32 1.0, %v11741_v38  ;;  %v1931_v49 = vsub.f32 0.0, %v12697_v31  ;;  %v12705_v52 = vadd.f32 %v12659_v46, %v1856_v44 }
 0x27c   : > { %11754 = vrcp.f32 %v1971_v39  ;;  %v1972_v54 = vadd.f32 1.0, %v11743_v59  ;;  %v1959_v57 = vmul.f32 1.442695, %v1933_v56  ;;  %v1934_v58 = vsub.f32 0.0, %v12701_v41 }
 0x27d   : > { %11756 = vrcp.f32 %v1974_v47  ;;  %v1955_v63 = vmul.f32 1.442695, %v1931_v49  ;;  %v1932_v2 = vsub.f32 0.0, %v12705_v52 }
 0x27e   : > { %11758 = vrcp.f32 %v1972_v54  ;;  %v1961_v35 = vmul.f32 1.442695, %v1934_v58 }
 0x27f   : > { %11760 = vpow2.f32 %v1959_v57  ;;  %v1957_v6 = vmul.f32 1.442695, %v1932_v2  ;;  %v10375_v8 = vpop.f32.mrb[12].mxu1 }
 0x280   : > { %v11745_v37 = vpop.eup %11744  ;;  %11762 = vpow2.f32 %v1955_v63  ;;  %v12710_v13 = vadd.f32 %v10375_v8, %v12659_v46  ;;  %v1869_v9 = vpop.f32.mrb[13].mxu1 }
 0x281   : > { %v11747_v40 = vpop.eup %11746  ;;  %v1977_v10 = vadd.f32 1.0, %v11745_v37  ;;  %11764 = vpow2.f32 %v1961_v35  ;;  %v12713_v12 = vadd.f32 %v12659_v46, %v1869_v9  ;;  %v10376_v14 = vpop.f32.mrb[14].mxu1 }
 0x282   : > { %v11749_v17 = vpop.eup %11748  ;;  %v1975_v21 = vadd.f32 1.0, %v11747_v40  ;;  %11766 = vpow2.f32 %v1957_v6  ;;  %v1937_v28 = vsub.f32 0.0, %v12710_v13  ;;  %v12717_v34 = vadd.f32 %v10376_v14, %v12659_v46  ;;  %v1872_v23 = vpop.f32.mrb[15].mxu1 }
 0x283   : > { %v11751_v25 = vpop.eup %11750  ;;  %11768 = vrcp.f32 %v1977_v10  ;;  %v1978_v42 = vadd.f32 1.0, %v11749_v17  ;;  %v1935_v26 = vsub.f32 0.0, %v12713_v12  ;;  %v12721_v51 = vadd.f32 %v12659_v46, %v1872_v23 }
 0x284   : > { %11770 = vrcp.f32 %v1975_v21  ;;  %v1976_v48 = vadd.f32 1.0, %v11751_v25  ;;  %v1967_v53 = vmul.f32 1.442695, %v1937_v28  ;;  %v1938_v36 = vsub.f32 0.0, %v12717_v34 }
 0x285   : > { %v11753_v38 = vpop.eup %11752  ;;  %11772 = vrcp.f32 %v1978_v42  ;;  %v1963_v39 = vmul.f32 1.442695, %v1935_v26  ;;  %v1936_v56 = vsub.f32 0.0, %v12721_v51 }
 0x286   : > { %v11755_v44 = vpop.eup %11754  ;;  %v12726_v59 = vmul.f32 %v11753_v38, %v12662_v32  ;;  %11774 = vrcp.f32 %v1976_v48  ;;  %v1969_v47 = vmul.f32 1.442695, %v1938_v36 }
 0x287   : > { %v11757_v49 = vpop.eup %11756  ;;  %v12729_v46 = vmul.f32 %v11755_v44, %v12665_v50  ;;  %11776 = vpow2.f32 %v1967_v53  ;;  %v1965_v54 = vmul.f32 1.442695, %v1936_v56 }
 0x288   : > { %v11759_v57 = vpop.eup %11758  ;;  %v2038_v58 = vrot.slane %v12726_v59, 6  ;;  %v2106_v63 = vrot.slane %v12726_v59, 7  ;;  %v12734_v2 = vmul.f32 %v11757_v49, %v12669_v55  ;;  %11778 = vpow2.f32 %v1963_v39 }
 0x289   : > { %v11761_v35 = vpop.eup %11760  ;;  %v12737_v32 = vmul.f32 %v11759_v57, %v12673_v61  ;;  %11780 = vpow2.f32 %v1969_v47  ;;  %v2103_v6 = vrot.slane %v12729_v46, 7  ;;  %v2035_v50 = vrot.slane %v12729_v46, 6 }
 0x28a   : > { %v11763_v8 = vpop.eup %11762  ;;  %v2040_v37 = vrot.slane %v12734_v2, 6  ;;  %v2108_v9 = vrot.slane %v12734_v2, 7  ;;  %v1981_v61 = vadd.f32 1.0, %v11761_v35  ;;  %11782 = vpow2.f32 %v1965_v54 }
 0x28b   : > { %v11765_v10 = vpop.eup %11764  ;;  %v1979_v17 = vadd.f32 1.0, %v11763_v8  ;;  %v2104_v23 = vrot.slane %v12737_v32, 7  ;;  %v2150_v25 = vsel %vm835_vm2, 0.0, %v2103_v6  ;;  %v2036_v53 = vrot.slane %v12737_v32, 6 }
 0x28c   : > { %v11767_v21 = vpop.eup %11766  ;;  %v1982_v28 = vadd.f32 1.0, %v11765_v10  ;;  %v2109_v42 = vsel %vm835_vm2, %v2106_v63, %v2108_v9  ;;  %11784 = vrcp.f32 %v1981_v61  ;;  %v12752_v36 = vsel %vm766_vm4, 0.0, %v2035_v50 }
 0x28d   : > { %v11769_v26 = vpop.eup %11768  ;;  %v1980_v48 = vadd.f32 1.0, %v11767_v21  ;;  %11786 = vrcp.f32 %v1979_v17  ;;  %v2105_v56 = vsel %vm835_vm2, %v2103_v6, %v2104_v23  ;;  %v2107_v44 = vsel %vm835_vm2, %v2104_v23, %v2106_v63 }
 0x28e   : > { %v11771_v38 = vpop.eup %11770  ;;  %v12755_v39 = vmul.f32 %v11769_v26, %v12678_v7  ;;  %11788 = vrcp.f32 %v1982_v28  ;;  %v2151_v54 = vpack.c.bf16 %v2105_v56, %v2150_v25  ;;  %v2152_v57 = vpack.c.bf16 %v2109_v42, %v2107_v44  ;;  %v11482_v7 = vld [vmem:[%s16157_s5 + $0x8] sm:$0xff]  }
 0x28f   : > { %v11773_v47 = vpop.eup %11772  ;;  %v12760_v49 = vmul.f32 %v11771_v38, %v12681_v18  ;;  %11790 = vrcp.f32 %v1980_v48  ;;  %v12770_v63 = vsel %vm766_vm4, %v2035_v50, %v2036_v53  ;;  %v12784_v50 = vsel %vm766_vm4, %v2036_v53, %v2038_v58 }
 0x290   : > { %v11775_v35 = vpop.eup %11774  ;;  %v12763_v8 = vmul.f32 %v11773_v47, %v12685_v11  ;;  %v2114_v6 = vrot.slane %v12755_v39, 7  ;;  %10389 = vmatprep.mubr.msk.bf16.mxu0 %vm941_vm3, %v2151_v54  ;;  %v12796_v38 = vsel %vm766_vm4, %v2038_v58, %v2040_v37  ;;  %v16257_v5 = vrot.slane %v12734_v2, 2 }
 0x291   : > { %v11777_v10 = vpop.eup %11776  ;;  %v12775_v17 = vmul.f32 %v11775_v35, %v12689_v15  ;;  %v2110_v11 = vrot.slane %v12760_v49, 7  ;;  %10390 = vmatmul.mubr.msk.bf16.vlgmr.msra.gmra.mrb[16].mxu0 %vm941_vm3, %v2152_v57  ;;  %v2042_v58 = vrot.slane %v12760_v49, 6 }
 0x292   : > { %v11779_v21 = vpop.eup %11778  ;;  %v1985_v28 = vadd.f32 1.0, %v11777_v10  ;;  %v2116_v23 = vrot.slane %v12763_v8, 7  ;;  %10406 = vmatpush3.bf16.msra.mxu0 %v12653_v45  ;;  %v11483_v45 = vld [vmem:[%s16157_s5 + $0x10] sm:$0xff]   ;;  %v16258_v20 = vmov %v16257_v5 }
 0x293   : > { %v11781_v15 = vpop.eup %11780  ;;  %v1983_v42 = vadd.f32 1.0, %v11779_v21  ;;  %v2111_v26 = vsel %vm835_vm2, %v2108_v9, %v2110_v11  ;;  %v2112_v48 = vrot.slane %v12775_v17, 7  ;;  %10407 = vmatprep.subr.bf16.mxu0 %v11482_v7  ;;  %v2931_v60 = vrot.slane %v12775_v17, 2 }
 0x294   : > { %11792 = vrcp.f32 %v1985_v28  ;;  %v1986_v53 = vadd.f32 1.0, %v11781_v15  ;;  %v2117_v56 = vsel %vm835_vm2, %v2114_v6, %v2116_v23  ;;  %v11783_v44 = vpop.eup %11782  ;;  %v12810_v28 = vsel %vm766_vm4, %v2040_v37, %v2042_v58 }
 0x295   : > { %11794 = vrcp.f32 %v1983_v42  ;;  %v2113_v47 = vsel %vm835_vm2, %v2110_v11, %v2112_v48  ;;  %v2115_v54 = vsel %vm835_vm2, %v2112_v48, %v2114_v6  ;;  %v1984_v57 = vadd.f32 1.0, %v11783_v44 }
 0x296   : > { %11796 = vrcp.f32 %v1986_v53  ;;  %v2153_v35 = vpack.c.bf16 %v2113_v47, %v2111_v26  ;;  %v2154_v10 = vpack.c.bf16 %v2117_v56, %v2115_v54  ;;  %v11785_v21 = vpop.eup %11784  ;;  %10408 = vmatpush3.bf16.msra.mxu0 %v11482_v7  ;;  %v2044_v15 = vrot.slane %v12775_v17, 6  ;;  %v11484_v7 = vld [vmem:[%s16157_s5 + $0x18] sm:$0xff]  }
 0x297   : > { %v2046_v42 = vrot.slane %v12755_v39, 6  ;;  %v2048_v11 = vrot.slane %v12763_v8, 6  ;;  %v11787_v6 = vpop.eup %11786  ;;  %v12816_v48 = vmul.f32 %v11785_v21, %v12694_v27  ;;  %11798 = vrcp.f32 %v1984_v57  ;;  %10409 = vmatprep.subr.bf16.mxu0 %v11483_v45 }
 0x298   : > { %10393 = vmatprep.mubr.msk.bf16.mxu0 %vm941_vm3, %v2153_v35  ;;  %v11789_v53 = vpop.eup %11788  ;;  %v12827_v56 = vmul.f32 %v11787_v6, %v12697_v31  ;;  %v12830_v27 = vsel %vm766_vm4, %v2042_v58, %v2044_v15  ;;  %v11485_v6 = vld [vmem:[%s16157_s5 + $0x20] sm:$0xff]  }
 0x299   : > { %v12833_v44 = vsel %vm766_vm4, %v2044_v15, %v2046_v42  ;;  %v12836_v47 = vsel %vm766_vm4, %v2046_v42, %v2048_v11  ;;  %v11791_v54 = vpop.eup %11790  ;;  %v12839_v57 = vmul.f32 %v11789_v53, %v12701_v41  ;;  %10394 = vmatmul.mubr.msk.bf16.gmra.mrb[20].mxu0 %vm941_vm3, %v2154_v10  ;;  %v2122_v35 = vrot.slane %v12816_v48, 7 }
 0x29a   : > { %v12848_v21 = vmul.f32 %v11791_v54, %v12705_v52  ;;  %10410 = vmatpush3.bf16.msra.mxu0 %v11483_v45  ;;  %v2118_v15 = vrot.slane %v12827_v56, 7  ;;  %v2050_v42 = vrot.slane %v12827_v56, 6  ;;  %v2054_v41 = vrot.slane %v12816_v48, 6 }
 0x29b   : > { %10411 = vmatprep.subr.bf16.mxu0 %v11484_v7  ;;  %v2124_v10 = vrot.slane %v12839_v57, 7  ;;  %v2056_v53 = vrot.slane %v12839_v57, 6  ;;  %v2680_v45 = vrot.slane %v12729_v46, 1 }
 0x29c   : > { %v2119_v54 = vsel %vm835_vm2, %v2116_v23, %v2118_v15  ;;  %v2120_v26 = vrot.slane %v12848_v21, 7  ;;  %v12865_v40 = vsel %vm766_vm4, %v2048_v11, %v2050_v42  ;;  %v2052_v37 = vrot.slane %v12848_v21, 6 }
 0x29d   : > { %v2125_v31 = vsel %vm835_vm2, %v2122_v35, %v2124_v10  ;;  %v12870_v9 = vsel %vm766_vm4, %v2054_v41, %v2056_v53 }
 0x29e   : > { %v11793_v58 = vpop.eup %11792  ;;  %v2121_v11 = vsel %vm835_vm2, %v2118_v15, %v2120_v26  ;;  %v2123_v61 = vsel %vm835_vm2, %v2120_v26, %v2122_v35  ;;  %10412 = vmatpush3.bf16.msra.mxu0 %v11484_v7  ;;  %v12881_v25 = vsel %vm766_vm4, %v2050_v42, %v2052_v37  ;;  %v11486_v7 = vld [vmem:[%s16157_s5 + $0x28] sm:$0xff]   ;;  %v12896_v26 = vsel %vm766_vm4, %v2052_v37, %v2054_v41 }
 0x29f   : > { %v11795_v14 = vpop.eup %11794  ;;  %v12876_v23 = vmul.f32 %v11793_v58, %v12710_v13  ;;  %v2155_v22 = vpack.c.bf16 %v2121_v11, %v2119_v54  ;;  %v2156_v52 = vpack.c.bf16 %v2125_v31, %v2123_v61  ;;  %10413 = vmatprep.subr.bf16.mxu0 %v11485_v6  ;;  %v2681_v35 = vrot.slane %v12737_v32, 1 }
 0x2a0   : > { %v11797_v18 = vpop.eup %11796  ;;  %v12884_v55 = vmul.f32 %v11795_v14, %v12713_v12 }
 0x2a1   : > { %v12889_v13 = vmul.f32 %v11797_v18, %v12717_v34  ;;  %v2130_v58 = vrot.slane %v12876_v23, 7  ;;  %v2062_v12 = vrot.slane %v12876_v23, 6  ;;  %v11799_v14 = vpop.eup %11798  ;;  %10397 = vmatprep.mubr.msk.bf16.mxu0 %vm941_vm3, %v2155_v22  ;;  %v12918_v54 = vsel %vm1414_vm5, %v2680_v45, %v2681_v35 }
 0x2a2   : > { %v2126_v61 = vrot.slane %v12884_v55, 7  ;;  %v2058_v18 = vrot.slane %v12884_v55, 6  ;;  %v12906_v31 = vmul.f32 %v11799_v14, %v12721_v51  ;;  %10398 = vmatmul.mubr.msk.bf16.gmra.mrb[24].mxu0 %vm941_vm3, %v2156_v52  ;;  %v2683_v51 = vrot.slane %v12726_v59, 1  ;;  %v12926_v14 = vld [vmem:[%s16157_s5 + $0x60] sm:$0xff]  }
 0x2a3   : > { %v2132_v37 = vrot.slane %v12889_v13, 7  ;;  %v2064_v15 = vrot.slane %v12889_v13, 6  ;;  %10414 = vmatpush3.bf16.msra.mxu0 %v11485_v6  ;;  %v16251_v22 = vrot.slane %v12734_v2, 1  ;;  %v16252_v34 = vrot.slane %v12760_v49, 1 }
 0x2a4   : > { %v2127_v42 = vsel %vm835_vm2, %v2124_v10, %v2126_v61  ;;  %v12915_v41 = vsel %vm766_vm4, %v2056_v53, %v2058_v18  ;;  %v2128_v52 = vrot.slane %v12906_v31, 7  ;;  %10415 = vmatprep.subr.bf16.mxu0 %v11486_v7  ;;  %v2060_v10 = vrot.slane %v12906_v31, 6 }
 0x2a5   : > { %v2133_v11 = vsel %vm835_vm2, %v2130_v58, %v2132_v37  ;;  %v12930_v6 = vsel %vm766_vm4, %v2062_v12, %v2064_v15  ;;  %v12935_v45 = vsel %vm1414_vm5, %v2681_v35, %v2683_v51  ;;  %v12940_v37 = vsel %vm1414_vm5, %v2683_v51, %v16251_v22 }
 0x2a6   : > { %v16253_v19 = vmov %v16251_v22  ;;  %v2129_v15 = vsel %vm835_vm2, %v2126_v61, %v2128_v52  ;;  %v2131_v43 = vsel %vm835_vm2, %v2128_v52, %v2130_v58  ;;  %v12952_v53 = vsel %vm766_vm4, %v2058_v18, %v2060_v10 }
 0x2a7   : > { %v12947_v16 = vsel %vm1414_vm5, %v16253_v19, %v16252_v34  ;;  %v12955_v35 = vsel %vm766_vm4, %v2060_v10, %v2062_v12  ;;  %v2157_v4 = vpack.c.bf16 %v2129_v15, %v2127_v42  ;;  %v2158_v22 = vpack.c.bf16 %v2133_v11, %v2131_v43  ;;  %10416 = vmatpush3.bf16.msra.mxu0 %v11486_v7 }
 0x2a8   : > { %10433 = vmatprep.subr.bf16.mxu0 %v12926_v14  ;;  %v2689_v12 = vrot.slane %v12775_v17, 1  ;;  %v2691_v34 = vrot.slane %v12755_v39, 1  ;;  %v2693_v43 = vrot.slane %v12763_v8, 1  ;;  %v2695_v7 = vrot.slane %v12827_v56, 1 }
 0x2a9   : > { %10401 = vmatprep.mubr.msk.bf16.mxu0 %vm941_vm3, %v2157_v4  ;;  %v2697_v18 = vrot.slane %v12848_v21, 1  ;;  %v2699_v42 = vrot.slane %v12816_v48, 1  ;;  %v16254_v52 = vrot.slane %v12760_v49, 1  ;;  %v2701_v4 = vrot.slane %v12839_v57, 1 }
 0x2aa   : > { %10402 = vmatmul.mubr.msk.bf16.gmra.mrb[28].mxu0 %vm941_vm3, %v2158_v22  ;;  %v12980_v10 = vsel %vm1414_vm5, %v2689_v12, %v2691_v34  ;;  %v2703_v15 = vrot.slane %v12884_v55, 1  ;;  %v16255_v61 = vpack.c.bf16 %v12770_v63, %v12752_v36  ;;  %v12991_v58 = vsel %vm1414_vm5, %v2691_v34, %v2693_v43 }
 0x2ab   : > { %v12977_v11 = vsel %vm1414_vm5, %v16254_v52, %v2689_v12  ;;  %v12994_v52 = vsel %vm1414_vm5, %v2693_v43, %v2695_v7  ;;  %v12997_v12 = vsel %vm1414_vm5, %v2695_v7, %v2697_v18  ;;  %v13002_v51 = vsel %vm1414_vm5, %v2697_v18, %v2699_v42 }
 0x2ac   : > { %10417 = vmatprep.mubr.msk.bf16.mxu0 %vm941_vm3, %v16255_v61  ;;  %v13005_v36 = vsel %vm1414_vm5, %v2699_v42, %v2701_v4  ;;  %v13008_v63 = vsel %vm1414_vm5, %v2701_v4, %v2703_v15  ;;  %v2705_v43 = vrot.slane %v12906_v31, 1  ;;  %v2707_v7 = vrot.slane %v12876_v23, 1 }
 0x2ad   : > { %v2709_v19 = vrot.slane %v12889_v13, 1  ;;  %v2922_v18 = vrot.slane %v12729_v46, 2  ;;  %v2923_v42 = vrot.slane %v12737_v32, 2  ;;  %v2925_v22 = vrot.slane %v12726_v59, 2 }
 0x2ae   : > { %v13021_v4 = vsel %vm1414_vm5, %v2703_v15, %v2705_v43  ;;  %v13024_v61 = vsel %vm1414_vm5, %v2705_v43, %v2707_v7  ;;  %v16256_v34 = vrot.slane %v12760_v49, 2 }
 0x2af   : > { %v13040_v29 = vsel %vm1414_vm5, %v2707_v7, %v2709_v19  ;;  %v13043_v43 = vsel %vm1414_vm5, %v2709_v19, 0.0  ;;  %v13046_v24 = vsel %vm1657_vm6, %v2922_v18, %v2923_v42  ;;  %v13056_v3 = vsel %vm1657_vm6, %v2925_v22, %v16258_v20 }
 0x2b0   : > { %v13031_v0 = vsel %vm1657_vm6, %v16257_v5, %v16256_v34  ;;  %v13051_v34 = vsel %vm1657_vm6, %v2923_v42, %v2925_v22  ;;  %16259 = vst [vmem:[#allocation18_spill] sm:$0xff] %v13056_v3  ;;  %v16260_v7 = vrot.slane %v12760_v49, 2  ;;  %v16261_v19 = vpack.c.bf16 %v12796_v38, %v12784_v50  ;;  %v11489_v42 = vld [vmem:[%s16157_s5 + $0x70] sm:$0xff]  }
 0x2b1   : > { %v2933_v5 = vrot.slane %v12755_v39, 2  ;;  %v2935_v20 = vrot.slane %v12763_v8, 2  ;;  %v16262_v22 = vpack.c.bf16 %v12830_v27, %v12810_v28  ;;  %v2937_v50 = vrot.slane %v12827_v56, 2 }
 0x2b2   : > { %v13061_v15 = vsel %vm1657_vm6, %v16260_v7, %v2931_v60  ;;  %10418 = vmatmul.mubr.msk.bf16.vlgmr.msra.gmra.mrb[16].mxu0 %vm941_vm3, %v16261_v19  ;;  %v2939_v38 = vrot.slane %v12848_v21, 2  ;;  %v2941_v7 = vrot.slane %v12816_v48, 2  ;;  %v2943_v19 = vrot.slane %v12839_v57, 2 }
 0x2b3   : > { %10434 = vmatpush3.bf16.msra.mxu0 %v12926_v14  ;;  %10421 = vmatprep.mubr.msk.bf16.mxu0 %vm941_vm3, %v16262_v22  ;;  %v13086_v14 = vsel %vm1657_vm6, %v2931_v60, %v2933_v5  ;;  %v13089_v28 = vsel %vm1657_vm6, %v2933_v5, %v2935_v20  ;;  %v2945_v27 = vrot.slane %v12884_v55, 2  ;;  %v2947_v22 = vrot.slane %v12906_v31, 2 }
 0x2b4   : > { %10435 = vmatprep.subr.bf16.mxu0 %v11488_v30  ;;  %v13096_v1 = vsel %vm1657_vm6, %v2935_v20, %v2937_v50  ;;  %v13099_v33 = vsel %vm1657_vm6, %v2937_v50, %v2939_v38  ;;  %v13102_v62 = vsel %vm1657_vm6, %v2939_v38, %v2941_v7  ;;  %v13109_v3 = vsel %vm1657_vm6, %v2941_v7, %v2943_v19  ;;  %v11490_v7 = vld [vmem:[%s16157_s5 + $0x78] sm:$0xff]  }
 0x2b5   : > { %16263 = vst [vmem:[#allocation19_spill] sm:$0xff] %v13109_v3  ;;  %v13112_v18 = vsel %vm1657_vm6, %v2943_v19, %v2945_v27  ;;  %v13117_v50 = vsel %vm1657_vm6, %v2945_v27, %v2947_v22  ;;  %v2949_v38 = vrot.slane %v12876_v23, 2  ;;  %v2951_v60 = vrot.slane %v12889_v13, 2 }
 0x2b6   : > { %v16264_v27 = vpack.c.bf16 %v12836_v47, %v12833_v44  ;;  %v11492_v44 = vld [vmem:[%s16157_s5 + $0x88] sm:$0xff]   ;;  %v16266_v47 = vpack.c.bf16 %v12870_v9, %v12896_v26  ;;  %v16269_v9 = vpack.c.bf16 %v12737_v32, %v12729_v46  ;;  %v11494_v26 = vld [vmem:[%s16157_s5 + $0x98] sm:$0xff]   ;;  %v11495_v46 = vld [vmem:[%s16157_s5 + $0xa0] sm:$0xff]  }
 0x2b7   : > { %10436 = vmatpush3.bf16.msra.mxu0 %v11488_v30  ;;  %v13125_v5 = vsel %vm1657_vm6, %v2947_v22, %v2949_v38  ;;  %v13128_v30 = vsel %vm1657_vm6, %v2949_v38, %v2951_v60  ;;  %v13131_v19 = vsel %vm1657_vm6, %v2951_v60, 0.0  ;;  %v16265_v22 = vpack.c.bf16 %v12881_v25, %v12865_v40  ;;  %v11491_v60 = vld [vmem:[%s16157_s5 + $0x80] sm:$0xff]   ;;  %v11493_v25 = vld [vmem:[%s16157_s5 + $0x90] sm:$0xff]   ;;  %v11496_v32 = vld [vmem:[%s16157_s5 + $0xa8] sm:$0xff]  }
 0x2b8   : > { %10437 = vmatprep.subr.bf16.mxu0 %v11489_v42  ;;  %v2976_v20 = vpack.c.bf16 %v13125_v5, %v13117_v50  ;;  %v2977_v3 = vpack.c.bf16 %v13131_v19, %v13128_v30  ;;  %v16267_v40 = vpack.c.bf16 %v12952_v53, %v12915_v41  ;;  %v16270_v41 = vpack.c.bf16 %v12734_v2, %v12726_v59  ;;  %v11503_v53 = vld [vmem:[%s16157_s5 + $0xe0] sm:$0xff]   ;;  %v16294_v38 = vld [vmem:[#allocation3_spill] sm:$0xff] }
 0x2b9   : > { %v16272_v59 = vpack.c.bf16 %v12763_v8, %v12755_v39  ;;  %v16273_v2 = vpack.c.bf16 %v12848_v21, %v12827_v56  ;;  %v16274_v39 = vpack.c.bf16 %v12839_v57, %v12816_v48  ;;  %v16275_v8 = vpack.c.bf16 %v12906_v31, %v12884_v55  ;;  %v11499_v56 = vld [vmem:[%s16157_s5 + $0xc0] sm:$0xff]   ;;  %v11500_v55 = vld [vmem:[%s16157_s5 + $0xc8] sm:$0xff]   ;;  %v11502_v31 = vld [vmem:[%s16157_s5 + $0xd8] sm:$0xff]  }
 0x2ba   : > { %10422 = vmatmul.mubr.msk.bf16.gmra.mrb[20].mxu0 %vm941_vm3, %v16264_v27  ;;  %v16276_v21 = vpack.c.bf16 %v12889_v13, %v12876_v23  ;;  %v16277_v48 = vpack.c.bf16 %v12935_v45, %v12918_v54  ;;  %v16278_v57 = vpack.c.bf16 %v12947_v16, %v12940_v37  ;;  %v16279_v23 = vpack.c.bf16 %v12980_v10, %v12977_v11  ;;  %v11501_v13 = vld [vmem:[%s16157_s5 + $0xd0] sm:$0xff]   ;;  %v11504_v45 = vld [vmem:[%s16157_s5 + $0xe8] sm:$0xff]   ;;  %v16286_v11 = vld [vmem:[#allocation18_spill] sm:$0xff] }
 0x2bb   : > { %10425 = vmatprep.mubr.msk.bf16.mxu0 %vm941_vm3, %v16265_v22  ;;  %10438 = vmatpush3.bf16.msra.mxu0 %v11489_v42  ;;  %v16268_v42 = vpack.c.bf16 %v12930_v6, %v12955_v35  ;;  %v16271_v6 = vpack.c.bf16 %v12775_v17, %v12760_v49  ;;  %v11497_v49 = vld [vmem:[%s16157_s5 + $0xb0] sm:$0xff]   ;;  %v11498_v17 = vld [vmem:[%s16157_s5 + $0xb8] sm:$0xff]   ;;  %v16280_v16 = vpack.c.bf16 %v12994_v52, %v12991_v58 }
 0x2bc   : > { %10439 = vmatprep.subr.bf16.mxu0 %v11490_v7  ;;  %v16281_v54 = vpack.c.bf16 %v13002_v51, %v12997_v12  ;;  %v16282_v37 = vpack.c.bf16 %v13008_v63, %v13005_v36  ;;  %v16283_v35 = vpack.c.bf16 %v13024_v61, %v13021_v4  ;;  %v16284_v51 = vpack.c.bf16 %v13043_v43, %v13040_v29  ;;  %v16291_v12 = vld [vmem:[#allocation19_spill] sm:$0xff]  ;;  %v11509_v36 = vld [vmem:[%s16159_s7 + $0x50] sm:$0xff]   ;;  %v11510_v63 = vld [vmem:[%s16159_s7 + $0x58] sm:$0xff]  }
 0x2bd   : > { %v16285_v58 = vpack.c.bf16 %v13051_v34, %v13046_v24  ;;  %v16287_v10 = vpack.c.bf16 %v13031_v0, %v16286_v11  ;;  %v16288_v52 = vpack.c.bf16 %v13086_v14, %v13061_v15  ;;  %v16289_v29 = vpack.c.bf16 %v13096_v1, %v13089_v28  ;;  %v11507_v1 = vld [vmem:[%s16159_s7 + $0x40] sm:$0xff]   ;;  %v16295_v27 = vld [vmem:[#allocation4_spill] sm:$0xff] }
 0x2be   : > { %v16290_v24 = vpack.c.bf16 %v13102_v62, %v13099_v33  ;;  %v16292_v0 = vpack.c.bf16 %v13112_v18, %v16291_v12  ;;  %v11505_v62 = vld [vmem:[%s16159_s7 + $0x30] sm:$0xff]   ;;  %v11506_v33 = vld [vmem:[%s16159_s7 + $0x38] sm:$0xff]   ;;  %v13316_v61 = vld [vmem:[%s16159_s7] sm:$0xff]  }
 0x2bf   : > { %10440 = vmatpush3.bf16.msra.mxu0 %v11490_v7  ;;  %10517 = vmatprep.subr.bf16.mxu1 %v11505_v62  ;;  %v13322_v4 = vld [vmem:[%s16158_s6] ss:$0 sm:$0xff] }
 0x2c0   : > { %10441 = vmatprep.subr.bf16.mxu0 %v11491_v60  ;;  %10518 = vmatpush3.bf16.msra.mxu1 %v11505_v62  ;;  %v16293_v28 = vld [vmem:[#allocation2_spill] sm:$0xff] }
 0x2c1   : > { %10519 = vmatprep.subr.bf16.mxu1 %v11506_v33  ;;  %v16301_v12 = vld [vmem:[#allocation10_spill] sm:$0xff] }
 0x2c2   : > { %10426 = vmatmul.mubr.msk.bf16.gmra.mrb[24].mxu0 %vm941_vm3, %v16266_v47 }
 0x2c3   : > { %10429 = vmatprep.mubr.msk.bf16.mxu0 %vm941_vm3, %v16267_v40  ;;  %10442 = vmatpush3.bf16.msra.mxu0 %v11491_v60 }
 0x2c4   : > { %10443 = vmatprep.subr.bf16.mxu0 %v11492_v44  ;;  %10520 = vmatpush3.bf16.msra.mxu1 %v11506_v33 }
 0x2c5   : > { %10521 = vmatprep.subr.bf16.mxu1 %v11507_v1 }
 0x2c7   : > { %10444 = vmatpush3.bf16.msra.mxu0 %v11492_v44  ;;  %v16296_v44 = vld [vmem:[#allocation5_spill] sm:$0xff] }
 0x2c8   : > { %10461 = vmatprep.subr.bf16.mxu0 %v11493_v25  ;;  %10522 = vmatpush3.bf16.msra.mxu1 %v11507_v1 }
 0x2ca   : > { %10430 = vmatmul.mubr.msk.bf16.gmra.mrb[28].mxu0 %vm941_vm3, %v16268_v42 }
 0x2cb   : > { %10445 = vmatprep.mubr.msk.bf16.mxu0 %vm941_vm3, %v16269_v9 }
 0x2d2   : > { %10446 = vmatmul.mubr.msk.bf16.vlgmr.msra.gmra.mrb[16].mxu0 %vm941_vm3, %v16270_v41 }
 0x2d3   : > { %10462 = vmatpush3.bf16.msra.mxu0 %v11493_v25  ;;  %10449 = vmatprep.mubr.msk.bf16.mxu0 %vm941_vm3, %v16271_v6 }
 0x2d4   : > { %10463 = vmatprep.subr.bf16.mxu0 %v11494_v26 }
 0x2d7   : > { %10464 = vmatpush3.bf16.msra.mxu0 %v11494_v26 }
 0x2d8   : > { %10465 = vmatprep.subr.bf16.mxu0 %v11495_v46 }
 0x2da   : > { %10450 = vmatmul.mubr.msk.bf16.gmra.mrb[20].mxu0 %vm941_vm3, %v16272_v59 }
 0x2db   : > { %10453 = vmatprep.mubr.msk.bf16.mxu0 %vm941_vm3, %v16273_v2  ;;  %10466 = vmatpush3.bf16.msra.mxu0 %v11495_v46 }
 0x2dc   : > { %10467 = vmatprep.subr.bf16.mxu0 %v11496_v32 }
 0x2df   : > { %10468 = vmatpush3.bf16.msra.mxu0 %v11496_v32 }
 0x2e0   : > { %10469 = vmatprep.subr.bf16.mxu0 %v11497_v49 }
 0x2e2   : > { %10454 = vmatmul.mubr.msk.bf16.gmra.mrb[24].mxu0 %vm941_vm3, %v16274_v39 }
 0x2e3   : > { %10457 = vmatprep.mubr.msk.bf16.mxu0 %vm941_vm3, %v16275_v8  ;;  %10470 = vmatpush3.bf16.msra.mxu0 %v11497_v49  ;;  %v16297_v49 = vld [vmem:[#allocation6_spill] sm:$0xff] }
 0x2e4   : > { %10471 = vmatprep.subr.bf16.mxu0 %v11498_v17 }
 0x2e7   : > { %10472 = vmatpush3.bf16.msra.mxu0 %v11498_v17 }
 0x2e8   : > { %10489 = vmatprep.subr.bf16.mxu0 %v11499_v56 }
 0x2ea   : > { %10458 = vmatmul.mubr.msk.bf16.gmra.mrb[28].mxu0 %vm941_vm3, %v16276_v21 }
 0x2eb   : > { %10473 = vmatprep.mubr.msk.bf16.mxu0 %vm941_vm3, %v16277_v48 }
 0x2f2   : > { %10474 = vmatmul.mubr.msk.bf16.vlgmr.msra.gmra.mrb[16].mxu0 %vm941_vm3, %v16278_v57  ;;  %v16299_v57 = vld [vmem:[#allocation8_spill] sm:$0xff] }
 0x2f3   : > { %10490 = vmatpush3.bf16.msra.mxu0 %v11499_v56  ;;  %10477 = vmatprep.mubr.msk.bf16.mxu0 %vm941_vm3, %v16279_v23  ;;  %v16298_v56 = vld [vmem:[#allocation7_spill] sm:$0xff] }
 0x2f4   : > { %10491 = vmatprep.subr.bf16.mxu0 %v11500_v55 }
 0x2f7   : > { %10492 = vmatpush3.bf16.msra.mxu0 %v11500_v55 }
 0x2f8   : > { %10493 = vmatprep.subr.bf16.mxu0 %v11501_v13 }
 0x2fa   : > { %10478 = vmatmul.mubr.msk.bf16.gmra.mrb[20].mxu0 %vm941_vm3, %v16280_v16 }
 0x2fb   : > { %10481 = vmatprep.mubr.msk.bf16.mxu0 %vm941_vm3, %v16281_v54  ;;  %10494 = vmatpush3.bf16.msra.mxu0 %v11501_v13 }
 0x2fc   : > { %10495 = vmatprep.subr.bf16.mxu0 %v11502_v31 }
 0x2ff   : > { %10496 = vmatpush3.bf16.msra.mxu0 %v11502_v31  ;;  %v16300_v31 = vld [vmem:[#allocation9_spill] sm:$0xff] }
 0x300   : > { %10497 = vmatprep.subr.bf16.mxu0 %v11503_v53 }
 0x302   : > { %10482 = vmatmul.mubr.msk.bf16.gmra.mrb[24].mxu0 %vm941_vm3, %v16282_v37 }
 0x303   : > { %10485 = vmatprep.mubr.msk.bf16.mxu0 %vm941_vm3, %v16283_v35  ;;  %10498 = vmatpush3.bf16.msra.mxu0 %v11503_v53 }
 0x304   : > { %10499 = vmatprep.subr.bf16.mxu0 %v11504_v45 }
 0x307   : > { %10500 = vmatpush3.bf16.msra.mxu0 %v11504_v45 }
 0x30a   : > { %10486 = vmatmul.mubr.msk.bf16.gmra.mrb[28].mxu0 %vm941_vm3, %v16284_v51 }
 0x30b   : > { %10501 = vmatprep.mubr.msk.bf16.mxu0 %vm941_vm3, %v16285_v58 }
 0x312   : > { %10502 = vmatmul.mubr.msk.bf16.vlgmr.msra.gmra.mrb[16].mxu0 %vm941_vm3, %v16287_v10 }
 0x313   : > { %10505 = vmatprep.mubr.msk.bf16.mxu0 %vm941_vm3, %v16288_v52 }
 0x31a   : > { %10506 = vmatmul.mubr.msk.bf16.gmra.mrb[20].mxu0 %vm941_vm3, %v16289_v29 }
 0x31b   : > { %10509 = vmatprep.mubr.msk.bf16.mxu0 %vm941_vm3, %v16290_v24 }
 0x322   : > { %10510 = vmatmul.mubr.msk.bf16.gmra.mrb[24].mxu0 %vm941_vm3, %v16292_v0 }
 0x323   : > { %10513 = vmatprep.mubr.msk.bf16.mxu0 %vm941_vm3, %v2976_v20 }
 0x32a   : > { %10514 = vmatmul.mubr.msk.bf16.gmra.mrb[28].mxu0 %vm941_vm3, %v2977_v3  ;;  %v11508_v3 = vld [vmem:[%s16159_s7 + $0x48] sm:$0xff]  }
 0x32b   : > { %10523 = vmatprep.subr.bf16.mxu1 %v11508_v3 }
 0x32c   : > { %10524 = vmatpush3.bf16.msra.mxu1 %v11508_v3 }
 0x32d   : > { %10525 = vmatprep.subr.bf16.mxu1 %v11509_v36 }
 0x330   : > { %10526 = vmatpush3.bf16.msra.mxu1 %v11509_v36  ;;  %v16302_v36 = vld [vmem:[#allocation11_spill] sm:$0xff] }
 0x331   : > { %10527 = vmatprep.subr.bf16.mxu1 %v11510_v63 }
 0x334   : > { %10528 = vmatpush3.bf16.msra.mxu1 %v11510_v63 }
 0x335   : > { %10545 = vmatprep.subr.bf16.mxu1 %v13316_v61 }
 0x3e5   : > { %v10503_v15 = vpop.f32.mrb[16].mxu0 }
 0x3e6   : > { %v3173_v43 = vadd.f32 %v10503_v15, %v13322_v4  ;;  %v3085_v34 = vpop.f32.mrb[17].mxu0 }
 0x3e7   : > { %v3171_v18 = vadd.f32 %v13322_v4, %v3085_v34  ;;  %v10504_v14 = vpop.f32.mrb[18].mxu0 }
 0x3e8   : > { %v13327_v5 = vadd.f32 %v3173_v43, %v16293_v28  ;;  %v3174_v20 = vadd.f32 %v10504_v14, %v13322_v4  ;;  %v3088_v50 = vpop.f32.mrb[19].mxu0  ;;  %v16303_v14 = vld [vmem:[#allocation12_spill] sm:$0xff] }
 0x3e9   : > { %v13331_v7 = vadd.f32 %v3171_v18, %v16294_v38  ;;  %v3172_v30 = vadd.f32 %v13322_v4, %v3088_v50 }
 0x3ea   : > { %v3205_v19 = vsub.f32 0.0, %v13327_v5  ;;  %v13336_v22 = vadd.f32 %v3174_v20, %v16295_v27 }
 0x3eb   : > { %v3203_v60 = vsub.f32 0.0, %v13331_v7  ;;  %v13340_v47 = vadd.f32 %v3172_v30, %v16296_v44  ;;  %v16304_v30 = vld [vmem:[#allocation13_spill] sm:$0xff] }
 0x3ec   : > { %v3223_v40 = vmul.f32 1.442695, %v3205_v19  ;;  %v3206_v25 = vsub.f32 0.0, %v13336_v22 }
 0x3ed   : > { %v3219_v42 = vmul.f32 1.442695, %v3203_v60  ;;  %v3204_v9 = vsub.f32 0.0, %v13340_v47  ;;  %v10507_v26 = vpop.f32.mrb[20].mxu0 }
 0x3ee   : > { %11800 = vpow2.f32 %v3223_v40  ;;  %v3225_v41 = vmul.f32 1.442695, %v3206_v25  ;;  %v3177_v6 = vadd.f32 %v10507_v26, %v13322_v4  ;;  %v3101_v46 = vpop.f32.mrb[21].mxu0 }
 0x3ef   : > { %11802 = vpow2.f32 %v3219_v42  ;;  %v3221_v32 = vmul.f32 1.442695, %v3204_v9  ;;  %v3175_v59 = vadd.f32 %v13322_v4, %v3101_v46  ;;  %v10508_v2 = vpop.f32.mrb[22].mxu0 }
 0x3f0   : > { %11804 = vpow2.f32 %v3225_v41  ;;  %v13347_v17 = vadd.f32 %v3177_v6, %v16297_v49  ;;  %v3178_v39 = vadd.f32 %v10508_v2, %v13322_v4  ;;  %v3104_v8 = vpop.f32.mrb[23].mxu0  ;;  %v16305_v2 = vld [vmem:[#allocation14_spill] sm:$0xff] }
 0x3f1   : > { %11806 = vpow2.f32 %v3221_v32  ;;  %v13351_v21 = vadd.f32 %v3175_v59, %v16298_v56  ;;  %v3176_v48 = vadd.f32 %v13322_v4, %v3104_v8 }
 0x3f2   : > { %v3209_v55 = vsub.f32 0.0, %v13347_v17  ;;  %v13356_v23 = vadd.f32 %v3178_v39, %v16299_v57 }
 0x3f3   : > { %v3207_v13 = vsub.f32 0.0, %v13351_v21  ;;  %v13360_v16 = vadd.f32 %v3176_v48, %v16300_v31 }
 0x3f4   : > { %v3231_v54 = vmul.f32 1.442695, %v3209_v55  ;;  %v3210_v53 = vsub.f32 0.0, %v13356_v23  ;;  %v16306_v55 = vld [vmem:[#allocation15_spill] sm:$0xff] }
 0x3f5   : > { %v3227_v45 = vmul.f32 1.442695, %v3207_v13  ;;  %v3208_v37 = vsub.f32 0.0, %v13360_v16  ;;  %v10511_v35 = vpop.f32.mrb[24].mxu0 }
 0x3f6   : > { %11808 = vpow2.f32 %v3231_v54  ;;  %v3233_v51 = vmul.f32 1.442695, %v3210_v53  ;;  %v3181_v58 = vadd.f32 %v10511_v35, %v13322_v4  ;;  %v3117_v11 = vpop.f32.mrb[25].mxu0 }
 0x3f7   : > { %11810 = vpow2.f32 %v3227_v45  ;;  %v3229_v10 = vmul.f32 1.442695, %v3208_v37  ;;  %v3179_v52 = vadd.f32 %v13322_v4, %v3117_v11  ;;  %v10512_v29 = vpop.f32.mrb[26].mxu0  ;;  %v16307_v45 = vld [vmem:[#allocation16_spill] sm:$0xff]  ;;  %v16308_v11 = vld [vmem:[#allocation17_spill] sm:$0xff] }
 0x3f8   : > { %v11801_v24 = vpop.eup %11800  ;;  %11812 = vpow2.f32 %v3233_v51  ;;  %v13367_v0 = vadd.f32 %v3181_v58, %v16301_v12  ;;  %v3182_v62 = vadd.f32 %v10512_v29, %v13322_v4  ;;  %v3120_v33 = vpop.f32.mrb[27].mxu0 }
 0x3f9   : > { %v11803_v1 = vpop.eup %11802  ;;  %v3253_v3 = vadd.f32 1.0, %v11801_v24  ;;  %11814 = vpow2.f32 %v3229_v10  ;;  %v13371_v63 = vadd.f32 %v3179_v52, %v16302_v36  ;;  %v3180_v15 = vadd.f32 %v13322_v4, %v3120_v33 }
 0x3fa   : > { %v11805_v43 = vpop.eup %11804  ;;  %v3251_v34 = vadd.f32 1.0, %v11803_v1  ;;  %v3213_v18 = vsub.f32 0.0, %v13367_v0  ;;  %v13376_v28 = vadd.f32 %v3182_v62, %v16303_v14 }
 0x3fb   : > { %v11807_v20 = vpop.eup %11806  ;;  %11816 = vrcp.f32 %v3253_v3  ;;  %v3254_v50 = vadd.f32 1.0, %v11805_v43  ;;  %v3211_v38 = vsub.f32 0.0, %v13371_v63  ;;  %v13380_v19 = vadd.f32 %v3180_v15, %v16304_v30 }
 0x3fc   : > { %11818 = vrcp.f32 %v3251_v34  ;;  %v3252_v27 = vadd.f32 1.0, %v11807_v20  ;;  %v3239_v60 = vmul.f32 1.442695, %v3213_v18  ;;  %v3214_v44 = vsub.f32 0.0, %v13376_v28 }
 0x3fd   : > { %11820 = vrcp.f32 %v3254_v50  ;;  %v3235_v40 = vmul.f32 1.442695, %v3211_v38  ;;  %v3212_v25 = vsub.f32 0.0, %v13380_v19  ;;  %v10515_v42 = vpop.f32.mrb[28].mxu0 }
 0x3fe   : > { %11822 = vrcp.f32 %v3252_v27  ;;  %v3241_v9 = vmul.f32 1.442695, %v3214_v44  ;;  %v3185_v26 = vadd.f32 %v10515_v42, %v13322_v4  ;;  %v3133_v41 = vpop.f32.mrb[29].mxu0 }
 0x3ff   : > { %11824 = vpow2.f32 %v3239_v60  ;;  %v3237_v6 = vmul.f32 1.442695, %v3212_v25  ;;  %v3183_v46 = vadd.f32 %v13322_v4, %v3133_v41  ;;  %v10516_v32 = vpop.f32.mrb[30].mxu0 }
 0x400   : > { %v11809_v59 = vpop.eup %11808  ;;  %11826 = vpow2.f32 %v3235_v40  ;;  %v13387_v49 = vadd.f32 %v3185_v26, %v16305_v2  ;;  %v3186_v39 = vadd.f32 %v10516_v32, %v13322_v4  ;;  %v3136_v8 = vpop.f32.mrb[31].mxu0 }
 0x401   : > { %v11811_v56 = vpop.eup %11810  ;;  %v3257_v48 = vadd.f32 1.0, %v11809_v59  ;;  %11828 = vpow2.f32 %v3241_v9  ;;  %v13391_v57 = vadd.f32 %v3183_v46, %v16306_v55  ;;  %v3184_v13 = vadd.f32 %v13322_v4, %v3136_v8  ;;  %v11512_v8 = vld [vmem:[%s16159_s7 + $0x8] sm:$0xff]  }
 0x402   : > { %v11813_v31 = vpop.eup %11812  ;;  %v3255_v54 = vadd.f32 1.0, %v11811_v56  ;;  %11830 = vpow2.f32 %v3237_v6  ;;  %v3217_v53 = vsub.f32 0.0, %v13387_v49  ;;  %v13396_v37 = vadd.f32 %v3186_v39, %v16307_v45 }
 0x403   : > { %v11815_v35 = vpop.eup %11814  ;;  %11832 = vrcp.f32 %v3257_v48  ;;  %v3258_v51 = vadd.f32 1.0, %v11813_v31  ;;  %v3215_v58 = vsub.f32 0.0, %v13391_v57  ;;  %v13400_v10 = vadd.f32 %v3184_v13, %v16308_v11 }
 0x404   : > { %11834 = vrcp.f32 %v3255_v54  ;;  %v3256_v52 = vadd.f32 1.0, %v11815_v35  ;;  %v3247_v29 = vmul.f32 1.442695, %v3217_v53  ;;  %v3218_v4 = vsub.f32 0.0, %v13396_v37 }
 0x405   : > { %v11817_v24 = vpop.eup %11816  ;;  %11836 = vrcp.f32 %v3258_v51  ;;  %v3243_v12 = vmul.f32 1.442695, %v3215_v58  ;;  %v3216_v62 = vsub.f32 0.0, %v13400_v10 }
 0x406   : > { %v11819_v33 = vpop.eup %11818  ;;  %v13405_v1 = vmul.f32 %v11817_v24, %v13327_v5  ;;  %11838 = vrcp.f32 %v3256_v52  ;;  %v3249_v3 = vmul.f32 1.442695, %v3218_v4 }
 0x407   : > { %v11821_v36 = vpop.eup %11820  ;;  %v13408_v15 = vmul.f32 %v11819_v33, %v13331_v7  ;;  %11840 = vpow2.f32 %v3247_v29  ;;  %v3245_v43 = vmul.f32 1.442695, %v3216_v62 }
 0x408   : > { %16309 = vst [vmem:[#allocation18_spill] sm:$0xff] %v13405_v1  ;;  %v11823_v34 = vpop.eup %11822  ;;  %v13411_v18 = vmul.f32 %v11821_v36, %v13336_v22  ;;  %11842 = vpow2.f32 %v3243_v12  ;;  %v3386_v7 = vrot.slane %v13405_v1, 7  ;;  %v11514_v36 = vld [vmem:[%s16159_s7 + $0x18] sm:$0xff]  }
 0x409   : > { %16310 = vst [vmem:[#allocation19_spill] sm:$0xff] %v13408_v15  ;;  %v11825_v14 = vpop.eup %11824  ;;  %v13414_v20 = vmul.f32 %v11823_v34, %v13340_v47  ;;  %11844 = vpow2.f32 %v3249_v3  ;;  %v3383_v5 = vrot.slane %v13408_v15, 7 }
 0x40a   : > { %16311 = vst [vmem:[#allocation2_spill] sm:$0xff] %v13411_v18  ;;  %v11827_v50 = vpop.eup %11826  ;;  %v3388_v38 = vrot.slane %v13411_v18, 7  ;;  %v3261_v30 = vadd.f32 1.0, %v11825_v14  ;;  %11846 = vpow2.f32 %v3245_v43 }
 0x40b   : > { %16312 = vst [vmem:[#allocation3_spill] sm:$0xff] %v13414_v20  ;;  %v11829_v27 = vpop.eup %11828  ;;  %v3259_v60 = vadd.f32 1.0, %v11827_v50  ;;  %v3384_v22 = vrot.slane %v13414_v20, 7  ;;  %v3430_v47 = vsel %vm835_vm2, 0.0, %v3383_v5 }
 0x40c   : > { %v11831_v44 = vpop.eup %11830  ;;  %11848 = vrcp.f32 %v3261_v30  ;;  %v3262_v40 = vadd.f32 1.0, %v11829_v27  ;;  %v3389_v25 = vsel %vm835_vm2, %v3386_v7, %v3388_v38  ;;  %v11515_v30 = vld [vmem:[%s16159_s7 + $0x20] sm:$0xff]  }
 0x40d   : > { %v11833_v42 = vpop.eup %11832  ;;  %11850 = vrcp.f32 %v3259_v60  ;;  %v3260_v9 = vadd.f32 1.0, %v11831_v44  ;;  %v3385_v26 = vsel %vm835_vm2, %v3383_v5, %v3384_v22  ;;  %v3387_v41 = vsel %vm835_vm2, %v3384_v22, %v3386_v7 }
 0x40e   : > { %v11835_v6 = vpop.eup %11834  ;;  %v13425_v46 = vmul.f32 %v11833_v42, %v13347_v17  ;;  %11852 = vrcp.f32 %v3262_v40  ;;  %v3431_v32 = vpack.c.bf16 %v3385_v26, %v3430_v47  ;;  %v3432_v59 = vpack.c.bf16 %v3389_v25, %v3387_v41  ;;  %v11516_v26 = vld [vmem:[%s16159_s7 + $0x28] sm:$0xff]  }
 0x40f   : > { %v11837_v2 = vpop.eup %11836  ;;  %v13428_v39 = vmul.f32 %v11835_v6, %v13351_v21  ;;  %11854 = vrcp.f32 %v3260_v9 }
 0x410   : > { %16313 = vst [vmem:[#allocation4_spill] sm:$0xff] %v13425_v46  ;;  %v11839_v56 = vpop.eup %11838  ;;  %v13434_v48 = vmul.f32 %v11837_v2, %v13356_v23  ;;  %10529 = vmatprep.mubr.msk.bf16.mxu1 %vm941_vm3, %v3431_v32  ;;  %v3394_v54 = vrot.slane %v13425_v46, 7 }
 0x411   : > { %16314 = vst [vmem:[#allocation5_spill] sm:$0xff] %v13428_v39  ;;  %v11841_v17 = vpop.eup %11840  ;;  %v13438_v55 = vmul.f32 %v11839_v56, %v13360_v16  ;;  %10530 = vmatmul.mubr.msk.bf16.vlgmr.msra.gmra.mrb[16].mxu1 %vm941_vm3, %v3432_v59  ;;  %v3390_v21 = vrot.slane %v13428_v39, 7  ;;  %v11513_v16 = vld [vmem:[%s16159_s7 + $0x10] sm:$0xff]  }
 0x412   : > { %16315 = vst [vmem:[#allocation6_spill] sm:$0xff] %v13434_v48  ;;  %v11843_v13 = vpop.eup %11842  ;;  %v3265_v31 = vadd.f32 1.0, %v11841_v17  ;;  %10546 = vmatpush3.bf16.msra.mxu1 %v13316_v61  ;;  %v3396_v53 = vrot.slane %v13434_v48, 7 }
 0x413   : > { %16316 = vst [vmem:[#allocation7_spill] sm:$0xff] %v13438_v55  ;;  %v11845_v23 = vpop.eup %11844  ;;  %v3263_v45 = vadd.f32 1.0, %v11843_v13  ;;  %10547 = vmatprep.subr.bf16.mxu1 %v11512_v8  ;;  %v3392_v35 = vrot.slane %v13438_v55, 7  ;;  %v3391_v11 = vsel %vm835_vm2, %v3388_v38, %v3390_v21 }
 0x414   : > { %v11847_v51 = vpop.eup %11846  ;;  %11856 = vrcp.f32 %v3265_v31  ;;  %v3266_v58 = vadd.f32 1.0, %v11845_v23  ;;  %v3397_v61 = vsel %vm835_vm2, %v3394_v54, %v3396_v53 }
 0x415   : > { %11858 = vrcp.f32 %v3263_v45  ;;  %v3264_v52 = vadd.f32 1.0, %v11847_v51  ;;  %v3393_v29 = vsel %vm835_vm2, %v3390_v21, %v3392_v35  ;;  %v3395_v4 = vsel %vm835_vm2, %v3392_v35, %v3394_v54 }
 0x416   : > { %v11849_v24 = vpop.eup %11848  ;;  %11860 = vrcp.f32 %v3266_v58  ;;  %10548 = vmatpush3.bf16.msra.mxu1 %v11512_v8  ;;  %v3433_v12 = vpack.c.bf16 %v3393_v29, %v3391_v11  ;;  %v3434_v62 = vpack.c.bf16 %v3397_v61, %v3395_v4  ;;  %v3320_v45 = vrot.slane %v13411_v18, 6 }
 0x417   : > { %v11851_v33 = vpop.eup %11850  ;;  %v13454_v3 = vmul.f32 %v11849_v24, %v13367_v0  ;;  %11862 = vrcp.f32 %v3264_v52  ;;  %10549 = vmatprep.subr.bf16.mxu1 %v11513_v16  ;;  %v3318_v51 = vrot.slane %v13405_v1, 6  ;;  %v3322_v58 = vrot.slane %v13428_v39, 6  ;;  %v11518_v24 = vld [vmem:[%s16159_s7 + $0x68] sm:$0xff]  }
 0x418   : > { %v11853_v43 = vpop.eup %11852  ;;  %v13460_v34 = vmul.f32 %v11851_v33, %v13371_v63  ;;  %10533 = vmatprep.mubr.msk.bf16.mxu1 %vm941_vm3, %v3433_v12 }
 0x419   : > { %16317 = vst [vmem:[#allocation8_spill] sm:$0xff] %v13454_v3  ;;  %v11855_v14 = vpop.eup %11854  ;;  %v13464_v5 = vmul.f32 %v11853_v43, %v13376_v28  ;;  %10534 = vmatmul.mubr.msk.bf16.gmra.mrb[20].mxu1 %vm941_vm3, %v3434_v62  ;;  %v3402_v38 = vrot.slane %v13454_v3, 7  ;;  %v3321_v61 = vsel %vm766_vm4, %v3318_v51, %v3320_v45  ;;  %v3323_v4 = vsel %vm766_vm4, %v3320_v45, %v3322_v58  ;;  %v11526_v45 = vld [vmem:[%s16159_s7 + $0xa8] sm:$0xff]  }
 0x41a   : > { %16318 = vst [vmem:[#allocation9_spill] sm:$0xff] %v13460_v34  ;;  %v13468_v0 = vmul.f32 %v11855_v14, %v13380_v19  ;;  %10550 = vmatpush3.bf16.msra.mxu1 %v11513_v16  ;;  %v3398_v50 = vrot.slane %v13460_v34, 7  ;;  %v3324_v16 = vrot.slane %v13438_v55, 6  ;;  %v3328_v62 = vrot.slane %v13434_v48, 6  ;;  %v11519_v14 = vld [vmem:[%s16159_s7 + $0x70] sm:$0xff]  }
 0x41b   : > { %16319 = vst [vmem:[#allocation10_spill] sm:$0xff] %v13464_v5  ;;  %10551 = vmatprep.subr.bf16.mxu1 %v11514_v36  ;;  %v3404_v63 = vrot.slane %v13464_v5, 7  ;;  %v3330_v43 = vrot.slane %v13460_v34, 6 }
 0x41c   : > { %16320 = vst [vmem:[#allocation11_spill] sm:$0xff] %v13468_v0  ;;  %v3400_v28 = vrot.slane %v13468_v0, 7  ;;  %v3399_v19 = vsel %vm835_vm2, %v3396_v53, %v3398_v50  ;;  %v3325_v52 = vsel %vm766_vm4, %v3322_v58, %v3324_v16  ;;  %v3332_v33 = vrot.slane %v13468_v0, 6  ;;  %v11528_v58 = vld [vmem:[%s16159_s7 + $0xb8] sm:$0xff]  }
 0x41d   : > { %v3405_v7 = vsel %vm835_vm2, %v3402_v38, %v3404_v63  ;;  %v3365_v12 = vpack.c.bf16 %v3325_v52, %v3323_v4  ;;  %v3960_v52 = vrot.slane %v13408_v15, 1  ;;  %v11529_v4 = vld [vmem:[%s16159_s7 + $0xc0] sm:$0xff]  }
 0x41e   : > { %v11857_v27 = vpop.eup %11856  ;;  %v3401_v60 = vsel %vm835_vm2, %v3398_v50, %v3400_v28  ;;  %v3403_v22 = vsel %vm835_vm2, %v3400_v28, %v3402_v38  ;;  %10552 = vmatpush3.bf16.msra.mxu1 %v11514_v36  ;;  %v3326_v36 = vrot.slane %v13425_v46, 6  ;;  %v3331_v28 = vsel %vm766_vm4, %v3328_v62, %v3330_v43 }
 0x41f   : > { %v11859_v44 = vpop.eup %11858  ;;  %v13482_v40 = vmul.f32 %v11857_v27, %v13387_v49  ;;  %v3435_v47 = vpack.c.bf16 %v3401_v60, %v3399_v19  ;;  %v3436_v25 = vpack.c.bf16 %v3405_v7, %v3403_v22  ;;  %10553 = vmatprep.subr.bf16.mxu1 %v11515_v30  ;;  %v11520_v7 = vld [vmem:[%s16159_s7 + $0x78] sm:$0xff]   ;;  %v3336_v19 = vrot.slane %v13464_v5, 6 }
 0x420   : > { %v11861_v42 = vpop.eup %11860  ;;  %v13485_v9 = vmul.f32 %v11859_v44, %v13391_v57  ;;  %v3316_v57 = vrot.slane %v13414_v20, 6  ;;  %v3327_v50 = vsel %vm766_vm4, %v3324_v16, %v3326_v36  ;;  %v3329_v38 = vsel %vm766_vm4, %v3326_v36, %v3328_v62  ;;  %v11527_v16 = vld [vmem:[%s16159_s7 + $0xb0] sm:$0xff]  }
 0x421   : > { %16321 = vst [vmem:[#allocation12_spill] sm:$0xff] %v13482_v40  ;;  %v11863_v41 = vpop.eup %11862  ;;  %v13491_v6 = vmul.f32 %v11861_v42, %v13396_v37  ;;  %10537 = vmatprep.mubr.msk.bf16.mxu1 %vm941_vm3, %v3435_v47  ;;  %v3410_v59 = vrot.slane %v13482_v40, 7  ;;  %v3315_v37 = vrot.slane %v13408_v15, 6  ;;  %v3334_v22 = vrot.slane %v13454_v3, 6  ;;  %v11521_v47 = vld [vmem:[%s16159_s7 + $0x80] sm:$0xff]  }
 0x422   : > { %16322 = vst [vmem:[#allocation13_spill] sm:$0xff] %v13485_v9  ;;  %v13495_v49 = vmul.f32 %v11863_v41, %v13400_v10  ;;  %10538 = vmatmul.mubr.msk.bf16.gmra.mrb[24].mxu1 %vm941_vm3, %v3436_v25  ;;  %v3406_v32 = vrot.slane %v13485_v9, 7  ;;  %v11517_v10 = vld [vmem:[%s16159_s7 + $0x60] sm:$0xff]   ;;  %v3319_v11 = vsel %vm766_vm4, %v3316_v57, %v3318_v51  ;;  %v3338_v44 = vrot.slane %v13485_v9, 6 }
 0x423   : > { %16323 = vst [vmem:[#allocation14_spill] sm:$0xff] %v13491_v6  ;;  %10554 = vmatpush3.bf16.msra.mxu1 %v11515_v30  ;;  %v3412_v2 = vrot.slane %v13491_v6, 7  ;;  %v3317_v31 = vsel %vm766_vm4, %v3315_v37, %v3316_v57  ;;  %v3362_v23 = vsel %vm766_vm4, 0.0, %v3315_v37  ;;  %v3364_v29 = vpack.c.bf16 %v3321_v61, %v3319_v11  ;;  %v11522_v57 = vld [vmem:[%s16159_s7 + $0x88] sm:$0xff]   ;;  %v11523_v37 = vld [vmem:[%s16159_s7 + $0x90] sm:$0xff]  }
 0x424   : > { %16324 = vst [vmem:[#allocation15_spill] sm:$0xff] %v13495_v49  ;;  %v3408_v8 = vrot.slane %v13495_v49, 7  ;;  %10555 = vmatprep.subr.bf16.mxu1 %v11516_v26  ;;  %v3407_v17 = vsel %vm835_vm2, %v3404_v63, %v3406_v32  ;;  %v3363_v35 = vpack.c.bf16 %v3317_v31, %v3362_v23  ;;  %v3333_v63 = vsel %vm766_vm4, %v3330_v43, %v3332_v33  ;;  %v11524_v31 = vld [vmem:[%s16159_s7 + $0x98] sm:$0xff]  }
 0x425   : > { %v3413_v56 = vsel %vm835_vm2, %v3410_v59, %v3412_v2  ;;  %v3366_v30 = vpack.c.bf16 %v3329_v38, %v3327_v50  ;;  %v3367_v27 = vpack.c.bf16 %v3333_v63, %v3331_v28  ;;  %v3340_v60 = vrot.slane %v13495_v49, 6 }
 0x426   : > { %v3409_v21 = vsel %vm835_vm2, %v3406_v32, %v3408_v8  ;;  %v3411_v13 = vsel %vm835_vm2, %v3408_v8, %v3410_v59  ;;  %v3335_v25 = vsel %vm766_vm4, %v3332_v33, %v3334_v22  ;;  %v3337_v42 = vsel %vm766_vm4, %v3334_v22, %v3336_v19 }
 0x427   : > { %v3437_v54 = vpack.c.bf16 %v3409_v21, %v3407_v17  ;;  %v3438_v53 = vpack.c.bf16 %v3413_v56, %v3411_v13  ;;  %10556 = vmatpush3.bf16.msra.mxu1 %v11516_v26  ;;  %v3341_v26 = vsel %vm766_vm4, %v3338_v44, %v3340_v60  ;;  %v3368_v41 = vpack.c.bf16 %v3337_v42, %v3335_v25  ;;  %v11531_v25 = vld [vmem:[%s16159_s7 + $0xd0] sm:$0xff]  }
 0x428   : > { %10573 = vmatprep.subr.bf16.mxu1 %v11517_v10  ;;  %v3339_v32 = vsel %vm766_vm4, %v3336_v19, %v3338_v44  ;;  %v3344_v2 = vrot.slane %v13491_v6, 6  ;;  %v3342_v8 = vrot.slane %v13482_v40, 6  ;;  %v3766_v21 = vpack.c.bf16 %v13414_v20, %v13408_v15 }
 0x429   : > { %10541 = vmatprep.mubr.msk.bf16.mxu1 %vm941_vm3, %v3437_v54  ;;  %v3369_v59 = vpack.c.bf16 %v3341_v26, %v3339_v32  ;;  %v3767_v13 = vpack.c.bf16 %v13411_v18, %v13405_v1  ;;  %v3768_v54 = vpack.c.bf16 %v13438_v55, %v13428_v39  ;;  %v3769_v23 = vpack.c.bf16 %v13434_v48, %v13425_v46 }
 0x42a   : > { %10542 = vmatmul.mubr.msk.bf16.gmra.mrb[28].mxu1 %vm941_vm3, %v3438_v53  ;;  %v3345_v56 = vsel %vm766_vm4, %v3342_v8, %v3344_v2  ;;  %v11525_v53 = vld [vmem:[%s16159_s7 + $0xa0] sm:$0xff]   ;;  %v3771_v51 = vpack.c.bf16 %v13464_v5, %v13454_v3  ;;  %v3772_v11 = vpack.c.bf16 %v13495_v49, %v13485_v9  ;;  %v3961_v61 = vrot.slane %v13414_v20, 1 }
 0x42b   : > { %10557 = vmatprep.mubr.msk.bf16.mxu1 %vm941_vm3, %v3363_v35  ;;  %v3770_v35 = vpack.c.bf16 %v13468_v0, %v13460_v34  ;;  %v3773_v62 = vpack.c.bf16 %v13491_v6, %v13482_v40  ;;  %v3967_v33 = vrot.slane %v13428_v39, 1  ;;  %v3969_v43 = vrot.slane %v13438_v55, 1 }
 0x42c   : > { %v3971_v50 = vrot.slane %v13425_v46, 1  ;;  %v3977_v22 = vrot.slane %v13468_v0, 1  ;;  %v3973_v44 = vrot.slane %v13434_v48, 1 }
 0x42d   : > { %v3970_v63 = vsel %vm1414_vm5, %v3967_v33, %v3969_v43 }
 0x42e   : > { %v3974_v32 = vsel %vm1414_vm5, %v3971_v50, %v3973_v44 }
 0x432   : > { %10558 = vmatmul.mubr.msk.bf16.vlgmr.msra.gmra.mrb[16].mxu1 %vm941_vm3, %v3364_v29  ;;  %v3963_v29 = vrot.slane %v13405_v1, 1 }
 0x433   : > { %10574 = vmatpush3.bf16.msra.mxu1 %v11517_v10  ;;  %10561 = vmatprep.mubr.msk.bf16.mxu1 %vm941_vm3, %v3365_v12  ;;  %v3343_v10 = vsel %vm766_vm4, %v3340_v60, %v3342_v8  ;;  %v3975_v60 = vrot.slane %v13460_v34, 1  ;;  %v3983_v8 = vrot.slane %v13485_v9, 1 }
 0x434   : > { %10575 = vmatprep.subr.bf16.mxu1 %v11518_v24  ;;  %v3370_v17 = vpack.c.bf16 %v3345_v56, %v3343_v10  ;;  %v3964_v12 = vsel %vm1414_vm5, %v3961_v61, %v3963_v29  ;;  %v3981_v10 = vrot.slane %v13464_v5, 1  ;;  %v3987_v56 = vrot.slane %v13482_v40, 1 }
 0x435   : > { %v3976_v42 = vsel %vm1414_vm5, %v3973_v44, %v3975_v60  ;;  %v3978_v26 = vsel %vm1414_vm5, %v3975_v60, %v3977_v22 }
 0x437   : > { %10576 = vmatpush3.bf16.msra.mxu1 %v11518_v24  ;;  %v3962_v24 = vsel %vm1414_vm5, %v3960_v52, %v3961_v61 }
 0x438   : > { %10577 = vmatprep.subr.bf16.mxu1 %v11519_v14  ;;  %v4008_v36 = vpack.c.bf16 %v3964_v12, %v3962_v24  ;;  %v4209_v24 = vrot.slane %v13428_v39, 2 }
 0x43a   : > { %10562 = vmatmul.mubr.msk.bf16.gmra.mrb[20].mxu1 %vm941_vm3, %v3366_v30  ;;  %v3972_v30 = vsel %vm1414_vm5, %v3969_v43, %v3971_v50 }
 0x43b   : > { %10565 = vmatprep.mubr.msk.bf16.mxu1 %vm941_vm3, %v3367_v27  ;;  %10578 = vmatpush3.bf16.msra.mxu1 %v11519_v14  ;;  %v3965_v14 = vrot.slane %v13411_v18, 1  ;;  %v11530_v27 = vld [vmem:[%s16159_s7 + $0xc8] sm:$0xff]   ;;  %v4010_v19 = vpack.c.bf16 %v3972_v30, %v3970_v63 }
 0x43c   : > { %10579 = vmatprep.subr.bf16.mxu1 %v11520_v7 }
 0x43d   : > { %v3968_v38 = vsel %vm1414_vm5, %v3965_v14, %v3967_v33  ;;  %v3966_v28 = vsel %vm1414_vm5, %v3963_v29, %v3965_v14  ;;  %v4207_v33 = vrot.slane %v13411_v18, 2 }
 0x43f   : > { %10580 = vmatpush3.bf16.msra.mxu1 %v11520_v7  ;;  %v4009_v7 = vpack.c.bf16 %v3968_v38, %v3966_v28  ;;  %v4210_v43 = vsel %vm1657_vm6, %v4207_v33, %v4209_v24  ;;  %v4217_v28 = vrot.slane %v13460_v34, 2 }
 0x440   : > { %10581 = vmatprep.subr.bf16.mxu1 %v11521_v47 }
 0x442   : > { %10566 = vmatmul.mubr.msk.bf16.gmra.mrb[24].mxu1 %vm941_vm3, %v3368_v41 }
 0x443   : > { %10569 = vmatprep.mubr.msk.bf16.mxu1 %vm941_vm3, %v3369_v59  ;;  %10582 = vmatpush3.bf16.msra.mxu1 %v11521_v47  ;;  %v3979_v47 = vrot.slane %v13454_v3, 1  ;;  %v11532_v59 = vld [vmem:[%s16159_s7 + $0xd8] sm:$0xff]  }
 0x444   : > { %10583 = vmatprep.subr.bf16.mxu1 %v11522_v57 }
 0x445   : > { %v3980_v41 = vsel %vm1414_vm5, %v3977_v22, %v3979_v47 }
 0x446   : > { %v4012_v2 = vpack.c.bf16 %v3980_v41, %v3978_v26  ;;  %v4225_v26 = vrot.slane %v13485_v9, 2  ;;  %v4227_v41 = vrot.slane %v13495_v49, 2 }
 0x447   : > { %10584 = vmatpush3.bf16.msra.mxu1 %v11522_v57  ;;  %v4011_v57 = vpack.c.bf16 %v3976_v42, %v3974_v32  ;;  %v4223_v32 = vrot.slane %v13464_v5, 2 }
 0x448   : > { %10601 = vmatprep.subr.bf16.mxu1 %v11523_v37 }
 0x44a   : > { %10570 = vmatmul.mubr.msk.bf16.gmra.mrb[28].mxu1 %vm941_vm3, %v3370_v17  ;;  %v11533_v17 = vld [vmem:[%s16159_s7 + $0xe0] sm:$0xff]  }
 0x44b   : > { %10585 = vmatprep.mubr.msk.bf16.mxu1 %vm941_vm3, %v3766_v21  ;;  %v3984_v21 = vsel %vm1414_vm5, %v3981_v10, %v3983_v8 }
 0x452   : > { %10586 = vmatmul.mubr.msk.bf16.vlgmr.msra.gmra.mrb[16].mxu1 %vm941_vm3, %v3767_v13 }
 0x453   : > { %10602 = vmatpush3.bf16.msra.mxu1 %v11523_v37  ;;  %10589 = vmatprep.mubr.msk.bf16.mxu1 %vm941_vm3, %v3768_v54  ;;  %v3985_v37 = vrot.slane %v13495_v49, 1  ;;  %v3982_v54 = vsel %vm1414_vm5, %v3979_v47, %v3981_v10 }
 0x454   : > { %10603 = vmatprep.subr.bf16.mxu1 %v11524_v31 }
 0x455   : > { %v3986_v13 = vsel %vm1414_vm5, %v3983_v8, %v3985_v37 }
 0x457   : > { %10604 = vmatpush3.bf16.msra.mxu1 %v11524_v31  ;;  %v3988_v31 = vsel %vm1414_vm5, %v3985_v37, %v3987_v56 }
 0x458   : > { %10605 = vmatprep.subr.bf16.mxu1 %v11525_v53 }
 0x45a   : > { %10590 = vmatmul.mubr.msk.bf16.gmra.mrb[20].mxu1 %vm941_vm3, %v3769_v23  ;;  %v11534_v23 = vld [vmem:[%s16159_s7 + $0xe8] sm:$0xff]  }
 0x45b   : > { %10593 = vmatprep.mubr.msk.bf16.mxu1 %vm941_vm3, %v3770_v35  ;;  %10606 = vmatpush3.bf16.msra.mxu1 %v11525_v53  ;;  %v4013_v53 = vpack.c.bf16 %v3984_v21, %v3982_v54  ;;  %v3989_v35 = vrot.slane %v13491_v6, 1  ;;  %v11535_v54 = vld [vmem:[%s16161_s9 + $0x30] sm:$0xff]  }
 0x45c   : > { %10607 = vmatprep.subr.bf16.mxu1 %v11526_v45  ;;  %10657 = vmatprep.subr.bf16.mxu0 %v11535_v54 }
 0x45d   : > { %v4007_v61 = vsel %vm1414_vm5, %v3989_v35, 0.0  ;;  %10658 = vmatpush3.bf16.msra.mxu0 %v11535_v54 }
 0x45f   : > { %10608 = vmatpush3.bf16.msra.mxu1 %v11526_v45  ;;  %v4014_v45 = vpack.c.bf16 %v3988_v31, %v3986_v13 }
 0x460   : > { %10609 = vmatprep.subr.bf16.mxu1 %v11527_v16 }
 0x462   : > { %10594 = vmatmul.mubr.msk.bf16.gmra.mrb[24].mxu1 %vm941_vm3, %v3771_v51  ;;  %v4202_v51 = vrot.slane %v13408_v15, 2 }
 0x463   : > { %10597 = vmatprep.mubr.msk.bf16.mxu1 %vm941_vm3, %v3772_v11  ;;  %10610 = vmatpush3.bf16.msra.mxu1 %v11527_v16  ;;  %v4203_v16 = vrot.slane %v13414_v20, 2  ;;  %v3990_v11 = vsel %vm1414_vm5, %v3987_v56, %v3989_v35  ;;  %v11539_v35 = vld [vmem:[%s16161_s9 + $0x50] sm:$0xff]  }
 0x464   : > { %10611 = vmatprep.subr.bf16.mxu1 %v11528_v58 }
 0x465   : > { %v4204_v52 = vsel %vm1657_vm6, %v4202_v51, %v4203_v16  ;;  %v13727_v51 = vld [vmem:[%s16161_s9] sm:$0xff]  }
 0x467   : > { %10612 = vmatpush3.bf16.msra.mxu1 %v11528_v58  ;;  %v4205_v58 = vrot.slane %v13405_v1, 2 }
 0x468   : > { %10629 = vmatprep.subr.bf16.mxu1 %v11529_v4 }
 0x469   : > { %v4206_v29 = vsel %vm1657_vm6, %v4203_v16, %v4205_v58  ;;  %v4208_v38 = vsel %vm1657_vm6, %v4205_v58, %v4207_v33  ;;  %v11540_v16 = vld [vmem:[%s16161_s9 + $0x58] sm:$0xff]   ;;  %v13733_v58 = vld [vmem:[%s16160_s8] ss:$0 sm:$0xff] }
 0x46a   : > { %10598 = vmatmul.mubr.msk.bf16.gmra.mrb[28].mxu1 %vm941_vm3, %v3773_v62  ;;  %v4250_v12 = vpack.c.bf16 %v4206_v29, %v4204_v52  ;;  %v4211_v62 = vrot.slane %v13438_v55, 2  ;;  %v4251_v63 = vpack.c.bf16 %v4210_v43, %v4208_v38  ;;  %v11548_v55 = vld [vmem:[%s16161_s9 + $0x68] sm:$0xff]  }
 0x46b   : > { %10613 = vmatprep.mubr.msk.bf16.mxu1 %vm941_vm3, %v4008_v36  ;;  %v4213_v36 = vrot.slane %v13425_v46, 2 }
 0x46c   : > { %v4212_v14 = vsel %vm1657_vm6, %v4209_v24, %v4211_v62 }
 0x46d   : > { %v4214_v50 = vsel %vm1657_vm6, %v4211_v62, %v4213_v36 }
 0x46e   : > { %v4252_v30 = vpack.c.bf16 %v4214_v50, %v4212_v14 }
 0x472   : > { %10614 = vmatmul.mubr.msk.bf16.vlgmr.msra.gmra.mrb[16].mxu1 %vm941_vm3, %v4009_v7  ;;  %v4219_v7 = vrot.slane %v13468_v0, 2 }
 0x473   : > { %10630 = vmatpush3.bf16.msra.mxu1 %v11529_v4  ;;  %10617 = vmatprep.mubr.msk.bf16.mxu1 %vm941_vm3, %v4010_v19  ;;  %v4015_v4 = vpack.c.bf16 %v4007_v61, %v3990_v11  ;;  %v4221_v19 = vrot.slane %v13454_v3, 2 }
 0x474   : > { %10631 = vmatprep.subr.bf16.mxu1 %v11530_v27  ;;  %v4220_v22 = vsel %vm1657_vm6, %v4217_v28, %v4219_v7 }
 0x475   : > { %v4222_v44 = vsel %vm1657_vm6, %v4219_v7, %v4221_v19  ;;  %v4224_v37 = vsel %vm1657_vm6, %v4221_v19, %v4223_v32 }
 0x476   : > { %v4254_v42 = vpack.c.bf16 %v4222_v44, %v4220_v22 }
 0x477   : > { %10632 = vmatpush3.bf16.msra.mxu1 %v11530_v27  ;;  %v4215_v27 = vrot.slane %v13434_v48, 2 }
 0x478   : > { %10633 = vmatprep.subr.bf16.mxu1 %v11531_v25 }
 0x479   : > { %v4218_v60 = vsel %vm1657_vm6, %v4215_v27, %v4217_v28  ;;  %v4216_v47 = vsel %vm1657_vm6, %v4213_v36, %v4215_v27 }
 0x47a   : > { %10618 = vmatmul.mubr.msk.bf16.gmra.mrb[20].mxu1 %vm941_vm3, %v4011_v57  ;;  %v4229_v57 = vrot.slane %v13482_v40, 2 }
 0x47b   : > { %10621 = vmatprep.mubr.msk.bf16.mxu1 %vm941_vm3, %v4012_v2  ;;  %10634 = vmatpush3.bf16.msra.mxu1 %v11531_v25  ;;  %v4253_v25 = vpack.c.bf16 %v4218_v60, %v4216_v47  ;;  %v4228_v2 = vsel %vm1657_vm6, %v4225_v26, %v4227_v41 }
 0x47c   : > { %10635 = vmatprep.subr.bf16.mxu1 %v11532_v59  ;;  %v4230_v8 = vsel %vm1657_vm6, %v4227_v41, %v4229_v57 }
 0x47d   : > { %v4256_v56 = vpack.c.bf16 %v4230_v8, %v4228_v2 }
 0x47f   : > { %10636 = vmatpush3.bf16.msra.mxu1 %v11532_v59  ;;  %v4226_v59 = vsel %vm1657_vm6, %v4223_v32, %v4225_v26 }
 0x480   : > { %10637 = vmatprep.subr.bf16.mxu1 %v11533_v17  ;;  %v4255_v10 = vpack.c.bf16 %v4226_v59, %v4224_v37 }
 0x482   : > { %10622 = vmatmul.mubr.msk.bf16.gmra.mrb[24].mxu1 %vm941_vm3, %v4013_v53  ;;  %v11536_v53 = vld [vmem:[%s16161_s9 + $0x38] sm:$0xff]  }
 0x483   : > { %10625 = vmatprep.mubr.msk.bf16.mxu1 %vm941_vm3, %v4014_v45  ;;  %10638 = vmatpush3.bf16.msra.mxu1 %v11533_v17  ;;  %v4231_v17 = vrot.slane %v13491_v6, 2  ;;  %v11538_v45 = vld [vmem:[%s16161_s9 + $0x48] sm:$0xff]  }
 0x484   : > { %10639 = vmatprep.subr.bf16.mxu1 %v11534_v23  ;;  %10659 = vmatprep.subr.bf16.mxu0 %v11536_v53 }
 0x485   : > { %v4232_v21 = vsel %vm1657_vm6, %v4229_v57, %v4231_v17  ;;  %v4249_v13 = vsel %vm1657_vm6, %v4231_v17, 0.0  ;;  %10660 = vmatpush3.bf16.msra.mxu0 %v11536_v53 }
 0x486   : > { %v4257_v31 = vpack.c.bf16 %v4249_v13, %v4232_v21 }
 0x487   : > { %10640 = vmatpush3.bf16.msra.mxu1 %v11534_v23  ;;  %v11537_v23 = vld [vmem:[%s16161_s9 + $0x40] sm:$0xff]  }
 0x488   : > { %10661 = vmatprep.subr.bf16.mxu0 %v11537_v23 }
 0x489   : > { %10662 = vmatpush3.bf16.msra.mxu0 %v11537_v23 }
 0x48a   : > { %10626 = vmatmul.mubr.msk.bf16.gmra.mrb[28].mxu1 %vm941_vm3, %v4015_v4  ;;  %10663 = vmatprep.subr.bf16.mxu0 %v11538_v45 }
 0x48b   : > { %10641 = vmatprep.mubr.msk.bf16.mxu1 %vm941_vm3, %v4250_v12 }
 0x48d   : > { %10664 = vmatpush3.bf16.msra.mxu0 %v11538_v45 }
 0x48e   : > { %10665 = vmatprep.subr.bf16.mxu0 %v11539_v35 }
 0x491   : > { %10666 = vmatpush3.bf16.msra.mxu0 %v11539_v35 }
 0x492   : > { %10642 = vmatmul.mubr.msk.bf16.vlgmr.msra.gmra.mrb[16].mxu1 %vm941_vm3, %v4251_v63  ;;  %10667 = vmatprep.subr.bf16.mxu0 %v11540_v16 }
 0x493   : > { %10645 = vmatprep.mubr.msk.bf16.mxu1 %vm941_vm3, %v4252_v30 }
 0x495   : > { %10668 = vmatpush3.bf16.msra.mxu0 %v11540_v16 }
 0x496   : > { %10685 = vmatprep.subr.bf16.mxu0 %v13727_v51 }
 0x49a   : > { %10646 = vmatmul.mubr.msk.bf16.gmra.mrb[20].mxu1 %vm941_vm3, %v4253_v25 }
 0x49b   : > { %10649 = vmatprep.mubr.msk.bf16.mxu1 %vm941_vm3, %v4254_v42 }
 0x4a2   : > { %10650 = vmatmul.mubr.msk.bf16.gmra.mrb[24].mxu1 %vm941_vm3, %v4255_v10 }
 0x4a3   : > { %10653 = vmatprep.mubr.msk.bf16.mxu1 %vm941_vm3, %v4256_v56 }
 0x4aa   : > { %10654 = vmatmul.mubr.msk.bf16.gmra.mrb[28].mxu1 %vm941_vm3, %v4257_v31 }
 0x565   : > { %v10643_v11 = vpop.f32.mrb[16].mxu1 }
 0x566   : > { %v13736_v61 = vadd.f32 %v10643_v11, %v13733_v58  ;;  %v4365_v52 = vpop.f32.mrb[17].mxu1 }
 0x567   : > { %v13739_v29 = vadd.f32 %v13733_v58, %v4365_v52  ;;  %v10644_v4 = vpop.f32.mrb[18].mxu1 }
 0x568   : > { %v4469_v24 = vsub.f32 0.0, %v13736_v61  ;;  %v13743_v12 = vadd.f32 %v10644_v4, %v13733_v58  ;;  %v4368_v62 = vpop.f32.mrb[19].mxu1 }
 0x569   : > { %v4467_v33 = vsub.f32 0.0, %v13739_v29  ;;  %v13747_v36 = vadd.f32 %v13733_v58, %v4368_v62 }
 0x56a   : > { %v4487_v43 = vmul.f32 1.442695, %v4469_v24  ;;  %v4470_v14 = vsub.f32 0.0, %v13743_v12 }
 0x56b   : > { %v4483_v50 = vmul.f32 1.442695, %v4467_v33  ;;  %v4468_v38 = vsub.f32 0.0, %v13747_v36 }
 0x56c   : > { %11864 = vpow2.f32 %v4487_v43  ;;  %v4489_v63 = vmul.f32 1.442695, %v4470_v14 }
 0x56d   : > { %11866 = vpow2.f32 %v4483_v50  ;;  %v4485_v30 = vmul.f32 1.442695, %v4468_v38  ;;  %v10647_v28 = vpop.f32.mrb[20].mxu1 }
 0x56e   : > { %11868 = vpow2.f32 %v4489_v63  ;;  %v13752_v7 = vadd.f32 %v10647_v28, %v13733_v58  ;;  %v4381_v27 = vpop.f32.mrb[21].mxu1 }
 0x56f   : > { %11870 = vpow2.f32 %v4485_v30  ;;  %v13755_v19 = vadd.f32 %v13733_v58, %v4381_v27  ;;  %v10648_v60 = vpop.f32.mrb[22].mxu1 }
 0x570   : > { %v4473_v22 = vsub.f32 0.0, %v13752_v7  ;;  %v13759_v44 = vadd.f32 %v10648_v60, %v13733_v58  ;;  %v4384_v47 = vpop.f32.mrb[23].mxu1 }
 0x571   : > { %v4471_v25 = vsub.f32 0.0, %v13755_v19  ;;  %v13763_v42 = vadd.f32 %v13733_v58, %v4384_v47 }
 0x572   : > { %v4495_v26 = vmul.f32 1.442695, %v4473_v22  ;;  %v4474_v41 = vsub.f32 0.0, %v13759_v44 }
 0x573   : > { %v4491_v32 = vmul.f32 1.442695, %v4471_v25  ;;  %v4472_v57 = vsub.f32 0.0, %v13763_v42 }
 0x574   : > { %11872 = vpow2.f32 %v4495_v26  ;;  %v4497_v59 = vmul.f32 1.442695, %v4474_v41 }
 0x575   : > { %11874 = vpow2.f32 %v4491_v32  ;;  %v4493_v2 = vmul.f32 1.442695, %v4472_v57  ;;  %v10651_v8 = vpop.f32.mrb[24].mxu1 }
 0x576   : > { %v11865_v37 = vpop.eup %11864  ;;  %11876 = vpow2.f32 %v4497_v59  ;;  %v13768_v10 = vadd.f32 %v10651_v8, %v13733_v58  ;;  %v4397_v56 = vpop.f32.mrb[25].mxu1 }
 0x577   : > { %v11867_v17 = vpop.eup %11866  ;;  %v4517_v21 = vadd.f32 1.0, %v11865_v37  ;;  %11878 = vpow2.f32 %v4493_v2  ;;  %v13771_v13 = vadd.f32 %v13733_v58, %v4397_v56  ;;  %v10652_v31 = vpop.f32.mrb[26].mxu1 }
 0x578   : > { %v11869_v54 = vpop.eup %11868  ;;  %v4515_v53 = vadd.f32 1.0, %v11867_v17  ;;  %v4477_v23 = vsub.f32 0.0, %v13768_v10  ;;  %v13775_v45 = vadd.f32 %v10652_v31, %v13733_v58  ;;  %v4400_v35 = vpop.f32.mrb[27].mxu1 }
 0x579   : > { %v11871_v16 = vpop.eup %11870  ;;  %11880 = vrcp.f32 %v4517_v21  ;;  %v4518_v11 = vadd.f32 1.0, %v11869_v54  ;;  %v4475_v52 = vsub.f32 0.0, %v13771_v13  ;;  %v13779_v4 = vadd.f32 %v13733_v58, %v4400_v35 }
 0x57a   : > { %11882 = vrcp.f32 %v4515_v53  ;;  %v4516_v24 = vadd.f32 1.0, %v11871_v16  ;;  %v4503_v62 = vmul.f32 1.442695, %v4477_v23  ;;  %v4478_v33 = vsub.f32 0.0, %v13775_v45 }
 0x57b   : > { %11884 = vrcp.f32 %v4518_v11  ;;  %v4499_v43 = vmul.f32 1.442695, %v4475_v52  ;;  %v4476_v14 = vsub.f32 0.0, %v13779_v4 }
 0x57c   : > { %11886 = vrcp.f32 %v4516_v24  ;;  %v4505_v50 = vmul.f32 1.442695, %v4478_v33 }
 0x57d   : > { %11888 = vpow2.f32 %v4503_v62  ;;  %v4501_v38 = vmul.f32 1.442695, %v4476_v14  ;;  %v10655_v63 = vpop.f32.mrb[28].mxu1 }
 0x57e   : > { %v11873_v30 = vpop.eup %11872  ;;  %11890 = vpow2.f32 %v4499_v43  ;;  %v13784_v28 = vadd.f32 %v10655_v63, %v13733_v58  ;;  %v4413_v27 = vpop.f32.mrb[29].mxu1 }
 0x57f   : > { %v11875_v60 = vpop.eup %11874  ;;  %v4521_v22 = vadd.f32 1.0, %v11873_v30  ;;  %11892 = vpow2.f32 %v4505_v50  ;;  %v13787_v47 = vadd.f32 %v13733_v58, %v4413_v27  ;;  %v10656_v25 = vpop.f32.mrb[30].mxu1 }
 0x580   : > { %v11877_v26 = vpop.eup %11876  ;;  %v4519_v41 = vadd.f32 1.0, %v11875_v60  ;;  %11894 = vpow2.f32 %v4501_v38  ;;  %v4481_v32 = vsub.f32 0.0, %v13784_v28  ;;  %v13791_v57 = vadd.f32 %v10656_v25, %v13733_v58  ;;  %v4416_v59 = vpop.f32.mrb[31].mxu1 }
 0x581   : > { %v11879_v2 = vpop.eup %11878  ;;  %11896 = vrcp.f32 %v4521_v22  ;;  %v4522_v8 = vadd.f32 1.0, %v11877_v26  ;;  %v4479_v37 = vsub.f32 0.0, %v13787_v47  ;;  %v13795_v56 = vadd.f32 %v13733_v58, %v4416_v59 }
 0x582   : > { %11898 = vrcp.f32 %v4519_v41  ;;  %v4520_v17 = vadd.f32 1.0, %v11879_v2  ;;  %v4511_v21 = vmul.f32 1.442695, %v4481_v32  ;;  %v4482_v31 = vsub.f32 0.0, %v13791_v57 }
 0x583   : > { %v11881_v54 = vpop.eup %11880  ;;  %11900 = vrcp.f32 %v4522_v8  ;;  %v4507_v53 = vmul.f32 1.442695, %v4479_v37  ;;  %v4480_v23 = vsub.f32 0.0, %v13795_v56 }
 0x584   : > { %v11883_v35 = vpop.eup %11882  ;;  %v13800_v16 = vmul.f32 %v11881_v54, %v13736_v61  ;;  %11902 = vrcp.f32 %v4520_v17  ;;  %v4513_v11 = vmul.f32 1.442695, %v4482_v31 }
 0x585   : > { %v11885_v52 = vpop.eup %11884  ;;  %v13803_v58 = vmul.f32 %v11883_v35, %v13739_v29  ;;  %11904 = vpow2.f32 %v4511_v21  ;;  %v4509_v24 = vmul.f32 1.442695, %v4480_v23 }
 0x586   : > { %v11887_v62 = vpop.eup %11886  ;;  %v4582_v33 = vrot.slane %v13800_v16, 6  ;;  %v4650_v43 = vrot.slane %v13800_v16, 7  ;;  %v13808_v14 = vmul.f32 %v11885_v52, %v13743_v12  ;;  %11906 = vpow2.f32 %v4507_v53 }
 0x587   : > { %v11889_v50 = vpop.eup %11888  ;;  %v13811_v61 = vmul.f32 %v11887_v62, %v13747_v36  ;;  %11908 = vpow2.f32 %v4513_v11  ;;  %v4647_v38 = vrot.slane %v13803_v58, 7  ;;  %v4579_v29 = vrot.slane %v13803_v58, 6 }
 0x588   : > { %v11891_v63 = vpop.eup %11890  ;;  %v4584_v30 = vrot.slane %v13808_v14, 6  ;;  %v4652_v27 = vrot.slane %v13808_v14, 7  ;;  %v4525_v36 = vadd.f32 1.0, %v11889_v50  ;;  %11910 = vpow2.f32 %v4509_v24 }
 0x589   : > { %v11893_v22 = vpop.eup %11892  ;;  %v4523_v26 = vadd.f32 1.0, %v11891_v63  ;;  %v4648_v59 = vrot.slane %v13811_v61, 7  ;;  %v4694_v2 = vsel %vm835_vm2, 0.0, %v4647_v38  ;;  %v4580_v21 = vrot.slane %v13811_v61, 6 }
 0x58a   : > { %v11895_v41 = vpop.eup %11894  ;;  %v4526_v32 = vadd.f32 1.0, %v11893_v22  ;;  %v4653_v8 = vsel %vm835_vm2, %v4650_v43, %v4652_v27  ;;  %11912 = vrcp.f32 %v4525_v36  ;;  %v13826_v31 = vsel %vm766_vm4, 0.0, %v4579_v29 }
 0x58b   : > { %v11897_v37 = vpop.eup %11896  ;;  %v4524_v17 = vadd.f32 1.0, %v11895_v41  ;;  %11914 = vrcp.f32 %v4523_v26  ;;  %v4649_v23 = vsel %vm835_vm2, %v4647_v38, %v4648_v59  ;;  %v4651_v35 = vsel %vm835_vm2, %v4648_v59, %v4650_v43 }
 0x58c   : > { %v11899_v54 = vpop.eup %11898  ;;  %v13829_v53 = vmul.f32 %v11897_v37, %v13752_v7  ;;  %11916 = vrcp.f32 %v4526_v32  ;;  %v4695_v24 = vpack.c.bf16 %v4649_v23, %v4694_v2  ;;  %v4696_v62 = vpack.c.bf16 %v4653_v8, %v4651_v35  ;;  %v11542_v7 = vld [vmem:[%s16161_s9 + $0x8] sm:$0xff]  }
 0x58d   : > { %v11901_v11 = vpop.eup %11900  ;;  %v13834_v52 = vmul.f32 %v11899_v54, %v13755_v19  ;;  %11918 = vrcp.f32 %v4524_v17  ;;  %v13844_v43 = vsel %vm766_vm4, %v4579_v29, %v4580_v21  ;;  %v13858_v29 = vsel %vm766_vm4, %v4580_v21, %v4582_v33 }
 0x58e   : > { %v11903_v50 = vpop.eup %11902  ;;  %v13837_v63 = vmul.f32 %v11901_v11, %v13759_v44  ;;  %v4658_v38 = vrot.slane %v13829_v53, 7  ;;  %10669 = vmatprep.mubr.msk.bf16.mxu0 %vm941_vm3, %v4695_v24  ;;  %v13870_v54 = vsel %vm766_vm4, %v4582_v33, %v4584_v30  ;;  %v16331_v5 = vrot.slane %v13808_v14, 2 }
 0x58f   : > { %v11905_v22 = vpop.eup %11904  ;;  %v13849_v26 = vmul.f32 %v11903_v50, %v13763_v42  ;;  %v4654_v44 = vrot.slane %v13834_v52, 7  ;;  %10670 = vmatmul.mubr.msk.bf16.vlgmr.msra.gmra.mrb[32].mxu0 %vm941_vm3, %v4696_v62  ;;  %v4586_v33 = vrot.slane %v13834_v52, 6 }
 0x590   : > { %v11907_v41 = vpop.eup %11906  ;;  %v4529_v32 = vadd.f32 1.0, %v11905_v22  ;;  %v4660_v59 = vrot.slane %v13837_v63, 7  ;;  %10686 = vmatpush3.bf16.msra.mxu0 %v13727_v51  ;;  %v11543_v51 = vld [vmem:[%s16161_s9 + $0x10] sm:$0xff]   ;;  %v16332_v46 = vmov %v16331_v5 }
 0x591   : > { %v11909_v42 = vpop.eup %11908  ;;  %v4527_v8 = vadd.f32 1.0, %v11907_v41  ;;  %v4655_v37 = vsel %vm835_vm2, %v4652_v27, %v4654_v44  ;;  %v4656_v17 = vrot.slane %v13849_v26, 7  ;;  %10687 = vmatprep.subr.bf16.mxu0 %v11542_v7  ;;  %v5475_v3 = vrot.slane %v13849_v26, 2 }
 0x592   : > { %11920 = vrcp.f32 %v4529_v32  ;;  %v4530_v21 = vadd.f32 1.0, %v11909_v42  ;;  %v4661_v23 = vsel %vm835_vm2, %v4658_v38, %v4660_v59  ;;  %v11911_v35 = vpop.eup %11910  ;;  %v13884_v32 = vsel %vm766_vm4, %v4584_v30, %v4586_v33 }
 0x593   : > { %11922 = vrcp.f32 %v4527_v8  ;;  %v4657_v11 = vsel %vm835_vm2, %v4654_v44, %v4656_v17  ;;  %v4659_v24 = vsel %vm835_vm2, %v4656_v17, %v4658_v38  ;;  %v4528_v62 = vadd.f32 1.0, %v11911_v35 }
 0x594   : > { %11924 = vrcp.f32 %v4530_v21  ;;  %v4697_v50 = vpack.c.bf16 %v4657_v11, %v4655_v37  ;;  %v4698_v22 = vpack.c.bf16 %v4661_v23, %v4659_v24  ;;  %v11913_v41 = vpop.eup %11912  ;;  %10688 = vmatpush3.bf16.msra.mxu0 %v11542_v7  ;;  %v4588_v42 = vrot.slane %v13849_v26, 6  ;;  %v11544_v7 = vld [vmem:[%s16161_s9 + $0x18] sm:$0xff]  }
 0x595   : > { %v4590_v8 = vrot.slane %v13829_v53, 6  ;;  %v4592_v44 = vrot.slane %v13837_v63, 6  ;;  %v11915_v38 = vpop.eup %11914  ;;  %v13890_v17 = vmul.f32 %v11913_v41, %v13768_v10  ;;  %11926 = vrcp.f32 %v4528_v62  ;;  %10689 = vmatprep.subr.bf16.mxu0 %v11543_v51 }
 0x596   : > { %10673 = vmatprep.mubr.msk.bf16.mxu0 %vm941_vm3, %v4697_v50  ;;  %v11917_v21 = vpop.eup %11916  ;;  %v13901_v23 = vmul.f32 %v11915_v38, %v13771_v13  ;;  %v13904_v10 = vsel %vm766_vm4, %v4586_v33, %v4588_v42  ;;  %v11545_v38 = vld [vmem:[%s16161_s9 + $0x20] sm:$0xff]  }
 0x597   : > { %v13907_v35 = vsel %vm766_vm4, %v4588_v42, %v4590_v8  ;;  %v13910_v11 = vsel %vm766_vm4, %v4590_v8, %v4592_v44  ;;  %v11919_v24 = vpop.eup %11918  ;;  %v13913_v62 = vmul.f32 %v11917_v21, %v13775_v45  ;;  %10674 = vmatmul.mubr.msk.bf16.gmra.mrb[36].mxu0 %vm941_vm3, %v4698_v22  ;;  %v4666_v50 = vrot.slane %v13890_v17, 7 }
 0x598   : > { %v13922_v41 = vmul.f32 %v11919_v24, %v13779_v4  ;;  %10690 = vmatpush3.bf16.msra.mxu0 %v11543_v51  ;;  %v4662_v42 = vrot.slane %v13901_v23, 7  ;;  %v4594_v8 = vrot.slane %v13901_v23, 6  ;;  %v4598_v45 = vrot.slane %v13890_v17, 6 }
 0x599   : > { %10691 = vmatprep.subr.bf16.mxu0 %v11544_v7  ;;  %v4668_v22 = vrot.slane %v13913_v62, 7  ;;  %v4600_v21 = vrot.slane %v13913_v62, 6  ;;  %v5224_v51 = vrot.slane %v13803_v58, 1 }
 0x59a   : > { %v4663_v24 = vsel %vm835_vm2, %v4660_v59, %v4662_v42  ;;  %v4664_v37 = vrot.slane %v13922_v41, 7  ;;  %v13939_v60 = vsel %vm766_vm4, %v4592_v44, %v4594_v8  ;;  %v4596_v30 = vrot.slane %v13922_v41, 6 }
 0x59b   : > { %v4669_v13 = vsel %vm835_vm2, %v4666_v50, %v4668_v22  ;;  %v13944_v27 = vsel %vm766_vm4, %v4598_v45, %v4600_v21 }
 0x59c   : > { %v11921_v33 = vpop.eup %11920  ;;  %v4665_v44 = vsel %vm835_vm2, %v4662_v42, %v4664_v37  ;;  %v4667_v36 = vsel %vm835_vm2, %v4664_v37, %v4666_v50  ;;  %10692 = vmatpush3.bf16.msra.mxu0 %v11544_v7  ;;  %v13955_v2 = vsel %vm766_vm4, %v4594_v8, %v4596_v30  ;;  %v11546_v7 = vld [vmem:[%s16161_s9 + $0x28] sm:$0xff]   ;;  %v13970_v37 = vsel %vm766_vm4, %v4596_v30, %v4598_v45 }
 0x59d   : > { %v11923_v25 = vpop.eup %11922  ;;  %v13950_v59 = vmul.f32 %v11921_v33, %v13784_v28  ;;  %v4699_v49 = vpack.c.bf16 %v4665_v44, %v4663_v24  ;;  %v4700_v4 = vpack.c.bf16 %v4669_v13, %v4667_v36  ;;  %10693 = vmatprep.subr.bf16.mxu0 %v11545_v38  ;;  %v5225_v50 = vrot.slane %v13811_v61, 1 }
 0x59e   : > { %v11925_v19 = vpop.eup %11924  ;;  %v13958_v12 = vmul.f32 %v11923_v25, %v13787_v47 }
 0x59f   : > { %v13963_v28 = vmul.f32 %v11925_v19, %v13791_v57  ;;  %v4674_v33 = vrot.slane %v13950_v59, 7  ;;  %v4606_v47 = vrot.slane %v13950_v59, 6  ;;  %v11927_v25 = vpop.eup %11926  ;;  %10677 = vmatprep.mubr.msk.bf16.mxu0 %vm941_vm3, %v4699_v49  ;;  %v13992_v24 = vsel %vm1414_vm5, %v5224_v51, %v5225_v50 }
 0x5a0   : > { %v4670_v36 = vrot.slane %v13958_v12, 7  ;;  %v4602_v19 = vrot.slane %v13958_v12, 6  ;;  %v13980_v13 = vmul.f32 %v11927_v25, %v13795_v56  ;;  %10678 = vmatmul.mubr.msk.bf16.gmra.mrb[40].mxu0 %vm941_vm3, %v4700_v4  ;;  %v5227_v56 = vrot.slane %v13800_v16, 1  ;;  %v14000_v25 = vld [vmem:[%s16161_s9 + $0x60] sm:$0xff]  }
 0x5a1   : > { %v4676_v30 = vrot.slane %v13963_v28, 7  ;;  %v4608_v42 = vrot.slane %v13963_v28, 6  ;;  %10694 = vmatpush3.bf16.msra.mxu0 %v11545_v38  ;;  %v16325_v49 = vrot.slane %v13808_v14, 1  ;;  %v16326_v57 = vrot.slane %v13834_v52, 1 }
 0x5a2   : > { %v4671_v8 = vsel %vm835_vm2, %v4668_v22, %v4670_v36  ;;  %v13989_v45 = vsel %vm766_vm4, %v4600_v21, %v4602_v19  ;;  %v4672_v4 = vrot.slane %v13980_v13, 7  ;;  %10695 = vmatprep.subr.bf16.mxu0 %v11546_v7  ;;  %v4604_v22 = vrot.slane %v13980_v13, 6 }
 0x5a3   : > { %v4677_v44 = vsel %vm835_vm2, %v4674_v33, %v4676_v30  ;;  %v14004_v38 = vsel %vm766_vm4, %v4606_v47, %v4608_v42  ;;  %v14009_v51 = vsel %vm1414_vm5, %v5225_v50, %v5227_v56  ;;  %v14014_v30 = vsel %vm1414_vm5, %v5227_v56, %v16325_v49 }
 0x5a4   : > { %v16327_v6 = vmov %v16325_v49  ;;  %v4673_v42 = vsel %vm835_vm2, %v4670_v36, %v4672_v4  ;;  %v4675_v40 = vsel %vm835_vm2, %v4672_v4, %v4674_v33  ;;  %v14026_v21 = vsel %vm766_vm4, %v4602_v19, %v4604_v22 }
 0x5a5   : > { %v14021_v9 = vsel %vm1414_vm5, %v16327_v6, %v16326_v57  ;;  %v14029_v50 = vsel %vm766_vm4, %v4604_v22, %v4606_v47  ;;  %v4701_v0 = vpack.c.bf16 %v4673_v42, %v4671_v8  ;;  %v4702_v49 = vpack.c.bf16 %v4677_v44, %v4675_v40  ;;  %10696 = vmatpush3.bf16.msra.mxu0 %v11546_v7 }
 0x5a6   : > { %10713 = vmatprep.subr.bf16.mxu0 %v14000_v25  ;;  %v5233_v47 = vrot.slane %v13849_v26, 1  ;;  %v5235_v57 = vrot.slane %v13829_v53, 1  ;;  %v5237_v40 = vrot.slane %v13837_v63, 1  ;;  %v5239_v7 = vrot.slane %v13901_v23, 1 }
 0x5a7   : > { %10681 = vmatprep.mubr.msk.bf16.mxu0 %vm941_vm3, %v4701_v0  ;;  %v5241_v19 = vrot.slane %v13922_v41, 1  ;;  %v5243_v8 = vrot.slane %v13890_v17, 1  ;;  %v16328_v4 = vrot.slane %v13834_v52, 1  ;;  %v5245_v0 = vrot.slane %v13913_v62, 1 }
 0x5a8   : > { %10682 = vmatmul.mubr.msk.bf16.gmra.mrb[44].mxu0 %vm941_vm3, %v4702_v49  ;;  %v14054_v22 = vsel %vm1414_vm5, %v5233_v47, %v5235_v57  ;;  %v5247_v42 = vrot.slane %v13958_v12, 1  ;;  %v16329_v36 = vpack.c.bf16 %v13844_v43, %v13826_v31  ;;  %v14065_v33 = vsel %vm1414_vm5, %v5235_v57, %v5237_v40 }
 0x5a9   : > { %v14051_v44 = vsel %vm1414_vm5, %v16328_v4, %v5233_v47  ;;  %v14068_v4 = vsel %vm1414_vm5, %v5237_v40, %v5239_v7  ;;  %v14071_v47 = vsel %vm1414_vm5, %v5239_v7, %v5241_v19  ;;  %v14076_v56 = vsel %vm1414_vm5, %v5241_v19, %v5243_v8 }
 0x5aa   : > { %10697 = vmatprep.mubr.msk.bf16.mxu0 %vm941_vm3, %v16329_v36  ;;  %v14079_v31 = vsel %vm1414_vm5, %v5243_v8, %v5245_v0  ;;  %v14082_v43 = vsel %vm1414_vm5, %v5245_v0, %v5247_v42  ;;  %v5249_v40 = vrot.slane %v13980_v13, 1  ;;  %v5251_v7 = vrot.slane %v13950_v59, 1 }
 0x5ab   : > { %v5253_v6 = vrot.slane %v13963_v28, 1  ;;  %v5466_v19 = vrot.slane %v13803_v58, 2  ;;  %v5467_v8 = vrot.slane %v13811_v61, 2  ;;  %v5469_v49 = vrot.slane %v13800_v16, 2 }
 0x5ac   : > { %v14095_v0 = vsel %vm1414_vm5, %v5247_v42, %v5249_v40  ;;  %v14098_v36 = vsel %vm1414_vm5, %v5249_v40, %v5251_v7  ;;  %v16330_v57 = vrot.slane %v13834_v52, 2 }
 0x5ad   : > { %v14114_v48 = vsel %vm1414_vm5, %v5251_v7, %v5253_v6  ;;  %v14117_v40 = vsel %vm1414_vm5, %v5253_v6, 0.0  ;;  %v14120_v39 = vsel %vm1657_vm6, %v5466_v19, %v5467_v8  ;;  %v14130_v20 = vsel %vm1657_vm6, %v5469_v49, %v16332_v46 }
 0x5ae   : > { %v14105_v34 = vsel %vm1657_vm6, %v16331_v5, %v16330_v57  ;;  %v14125_v57 = vsel %vm1657_vm6, %v5467_v8, %v5469_v49  ;;  %16333 = vst [vmem:[#allocation16_spill] sm:$0xff] %v14130_v20  ;;  %v16334_v7 = vrot.slane %v13834_v52, 2  ;;  %v16335_v6 = vpack.c.bf16 %v13870_v54, %v13858_v29  ;;  %v11549_v8 = vld [vmem:[%s16161_s9 + $0x70] sm:$0xff]  }
 0x5af   : > { %v5477_v5 = vrot.slane %v13829_v53, 2  ;;  %v5479_v46 = vrot.slane %v13837_v63, 2  ;;  %v16336_v49 = vpack.c.bf16 %v13904_v10, %v13884_v32  ;;  %v5481_v29 = vrot.slane %v13901_v23, 2 }
 0x5b0   : > { %v14135_v42 = vsel %vm1657_vm6, %v16334_v7, %v5475_v3  ;;  %10698 = vmatmul.mubr.msk.bf16.vlgmr.msra.gmra.mrb[32].mxu0 %vm941_vm3, %v16335_v6  ;;  %v5483_v54 = vrot.slane %v13922_v41, 2  ;;  %v5485_v7 = vrot.slane %v13890_v17, 2  ;;  %v5487_v6 = vrot.slane %v13913_v62, 2 }
 0x5b1   : > { %10714 = vmatpush3.bf16.msra.mxu0 %v14000_v25  ;;  %10701 = vmatprep.mubr.msk.bf16.mxu0 %vm941_vm3, %v16336_v49  ;;  %v14160_v25 = vsel %vm1657_vm6, %v5475_v3, %v5477_v5  ;;  %v14163_v32 = vsel %vm1657_vm6, %v5477_v5, %v5479_v46  ;;  %v5489_v10 = vrot.slane %v13958_v12, 2  ;;  %v5491_v49 = vrot.slane %v13980_v13, 2 }
 0x5b2   : > { %10715 = vmatprep.subr.bf16.mxu0 %v11548_v55  ;;  %v14170_v18 = vsel %vm1657_vm6, %v5479_v46, %v5481_v29  ;;  %v14173_v15 = vsel %vm1657_vm6, %v5481_v29, %v5483_v54  ;;  %v14176_v1 = vsel %vm1657_vm6, %v5483_v54, %v5485_v7  ;;  %v14183_v20 = vsel %vm1657_vm6, %v5485_v7, %v5487_v6  ;;  %v11550_v7 = vld [vmem:[%s16161_s9 + $0x78] sm:$0xff]  }
 0x5b3   : > { %16337 = vst [vmem:[#allocation17_spill] sm:$0xff] %v14183_v20  ;;  %v14186_v19 = vsel %vm1657_vm6, %v5487_v6, %v5489_v10  ;;  %v14191_v29 = vsel %vm1657_vm6, %v5489_v10, %v5491_v49  ;;  %v5493_v54 = vrot.slane %v13950_v59, 2  ;;  %v5495_v3 = vrot.slane %v13963_v28, 2 }
 0x5b4   : > { %v16338_v10 = vpack.c.bf16 %v13910_v11, %v13907_v35  ;;  %v11552_v35 = vld [vmem:[%s16161_s9 + $0x88] sm:$0xff]   ;;  %v16340_v11 = vpack.c.bf16 %v13944_v27, %v13970_v37  ;;  %v16343_v27 = vpack.c.bf16 %v13811_v61, %v13803_v58  ;;  %v11554_v37 = vld [vmem:[%s16161_s9 + $0x98] sm:$0xff]   ;;  %v11555_v58 = vld [vmem:[%s16161_s9 + $0xa0] sm:$0xff]  }
 0x5b5   : > { %10716 = vmatpush3.bf16.msra.mxu0 %v11548_v55  ;;  %v14199_v5 = vsel %vm1657_vm6, %v5491_v49, %v5493_v54  ;;  %v14202_v55 = vsel %vm1657_vm6, %v5493_v54, %v5495_v3  ;;  %v14205_v6 = vsel %vm1657_vm6, %v5495_v3, 0.0  ;;  %v16339_v49 = vpack.c.bf16 %v13955_v2, %v13939_v60  ;;  %v11551_v3 = vld [vmem:[%s16161_s9 + $0x80] sm:$0xff]   ;;  %v11553_v2 = vld [vmem:[%s16161_s9 + $0x90] sm:$0xff]   ;;  %v11556_v61 = vld [vmem:[%s16161_s9 + $0xa8] sm:$0xff]  }
 0x5b6   : > { %10717 = vmatprep.subr.bf16.mxu0 %v11549_v8  ;;  %v5520_v46 = vpack.c.bf16 %v14199_v5, %v14191_v29  ;;  %v5521_v20 = vpack.c.bf16 %v14205_v6, %v14202_v55  ;;  %v16341_v60 = vpack.c.bf16 %v14026_v21, %v13989_v45  ;;  %v16344_v45 = vpack.c.bf16 %v13808_v14, %v13800_v16  ;;  %v11563_v21 = vld [vmem:[%s16161_s9 + $0xe0] sm:$0xff]  }
 0x5b7   : > { %v16346_v16 = vpack.c.bf16 %v13837_v63, %v13829_v53  ;;  %v16347_v14 = vpack.c.bf16 %v13922_v41, %v13901_v23  ;;  %v16348_v53 = vpack.c.bf16 %v13913_v62, %v13890_v17  ;;  %v16349_v63 = vpack.c.bf16 %v13980_v13, %v13958_v12  ;;  %v11559_v23 = vld [vmem:[%s16161_s9 + $0xc0] sm:$0xff]   ;;  %v11560_v12 = vld [vmem:[%s16161_s9 + $0xc8] sm:$0xff]   ;;  %v11562_v13 = vld [vmem:[%s16161_s9 + $0xd8] sm:$0xff]  }
 0x5b8   : > { %10702 = vmatmul.mubr.msk.bf16.gmra.mrb[36].mxu0 %vm941_vm3, %v16338_v10  ;;  %v16350_v41 = vpack.c.bf16 %v13963_v28, %v13950_v59  ;;  %v16351_v17 = vpack.c.bf16 %v14009_v51, %v13992_v24  ;;  %v16352_v62 = vpack.c.bf16 %v14021_v9, %v14014_v30  ;;  %v16353_v59 = vpack.c.bf16 %v14054_v22, %v14051_v44  ;;  %v11561_v28 = vld [vmem:[%s16161_s9 + $0xd0] sm:$0xff]   ;;  %v11564_v51 = vld [vmem:[%s16161_s9 + $0xe8] sm:$0xff]   ;;  %v14412_v5 = vld [vmem:[%s16162_s10] ss:$0 sm:$0xff] }
 0x5b9   : > { %10705 = vmatprep.mubr.msk.bf16.mxu0 %vm941_vm3, %v16339_v49  ;;  %10718 = vmatpush3.bf16.msra.mxu0 %v11549_v8  ;;  %v16342_v8 = vpack.c.bf16 %v14004_v38, %v14029_v50  ;;  %v16345_v38 = vpack.c.bf16 %v13849_v26, %v13834_v52  ;;  %v11557_v52 = vld [vmem:[%s16161_s9 + $0xb0] sm:$0xff]   ;;  %v11558_v26 = vld [vmem:[%s16161_s9 + $0xb8] sm:$0xff]   ;;  %v16354_v9 = vpack.c.bf16 %v14068_v4, %v14065_v33  ;;  %v16367_v6 = vld [vmem:[#allocation18_spill] sm:$0xff] }
 0x5ba   : > { %10719 = vmatprep.subr.bf16.mxu0 %v11550_v7  ;;  %v16355_v24 = vpack.c.bf16 %v14076_v56, %v14071_v47  ;;  %v16356_v30 = vpack.c.bf16 %v14082_v43, %v14079_v31  ;;  %v16357_v50 = vpack.c.bf16 %v14098_v36, %v14095_v0  ;;  %v16358_v56 = vpack.c.bf16 %v14117_v40, %v14114_v48  ;;  %v16360_v44 = vld [vmem:[#allocation16_spill] sm:$0xff]  ;;  %v16365_v47 = vld [vmem:[#allocation17_spill] sm:$0xff]  ;;  %v11573_v43 = vld [vmem:[%s16163_s11 + $0x84] ss:$8 sps:$4 sm:$0xff]  }
 0x5bb   : > { %v16359_v33 = vpack.c.bf16 %v14125_v57, %v14120_v39  ;;  %v16361_v22 = vpack.c.bf16 %v14105_v34, %v16360_v44  ;;  %v16362_v4 = vpack.c.bf16 %v14160_v25, %v14135_v42  ;;  %v16363_v48 = vpack.c.bf16 %v14170_v18, %v14163_v32  ;;  %v11568_v18 = vld [vmem:[%s16163_s11 + $0x70] ss:$8 sps:$4 sm:$0xff]   ;;  %v11570_v31 = vld [vmem:[%s16163_s11 + $0x74] ss:$8 sps:$4 sm:$0xff]   ;;  %v11579_v42 = vld [vmem:[%s16163_s11 + $0xa4] ss:$8 sps:$4 sm:$0xff]  }
 0x5bc   : > { %v16364_v39 = vpack.c.bf16 %v14176_v1, %v14173_v15  ;;  %v16366_v34 = vpack.c.bf16 %v14186_v19, %v16365_v47  ;;  %v11565_v1 = vld [vmem:[%s16163_s11 + $0x60] ss:$8 sps:$4 sm:$0xff]   ;;  %v11567_v15 = vld [vmem:[%s16163_s11 + $0x64] ss:$8 sps:$4 sm:$0xff]   ;;  %v11576_v36 = vld [vmem:[%s16163_s11 + $0x94] ss:$8 sps:$4 sm:$0xff]  }
 0x5bd   : > { %10720 = vmatpush3.bf16.msra.mxu0 %v11550_v7  ;;  %6080 = vmatprep.subr.bf16.mxu1 %v11567_v15  ;;  %v11574_v0 = vld [vmem:[%s16163_s11 + $0x90] ss:$8 sps:$4 sm:$0xff]   ;;  %v11577_v40 = vld [vmem:[%s16163_s11 + $0xa0] ss:$8 sps:$4 sm:$0xff]   ;;  %v11582_v57 = vld [vmem:[%s16163_s11 + $0xb4] ss:$8 sps:$4 sm:$0xff]  }
 0x5be   : > { %10721 = vmatprep.subr.bf16.mxu0 %v11551_v3  ;;  %6081 = vmatpush1.bf16.msra.mxu1 %v11565_v1  ;;  %v11580_v19 = vld [vmem:[%s16163_s11 + $0xb0] ss:$8 sps:$4 sm:$0xff]   ;;  %v11585_v25 = vld [vmem:[%s16163_s11 + $0x4] ss:$8 sps:$4 sm:$0xff]   ;;  %v16204_v32 = vmov 0  }
 0x5bf   : > { %6082 = vmatprep.subr.bf16.mxu1 %v11570_v31  ;;  %6112 = vmatprep.mubr.bf16.mxu1 %v16204_v32 }
 0x5c0   : > { %10706 = vmatmul.mubr.msk.bf16.gmra.mrb[40].mxu0 %vm941_vm3, %v16340_v11 }
 0x5c1   : > { %10709 = vmatprep.mubr.msk.bf16.mxu0 %vm941_vm3, %v16341_v60  ;;  %10722 = vmatpush3.bf16.msra.mxu0 %v11551_v3 }
 0x5c2   : > { %10723 = vmatprep.subr.bf16.mxu0 %v11552_v35  ;;  %6083 = vmatpush1.bf16.msra.mxu1 %v11568_v18 }
 0x5c3   : > { %6084 = vmatprep.subr.bf16.mxu1 %v11573_v43  ;;  %v16375_v43 = vld [vmem:[#allocation8_spill] sm:$0xff] }
 0x5c5   : > { %10724 = vmatpush3.bf16.msra.mxu0 %v11552_v35  ;;  %v16368_v35 = vld [vmem:[#allocation19_spill] sm:$0xff] }
 0x5c6   : > { %10741 = vmatprep.subr.bf16.mxu0 %v11553_v2 }
 0x5c8   : > { %10710 = vmatmul.mubr.msk.bf16.gmra.mrb[44].mxu0 %vm941_vm3, %v16342_v8  ;;  %v16369_v8 = vld [vmem:[#allocation2_spill] sm:$0xff] }
 0x5c9   : > { %10725 = vmatprep.mubr.msk.bf16.mxu0 %vm941_vm3, %v16343_v27 }
 0x5d0   : > { %10726 = vmatmul.mubr.msk.bf16.vlgmr.msra.gmra.mrb[32].mxu0 %vm941_vm3, %v16344_v45  ;;  %v16370_v45 = vld [vmem:[#allocation3_spill] sm:$0xff] }
 0x5d1   : > { %10742 = vmatpush3.bf16.msra.mxu0 %v11553_v2  ;;  %10729 = vmatprep.mubr.msk.bf16.mxu0 %vm941_vm3, %v16345_v38 }
 0x5d2   : > { %10743 = vmatprep.subr.bf16.mxu0 %v11554_v37 }
 0x5d5   : > { %10744 = vmatpush3.bf16.msra.mxu0 %v11554_v37 }
 0x5d6   : > { %10745 = vmatprep.subr.bf16.mxu0 %v11555_v58 }
 0x5d8   : > { %10730 = vmatmul.mubr.msk.bf16.gmra.mrb[36].mxu0 %vm941_vm3, %v16346_v16 }
 0x5d9   : > { %10733 = vmatprep.mubr.msk.bf16.mxu0 %vm941_vm3, %v16347_v14  ;;  %10746 = vmatpush3.bf16.msra.mxu0 %v11555_v58 }
 0x5da   : > { %10747 = vmatprep.subr.bf16.mxu0 %v11556_v61 }
 0x5dd   : > { %10748 = vmatpush3.bf16.msra.mxu0 %v11556_v61 }
 0x5de   : > { %10749 = vmatprep.subr.bf16.mxu0 %v11557_v52 }
 0x5e0   : > { %10734 = vmatmul.mubr.msk.bf16.gmra.mrb[40].mxu0 %vm941_vm3, %v16348_v53 }
 0x5e1   : > { %10737 = vmatprep.mubr.msk.bf16.mxu0 %vm941_vm3, %v16349_v63  ;;  %10750 = vmatpush3.bf16.msra.mxu0 %v11557_v52 }
 0x5e2   : > { %10751 = vmatprep.subr.bf16.mxu0 %v11558_v26 }
 0x5e5   : > { %10752 = vmatpush3.bf16.msra.mxu0 %v11558_v26 }
 0x5e6   : > { %10769 = vmatprep.subr.bf16.mxu0 %v11559_v23 }
 0x5e8   : > { %10738 = vmatmul.mubr.msk.bf16.gmra.mrb[44].mxu0 %vm941_vm3, %v16350_v41 }
 0x5e9   : > { %10753 = vmatprep.mubr.msk.bf16.mxu0 %vm941_vm3, %v16351_v17 }
 0x5f0   : > { %10754 = vmatmul.mubr.msk.bf16.vlgmr.msra.gmra.mrb[32].mxu0 %vm941_vm3, %v16352_v62 }
 0x5f1   : > { %10770 = vmatpush3.bf16.msra.mxu0 %v11559_v23  ;;  %10757 = vmatprep.mubr.msk.bf16.mxu0 %vm941_vm3, %v16353_v59 }
 0x5f2   : > { %10771 = vmatprep.subr.bf16.mxu0 %v11560_v12 }
 0x5f5   : > { %10772 = vmatpush3.bf16.msra.mxu0 %v11560_v12  ;;  %v16371_v12 = vld [vmem:[#allocation4_spill] sm:$0xff] }
 0x5f6   : > { %10773 = vmatprep.subr.bf16.mxu0 %v11561_v28 }
 0x5f8   : > { %10758 = vmatmul.mubr.msk.bf16.gmra.mrb[36].mxu0 %vm941_vm3, %v16354_v9 }
 0x5f9   : > { %10761 = vmatprep.mubr.msk.bf16.mxu0 %vm941_vm3, %v16355_v24  ;;  %10774 = vmatpush3.bf16.msra.mxu0 %v11561_v28 }
 0x5fa   : > { %10775 = vmatprep.subr.bf16.mxu0 %v11562_v13 }
 0x5fd   : > { %10776 = vmatpush3.bf16.msra.mxu0 %v11562_v13  ;;  %v16372_v13 = vld [vmem:[#allocation5_spill] sm:$0xff] }
 0x5fe   : > { %10777 = vmatprep.subr.bf16.mxu0 %v11563_v21 }
 0x600   : > { %10762 = vmatmul.mubr.msk.bf16.gmra.mrb[40].mxu0 %vm941_vm3, %v16356_v30 }
 0x601   : > { %10765 = vmatprep.mubr.msk.bf16.mxu0 %vm941_vm3, %v16357_v50  ;;  %10778 = vmatpush3.bf16.msra.mxu0 %v11563_v21 }
 0x602   : > { %10779 = vmatprep.subr.bf16.mxu0 %v11564_v51 }
 0x605   : > { %10780 = vmatpush3.bf16.msra.mxu0 %v11564_v51  ;;  %v16373_v51 = vld [vmem:[#allocation6_spill] sm:$0xff] }
 0x608   : > { %10766 = vmatmul.mubr.msk.bf16.gmra.mrb[44].mxu0 %vm941_vm3, %v16358_v56  ;;  %v16374_v56 = vld [vmem:[#allocation7_spill] sm:$0xff] }
 0x609   : > { %10781 = vmatprep.mubr.msk.bf16.mxu0 %vm941_vm3, %v16359_v33 }
 0x610   : > { %10782 = vmatmul.mubr.msk.bf16.vlgmr.msra.gmra.mrb[32].mxu0 %vm941_vm3, %v16361_v22 }
 0x611   : > { %10785 = vmatprep.mubr.msk.bf16.mxu0 %vm941_vm3, %v16362_v4 }
 0x618   : > { %10786 = vmatmul.mubr.msk.bf16.gmra.mrb[36].mxu0 %vm941_vm3, %v16363_v48 }
 0x619   : > { %10789 = vmatprep.mubr.msk.bf16.mxu0 %vm941_vm3, %v16364_v39 }
 0x620   : > { %10790 = vmatmul.mubr.msk.bf16.gmra.mrb[40].mxu0 %vm941_vm3, %v16366_v34 }
 0x621   : > { %10793 = vmatprep.mubr.msk.bf16.mxu0 %vm941_vm3, %v5520_v46 }
 0x628   : > { %10794 = vmatmul.mubr.msk.bf16.gmra.mrb[44].mxu0 %vm941_vm3, %v5521_v20  ;;  %v11571_v20 = vld [vmem:[%s16163_s11 + $0x80] ss:$8 sps:$4 sm:$0xff]  }
 0x629   : > { %6085 = vmatpush1.bf16.msra.mxu1 %v11571_v20 }
 0x62a   : > { %6086 = vmatprep.subr.bf16.mxu1 %v11576_v36 }
 0x62d   : > { %6087 = vmatpush1.bf16.msra.mxu1 %v11574_v0 }
 0x62e   : > { %6088 = vmatprep.subr.bf16.mxu1 %v11579_v42 }
 0x631   : > { %6089 = vmatpush1.bf16.msra.mxu1 %v11577_v40 }
 0x632   : > { %6090 = vmatprep.subr.bf16.mxu1 %v11582_v57 }
 0x635   : > { %6091 = vmatpush1.bf16.msra.mxu1 %v11580_v19  ;;  %v16376_v19 = vld [vmem:[#allocation9_spill] sm:$0xff] }
 0x636   : > { %6277 = vmatprep.subr.bf16.mxu1 %v11585_v25 }
 0x6e3   : > { %v10783_v46 = vpop.f32.mrb[32].mxu0 }
 0x6e4   : > { %v5717_v29 = vadd.f32 %v10783_v46, %v14412_v5  ;;  %v5629_v54 = vpop.f32.mrb[33].mxu0 }
 0x6e5   : > { %v5715_v7 = vadd.f32 %v14412_v5, %v5629_v54  ;;  %v10784_v55 = vpop.f32.mrb[34].mxu0 }
 0x6e6   : > { %v14417_v10 = vadd.f32 %v5717_v29, %v16367_v6  ;;  %v5718_v49 = vadd.f32 %v10784_v55, %v14412_v5  ;;  %v5632_v3 = vpop.f32.mrb[35].mxu0  ;;  %v16377_v55 = vld [vmem:[#allocation10_spill] sm:$0xff] }
 0x6e7   : > { %v14421_v11 = vadd.f32 %v5715_v7, %v16368_v35  ;;  %v5716_v60 = vadd.f32 %v14412_v5, %v5632_v3 }
 0x6e8   : > { %v5749_v2 = vsub.f32 0.0, %v14417_v10  ;;  %v14426_v27 = vadd.f32 %v5718_v49, %v16369_v8 }
 0x6e9   : > { %v5747_v37 = vsub.f32 0.0, %v14421_v11  ;;  %v14430_v38 = vadd.f32 %v5716_v60, %v16370_v45  ;;  %v16378_v60 = vld [vmem:[#allocation11_spill] sm:$0xff] }
 0x6ea   : > { %v5767_v58 = vmul.f32 1.442695, %v5749_v2  ;;  %v5750_v61 = vsub.f32 0.0, %v14426_v27 }
 0x6eb   : > { %v5763_v16 = vmul.f32 1.442695, %v5747_v37  ;;  %v5748_v14 = vsub.f32 0.0, %v14430_v38  ;;  %v10787_v52 = vpop.f32.mrb[36].mxu0 }
 0x6ec   : > { %11928 = vpow2.f32 %v5767_v58  ;;  %v5769_v26 = vmul.f32 1.442695, %v5750_v61  ;;  %v5721_v53 = vadd.f32 %v10787_v52, %v14412_v5  ;;  %v5645_v63 = vpop.f32.mrb[37].mxu0 }
 0x6ed   : > { %11930 = vpow2.f32 %v5763_v16  ;;  %v5765_v23 = vmul.f32 1.442695, %v5748_v14  ;;  %v5719_v41 = vadd.f32 %v14412_v5, %v5645_v63  ;;  %v10788_v17 = vpop.f32.mrb[38].mxu0 }
 0x6ee   : > { %11932 = vpow2.f32 %v5769_v26  ;;  %v14437_v62 = vadd.f32 %v5721_v53, %v16371_v12  ;;  %v5722_v59 = vadd.f32 %v10788_v17, %v14412_v5  ;;  %v5648_v28 = vpop.f32.mrb[39].mxu0  ;;  %v16379_v17 = vld [vmem:[#allocation12_spill] sm:$0xff] }
 0x6ef   : > { %11934 = vpow2.f32 %v5765_v23  ;;  %v14441_v9 = vadd.f32 %v5719_v41, %v16372_v13  ;;  %v5720_v24 = vadd.f32 %v14412_v5, %v5648_v28 }
 0x6f0   : > { %v5753_v21 = vsub.f32 0.0, %v14437_v62  ;;  %v14446_v30 = vadd.f32 %v5722_v59, %v16373_v51 }
 0x6f1   : > { %v5751_v50 = vsub.f32 0.0, %v14441_v9  ;;  %v14450_v33 = vadd.f32 %v5720_v24, %v16374_v56 }
 0x6f2   : > { %v5775_v44 = vmul.f32 1.442695, %v5753_v21  ;;  %v5754_v22 = vsub.f32 0.0, %v14446_v30  ;;  %v16380_v21 = vld [vmem:[#allocation13_spill] sm:$0xff] }
 0x6f3   : > { %v5771_v4 = vmul.f32 1.442695, %v5751_v50  ;;  %v5752_v48 = vsub.f32 0.0, %v14450_v33  ;;  %v10791_v39 = vpop.f32.mrb[40].mxu0 }
 0x6f4   : > { %11936 = vpow2.f32 %v5775_v44  ;;  %v5777_v47 = vmul.f32 1.442695, %v5754_v22  ;;  %v5725_v34 = vadd.f32 %v10791_v39, %v14412_v5  ;;  %v5661_v1 = vpop.f32.mrb[41].mxu0 }
 0x6f5   : > { %11938 = vpow2.f32 %v5771_v4  ;;  %v5773_v15 = vmul.f32 1.442695, %v5752_v48  ;;  %v5723_v18 = vadd.f32 %v14412_v5, %v5661_v1  ;;  %v10792_v31 = vpop.f32.mrb[42].mxu0  ;;  %v16381_v4 = vld [vmem:[#allocation14_spill] sm:$0xff]  ;;  %v16382_v1 = vld [vmem:[#allocation15_spill] sm:$0xff] }
 0x6f6   : > { %v11929_v20 = vpop.eup %11928  ;;  %11940 = vpow2.f32 %v5777_v47  ;;  %v14457_v36 = vadd.f32 %v5725_v34, %v16375_v43  ;;  %v5726_v0 = vadd.f32 %v10792_v31, %v14412_v5  ;;  %v5664_v42 = vpop.f32.mrb[43].mxu0 }
 0x6f7   : > { %v11931_v40 = vpop.eup %11930  ;;  %v5797_v57 = vadd.f32 1.0, %v11929_v20  ;;  %11942 = vpow2.f32 %v5773_v15  ;;  %v14461_v25 = vadd.f32 %v5723_v18, %v16376_v19  ;;  %v5724_v46 = vadd.f32 %v14412_v5, %v5664_v42 }
 0x6f8   : > { %v11933_v29 = vpop.eup %11932  ;;  %v5795_v54 = vadd.f32 1.0, %v11931_v40  ;;  %v5757_v7 = vsub.f32 0.0, %v14457_v36  ;;  %v14466_v6 = vadd.f32 %v5726_v0, %v16377_v55 }
 0x6f9   : > { %v11935_v49 = vpop.eup %11934  ;;  %11944 = vrcp.f32 %v5797_v57  ;;  %v5798_v3 = vadd.f32 1.0, %v11933_v29  ;;  %v5755_v35 = vsub.f32 0.0, %v14461_v25  ;;  %v14470_v2 = vadd.f32 %v5724_v46, %v16378_v60 }
 0x6fa   : > { %11946 = vrcp.f32 %v5795_v54  ;;  %v5796_v8 = vadd.f32 1.0, %v11935_v49  ;;  %v5783_v37 = vmul.f32 1.442695, %v5757_v7  ;;  %v5758_v45 = vsub.f32 0.0, %v14466_v6 }
 0x6fb   : > { %11948 = vrcp.f32 %v5798_v3  ;;  %v5779_v58 = vmul.f32 1.442695, %v5755_v35  ;;  %v5756_v61 = vsub.f32 0.0, %v14470_v2  ;;  %v10795_v16 = vpop.f32.mrb[44].mxu0 }
 0x6fc   : > { %11950 = vrcp.f32 %v5796_v8  ;;  %v5785_v14 = vmul.f32 1.442695, %v5758_v45  ;;  %v5729_v52 = vadd.f32 %v10795_v16, %v14412_v5  ;;  %v5677_v26 = vpop.f32.mrb[45].mxu0 }
 0x6fd   : > { %11952 = vpow2.f32 %v5783_v37  ;;  %v5781_v53 = vmul.f32 1.442695, %v5756_v61  ;;  %v5727_v63 = vadd.f32 %v14412_v5, %v5677_v26  ;;  %v10796_v23 = vpop.f32.mrb[46].mxu0 }
 0x6fe   : > { %v11937_v41 = vpop.eup %11936  ;;  %11954 = vpow2.f32 %v5779_v58  ;;  %v14477_v12 = vadd.f32 %v5729_v52, %v16379_v17  ;;  %v5730_v59 = vadd.f32 %v10796_v23, %v14412_v5  ;;  %v5680_v28 = vpop.f32.mrb[47].mxu0 }
 0x6ff   : > { %v11939_v13 = vpop.eup %11938  ;;  %v5801_v24 = vadd.f32 1.0, %v11937_v41  ;;  %11956 = vpow2.f32 %v5785_v14  ;;  %v14481_v51 = vadd.f32 %v5727_v63, %v16380_v21  ;;  %v5728_v50 = vadd.f32 %v14412_v5, %v5680_v28 }
 0x700   : > { %v11941_v56 = vpop.eup %11940  ;;  %v5799_v44 = vadd.f32 1.0, %v11939_v13  ;;  %11958 = vpow2.f32 %v5781_v53  ;;  %v5761_v22 = vsub.f32 0.0, %v14477_v12  ;;  %v14486_v48 = vadd.f32 %v5730_v59, %v16381_v4 }
 0x701   : > { %v11943_v39 = vpop.eup %11942  ;;  %11960 = vrcp.f32 %v5801_v24  ;;  %v5802_v47 = vadd.f32 1.0, %v11941_v56  ;;  %v5759_v34 = vsub.f32 0.0, %v14481_v51  ;;  %v14490_v15 = vadd.f32 %v5728_v50, %v16382_v1  ;;  %v11583_v24 = vld [vmem:[%s16163_s11] ss:$8 sps:$4 sm:$0xff]  }
 0x702   : > { %11962 = vrcp.f32 %v5799_v44  ;;  %v5800_v18 = vadd.f32 1.0, %v11943_v39  ;;  %v5791_v31 = vmul.f32 1.442695, %v5761_v22  ;;  %v5762_v5 = vsub.f32 0.0, %v14486_v48  ;;  %v11588_v22 = vld [vmem:[%s16163_s11 + $0x14] ss:$8 sps:$4 sm:$0xff]  }
 0x703   : > { %v11945_v20 = vpop.eup %11944  ;;  %11964 = vrcp.f32 %v5802_v47  ;;  %v5760_v43 = vsub.f32 0.0, %v14490_v15  ;;  %v5787_v46 = vmul.f32 1.442695, %v5759_v34 }
 0x704   : > { %v11947_v0 = vpop.eup %11946  ;;  %v14495_v42 = vmul.f32 %v11945_v20, %v14417_v10  ;;  %11966 = vrcp.f32 %v5800_v18  ;;  %v14500_v29 = vmul.f32 1.442695, %v5762_v5 }
 0x705   : > { %v11949_v40 = vpop.eup %11948  ;;  %v14498_v57 = vmul.f32 %v11947_v0, %v14421_v11  ;;  %11968 = vpow2.f32 %v5791_v31  ;;  %v14507_v10 = vmul.f32 1.442695, %v5760_v43  ;;  %v11586_v0 = vld [vmem:[%s16163_s11 + $0x10] ss:$8 sps:$4 sm:$0xff]  }
 0x706   : > { %v11951_v19 = vpop.eup %11950  ;;  %v5930_v7 = vrot.slane %v14495_v42, 7  ;;  %v6643_v35 = vrot.slane %v14495_v42, 1  ;;  %v14512_v60 = vmul.f32 %v11949_v40, %v14426_v27 }
 0x707   : > { %v11953_v54 = vpop.eup %11952  ;;  %v5927_v55 = vrot.slane %v14498_v57, 7  ;;  %v14505_v49 = vmul.f32 %v11951_v19, %v14430_v38  ;;  %v5859_v11 = vrot.slane %v14498_v57, 6  ;;  %v6640_v58 = vrot.slane %v14498_v57, 1 }
 0x708   : > { %v11955_v3 = vpop.eup %11954  ;;  %v5805_v8 = vadd.f32 1.0, %v11953_v54  ;;  %v5864_v39 = vrot.slane %v14512_v60, 6  ;;  %v5932_v47 = vrot.slane %v14512_v60, 7  ;;  %v6645_v1 = vrot.slane %v14512_v60, 1 }
 0x709   : > { %v11957_v37 = vpop.eup %11956  ;;  %v5974_v45 = vsel %vm835_vm2, 0.0, %v5927_v55  ;;  %v5860_v61 = vrot.slane %v14505_v49, 6  ;;  %v5928_v38 = vrot.slane %v14505_v49, 7  ;;  %v6641_v52 = vrot.slane %v14505_v49, 1 }
 0x70a   : > { %v11959_v16 = vpop.eup %11958  ;;  %11970 = vrcp.f32 %v5805_v8  ;;  %v5803_v26 = vadd.f32 1.0, %v11955_v3  ;;  %v5806_v23 = vadd.f32 1.0, %v11957_v37  ;;  %v5933_v3 = vsel %vm835_vm2, %v5930_v7, %v5932_v47 }
 0x70b   : > { %v11961_v27 = vpop.eup %11960  ;;  %v14524_v53 = vsel %vm766_vm4, %v5859_v11, %v5860_v61  ;;  %v5929_v63 = vsel %vm835_vm2, %v5927_v55, %v5928_v38  ;;  %v5804_v41 = vadd.f32 1.0, %v11959_v16  ;;  %v14528_v59 = vsel %vm1414_vm5, %v6640_v58, %v6641_v52  ;;  %v11591_v55 = vld [vmem:[%s16163_s11 + $0x24] ss:$8 sps:$4 sm:$0xff]  }
 0x70c   : > { %v11963_v17 = vpop.eup %11962  ;;  %v14533_v28 = vsel %vm1414_vm5, %v6641_v52, %v6643_v35  ;;  %v14536_v13 = vmul.f32 %v11961_v27, %v14437_v62  ;;  %11972 = vrcp.f32 %v5803_v26  ;;  %v5975_v56 = vpack.c.bf16 %v5929_v63, %v5974_v45 }
 0x70d   : > { %v11965_v21 = vpop.eup %11964  ;;  %v14542_v50 = vmul.f32 %v11963_v17, %v14441_v9  ;;  %11974 = vrcp.f32 %v5806_v23  ;;  %v5931_v44 = vsel %vm835_vm2, %v5928_v38, %v5930_v7  ;;  %v5862_v62 = vrot.slane %v14495_v42, 6  ;;  %v11589_v7 = vld [vmem:[%s16163_s11 + $0x20] ss:$8 sps:$4 sm:$0xff]  }
 0x70e   : > { %v11967_v4 = vpop.eup %11966  ;;  %v14552_v34 = vmul.f32 %v11965_v21, %v14446_v30  ;;  %v14555_v9 = vsel %vm766_vm4, 0.0, %v5859_v11  ;;  %9565 = vmatmul.mubr.msk.bf16.vlgmr.msra.gmra.mrb[32].mxu1 %vm941_vm3, %v5975_v56  ;;  %v5870_v20 = vrot.slane %v14536_v13, 6  ;;  %v5938_v43 = vrot.slane %v14536_v13, 7 }
 0x70f   : > { %v5934_v18 = vrot.slane %v14542_v50, 7  ;;  %v14560_v31 = vmul.f32 %v11967_v4, %v14450_v33  ;;  %v11969_v5 = vpop.eup %11968  ;;  %11976 = vrcp.f32 %v5804_v41  ;;  %6278 = vmatpush1.bf16.msra.mxu1 %v11583_v24  ;;  %6122 = vmatprep.mubr.bf16.mxu1 %v16204_v32  ;;  %v5866_v33 = vrot.slane %v14542_v50, 6 }
 0x710   : > { %v5940_v30 = vrot.slane %v14552_v34, 7  ;;  %v5872_v40 = vrot.slane %v14552_v34, 6  ;;  %6279 = vmatprep.subr.bf16.mxu1 %v11588_v22  ;;  %11978 = vpow2.f32 %v5787_v46  ;;  %v5809_v37 = vadd.f32 1.0, %v11969_v5  ;;  %v11597_v5 = vld [vmem:[%s16163_s11 + $0x44] ss:$8 sps:$4 sm:$0xff]  }
 0x711   : > { %v5868_v19 = vrot.slane %v14560_v31, 6  ;;  %v5936_v54 = vrot.slane %v14560_v31, 7  ;;  %v14579_v11 = vsel %vm835_vm2, %v5932_v47, %v5934_v18  ;;  %v5976_v45 = vpack.c.bf16 %v5933_v3, %v5931_v44 }
 0x712   : > { %v14584_v8 = vsel %vm835_vm2, %v5938_v43, %v5940_v30  ;;  %11980 = vpow2.f32 %v14500_v29  ;;  %v11594_v29 = vld [vmem:[%s16163_s11 + $0x34] ss:$8 sps:$4 sm:$0xff]   ;;  %v14612_v63 = vsel %vm766_vm4, %v5860_v61, %v5862_v62  ;;  %v14615_v23 = vsel %vm766_vm4, %v5862_v62, %v5864_v39  ;;  %v11592_v62 = vld [vmem:[%s16163_s11 + $0x30] ss:$8 sps:$4 sm:$0xff]  }
 0x713   : > { %v14587_v58 = vsel %vm835_vm2, %v5934_v18, %v5936_v54  ;;  %v14590_v38 = vsel %vm835_vm2, %v5936_v54, %v5938_v43  ;;  %6280 = vmatpush1.bf16.msra.mxu1 %v11586_v0  ;;  %11982 = vpow2.f32 %v14507_v10  ;;  %v14620_v17 = vsel %vm766_vm4, %v5864_v39, %v5866_v33 }
 0x714   : > { %v11971_v16 = vpop.eup %11970  ;;  %v5977_v46 = vpack.c.bf16 %v14587_v58, %v14579_v11  ;;  %v5978_v52 = vpack.c.bf16 %v14584_v8, %v14590_v38  ;;  %6281 = vmatprep.subr.bf16.mxu1 %v11591_v55  ;;  %v14623_v10 = vsel %vm766_vm4, %v5866_v33, %v5868_v19  ;;  %v14626_v24 = vsel %vm766_vm4, %v5868_v19, %v5870_v20  ;;  %v11598_v11 = vld [vmem:[%s16163_s11 + $0x50] ss:$8 sps:$4 sm:$0xff]  }
 0x715   : > { %v14603_v27 = vmul.f32 %v11971_v16, %v14457_v36  ;;  %v6651_v61 = vrot.slane %v14536_v13, 1  ;;  %v6647_v56 = vrot.slane %v14542_v50, 1  ;;  %v6653_v44 = vrot.slane %v14552_v34, 1 }
 0x716   : > { %v11973_v41 = vpop.eup %11972  ;;  %9566 = vmatmul.mubr.msk.bf16.gmra.mrb[36].mxu1 %vm941_vm3, %v5976_v45  ;;  %11984 = vrcp.f32 %v5809_v37  ;;  %v14645_v47 = vsel %vm766_vm4, %v5870_v20, %v5872_v40  ;;  %v11600_v45 = vld [vmem:[%s16163_s11 + $0x54] ss:$8 sps:$4 sm:$0xff]  }
 0x717   : > { %v11975_v21 = vpop.eup %11974  ;;  %v14632_v22 = vmul.f32 %v11973_v41, %v14461_v25  ;;  %6132 = vmatprep.mubr.bf16.mxu1 %v16204_v32  ;;  %6282 = vmatpush1.bf16.msra.mxu1 %v11589_v7  ;;  %v5878_v25 = vrot.slane %v14603_v27, 6  ;;  %v5946_v33 = vrot.slane %v14603_v27, 7  ;;  %v6649_v41 = vrot.slane %v14560_v31, 1 }
 0x718   : > { %v14636_v4 = vmul.f32 %v11975_v21, %v14466_v6  ;;  %6283 = vmatprep.subr.bf16.mxu1 %v11594_v29  ;;  %v6659_v14 = vrot.slane %v14603_v27, 1 }
 0x719   : > { %v5874_v18 = vrot.slane %v14632_v22, 6  ;;  %v5942_v6 = vrot.slane %v14632_v22, 7  ;;  %v11977_v0 = vpop.eup %11976  ;;  %v6655_v29 = vrot.slane %v14632_v22, 1 }
 0x71a   : > { %v5880_v20 = vrot.slane %v14636_v4, 6  ;;  %v5948_v19 = vrot.slane %v14636_v4, 7  ;;  %v14661_v55 = vmul.f32 %v11977_v0, %v14470_v2  ;;  %v11979_v16 = vpop.eup %11978  ;;  %v11595_v2 = vld [vmem:[%s16163_s11 + $0x40] ss:$8 sps:$4 sm:$0xff]   ;;  %v6661_v36 = vrot.slane %v14636_v4, 1 }
 0x71b   : > { %v14666_v3 = vsel %vm835_vm2, %v5940_v30, %v5942_v6  ;;  %v14669_v37 = vsel %vm766_vm4, %v5872_v40, %v5874_v18  ;;  %6284 = vmatpush1.bf16.msra.mxu1 %v11592_v62  ;;  %v5807_v0 = vadd.f32 1.0, %v11979_v16  ;;  %v14706_v16 = vsel %vm1414_vm5, %v6643_v35, %v6645_v1 }
 0x71c   : > { %v14676_v7 = vsel %vm835_vm2, %v5946_v33, %v5948_v19  ;;  %v14684_v30 = vsel %vm766_vm4, %v5878_v25, %v5880_v20  ;;  %v5876_v21 = vrot.slane %v14661_v55, 6  ;;  %v5944_v62 = vrot.slane %v14661_v55, 7  ;;  %6285 = vmatprep.subr.bf16.mxu1 %v11597_v5  ;;  %v11981_v54 = vpop.eup %11980 }
 0x71d   : > { %v11983_v5 = vpop.eup %11982  ;;  %11986 = vrcp.f32 %v5807_v0  ;;  %v5810_v43 = vadd.f32 1.0, %v11981_v54  ;;  %v6657_v35 = vrot.slane %v14661_v55, 1  ;;  %v14781_v0 = vsel %vm1414_vm5, %v6659_v14, %v6661_v36 }
 0x71e   : > { %9567 = vmatmul.mubr.msk.bf16.gmra.mrb[40].mxu1 %vm941_vm3, %v5977_v46  ;;  %v5945_v40 = vsel %vm835_vm2, %v5942_v6, %v5944_v62  ;;  %v14714_v39 = vsel %vm835_vm2, %v5944_v62, %v5946_v33  ;;  %v5808_v26 = vadd.f32 1.0, %v11983_v5  ;;  %v11603_v6 = vld [vmem:[%s16163_s11 + $0xc4] ss:$8 sps:$4 sm:$0xff]   ;;  %v14730_v33 = vsel %vm766_vm4, %v5874_v18, %v5876_v21 }
 0x71f   : > { %6142 = vmatprep.mubr.bf16.mxu1 %v16204_v32  ;;  %6286 = vmatpush1.bf16.msra.mxu1 %v11595_v2  ;;  %11988 = vrcp.f32 %v5810_v43  ;;  %v5979_v58 = vpack.c.bf16 %v5945_v40, %v14666_v3  ;;  %v14735_v43 = vsel %vm766_vm4, %v5876_v21, %v5878_v25  ;;  %v14742_v3 = vsel %vm1414_vm5, %v6645_v1, %v6647_v56 }
 0x720   : > { %6287 = vmatprep.subr.bf16.mxu1 %v11600_v45  ;;  %v11985_v54 = vpop.eup %11984  ;;  %11990 = vrcp.f32 %v5808_v26  ;;  %v14751_v26 = vsel %vm1414_vm5, %v6647_v56, %v6649_v41  ;;  %v14756_v25 = vsel %vm1414_vm5, %v6649_v41, %v6651_v61  ;;  %v14765_v40 = vsel %vm1414_vm5, %v6651_v61, %v6653_v44 }
 0x721   : > { %v14770_v56 = vsel %vm1414_vm5, %v6653_v44, %v6655_v29  ;;  %v14773_v21 = vsel %vm1414_vm5, %v6655_v29, %v6657_v35  ;;  %v14778_v62 = vsel %vm1414_vm5, %v6657_v35, %v6659_v14  ;;  %v14791_v29 = vmul.f32 %v11985_v54, %v14477_v12 }
 0x722   : > { %16383 = vst [vmem:[#allocation16_spill] sm:$0xff] %v14773_v21 }
 0x723   : > { %6288 = vmatpush1.bf16.msra.mxu1 %v11598_v11  ;;  %v5886_v38 = vrot.slane %v14791_v29, 6  ;;  %v6667_v12 = vrot.slane %v14791_v29, 1 }
 0x724   : > { %6495 = vmatprep.subr.bf16.mxu1 %v11603_v6 }
 0x726   : > { %9568 = vmatmul.mubr.msk.bf16.gmra.mrb[44].mxu1 %vm941_vm3, %v5978_v52  ;;  %v5954_v52 = vrot.slane %v14791_v29, 7 }
 0x727   : > { %6152 = vmatprep.mubr.bf16.mxu1 %v16204_v32  ;;  %v11987_v44 = vpop.eup %11986 }
 0x728   : > { %v14794_v5 = vmul.f32 %v11987_v44, %v14481_v51 }
 0x729   : > { %v11989_v35 = vpop.eup %11988 }
 0x72a   : > { %v11991_v14 = vpop.eup %11990  ;;  %v5882_v11 = vrot.slane %v14794_v5, 6  ;;  %v5950_v6 = vrot.slane %v14794_v5, 7  ;;  %v6663_v61 = vrot.slane %v14794_v5, 1  ;;  %v14800_v8 = vmul.f32 %v11989_v35, %v14486_v48 }
 0x72b   : > { %v14806_v51 = vmul.f32 %v11991_v14, %v14490_v15 }
 0x72c   : > { %v5888_v54 = vrot.slane %v14800_v8, 6  ;;  %v5956_v44 = vrot.slane %v14800_v8, 7  ;;  %v5951_v41 = vsel %vm835_vm2, %v5948_v19, %v5950_v6  ;;  %v14816_v48 = vsel %vm766_vm4, %v5880_v20, %v5882_v11 }
 0x72d   : > { %v5884_v35 = vrot.slane %v14806_v51, 6  ;;  %v5952_v1 = vrot.slane %v14806_v51, 7  ;;  %v6665_v15 = vrot.slane %v14806_v51, 1  ;;  %v14832_v45 = vsel %vm1414_vm5, %v6661_v36, %v6663_v61 }
 0x72e   : > { %9569 = vmatmul.mubr.msk.bf16.gmra.mrb[48].mxu1 %vm941_vm3, %v5979_v58  ;;  %v5957_v19 = vsel %vm835_vm2, %v5954_v52, %v5956_v44  ;;  %v14827_v18 = vsel %vm766_vm4, %v5886_v38, %v5888_v54  ;;  %v6693_v20 = vpack.c.bf16 %v14832_v45, %v14781_v0  ;;  %v11639_v45 = vld [vmem:[%s16165_s13 + $0x34] sm:$0xff]  }
 0x72f   : > { %6162 = vmatprep.mubr.bf16.mxu1 %v16204_v32  ;;  %v5953_v2 = vsel %vm835_vm2, %v5950_v6, %v5952_v1  ;;  %v5955_v58 = vsel %vm835_vm2, %v5952_v1, %v5954_v52  ;;  %v5885_v46 = vsel %vm766_vm4, %v5882_v11, %v5884_v35  ;;  %v5887_v14 = vsel %vm766_vm4, %v5884_v35, %v5886_v38  ;;  %v11601_v38 = vld [vmem:[%s16163_s11 + $0xc0] ss:$8 sps:$4 sm:$0xff]  }
 0x730   : > { %v5981_v32 = vpack.c.bf16 %v5953_v2, %v5951_v41  ;;  %v5982_v21 = vpack.c.bf16 %v5957_v19, %v5955_v58  ;;  %v5913_v44 = vpack.c.bf16 %v5885_v46, %v14816_v48  ;;  %v5914_v54 = vpack.c.bf16 %v14827_v18, %v5887_v14  ;;  %v11607_v52 = vld [vmem:[%s16163_s11 + $0xe0] ss:$8 sps:$4 sm:$0xff]   ;;  %v11615_v48 = vld [vmem:[%s16163_s11 + $0x104] ss:$8 sps:$4 sm:$0xff]   ;;  %v11628_v58 = vld [vmem:[%s16163_s11 + $0x150] ss:$8 sps:$4 sm:$0xff]  }
 0x731   : > { %v14843_v36 = vsel %vm1414_vm5, %v6663_v61, %v6665_v15  ;;  %v14846_v6 = vsel %vm1414_vm5, %v6665_v15, %v6667_v12  ;;  %v6669_v1 = vrot.slane %v14800_v8, 1  ;;  %v16384_v41 = vpack.c.bf16 %v14676_v7, %v14714_v39  ;;  %v11606_v39 = vld [vmem:[%s16163_s11 + $0xd4] ss:$8 sps:$4 sm:$0xff]   ;;  %v11613_v35 = vld [vmem:[%s16163_s11 + $0x100] ss:$8 sps:$4 sm:$0xff]  }
 0x732   : > { %v6694_v11 = vpack.c.bf16 %v14846_v6, %v14843_v36  ;;  %v16385_v61 = vmov 0   ;;  %v16386_v7 = vpack.c.bf16 %v14524_v53, %v14555_v9  ;;  %v11612_v53 = vld [vmem:[%s16163_s11 + $0xf4] ss:$8 sps:$4 sm:$0xff]   ;;  %v16387_v9 = vpack.c.bf16 %v14615_v23, %v14612_v63  ;;  %v11616_v15 = vld [vmem:[%s16163_s11 + $0x110] ss:$8 sps:$4 sm:$0xff]  }
 0x733   : > { %v14852_v2 = vsel %vm1414_vm5, %v6667_v12, %v6669_v1  ;;  %v14855_v46 = vsel %vm1414_vm5, %v6669_v1, 0.0  ;;  %v11610_v12 = vld [vmem:[%s16163_s11 + $0xf0] ss:$8 sps:$4 sm:$0xff]   ;;  %v11618_v63 = vld [vmem:[%s16163_s11 + $0x114] ss:$8 sps:$4 sm:$0xff]   ;;  %v16388_v23 = vpack.c.bf16 %v14623_v10, %v14620_v17  ;;  %v16389_v19 = vpack.c.bf16 %v14645_v47, %v14626_v24 }
 0x734   : > { %v6695_v18 = vpack.c.bf16 %v14855_v46, %v14852_v2  ;;  %v11621_v14 = vld [vmem:[%s16163_s11 + $0x124] ss:$8 sps:$4 sm:$0xff]   ;;  %v16390_v17 = vpack.c.bf16 %v14730_v33, %v14669_v37  ;;  %v16391_v10 = vpack.c.bf16 %v14684_v30, %v14735_v43  ;;  %v11619_v24 = vld [vmem:[%s16163_s11 + $0x120] ss:$8 sps:$4 sm:$0xff]   ;;  %v11624_v47 = vld [vmem:[%s16163_s11 + $0x134] ss:$8 sps:$4 sm:$0xff]   ;;  %v16392_v37 = vpack.c.bf16 %v14505_v49, %v14498_v57 }
 0x735   : > { %v11622_v30 = vld [vmem:[%s16163_s11 + $0x130] ss:$8 sps:$4 sm:$0xff]   ;;  %v11627_v33 = vld [vmem:[%s16163_s11 + $0x144] ss:$8 sps:$4 sm:$0xff]   ;;  %v11625_v43 = vld [vmem:[%s16163_s11 + $0x140] ss:$8 sps:$4 sm:$0xff]   ;;  %v16393_v49 = vpack.c.bf16 %v14512_v60, %v14495_v42  ;;  %v16394_v60 = vpack.c.bf16 %v14560_v31, %v14542_v50  ;;  %v16396_v50 = vpack.c.bf16 %v14661_v55, %v14632_v22  ;;  %v16397_v31 = vpack.c.bf16 %v14636_v4, %v14603_v27 }
 0x736   : > { %9570 = vmatmul.mubr.msk.bf16.gmra.mrb[52].mxu1 %vm941_vm3, %v16384_v41  ;;  %v11630_v57 = vld [vmem:[%s16163_s11 + $0x154] ss:$8 sps:$4 sm:$0xff]   ;;  %v11634_v1 = vld [vmem:[%s16163_s11 + $0x170] ss:$8 sps:$4 sm:$0xff]   ;;  %v16395_v41 = vpack.c.bf16 %v14552_v34, %v14536_v13  ;;  %v16398_v13 = vpack.c.bf16 %v14806_v51, %v14794_v5  ;;  %v16399_v34 = vpack.c.bf16 %v14800_v8, %v14791_v29  ;;  %v16400_v27 = vpack.c.bf16 %v14533_v28, %v14528_v59  ;;  %v6938_v5 = vld [vmem:[%s16164_s12] sm:$0x3] }
 0x737   : > { %6172 = vmatprep.mubr.bf16.mxu1 %v16385_v61  ;;  %v11636_v42 = vld [vmem:[%s16163_s11 + $0x174] ss:$8 sps:$4 sm:$0xff]   ;;  %v16401_v22 = vpack.c.bf16 %v14742_v3, %v14706_v16  ;;  %v16402_v4 = vpack.c.bf16 %v14756_v25, %v14751_v26  ;;  %v16403_v59 = vpack.c.bf16 %v14770_v56, %v14765_v40  ;;  %v11637_v16 = vld [vmem:[%s16165_s13 + $0x24] sm:$0xff]   ;;  %v11638_v3 = vld [vmem:[%s16165_s13 + $0x2c] sm:$0xff]  }
 0x738   : > { %v16404_v28 = vld [vmem:[#allocation16_spill] sm:$0xff]  ;;  %10797 = vmatprep.subr.bf16.mxu0 %v11637_v16  ;;  %v11640_v26 = vld [vmem:[%s16165_s13 + $0x3c] sm:$0xff]   ;;  %v11641_v25 = vld [vmem:[%s16165_s13 + $0x44] ss:$0 sps:$4 sm:$0xff]  }
 0x739   : > { %v16405_v55 = vpack.c.bf16 %v14778_v62, %v16404_v28  ;;  %10798 = vmatpush3.bf16.msra.mxu0 %v11637_v16  ;;  %v7279_v40 = vsel %vm553_vm0, %v11641_v25, 0  ;;  %v15070_v56 = vld [vmem:[%s16165_s13] sm:$0xff]   ;;  %v6940_v62 = vlaneseq }
 0x73a   : > { %10799 = vmatprep.subr.bf16.mxu0 %v11638_v3 }
 0x73b   : > { %v6941_v0 = vshrl.u32 %v6940_v62, 7 }
 0x73d   : > { %10800 = vmatpush3.bf16.msra.mxu0 %v11638_v3  ;;  %v6942_v29 = vsub.s32 0, %v6941_v0  ;;  %v6946_v51 = vsub.s32 1, %v6941_v0 }
 0x73e   : > { %9571 = vmatmul.mubr.msk.bf16.gmra.mrb[56].mxu1 %vm941_vm3, %v5981_v32  ;;  %v11604_v32 = vld [vmem:[%s16163_s11 + $0xd0] ss:$8 sps:$4 sm:$0xff]   ;;  %10801 = vmatprep.subr.bf16.mxu0 %v11639_v45 }
 0x73f   : > { %6182 = vmatprep.mubr.bf16.mxu1 %v16385_v61  ;;  %v15076_v8 = vrot.slane %v6938_v5, %v6942_v29 }
 0x741   : > { %10802 = vmatpush3.bf16.msra.mxu0 %v11639_v45 }
 0x742   : > { %10803 = vmatprep.subr.bf16.mxu0 %v11640_v26 }
 0x745   : > { %10804 = vmatpush3.bf16.msra.mxu0 %v11640_v26 }
 0x746   : > { %9572 = vmatmul.mubr.msk.bf16.gmra.mrb[60].mxu1 %vm941_vm3, %v5982_v21  ;;  %v11609_v21 = vld [vmem:[%s16163_s11 + $0xe4] ss:$8 sps:$4 sm:$0xff]   ;;  %11428 = vmatprep.subr.msk.bf16.mxu0 %vm553_vm0, %v11641_v25 }
 0x747   : > { %6309 = vmatprep.mubr.bf16.mxu1 %v16385_v61 }
 0x749   : > { %10806 = vmatpush3.bf16.msra.mxu0 %v7279_v40 }
 0x74a   : > { %10823 = vmatprep.subr.bf16.mxu0 %v15070_v56 }
 0x74e   : > { %9585 = vmatmul.mubr.msk.bf16.vlgmr.msra.gmra.mrb[32].mxu1 %vm941_vm3, %v16386_v7 }
 0x74f   : > { %6496 = vmatpush1.bf16.msra.mxu1 %v11601_v38  ;;  %6319 = vmatprep.mubr.bf16.mxu1 %v16385_v61 }
 0x750   : > { %6497 = vmatprep.subr.bf16.mxu1 %v11606_v39 }
 0x753   : > { %6498 = vmatpush1.bf16.msra.mxu1 %v11604_v32 }
 0x754   : > { %6499 = vmatprep.subr.bf16.mxu1 %v11609_v21 }
 0x756   : > { %9586 = vmatmul.mubr.msk.bf16.gmra.mrb[36].mxu1 %vm941_vm3, %v16387_v9 }
 0x757   : > { %6329 = vmatprep.mubr.bf16.mxu1 %v16385_v61  ;;  %6500 = vmatpush1.bf16.msra.mxu1 %v11607_v52 }
 0x758   : > { %6501 = vmatprep.subr.bf16.mxu1 %v11612_v53 }
 0x75b   : > { %6502 = vmatpush1.bf16.msra.mxu1 %v11610_v12 }
 0x75c   : > { %6503 = vmatprep.subr.bf16.mxu1 %v11615_v48 }
 0x75e   : > { %9587 = vmatmul.mubr.msk.bf16.gmra.mrb[40].mxu1 %vm941_vm3, %v16388_v23 }
 0x75f   : > { %6339 = vmatprep.mubr.bf16.mxu1 %v16385_v61  ;;  %6504 = vmatpush1.bf16.msra.mxu1 %v11613_v35 }
 0x760   : > { %6505 = vmatprep.subr.bf16.mxu1 %v11618_v63 }
 0x763   : > { %6506 = vmatpush1.bf16.msra.mxu1 %v11616_v15 }
 0x764   : > { %6793 = vmatprep.subr.bf16.mxu1 %v11621_v14 }
 0x766   : > { %9588 = vmatmul.mubr.msk.bf16.gmra.mrb[44].mxu1 %vm941_vm3, %v16389_v19 }
 0x767   : > { %6349 = vmatprep.mubr.bf16.mxu1 %v16385_v61 }
 0x76e   : > { %9589 = vmatmul.mubr.msk.bf16.gmra.mrb[48].mxu1 %vm941_vm3, %v16390_v17 }
 0x76f   : > { %6359 = vmatprep.mubr.bf16.mxu1 %v16385_v61 }
 0x776   : > { %9590 = vmatmul.mubr.msk.bf16.gmra.mrb[52].mxu1 %vm941_vm3, %v16391_v10 }
 0x777   : > { %6369 = vmatprep.mubr.bf16.mxu1 %v16385_v61 }
 0x77e   : > { %9591 = vmatmul.mubr.msk.bf16.gmra.mrb[56].mxu1 %vm941_vm3, %v5913_v44  ;;  %v11633_v44 = vld [vmem:[%s16163_s11 + $0x164] ss:$8 sps:$4 sm:$0xff]  }
 0x77f   : > { %6379 = vmatprep.mubr.bf16.mxu1 %v16385_v61 }
 0x786   : > { %9592 = vmatmul.mubr.msk.bf16.gmra.mrb[60].mxu1 %vm941_vm3, %v5914_v54  ;;  %v11631_v54 = vld [vmem:[%s16163_s11 + $0x160] ss:$8 sps:$4 sm:$0xff]  }
 0x787   : > { %6527 = vmatprep.mubr.bf16.mxu1 %v16385_v61 }
 0x78e   : > { %9617 = vmatmul.mubr.msk.bf16.vlgmr.msra.gmra.mrb[32].mxu1 %vm941_vm3, %v16392_v37 }
 0x78f   : > { %6794 = vmatpush1.bf16.msra.mxu1 %v11619_v24  ;;  %6537 = vmatprep.mubr.bf16.mxu1 %v16385_v61 }
 0x790   : > { %6795 = vmatprep.subr.bf16.mxu1 %v11624_v47 }
 0x793   : > { %6796 = vmatpush1.bf16.msra.mxu1 %v11622_v30 }
 0x794   : > { %6797 = vmatprep.subr.bf16.mxu1 %v11627_v33 }
 0x796   : > { %9618 = vmatmul.mubr.msk.bf16.gmra.mrb[36].mxu1 %vm941_vm3, %v16393_v49 }
 0x797   : > { %6547 = vmatprep.mubr.bf16.mxu1 %v16385_v61  ;;  %6798 = vmatpush1.bf16.msra.mxu1 %v11625_v43 }
 0x798   : > { %6799 = vmatprep.subr.bf16.mxu1 %v11630_v57 }
 0x79b   : > { %6800 = vmatpush1.bf16.msra.mxu1 %v11628_v58 }
 0x79c   : > { %6801 = vmatprep.subr.bf16.mxu1 %v11633_v44 }
 0x79e   : > { %9619 = vmatmul.mubr.msk.bf16.gmra.mrb[40].mxu1 %vm941_vm3, %v16394_v60 }
 0x79f   : > { %6557 = vmatprep.mubr.bf16.mxu1 %v16385_v61  ;;  %6802 = vmatpush1.bf16.msra.mxu1 %v11631_v54 }
 0x7a0   : > { %6803 = vmatprep.subr.bf16.mxu1 %v11636_v42 }
 0x7a3   : > { %6804 = vmatpush1.bf16.msra.mxu1 %v11634_v1 }
 0x7a6   : > { %9620 = vmatmul.mubr.msk.bf16.gmra.mrb[44].mxu1 %vm941_vm3, %v16395_v41 }
 0x7a7   : > { %6567 = vmatprep.mubr.bf16.mxu1 %v16385_v61 }
 0x7ae   : > { %9621 = vmatmul.mubr.msk.bf16.gmra.mrb[48].mxu1 %vm941_vm3, %v16396_v50 }
 0x7af   : > { %6577 = vmatprep.mubr.bf16.mxu1 %v16385_v61 }
 0x7b6   : > { %9622 = vmatmul.mubr.msk.bf16.gmra.mrb[52].mxu1 %vm941_vm3, %v16397_v31 }
 0x7b7   : > { %6587 = vmatprep.mubr.bf16.mxu1 %v16385_v61 }
 0x7be   : > { %9623 = vmatmul.mubr.msk.bf16.gmra.mrb[56].mxu1 %vm941_vm3, %v16398_v13 }
 0x7bf   : > { %6597 = vmatprep.mubr.bf16.mxu1 %v16385_v61 }
 0x7c6   : > { %9624 = vmatmul.mubr.msk.bf16.gmra.mrb[60].mxu1 %vm941_vm3, %v16399_v34 }
 0x7c7   : > { %6825 = vmatprep.mubr.bf16.mxu1 %v16385_v61 }
 0x7ce   : > { %9649 = vmatmul.mubr.msk.bf16.vlgmr.msra.gmra.mrb[32].mxu1 %vm941_vm3, %v16400_v27 }
 0x7cf   : > { %6835 = vmatprep.mubr.bf16.mxu1 %v16385_v61 }
 0x7d6   : > { %9650 = vmatmul.mubr.msk.bf16.gmra.mrb[36].mxu1 %vm941_vm3, %v16401_v22 }
 0x7d7   : > { %6845 = vmatprep.mubr.bf16.mxu1 %v16385_v61 }
 0x7de   : > { %9651 = vmatmul.mubr.msk.bf16.gmra.mrb[40].mxu1 %vm941_vm3, %v16402_v4 }
 0x7df   : > { %6855 = vmatprep.mubr.bf16.mxu1 %v16385_v61 }
 0x7e6   : > { %9652 = vmatmul.mubr.msk.bf16.gmra.mrb[44].mxu1 %vm941_vm3, %v16403_v59 }
 0x7e7   : > { %6865 = vmatprep.mubr.bf16.mxu1 %v16385_v61 }
 0x7ee   : > { %9653 = vmatmul.mubr.msk.bf16.gmra.mrb[48].mxu1 %vm941_vm3, %v16405_v55 }
 0x7ef   : > { %6875 = vmatprep.mubr.bf16.mxu1 %v16385_v61 }
 0x7f6   : > { %9654 = vmatmul.mubr.msk.bf16.gmra.mrb[52].mxu1 %vm941_vm3, %v6693_v20 }
 0x7f7   : > { %6885 = vmatprep.mubr.bf16.mxu1 %v16385_v61 }
 0x7fe   : > { %9655 = vmatmul.mubr.msk.bf16.gmra.mrb[56].mxu1 %vm941_vm3, %v6694_v11  ;;  %v15081_v11 = vrot.slane %v6938_v5, %v6946_v51 }
 0x7ff   : > { %6895 = vmatprep.mubr.bf16.mxu1 %v16385_v61 }
 0x806   : > { %9656 = vmatmul.mubr.msk.bf16.gmra.mrb[60].mxu1 %vm941_vm3, %v6695_v18 }
 0x8a1   : > { %v6827_v20 = vpop.f32.mrb[32].mxu1 }
 0x8a2   : > { %v15079_v36 = vadd.f32 %v15076_v8, %v6827_v20  ;;  %v6829_v6 = vpop.f32.mrb[33].mxu1 }
 0x8a3   : > { %v6831_v2 = vpop.f32.mrb[34].mxu1  ;;  %v6951_v39 = vadd.f32 %v15081_v11, %v6829_v6 }
 0x8a4   : > { %v6982_v46 = vsub.f32 0.0, %v15079_v36  ;;  %v15085_v18 = vadd.f32 %v15076_v8, %v6831_v2  ;;  %8702 = vrot.lane.b32.xlu0 %v15079_v36, %s12129_s22  ;;  %v6833_v61 = vpop.f32.mrb[35].mxu1 }
 0x8a5   : > { %v6953_v21 = vadd.f32 %v15081_v11, %v6833_v61 }
 0x8a6   : > { %v6998_v38 = vmul.f32 1.442695, %v6982_v46  ;;  %v6983_v7 = vsub.f32 0.0, %v15085_v18  ;;  %8706 = vrot.lane.b32.xlu1 %v15085_v18, %s12129_s22 }
 0x8a8   : > { %11992 = vpow2.f32 %v6998_v38  ;;  %v7000_v32 = vmul.f32 1.442695, %v6983_v7  ;;  %8704 = vrot.lane.b32.xlu0 %v6951_v39, %s12129_s22 }
 0x8a9   : > { %v6837_v52 = vpop.f32.mrb[36].mxu1 }
 0x8aa   : > { %11994 = vpow2.f32 %v7000_v32  ;;  %v15096_v53 = vadd.f32 %v15076_v8, %v6837_v52  ;;  %8708 = vrot.lane.b32.xlu1 %v6953_v21, %s12129_s22  ;;  %v6839_v9 = vpop.f32.mrb[37].mxu1 }
 0x8ab   : > { %v6955_v12 = vadd.f32 %v15081_v11, %v6839_v9  ;;  %v6841_v48 = vpop.f32.mrb[38].mxu1 }
 0x8ac   : > { %v6984_v35 = vsub.f32 0.0, %v15096_v53  ;;  %v15102_v63 = vadd.f32 %v15076_v8, %v6841_v48  ;;  %8710 = vrot.lane.b32.xlu0 %v15096_v53, %s12129_s22  ;;  %v6843_v23 = vpop.f32.mrb[39].mxu1 }
 0x8ad   : > { %v6957_v17 = vadd.f32 %v15081_v11, %v6843_v23 }
 0x8ae   : > { %v7002_v15 = vmul.f32 1.442695, %v6984_v35  ;;  %v6985_v14 = vsub.f32 0.0, %v15102_v63  ;;  %8712 = vrot.lane.b32.xlu1 %v6955_v12, %s12129_s22 }
 0x8b0   : > { %11996 = vpow2.f32 %v7002_v15  ;;  %v7004_v19 = vmul.f32 1.442695, %v6985_v14  ;;  %8714 = vrot.lane.b32.xlu0 %v15102_v63, %s12129_s22 }
 0x8b1   : > { %v6847_v10 = vpop.f32.mrb[40].mxu1 }
 0x8b2   : > { %v11993_v24 = vpop.eup %11992  ;;  %11998 = vpow2.f32 %v7004_v19  ;;  %v15112_v47 = vadd.f32 %v15076_v8, %v6847_v10  ;;  %8716 = vrot.lane.b32.xlu1 %v6957_v17, %s12129_s22  ;;  %v6849_v37 = vpop.f32.mrb[41].mxu1 }
 0x8b3   : > { %v7030_v30 = vadd.f32 1.0, %v11993_v24  ;;  %v6959_v33 = vadd.f32 %v15081_v11, %v6849_v37  ;;  %v6851_v43 = vpop.f32.mrb[42].mxu1 }
 0x8b4   : > { %v11995_v57 = vpop.eup %11994  ;;  %v6986_v49 = vsub.f32 0.0, %v15112_v47  ;;  %v15118_v58 = vadd.f32 %v15076_v8, %v6851_v43  ;;  %8718 = vrot.lane.b32.xlu0 %v15112_v47, %s12129_s22  ;;  %v6853_v44 = vpop.f32.mrb[43].mxu1 }
 0x8b5   : > { %12000 = vrcp.f32 %v7030_v30  ;;  %v7031_v54 = vadd.f32 1.0, %v11995_v57  ;;  %v6961_v41 = vadd.f32 %v15081_v11, %v6853_v44 }
 0x8b6   : > { %v7006_v42 = vmul.f32 1.442695, %v6986_v49  ;;  %v6987_v60 = vsub.f32 0.0, %v15118_v58  ;;  %8720 = vrot.lane.b32.xlu1 %v6959_v33, %s12129_s22 }
 0x8b7   : > { %12002 = vrcp.f32 %v7031_v54 }
 0x8b8   : > { %12004 = vpow2.f32 %v7006_v42  ;;  %v7008_v1 = vmul.f32 1.442695, %v6987_v60  ;;  %8722 = vrot.lane.b32.xlu0 %v15118_v58, %s12129_s22 }
 0x8b9   : > { %v6857_v50 = vpop.f32.mrb[44].mxu1 }
 0x8ba   : > { %v11997_v31 = vpop.eup %11996  ;;  %12006 = vpow2.f32 %v7008_v1  ;;  %v15128_v13 = vadd.f32 %v15076_v8, %v6857_v50  ;;  %8724 = vrot.lane.b32.xlu1 %v6961_v41, %s12129_s22  ;;  %v6859_v34 = vpop.f32.mrb[45].mxu1  ;;  %v15192_v50 = vld [vmem:[%s16165_s13 + $0x20] ss:$0 sps:$4 sm:$0xff]  }
 0x8bb   : > { %v7032_v27 = vadd.f32 1.0, %v11997_v31  ;;  %v6963_v22 = vadd.f32 %v15081_v11, %v6859_v34  ;;  %v6861_v4 = vpop.f32.mrb[46].mxu1 }
 0x8bc   : > { %v11999_v59 = vpop.eup %11998  ;;  %v6988_v28 = vsub.f32 0.0, %v15128_v13  ;;  %v15134_v55 = vadd.f32 %v15076_v8, %v6861_v4  ;;  %8726 = vrot.lane.b32.xlu0 %v15128_v13, %s12129_s22  ;;  %v6863_v16 = vpop.f32.mrb[47].mxu1 }
 0x8bd   : > { %12008 = vrcp.f32 %v7032_v27  ;;  %v7033_v3 = vadd.f32 1.0, %v11999_v59  ;;  %v6965_v0 = vadd.f32 %v15081_v11, %v6863_v16 }
 0x8be   : > { %v7010_v45 = vmul.f32 1.442695, %v6988_v28  ;;  %v6989_v26 = vsub.f32 0.0, %v15134_v55  ;;  %8728 = vrot.lane.b32.xlu1 %v6963_v22, %s12129_s22  ;;  %v11643_v28 = vld [vmem:[%s16165_s13 + $0x8] sm:$0xff]  }
 0x8bf   : > { %v12001_v25 = vpop.eup %12000  ;;  %12010 = vrcp.f32 %v7033_v3 }
 0x8c0   : > { %v15141_v40 = vmul.f32 %v12001_v25, %v15079_v36  ;;  %12012 = vpow2.f32 %v7010_v45  ;;  %v7012_v62 = vmul.f32 1.442695, %v6989_v26  ;;  %8730 = vrot.lane.b32.xlu0 %v15134_v55, %s12129_s22 }
 0x8c1   : > { %v12003_v29 = vpop.eup %12002  ;;  %v6867_v5 = vpop.f32.mrb[48].mxu1 }
 0x8c2   : > { %v12005_v51 = vpop.eup %12004  ;;  %v15147_v20 = vmul.f32 %v12003_v29, %v15085_v18  ;;  %12014 = vpow2.f32 %v7012_v62  ;;  %v15150_v6 = vadd.f32 %v15076_v8, %v6867_v5  ;;  %8732 = vrot.lane.b32.xlu1 %v6965_v0, %s12129_s22  ;;  %v6869_v36 = vpop.f32.mrb[49].mxu1  ;;  %v7160_v2 = vrot.slane %v15141_v40, 6 }
 0x8c3   : > { %v7034_v46 = vadd.f32 1.0, %v12005_v51  ;;  %v6967_v61 = vadd.f32 %v15081_v11, %v6869_v36  ;;  %v6871_v38 = vpop.f32.mrb[50].mxu1  ;;  %v7095_v62 = vrot.slane %v15141_v40, 5  ;;  %v15211_v0 = vsel %vm553_vm0, %v15192_v50, 0 }
 0x8c4   : > { %v12007_v39 = vpop.eup %12006  ;;  %v6990_v7 = vsub.f32 0.0, %v15150_v6  ;;  %v15157_v32 = vadd.f32 %v15076_v8, %v6871_v38  ;;  %8734 = vrot.lane.b32.xlu0 %v15150_v6, %s12129_s22  ;;  %v6873_v18 = vpop.f32.mrb[51].mxu1  ;;  %v7161_v21 = vrot.slane %v15147_v20, 6  ;;  %v7207_v35 = vsel %vm766_vm4, 0.0, %v7160_v2 }
 0x8c5   : > { %12016 = vrcp.f32 %v7034_v46  ;;  %v7035_v52 = vadd.f32 1.0, %v12007_v39  ;;  %v6969_v17 = vadd.f32 %v15081_v11, %v6873_v18 }
 0x8c6   : > { %v7014_v9 = vmul.f32 1.442695, %v6990_v7  ;;  %v6991_v12 = vsub.f32 0.0, %v15157_v32  ;;  %8736 = vrot.lane.b32.xlu1 %v6967_v61, %s12129_s22  ;;  %v7162_v48 = vsel %vm766_vm4, %v7160_v2, %v7161_v21 }
 0x8c7   : > { %v12009_v23 = vpop.eup %12008  ;;  %12018 = vrcp.f32 %v7035_v52  ;;  %v7208_v15 = vpack.c.bf16 %v7162_v48, %v7207_v35 }
 0x8c8   : > { %v15167_v14 = vmul.f32 %v12009_v23, %v15096_v53  ;;  %12020 = vpow2.f32 %v7014_v9  ;;  %v7016_v19 = vmul.f32 1.442695, %v6991_v12  ;;  %8738 = vrot.lane.b32.xlu0 %v15157_v32, %s12129_s22 }
 0x8c9   : > { %v12011_v10 = vpop.eup %12010  ;;  %v6877_v24 = vpop.f32.mrb[52].mxu1  ;;  %10807 = vmatprep.mubr.msk.bf16.mxu0 %vm7253_vm7, %v7208_v15 }
 0x8ca   : > { %v12013_v37 = vpop.eup %12012  ;;  %v15174_v30 = vmul.f32 %v12011_v10, %v15102_v63  ;;  %12022 = vpow2.f32 %v7016_v19  ;;  %v15177_v33 = vadd.f32 %v15076_v8, %v6877_v24  ;;  %v7163_v53 = vrot.slane %v15167_v14, 6  ;;  %8740 = vrot.lane.b32.xlu1 %v6969_v17, %s12129_s22  ;;  %v6879_v43 = vpop.f32.mrb[53].mxu1 }
 0x8cb   : > { %v7036_v57 = vadd.f32 1.0, %v12013_v37  ;;  %v6971_v49 = vadd.f32 %v15081_v11, %v6879_v43  ;;  %v6881_v44 = vpop.f32.mrb[54].mxu1 }
 0x8cc   : > { %v12015_v54 = vpop.eup %12014  ;;  %v6992_v42 = vsub.f32 0.0, %v15177_v33  ;;  %v15184_v60 = vadd.f32 %v15076_v8, %v6881_v44  ;;  %8742 = vrot.lane.b32.xlu0 %v15177_v33, %s12129_s22  ;;  %v6883_v63 = vpop.f32.mrb[55].mxu1  ;;  %v7165_v1 = vrot.slane %v15174_v30, 6  ;;  %v7164_v34 = vsel %vm766_vm4, %v7161_v21, %v7163_v53 }
 0x8cd   : > { %12024 = vrcp.f32 %v7036_v57  ;;  %v7037_v41 = vadd.f32 1.0, %v12015_v54  ;;  %v6973_v45 = vadd.f32 %v15081_v11, %v6883_v63  ;;  %v16210_v38 = vrot.slane %v15174_v30, 5 }
 0x8ce   : > { %v7018_v31 = vmul.f32 1.442695, %v6992_v42  ;;  %v6993_v27 = vsub.f32 0.0, %v15184_v60  ;;  %8744 = vrot.lane.b32.xlu1 %v6971_v49, %s12129_s22  ;;  %v7166_v22 = vsel %vm766_vm4, %v7163_v53, %v7165_v1  ;;  %v16208_v35 = vrot.slane %v15174_v30, 7  ;;  %v11645_v53 = vld [vmem:[%s16165_s13 + $0x18] sm:$0xff]  }
 0x8cf   : > { %v12017_v4 = vpop.eup %12016  ;;  %12026 = vrcp.f32 %v7037_v41  ;;  %v7209_v59 = vpack.c.bf16 %v7166_v22, %v7164_v34 }
 0x8d0   : > { %v15202_v16 = vmul.f32 %v12017_v4, %v15112_v47  ;;  %12028 = vpow2.f32 %v7018_v31  ;;  %v7020_v3 = vmul.f32 1.442695, %v6993_v27  ;;  %8746 = vrot.lane.b32.xlu0 %v15184_v60, %s12129_s22 }
 0x8d1   : > { %v12019_v26 = vpop.eup %12018  ;;  %v6887_v25 = vpop.f32.mrb[56].mxu1  ;;  %10808 = vmatmul.mubr.msk.bf16.vlgmr.msra.gmra.mrb[48].mxu0 %vm7253_vm7, %v7209_v59 }
 0x8d2   : > { %v12021_v47 = vpop.eup %12020  ;;  %v15214_v29 = vmul.f32 %v12019_v26, %v15118_v58  ;;  %12030 = vpow2.f32 %v7020_v3  ;;  %v15217_v5 = vadd.f32 %v15076_v8, %v6887_v25  ;;  %8748 = vrot.lane.b32.xlu1 %v6973_v45, %s12129_s22  ;;  %v6889_v51 = vpop.f32.mrb[57].mxu1  ;;  %v7167_v36 = vrot.slane %v15202_v16, 6  ;;  %10824 = vmatpush3.bf16.msra.mxu0 %v15070_v56  ;;  %v11644_v58 = vld [vmem:[%s16165_s13 + $0x10] sm:$0xff]  }
 0x8d3   : > { %v7038_v2 = vadd.f32 1.0, %v12021_v47  ;;  %v6975_v46 = vadd.f32 %v15081_v11, %v6889_v51  ;;  %v6891_v61 = vpop.f32.mrb[58].mxu1  ;;  %10825 = vmatprep.subr.bf16.mxu0 %v11643_v28  ;;  %v7102_v39 = vrot.slane %v15202_v16, 5  ;;  %v7536_v43 = vrot.slane %v15202_v16, 7 }
 0x8d4   : > { %v12023_v7 = vpop.eup %12022  ;;  %v6994_v18 = vsub.f32 0.0, %v15217_v5  ;;  %v15230_v21 = vadd.f32 %v15076_v8, %v6891_v61  ;;  %8750 = vrot.lane.b32.xlu0 %v15217_v5, %s12129_s22  ;;  %v6893_v56 = vpop.f32.mrb[59].mxu1  ;;  %v7168_v52 = vsel %vm766_vm4, %v7165_v1, %v7167_v36  ;;  %v7169_v9 = vrot.slane %v15214_v29, 6 }
 0x8d5   : > { %12032 = vrcp.f32 %v7038_v2  ;;  %v7039_v12 = vadd.f32 1.0, %v12023_v7  ;;  %v15239_v48 = vsel %vm7094_vm8, %v16210_v38, %v7102_v39  ;;  %v7104_v17 = vrot.slane %v15214_v29, 5 }
 0x8d6   : > { %v7022_v23 = vmul.f32 1.442695, %v6994_v18  ;;  %v6995_v15 = vsub.f32 0.0, %v15230_v21  ;;  %8752 = vrot.lane.b32.xlu1 %v6975_v46, %s12129_s22  ;;  %v7170_v19 = vsel %vm766_vm4, %v7167_v36, %v7169_v9  ;;  %10826 = vmatpush3.bf16.msra.mxu0 %v11643_v28  ;;  %v6977_v24 = vadd.f32 %v15081_v11, %v6893_v56 }
 0x8d7   : > { %v12025_v10 = vpop.eup %12024  ;;  %12034 = vrcp.f32 %v7039_v12  ;;  %v7210_v37 = vpack.c.bf16 %v7170_v19, %v7168_v52  ;;  %10827 = vmatprep.subr.bf16.mxu0 %v11644_v58  ;;  %v15257_v44 = vsel %vm7094_vm8, %v7102_v39, %v7104_v17  ;;  %v7538_v1 = vrot.slane %v15214_v29, 7 }
 0x8d8   : > { %v15252_v57 = vmul.f32 %v12025_v10, %v15128_v13  ;;  %12036 = vpow2.f32 %v7022_v23  ;;  %v7024_v49 = vmul.f32 1.442695, %v6995_v15  ;;  %8754 = vrot.lane.b32.xlu0 %v15230_v21, %s12129_s22  ;;  %v15265_v13 = vsel %vm835_vm2, %v16208_v35, %v7536_v43 }
 0x8d9   : > { %v12027_v54 = vpop.eup %12026  ;;  %v6897_v42 = vpop.f32.mrb[60].mxu1  ;;  %10811 = vmatprep.mubr.msk.bf16.mxu0 %vm7253_vm7, %v7210_v37 }
 0x8da   : > { %v12029_v31 = vpop.eup %12028  ;;  %v15271_v34 = vmul.f32 %v12027_v54, %v15134_v55  ;;  %12038 = vpow2.f32 %v7024_v49  ;;  %v15274_v27 = vadd.f32 %v15076_v8, %v6897_v42  ;;  %8756 = vrot.lane.b32.xlu1 %v6977_v24, %s12129_s22  ;;  %v6899_v22 = vpop.f32.mrb[61].mxu1  ;;  %v7171_v4 = vrot.slane %v15252_v57, 6  ;;  %10828 = vmatpush3.bf16.msra.mxu0 %v11644_v58 }
 0x8db   : > { %v7040_v59 = vadd.f32 1.0, %v12029_v31  ;;  %v6979_v28 = vadd.f32 %v15081_v11, %v6899_v22  ;;  %v6901_v3 = vpop.f32.mrb[62].mxu1  ;;  %10829 = vmatprep.subr.bf16.mxu0 %v11645_v53  ;;  %v7106_v45 = vrot.slane %v15252_v57, 5  ;;  %v15281_v55 = vsel %vm835_vm2, %v7536_v43, %v7538_v1 }
 0x8dc   : > { %v12031_v26 = vpop.eup %12030  ;;  %v6996_v25 = vsub.f32 0.0, %v15274_v27  ;;  %v15285_v47 = vadd.f32 %v15076_v8, %v6901_v3  ;;  %8758 = vrot.lane.b32.xlu0 %v15274_v27, %s12129_s22  ;;  %v6903_v51 = vpop.f32.mrb[63].mxu1  ;;  %v7172_v36 = vsel %vm766_vm4, %v7169_v9, %v7171_v4  ;;  %v7173_v2 = vrot.slane %v15271_v34, 6 }
 0x8dd   : > { %12040 = vrcp.f32 %v7040_v59  ;;  %v7041_v46 = vadd.f32 1.0, %v12031_v26  ;;  %v6981_v61 = vadd.f32 %v15081_v11, %v6903_v51  ;;  %v15293_v58 = vsel %vm7094_vm8, %v7104_v17, %v7106_v45  ;;  %v15304_v11 = vld [vmem:[%s16165_s13 + $0x48] sm:$0xff]  }
 0x8de   : > { %v7026_v39 = vmul.f32 1.442695, %v6996_v25  ;;  %v6997_v7 = vsub.f32 0.0, %v15285_v47  ;;  %8760 = vrot.lane.b32.xlu1 %v6979_v28, %s12129_s22  ;;  %v7174_v8 = vsel %vm766_vm4, %v7171_v4, %v7173_v2  ;;  %10830 = vmatpush3.bf16.msra.mxu0 %v11645_v53  ;;  %v7108_v18 = vrot.slane %v15271_v34, 5 }
 0x8df   : > { %v12033_v56 = vpop.eup %12032  ;;  %12042 = vrcp.f32 %v7041_v46  ;;  %v7211_v52 = vpack.c.bf16 %v7174_v8, %v7172_v36  ;;  %11429 = vmatprep.subr.msk.bf16.mxu0 %vm553_vm0, %v15192_v50  ;;  %v7540_v12 = vrot.slane %v15252_v57, 7  ;;  %v16209_v42 = vrot.slane %v15147_v20, 5 }
 0x8e0   : > { %v15310_v23 = vmul.f32 %v12033_v56, %v15150_v6  ;;  %12044 = vpow2.f32 %v7026_v39  ;;  %v7028_v15 = vmul.f32 1.442695, %v6997_v7  ;;  %8762 = vrot.lane.b32.xlu0 %v15285_v47, %s12129_s22  ;;  %v15315_v50 = vsel %vm7094_vm8, %v7106_v45, %v7108_v18 }
 0x8e1   : > { %v12035_v19 = vpop.eup %12034  ;;  %10812 = vmatmul.mubr.msk.bf16.gmra.mrb[52].mxu0 %vm7253_vm7, %v7211_v52  ;;  %v15321_v10 = vsel %vm835_vm2, %v7538_v1, %v7540_v12  ;;  %v7542_v6 = vrot.slane %v15271_v34, 7  ;;  %v15365_v7 = vsel %vm7094_vm8, 0.0, %v7095_v62  ;;  %v15376_v56 = vsel %vm7094_vm8, %v7095_v62, %v16209_v42 }
 0x8e2   : > { %v12037_v37 = vpop.eup %12036  ;;  %v15327_v53 = vmul.f32 %v12035_v19, %v15157_v32  ;;  %12046 = vpow2.f32 %v7028_v15  ;;  %8764 = vrot.lane.b32.xlu1 %v6981_v61, %s12129_s22  ;;  %v7175_v43 = vrot.slane %v15310_v23, 6  ;;  %10832 = vmatpush3.bf16.msra.mxu0 %v15211_v0  ;;  %v7110_v49 = vrot.slane %v15310_v23, 5 }
 0x8e3   : > { %v7042_v54 = vadd.f32 1.0, %v12037_v37  ;;  %10849 = vmatprep.subr.bf16.mxu0 %v15304_v11  ;;  %v15336_v1 = vsel %vm835_vm2, %v7540_v12, %v7542_v6  ;;  %v7544_v32 = vrot.slane %v15310_v23, 7  ;;  %v7952_v52 = vrot.slane %v15174_v30, 1 }
 0x8e4   : > { %v12039_v31 = vpop.eup %12038  ;;  %v7176_v22 = vsel %vm766_vm4, %v7173_v2, %v7175_v43  ;;  %v7177_v4 = vrot.slane %v15327_v53, 6  ;;  %v15342_v59 = vsel %vm7094_vm8, %v7108_v18, %v7110_v49  ;;  %v7112_v0 = vrot.slane %v15327_v53, 5 }
 0x8e5   : > { %12048 = vrcp.f32 %v7042_v54  ;;  %v7043_v28 = vadd.f32 1.0, %v12039_v31  ;;  %v15348_v45 = vsel %vm835_vm2, %v7542_v6, %v7544_v32  ;;  %v7546_v51 = vrot.slane %v15327_v53, 7 }
 0x8e6   : > { %v7178_v26 = vsel %vm766_vm4, %v7175_v43, %v7177_v4  ;;  %v15352_v25 = vsel %vm7094_vm8, %v7110_v49, %v7112_v0  ;;  %v7954_v12 = vrot.slane %v15202_v16, 1  ;;  %v16207_v62 = vrot.slane %v15167_v14, 1 }
 0x8e7   : > { %v12041_v2 = vpop.eup %12040  ;;  %12050 = vrcp.f32 %v7043_v28  ;;  %v7212_v46 = vpack.c.bf16 %v7178_v26, %v7176_v22  ;;  %v15368_v8 = vsel %vm835_vm2, %v7544_v32, %v7546_v51  ;;  %v7956_v32 = vrot.slane %v15214_v29, 1 }
 0x8e8   : > { %v15360_v39 = vmul.f32 %v12041_v2, %v15177_v33  ;;  %v15390_v54 = vsel %vm1414_vm5, %v7952_v52, %v7954_v12  ;;  %v7098_v42 = vrot.slane %v15167_v14, 5 }
 0x8e9   : > { %v12043_v18 = vpop.eup %12042  ;;  %10815 = vmatprep.mubr.msk.bf16.mxu0 %vm7253_vm7, %v7212_v46 }
 0x8ea   : > { %v12045_v15 = vpop.eup %12044  ;;  %v15383_v19 = vmul.f32 %v12043_v18, %v15184_v60  ;;  %v7179_v6 = vrot.slane %v15360_v39, 6  ;;  %v7114_v37 = vrot.slane %v15360_v39, 5  ;;  %v7548_v43 = vrot.slane %v15360_v39, 7 }
 0x8eb   : > { %v7044_v49 = vadd.f32 1.0, %v12045_v15 }
 0x8ec   : > { %v12047_v31 = vpop.eup %12046  ;;  %v7180_v22 = vsel %vm766_vm4, %v7177_v4, %v7179_v6  ;;  %v7181_v60 = vrot.slane %v15383_v19, 6  ;;  %v15396_v28 = vsel %vm7094_vm8, %v7112_v0, %v7114_v37  ;;  %v7116_v26 = vrot.slane %v15383_v19, 5 }
 0x8ed   : > { %12052 = vrcp.f32 %v7044_v49  ;;  %v7045_v2 = vadd.f32 1.0, %v12047_v31  ;;  %v15400_v46 = vsel %vm835_vm2, %v7546_v51, %v7548_v43  ;;  %v7550_v18 = vrot.slane %v15383_v19, 7 }
 0x8ee   : > { %v7182_v15 = vsel %vm766_vm4, %v7179_v6, %v7181_v60  ;;  %v15405_v36 = vsel %vm7094_vm8, %v7114_v37, %v7116_v26  ;;  %v15412_v0 = vsel %vm1414_vm5, %v16207_v62, %v7952_v52  ;;  %v15427_v52 = vsel %vm1414_vm5, %v7954_v12, %v7956_v32 }
 0x8ef   : > { %v12049_v49 = vpop.eup %12048  ;;  %12054 = vrcp.f32 %v7045_v2  ;;  %v7213_v31 = vpack.c.bf16 %v7182_v15, %v7180_v22  ;;  %v15417_v24 = vsel %vm835_vm2, %v7548_v43, %v7550_v18  ;;  %16406 = vst [vmem:[#allocation17_spill] sm:$0xff] %v15427_v52  ;;  %v7958_v22 = vrot.slane %v15252_v57, 1 }
 0x8f0   : > { %v15420_v6 = vmul.f32 %v12049_v49, %v15217_v5  ;;  %v7960_v43 = vrot.slane %v15271_v34, 1  ;;  %v7962_v15 = vrot.slane %v15310_v23, 1  ;;  %v7964_v5 = vrot.slane %v15327_v53, 1 }
 0x8f1   : > { %v12051_v2 = vpop.eup %12050  ;;  %10816 = vmatmul.mubr.msk.bf16.gmra.mrb[56].mxu0 %vm7253_vm7, %v7213_v31  ;;  %v15441_v41 = vsel %vm1414_vm5, %v7956_v32, %v7958_v22  ;;  %v7966_v51 = vrot.slane %v15360_v39, 1 }
 0x8f2   : > { %v15435_v49 = vmul.f32 %v12051_v2, %v15230_v21  ;;  %v7183_v62 = vrot.slane %v15420_v6, 6  ;;  %v7118_v4 = vrot.slane %v15420_v6, 5  ;;  %v7552_v12 = vrot.slane %v15420_v6, 7  ;;  %16407 = vst [vmem:[#allocation18_spill] sm:$0xff] %v15441_v41 }
 0x8f3   : > { %v15444_v31 = vsel %vm1414_vm5, %v7958_v22, %v7960_v43  ;;  %v15447_v37 = vsel %vm1414_vm5, %v7960_v43, %v7962_v15  ;;  %v15450_v33 = vsel %vm1414_vm5, %v7962_v15, %v7964_v5  ;;  %v7968_v15 = vrot.slane %v15383_v19, 1 }
 0x8f4   : > { %16408 = vst [vmem:[#allocation19_spill] sm:$0xff] %v15444_v31  ;;  %16409 = vst [vmem:[#allocation2_spill] sm:$0xff] %v15447_v37  ;;  %v7184_v21 = vsel %vm766_vm4, %v7181_v60, %v7183_v62  ;;  %v7185_v2 = vrot.slane %v15435_v49, 6  ;;  %v15455_v3 = vsel %vm7094_vm8, %v7116_v26, %v7118_v4  ;;  %v7120_v9 = vrot.slane %v15435_v49, 5 }
 0x8f5   : > { %16410 = vst [vmem:[#allocation3_spill] sm:$0xff] %v15450_v33  ;;  %v15459_v32 = vsel %vm835_vm2, %v7550_v18, %v7552_v12  ;;  %v7554_v22 = vrot.slane %v15435_v49, 7  ;;  %v15485_v26 = vsel %vm1414_vm5, %v7964_v5, %v7966_v51  ;;  %v7970_v63 = vrot.slane %v15420_v6, 1 }
 0x8f6   : > { %v7186_v60 = vsel %vm766_vm4, %v7183_v62, %v7185_v2  ;;  %v15468_v35 = vsel %vm7094_vm8, %v7118_v4, %v7120_v9  ;;  %16411 = vst [vmem:[#allocation4_spill] sm:$0xff] %v15485_v26  ;;  %v8195_v26 = vrot.slane %v15310_v23, 2 }
 0x8f7   : > { %v12053_v18 = vpop.eup %12052  ;;  %v7214_v61 = vpack.c.bf16 %v7186_v60, %v7184_v21  ;;  %v15476_v43 = vsel %vm835_vm2, %v7552_v12, %v7554_v22  ;;  %v7143_v12 = vpack.c.bf16 %v15376_v56, %v15365_v7  ;;  %v15505_v7 = vsel %vm1414_vm5, %v7968_v15, %v7970_v63 }
 0x8f8   : > { %v15480_v62 = vmul.f32 %v12053_v18, %v15274_v27  ;;  %v15494_v27 = vsel %vm1414_vm5, %v7966_v51, %v7968_v15  ;;  %v7972_v18 = vrot.slane %v15435_v49, 1 }
 0x8f9   : > { %v12055_v21 = vpop.eup %12054  ;;  %10819 = vmatprep.mubr.msk.bf16.mxu0 %vm7253_vm7, %v7214_v61 }
 0x8fa   : > { %v15498_v4 = vmul.f32 %v12055_v21, %v15285_v47  ;;  %v7187_v5 = vrot.slane %v15480_v62, 6  ;;  %v7122_v17 = vrot.slane %v15480_v62, 5  ;;  %v7556_v61 = vrot.slane %v15480_v62, 7 }
 0x8fb   : > { %v15508_v56 = vsel %vm1414_vm5, %v7970_v63, %v7972_v18  ;;  %v7974_v51 = vrot.slane %v15480_v62, 1  ;;  %v8207_v52 = vrot.slane %v15480_v62, 2 }
 0x8fc   : > { %v7188_v60 = vsel %vm766_vm4, %v7185_v2, %v7187_v5  ;;  %v7189_v47 = vrot.slane %v15498_v4, 6  ;;  %v15514_v21 = vsel %vm7094_vm8, %v7120_v9, %v7122_v17  ;;  %v7124_v38 = vrot.slane %v15498_v4, 5 }
 0x8fd   : > { %v15518_v33 = vsel %vm835_vm2, %v7554_v22, %v7556_v61  ;;  %v7558_v15 = vrot.slane %v15498_v4, 7  ;;  %v15530_v9 = vsel %vm1414_vm5, %v7972_v18, %v7974_v51  ;;  %v7976_v37 = vrot.slane %v15498_v4, 1 }
 0x8fe   : > { %v7190_v2 = vsel %vm766_vm4, %v7187_v5, %v7189_v47  ;;  %v15527_v31 = vsel %vm7094_vm8, %v7122_v17, %v7124_v38  ;;  %v16412_v5 = vrot.slane %v15174_v30, 5  ;;  %v16219_v47 = vrot.slane %v15167_v14, 2 }
 0x8ff   : > { %v7215_v22 = vpack.c.bf16 %v7190_v2, %v7188_v60  ;;  %v15536_v41 = vsel %vm835_vm2, %v7556_v61, %v7558_v15  ;;  %v15546_v18 = vsel %vm1414_vm5, %v7974_v51, %v7976_v37  ;;  %v15549_v60 = vsel %vm1414_vm5, %v7976_v37, 0.0 }
 0x900   : > { %v7101_v38 = vsel %vm7094_vm8, %v7098_v42, %v16412_v5  ;;  %16413 = vst [vmem:[#allocation5_spill] sm:$0xff] %v15546_v18  ;;  %16414 = vst [vmem:[#allocation6_spill] sm:$0xff] %v15549_v60  ;;  %v8185_v15 = vrot.slane %v15174_v30, 2  ;;  %v8187_v2 = vrot.slane %v15202_v16, 2  ;;  %v8189_v5 = vrot.slane %v15214_v29, 2 }
 0x901   : > { %10820 = vmatmul.mubr.msk.bf16.gmra.mrb[60].mxu0 %vm7253_vm7, %v7215_v22  ;;  %v8191_v51 = vrot.slane %v15252_v57, 2  ;;  %v8193_v37 = vrot.slane %v15271_v34, 2  ;;  %v16415_v22 = vrot.slane %v15147_v20, 5 }
 0x902   : > { %10833 = vmatprep.mubr.msk.bf16.mxu0 %vm7253_vm7, %v7143_v12  ;;  %v15568_v63 = vsel %vm1657_vm6, %v16219_v47, %v8185_v15  ;;  %v15571_v17 = vsel %vm1657_vm6, %v8185_v15, %v8187_v2  ;;  %v15576_v18 = vsel %vm1657_vm6, %v8187_v2, %v8189_v5  ;;  %v8199_v15 = vrot.slane %v15360_v39, 2 }
 0x903   : > { %v7099_v61 = vsel %vm7094_vm8, %v16415_v22, %v7098_v42  ;;  %16416 = vst [vmem:[#allocation7_spill] sm:$0xff] %v15568_v63  ;;  %16417 = vst [vmem:[#allocation8_spill] sm:$0xff] %v15576_v18  ;;  %v15579_v60 = vsel %vm1657_vm6, %v8189_v5, %v8191_v51  ;;  %v15584_v22 = vsel %vm1657_vm6, %v8191_v51, %v8193_v37  ;;  %v8201_v2 = vrot.slane %v15383_v19, 2  ;;  %v11648_v42 = vld [vmem:[%s16165_s13 + $0x50] sm:$0xff]  }
 0x904   : > { %v7144_v12 = vpack.c.bf16 %v7101_v38, %v7099_v61  ;;  %16418 = vst [vmem:[#allocation9_spill] sm:$0xff] %v15579_v60  ;;  %16419 = vst [vmem:[#allocation10_spill] sm:$0xff] %v15584_v22  ;;  %v15587_v47 = vsel %vm1657_vm6, %v8193_v37, %v8195_v26  ;;  %v8197_v38 = vrot.slane %v15327_v53, 2  ;;  %v8203_v5 = vrot.slane %v15420_v6, 2 }
 0x905   : > { %16420 = vst [vmem:[#allocation11_spill] sm:$0xff] %v15587_v47  ;;  %v8205_v37 = vrot.slane %v15435_v49, 2  ;;  %v8209_v18 = vrot.slane %v15498_v4, 2  ;;  %v15608_v22 = vsel %vm1657_vm6, %v8199_v15, %v8201_v2 }
 0x906   : > { %v15599_v51 = vsel %vm1657_vm6, %v8195_v26, %v8197_v38  ;;  %v15605_v61 = vsel %vm1657_vm6, %v8197_v38, %v8199_v15  ;;  %v15611_v47 = vsel %vm1657_vm6, %v8201_v2, %v8203_v5  ;;  %v16423_v15 = vpack.c.bf16 %v15257_v44, %v15239_v48 }
 0x907   : > { %v15619_v63 = vsel %vm1657_vm6, %v8203_v5, %v8205_v37  ;;  %v15622_v38 = vsel %vm1657_vm6, %v8205_v37, %v8207_v52  ;;  %v15632_v2 = vsel %vm1657_vm6, %v8207_v52, %v8209_v18  ;;  %v15635_v60 = vsel %vm1657_vm6, %v8209_v18, 0.0  ;;  %v11649_v5 = vld [vmem:[%s16165_s13 + $0x58] sm:$0xff]  }
 0x908   : > { %16421 = vst [vmem:[#allocation12_spill] sm:$0xff] %v15619_v63  ;;  %16422 = vst [vmem:[#allocation13_spill] sm:$0xff] %v15622_v38  ;;  %v16228_v48 = vrot.slane %v15167_v14, 3  ;;  %v8419_v44 = vrot.slane %v15174_v30, 3  ;;  %v8421_v37 = vrot.slane %v15202_v16, 3  ;;  %v8423_v52 = vrot.slane %v15214_v29, 3 }
 0x909   : > { %10834 = vmatmul.mubr.msk.bf16.vlgmr.msra.gmra.mrb[48].mxu0 %vm7253_vm7, %v7144_v12  ;;  %16424 = vst [vmem:[#allocation14_spill] sm:$0xff] %v15632_v2  ;;  %16425 = vst [vmem:[#allocation15_spill] sm:$0xff] %v15635_v60  ;;  %v8425_v18 = vrot.slane %v15252_v57, 3  ;;  %v8429_v26 = vrot.slane %v15310_v23, 3  ;;  %v8433_v2 = vrot.slane %v15360_v39, 3 }
 0x90a   : > { %10850 = vmatpush3.bf16.msra.mxu0 %v15304_v11  ;;  %10837 = vmatprep.mubr.msk.bf16.mxu0 %vm7253_vm7, %v16423_v15  ;;  %v8427_v15 = vrot.slane %v15271_v34, 3  ;;  %v15651_v12 = vsel %vm8413_vm9, %v16228_v48, %v8419_v44  ;;  %v15654_v11 = vsel %vm8413_vm9, %v8419_v44, %v8421_v37  ;;  %v15660_v60 = vsel %vm8413_vm9, %v8421_v37, %v8423_v52  ;;  %v11650_v48 = vld [vmem:[%s16165_s13 + $0x60] sm:$0xff]  }
 0x90b   : > { %10851 = vmatprep.subr.bf16.mxu0 %v11648_v42  ;;  %16426 = vst [vmem:[#allocation16_spill] sm:$0xff] %v15651_v12  ;;  %16427 = vst [vmem:[#allocation20_spill] sm:$0xff] %v15654_v11  ;;  %v15663_v63 = vsel %vm8413_vm9, %v8423_v52, %v8425_v18  ;;  %v8431_v37 = vrot.slane %v15327_v53, 3  ;;  %v8435_v12 = vrot.slane %v15383_v19, 3  ;;  %v8437_v11 = vrot.slane %v15420_v6, 3 }
 0x90c   : > { %16428 = vst [vmem:[#allocation21_spill] sm:$0xff] %v15660_v60  ;;  %v15671_v38 = vsel %vm8413_vm9, %v8425_v18, %v8427_v15  ;;  %v16431_v44 = vpack.c.bf16 %v15315_v50, %v15293_v58  ;;  %v8441_v60 = vrot.slane %v15480_v62, 3  ;;  %v8443_v52 = vrot.slane %v15498_v4, 3 }
 0x90d   : > { %16429 = vst [vmem:[#allocation22_spill] sm:$0xff] %v15671_v38  ;;  %v15687_v18 = vsel %vm8413_vm9, %v8429_v26, %v8431_v37  ;;  %v16432_v38 = vpack.c.bf16 %v15352_v25, %v15342_v59  ;;  %v15700_v58 = vsel %vm8413_vm9, %v8433_v2, %v8435_v12  ;;  %v15703_v50 = vsel %vm8413_vm9, %v8435_v12, %v8437_v11 }
 0x90e   : > { %10852 = vmatpush3.bf16.msra.mxu0 %v11648_v42  ;;  %v15674_v42 = vsel %vm8413_vm9, %v8427_v15, %v8429_v26  ;;  %v8439_v15 = vrot.slane %v15435_v49, 3  ;;  %v11651_v26 = vld [vmem:[%s16165_s13 + $0x68] ss:$0 sps:$4 sm:$0xff]   ;;  %v16433_v12 = vpack.c.bf16 %v15405_v36, %v15396_v28  ;;  %v16435_v36 = vpack.c.bf16 %v15527_v31, %v15514_v21  ;;  %v11654_v21 = vld [vmem:[%s16165_s13 + $0x7c] sm:$0xff]  }
 0x90f   : > { %10853 = vmatprep.subr.bf16.mxu0 %v11649_v5  ;;  %16430 = vst [vmem:[#allocation23_spill] sm:$0xff] %v15674_v42  ;;  %v15697_v42 = vsel %vm8413_vm9, %v8431_v37, %v8433_v2  ;;  %v7532_v28 = vrot.slane %v15167_v14, 7  ;;  %v16437_v31 = vpack.c.bf16 %v15281_v55, %v15265_v13  ;;  %v16439_v13 = vpack.c.bf16 %v15368_v8, %v15348_v45  ;;  %v11656_v55 = vld [vmem:[%s16165_s13 + $0x8c] ss:$0 sps:$4 sm:$0xff]  }
 0x910   : > { %v8466_v59 = vpack.c.bf16 %v15697_v42, %v15687_v18  ;;  %v15716_v2 = vsel %vm8413_vm9, %v8439_v15, %v8441_v60  ;;  %v16441_v45 = vpack.c.bf16 %v15476_v43, %v15459_v32  ;;  %v7762_v8 = vpack.c.bf16 %v15147_v20, %v15141_v40 }
 0x911   : > { %10838 = vmatmul.mubr.msk.bf16.gmra.mrb[52].mxu0 %vm7253_vm7, %v16431_v44  ;;  %v15724_v44 = vsel %vm8413_vm9, %v8443_v52, 0.0  ;;  %v16443_v32 = vpack.c.bf16 %v15214_v29, %v15202_v16  ;;  %v16445_v16 = vpack.c.bf16 %v15327_v53, %v15310_v23  ;;  %v11661_v29 = vld [vmem:[%s16165_s13 + $0xb0] ss:$0 sps:$4 sm:$0xff]   ;;  %v16447_v23 = vpack.c.bf16 %v15435_v49, %v15420_v6  ;;  %v11663_v6 = vld [vmem:[%s16165_s13 + $0xbc] sm:$0xff]  }
 0x912   : > { %10841 = vmatprep.mubr.msk.bf16.mxu0 %vm7253_vm7, %v16432_v38  ;;  %10854 = vmatpush3.bf16.msra.mxu0 %v11649_v5  ;;  %v15713_v38 = vsel %vm8413_vm9, %v8437_v11, %v8439_v15  ;;  %v15721_v5 = vsel %vm8413_vm9, %v8441_v60, %v8443_v52  ;;  %v7647_v11 = vsel %vm553_vm0, %v11651_v26, 0  ;;  %v11652_v15 = vld [vmem:[%s16165_s13 + $0x6c] sm:$0xff]   ;;  %v7530_v60 = vrot.slane %v15147_v20, 7 }
 0x913   : > { %10855 = vmatprep.subr.bf16.mxu0 %v11650_v48  ;;  %v16434_v52 = vpack.c.bf16 %v15468_v35, %v15455_v3  ;;  %v16436_v35 = vrot.slane %v15174_v30, 7  ;;  %v8065_v43 = vsel %vm553_vm0, %v11661_v29, 0  ;;  %v7948_v53 = vrot.slane %v15147_v20, 1 }
 0x914   : > { %v16450_v49 = vpack.c.bf16 %v15390_v54, %v15412_v0  ;;  %v16454_v54 = vld [vmem:[#allocation2_spill] sm:$0xff]  ;;  %v16455_v0 = vld [vmem:[#allocation19_spill] sm:$0xff] }
 0x915   : > { %v7535_v3 = vsel %vm835_vm2, %v7532_v28, %v16436_v35  ;;  %v16451_v35 = vld [vmem:[#allocation18_spill] sm:$0xff] }
 0x916   : > { %10856 = vmatpush3.bf16.msra.mxu0 %v11650_v48  ;;  %v7529_v48 = vrot.slane %v15141_v40, 7 }
 0x917   : > { %11430 = vmatprep.subr.msk.bf16.mxu0 %vm553_vm0, %v11651_v26 }
 0x918   : > { %v7531_v26 = vsel %vm835_vm2, %v7529_v48, %v7530_v60  ;;  %v7576_v37 = vsel %vm835_vm2, 0.0, %v7529_v48  ;;  %v7947_v48 = vrot.slane %v15141_v40, 1 }
 0x919   : > { %10842 = vmatmul.mubr.msk.bf16.gmra.mrb[56].mxu0 %vm7253_vm7, %v16433_v12  ;;  %v7577_v25 = vpack.c.bf16 %v7531_v26, %v7576_v37  ;;  %v7533_v12 = vsel %vm835_vm2, %v7530_v60, %v7532_v28  ;;  %v11653_v37 = vld [vmem:[%s16165_s13 + $0x74] sm:$0xff]   ;;  %v16438_v60 = vpack.c.bf16 %v15336_v1, %v15321_v10  ;;  %v16440_v1 = vpack.c.bf16 %v15417_v24, %v15400_v46 }
 0x91a   : > { %10845 = vmatprep.mubr.msk.bf16.mxu0 %vm7253_vm7, %v16434_v52  ;;  %10858 = vmatpush3.bf16.msra.mxu0 %v7647_v11  ;;  %v7578_v11 = vpack.c.bf16 %v7535_v3, %v7533_v12  ;;  %v11657_v10 = vld [vmem:[%s16165_s13 + $0x90] sm:$0xff]   ;;  %v16442_v52 = vpack.c.bf16 %v15536_v41, %v15518_v33  ;;  %v7763_v24 = vpack.c.bf16 %v15174_v30, %v15167_v14  ;;  %v11658_v46 = vld [vmem:[%s16165_s13 + $0x98] sm:$0xff]   ;;  %v11659_v41 = vld [vmem:[%s16165_s13 + $0xa0] sm:$0xff]   ;;  %v16448_v26 = vrot.slane %v15167_v14, 1 }
 0x91b   : > { %10875 = vmatprep.subr.bf16.mxu0 %v11652_v15  ;;  %v11660_v30 = vld [vmem:[%s16165_s13 + $0xa8] sm:$0xff]   ;;  %v16444_v33 = vpack.c.bf16 %v15271_v34, %v15252_v57  ;;  %v11662_v57 = vld [vmem:[%s16165_s13 + $0xb4] sm:$0xff]   ;;  %v16446_v34 = vpack.c.bf16 %v15383_v19, %v15360_v39  ;;  %v7949_v28 = vsel %vm1414_vm5, %v7947_v48, %v7948_v53  ;;  %v16449_v19 = vpack.c.bf16 %v15498_v4, %v15480_v62 }
 0x91c   : > { %v16452_v3 = vld [vmem:[#allocation17_spill] sm:$0xff]  ;;  %v11664_v62 = vld [vmem:[%s16165_s13 + $0xc4] sm:$0xff]   ;;  %v11665_v4 = vld [vmem:[%s16165_s13 + $0xcc] sm:$0xff]   ;;  %v16475_v48 = vpack.c.bf16 %v15611_v47, %v15608_v22 }
 0x91d   : > { %v16453_v12 = vpack.c.bf16 %v16451_v35, %v16452_v3  ;;  %v16480_v47 = vld [vmem:[#allocation15_spill] sm:$0xff]  ;;  %v16481_v22 = vld [vmem:[#allocation14_spill] sm:$0xff]  ;;  %v16483_v3 = vld [vmem:[#allocation20_spill] sm:$0xff] }
 0x91e   : > { %v16482_v35 = vpack.c.bf16 %v16480_v47, %v16481_v22 }
 0x921   : > { %10846 = vmatmul.mubr.msk.bf16.gmra.mrb[60].mxu0 %vm7253_vm7, %v16435_v36  ;;  %v7951_v36 = vsel %vm1414_vm5, %v7948_v53, %v16448_v26  ;;  %v16476_v26 = vld [vmem:[#allocation13_spill] sm:$0xff] }
 0x922   : > { %10859 = vmatprep.mubr.msk.bf16.mxu0 %vm7253_vm7, %v7577_v25  ;;  %v11655_v25 = vld [vmem:[%s16165_s13 + $0x84] sm:$0xff]   ;;  %v7995_v39 = vpack.c.bf16 %v7951_v36, %v7949_v28  ;;  %v8415_v36 = vrot.slane %v15147_v20, 3  ;;  %v8414_v28 = vrot.slane %v15141_v40, 3 }
 0x929   : > { %10860 = vmatmul.mubr.msk.bf16.vlgmr.msra.gmra.mrb[48].mxu0 %vm7253_vm7, %v7578_v11  ;;  %v16456_v11 = vpack.c.bf16 %v16454_v54, %v16455_v0  ;;  %v16491_v0 = vpack.c.bf16 %v15703_v50, %v15700_v58 }
 0x92a   : > { %10876 = vmatpush3.bf16.msra.mxu0 %v11652_v15  ;;  %10863 = vmatprep.mubr.msk.bf16.mxu0 %vm7253_vm7, %v16437_v31  ;;  %v7832_v15 = vsel %vm553_vm0, %v11656_v55, 0  ;;  %v16458_v31 = vld [vmem:[#allocation3_spill] sm:$0xff] }
 0x92b   : > { %10877 = vmatprep.subr.bf16.mxu0 %v11653_v37 }
 0x92e   : > { %10878 = vmatpush3.bf16.msra.mxu0 %v11653_v37  ;;  %v16457_v37 = vld [vmem:[#allocation4_spill] sm:$0xff] }
 0x92f   : > { %10879 = vmatprep.subr.bf16.mxu0 %v11654_v21 }
 0x931   : > { %10864 = vmatmul.mubr.msk.bf16.gmra.mrb[52].mxu0 %vm7253_vm7, %v16438_v60 }
 0x932   : > { %10867 = vmatprep.mubr.msk.bf16.mxu0 %vm7253_vm7, %v16439_v13  ;;  %10880 = vmatpush3.bf16.msra.mxu0 %v11654_v21  ;;  %v16459_v21 = vpack.c.bf16 %v16457_v37, %v16458_v31  ;;  %v11667_v13 = vld [vmem:[%s16165_s13 + $0xd8] sm:$0xff]   ;;  %v8707_v37 = vpop.permute.xlu1 %8706  ;;  %v8703_v31 = vpop.permute.xlu0 %8702 }
 0x933   : > { %10881 = vmatprep.subr.bf16.mxu0 %v11655_v25 }
 0x936   : > { %10882 = vmatpush3.bf16.msra.mxu0 %v11655_v25  ;;  %v11666_v25 = vld [vmem:[%s16165_s13 + $0xd4] ss:$0 sps:$4 sm:$0xff]   ;;  %v8709_v42 = vpop.permute.xlu1 %8708  ;;  %v8705_v18 = vpop.permute.xlu0 %8704 }
 0x937   : > { %11431 = vmatprep.subr.msk.bf16.mxu0 %vm553_vm0, %v11656_v55  ;;  %v8298_v60 = vsel %vm553_vm0, %v11666_v25, 0  ;;  %v16460_v55 = vpack.c.bf16 %v15505_v7, %v15494_v27  ;;  %v16463_v7 = vld [vmem:[#allocation6_spill] sm:$0xff] }
 0x939   : > { %10868 = vmatmul.mubr.msk.bf16.gmra.mrb[56].mxu0 %vm7253_vm7, %v16440_v1  ;;  %v8180_v1 = vrot.slane %v15141_v40, 2  ;;  %v16486_v40 = vld [vmem:[#allocation21_spill] sm:$0xff] }
 0x93a   : > { %10871 = vmatprep.mubr.msk.bf16.mxu0 %vm7253_vm7, %v16441_v45  ;;  %10884 = vmatpush3.bf16.msra.mxu0 %v7832_v15  ;;  %v16461_v15 = vpack.c.bf16 %v15530_v9, %v15508_v56  ;;  %v16462_v45 = vrot.slane %v15167_v14, 2  ;;  %v11668_v56 = vld [vmem:[%s16165_s13 + $0xe0] sm:$0xff]   ;;  %v16466_v9 = vld [vmem:[#allocation7_spill] sm:$0xff] }
 0x93b   : > { %10901 = vmatprep.subr.bf16.mxu0 %v11657_v10 }
 0x941   : > { %10872 = vmatmul.mubr.msk.bf16.gmra.mrb[60].mxu0 %vm7253_vm7, %v16442_v52 }
 0x942   : > { %10885 = vmatprep.mubr.msk.bf16.mxu0 %vm7253_vm7, %v7762_v8 }
 0x949   : > { %10886 = vmatmul.mubr.msk.bf16.vlgmr.msra.gmra.mrb[48].mxu0 %vm7253_vm7, %v7763_v24  ;;  %v16464_v24 = vld [vmem:[#allocation5_spill] sm:$0xff] }
 0x94a   : > { %10902 = vmatpush3.bf16.msra.mxu0 %v11657_v10  ;;  %10889 = vmatprep.mubr.msk.bf16.mxu0 %vm7253_vm7, %v16443_v32  ;;  %v8181_v10 = vrot.slane %v15147_v20, 2  ;;  %v16467_v32 = vpack.c.bf16 %v15571_v17, %v16466_v9  ;;  %v16471_v17 = vld [vmem:[#allocation11_spill] sm:$0xff]  ;;  %v16487_v20 = vpack.c.bf16 %v15663_v63, %v16486_v40  ;;  %v16492_v63 = vpack.c.bf16 %v15716_v2, %v15713_v38 }
 0x94b   : > { %10903 = vmatprep.subr.bf16.mxu0 %v11658_v46 }
 0x94c   : > { %v8184_v8 = vsel %vm1657_vm6, %v8181_v10, %v16462_v45  ;;  %v8182_v52 = vsel %vm1657_vm6, %v8180_v1, %v8181_v10 }
 0x94d   : > { %v8228_v27 = vpack.c.bf16 %v8184_v8, %v8182_v52 }
 0x94e   : > { %10904 = vmatpush3.bf16.msra.mxu0 %v11658_v46  ;;  %v16465_v46 = vpack.c.bf16 %v16463_v7, %v16464_v24 }
 0x94f   : > { %10905 = vmatprep.subr.bf16.mxu0 %v11659_v41 }
 0x951   : > { %10890 = vmatmul.mubr.msk.bf16.gmra.mrb[52].mxu0 %vm7253_vm7, %v16444_v33 }
 0x952   : > { %10893 = vmatprep.mubr.msk.bf16.mxu0 %vm7253_vm7, %v16445_v16  ;;  %10906 = vmatpush3.bf16.msra.mxu0 %v11659_v41  ;;  %v16468_v41 = vld [vmem:[#allocation9_spill] sm:$0xff]  ;;  %v11669_v16 = vld [vmem:[%s16165_s13 + $0xe8] sm:$0xff]  }
 0x953   : > { %10907 = vmatprep.subr.bf16.mxu0 %v11660_v30 }
 0x956   : > { %10908 = vmatpush3.bf16.msra.mxu0 %v11660_v30  ;;  %v16469_v30 = vld [vmem:[#allocation8_spill] sm:$0xff] }
 0x957   : > { %11432 = vmatprep.subr.msk.bf16.mxu0 %vm553_vm0, %v11661_v29  ;;  %v16470_v33 = vpack.c.bf16 %v16468_v41, %v16469_v30  ;;  %v11670_v29 = vld [vmem:[%s16165_s13 + $0xf0] sm:$0xff]  }
 0x959   : > { %10894 = vmatmul.mubr.msk.bf16.gmra.mrb[56].mxu0 %vm7253_vm7, %v16446_v34  ;;  %v16474_v34 = vpack.c.bf16 %v15605_v61, %v15599_v51  ;;  %v16477_v61 = vld [vmem:[#allocation12_spill] sm:$0xff] }
 0x95a   : > { %10897 = vmatprep.mubr.msk.bf16.mxu0 %vm7253_vm7, %v16447_v23  ;;  %10910 = vmatpush3.bf16.msra.mxu0 %v8065_v43  ;;  %v16472_v43 = vld [vmem:[#allocation10_spill] sm:$0xff]  ;;  %v11671_v23 = vld [vmem:[%s16165_s13 + $0xf8] ss:$0 sps:$4 sm:$0xff]   ;;  %v16478_v51 = vpack.c.bf16 %v16476_v26, %v16477_v61 }
 0x95b   : > { %10927 = vmatprep.subr.bf16.mxu0 %v11662_v57  ;;  %v8532_v53 = vsel %vm553_vm0, %v11671_v23, 0 }
 0x961   : > { %10898 = vmatmul.mubr.msk.bf16.gmra.mrb[60].mxu0 %vm7253_vm7, %v16449_v19 }
 0x962   : > { %10911 = vmatprep.mubr.msk.bf16.mxu0 %vm7253_vm7, %v7995_v39  ;;  %v16479_v39 = vrot.slane %v15167_v14, 3  ;;  %v16488_v14 = vld [vmem:[#allocation23_spill] sm:$0xff] }
 0x964   : > { %v8418_v19 = vsel %vm8413_vm9, %v8415_v36, %v16479_v39 }
 0x969   : > { %10912 = vmatmul.mubr.msk.bf16.vlgmr.msra.gmra.mrb[48].mxu0 %vm7253_vm7, %v16450_v49 }
 0x96a   : > { %10928 = vmatpush3.bf16.msra.mxu0 %v11662_v57  ;;  %10915 = vmatprep.mubr.msk.bf16.mxu0 %vm7253_vm7, %v16453_v12  ;;  %v16473_v57 = vpack.c.bf16 %v16471_v17, %v16472_v43  ;;  %v16484_v12 = vld [vmem:[#allocation16_spill] sm:$0xff] }
 0x96b   : > { %10929 = vmatprep.subr.bf16.mxu0 %v11663_v6 }
 0x96e   : > { %10930 = vmatpush3.bf16.msra.mxu0 %v11663_v6  ;;  %v8416_v6 = vsel %vm8413_vm9, %v8414_v28, %v8415_v36 }
 0x96f   : > { %10931 = vmatprep.subr.bf16.mxu0 %v11664_v62  ;;  %v8462_v49 = vpack.c.bf16 %v8418_v19, %v8416_v6 }
 0x971   : > { %10916 = vmatmul.mubr.msk.bf16.gmra.mrb[52].mxu0 %vm7253_vm7, %v16456_v11  ;;  %v16493_v11 = vpack.c.bf16 %v15724_v44, %v15721_v5 }
 0x972   : > { %10919 = vmatprep.mubr.msk.bf16.mxu0 %vm7253_vm7, %v16459_v21  ;;  %10932 = vmatpush3.bf16.msra.mxu0 %v11664_v62  ;;  %v16485_v62 = vpack.c.bf16 %v16483_v3, %v16484_v12  ;;  %v8711_v21 = vpop.permute.xlu0 %8710 }
 0x973   : > { %10933 = vmatprep.subr.bf16.mxu0 %v11665_v4 }
 0x976   : > { %10934 = vmatpush3.bf16.msra.mxu0 %v11665_v4  ;;  %v16489_v4 = vld [vmem:[#allocation22_spill] sm:$0xff]  ;;  %v8715_v58 = vpop.permute.xlu0 %8714 }
 0x977   : > { %11433 = vmatprep.subr.msk.bf16.mxu0 %vm553_vm0, %v11666_v25  ;;  %v16490_v54 = vpack.c.bf16 %v16488_v14, %v16489_v4 }
 0x979   : > { %10920 = vmatmul.mubr.msk.bf16.gmra.mrb[56].mxu0 %vm7253_vm7, %v16460_v55 }
 0x97a   : > { %10923 = vmatprep.mubr.msk.bf16.mxu0 %vm7253_vm7, %v16461_v15  ;;  %10936 = vmatpush3.bf16.msra.mxu0 %v8298_v60  ;;  %v8719_v60 = vpop.permute.xlu0 %8718 }
 0x97b   : > { %10953 = vmatprep.subr.bf16.mxu0 %v11667_v13 }
 0x97e   : > { %v8723_v55 = vpop.permute.xlu0 %8722 }
 0x981   : > { %10924 = vmatmul.mubr.msk.bf16.gmra.mrb[60].mxu0 %vm7253_vm7, %v16465_v46 }
 0x982   : > { %10937 = vmatprep.mubr.msk.bf16.mxu0 %vm7253_vm7, %v8228_v27  ;;  %v8727_v2 = vpop.permute.xlu0 %8726  ;;  %v15995_v27 = vld [vmem:[%s16166_s14] ss:$0 sm:$0xff] }
 0x986   : > { %v8731_v10 = vpop.permute.xlu0 %8730 }
 0x989   : > { %10938 = vmatmul.mubr.msk.bf16.vlgmr.msra.gmra.mrb[48].mxu0 %vm7253_vm7, %v16467_v32 }
 0x98a   : > { %10954 = vmatpush3.bf16.msra.mxu0 %v11667_v13  ;;  %10941 = vmatprep.mubr.msk.bf16.mxu0 %vm7253_vm7, %v16470_v33  ;;  %v15982_v5 = vpop.permute.xlu0 %8734  ;;  %v8767_v33 = vsel %vm8766_vm10, %v8703_v31, %v8705_v18 }
 0x98b   : > { %10955 = vmatprep.subr.bf16.mxu0 %v11668_v56 }
 0x98e   : > { %10956 = vmatpush3.bf16.msra.mxu0 %v11668_v56  ;;  %v15986_v45 = vpop.permute.xlu0 %8738 }
 0x98f   : > { %10957 = vmatprep.subr.bf16.mxu0 %v11669_v16 }
 0x991   : > { %10942 = vmatmul.mubr.msk.bf16.gmra.mrb[52].mxu0 %vm7253_vm7, %v16473_v57 }
 0x992   : > { %10945 = vmatprep.mubr.msk.bf16.mxu0 %vm7253_vm7, %v16474_v34  ;;  %10958 = vmatpush3.bf16.msra.mxu0 %v11669_v16  ;;  %v15990_v52 = vpop.permute.xlu0 %8742 }
 0x993   : > { %10959 = vmatprep.subr.bf16.mxu0 %v11670_v29 }
 0x996   : > { %10960 = vmatpush3.bf16.msra.mxu0 %v11670_v29  ;;  %v16001_v32 = vpop.permute.xlu0 %8746 }
 0x997   : > { %11434 = vmatprep.subr.msk.bf16.mxu0 %vm553_vm0, %v11671_v23  ;;  %v8768_v23 = vsel %vm8766_vm10, %v8707_v37, %v8709_v42 }
 0x999   : > { %10946 = vmatmul.mubr.msk.bf16.gmra.mrb[56].mxu0 %vm7253_vm7, %v16475_v48 }
 0x99a   : > { %10949 = vmatprep.mubr.msk.bf16.mxu0 %vm7253_vm7, %v16478_v51  ;;  %10962 = vmatpush3.bf16.msra.mxu0 %v8532_v53  ;;  %v16022_v39 = vpop.permute.xlu0 %8750 }
 0x9a1   : > { %10950 = vmatmul.mubr.msk.bf16.gmra.mrb[60].mxu0 %vm7253_vm7, %v16482_v35 }
 0x9a2   : > { %10963 = vmatprep.mubr.msk.bf16.mxu0 %vm7253_vm7, %v8462_v49 }
 0x9a9   : > { %10964 = vmatmul.mubr.msk.bf16.vlgmr.msra.gmra.mrb[48].mxu0 %vm7253_vm7, %v16485_v62 }
 0x9aa   : > { %10967 = vmatprep.mubr.msk.bf16.mxu0 %vm7253_vm7, %v16487_v20 }
 0x9b1   : > { %10968 = vmatmul.mubr.msk.bf16.gmra.mrb[52].mxu0 %vm7253_vm7, %v16490_v54 }
 0x9b2   : > { %10971 = vmatprep.mubr.msk.bf16.mxu0 %vm7253_vm7, %v8466_v59  ;;  %v8713_v59 = vpop.permute.xlu1 %8712 }
 0x9b3   : > { %v8769_v9 = vsel %vm8766_vm10, %v8711_v21, %v8713_v59  ;;  %v8755_v59 = vpop.permute.xlu0 %8754 }
 0x9b6   : > { %v8717_v25 = vpop.permute.xlu1 %8716 }
 0x9b7   : > { %v8770_v43 = vsel %vm8766_vm10, %v8715_v58, %v8717_v25 }
 0x9b9   : > { %10972 = vmatmul.mubr.msk.bf16.gmra.mrb[56].mxu0 %vm7253_vm7, %v16491_v0 }
 0x9ba   : > { %10975 = vmatprep.mubr.msk.bf16.mxu0 %vm7253_vm7, %v16492_v63  ;;  %v8721_v50 = vpop.permute.xlu1 %8720 }
 0x9bb   : > { %v8771_v20 = vsel %vm8766_vm10, %v8719_v60, %v8721_v50 }
 0x9be   : > { %v8725_v13 = vpop.permute.xlu1 %8724 }
 0x9bf   : > { %v8772_v31 = vsel %vm8766_vm10, %v8723_v55, %v8725_v13 }
 0x9c1   : > { %10976 = vmatmul.mubr.msk.bf16.gmra.mrb[60].mxu0 %vm7253_vm7, %v16493_v11 }
 0x9c2   : > { %v8729_v38 = vpop.permute.xlu1 %8728 }
 0x9c3   : > { %v8773_v3 = vsel %vm8766_vm10, %v8727_v2, %v8729_v38 }
 0x9c6   : > { %v8733_v15 = vpop.permute.xlu1 %8732 }
 0x9c7   : > { %v8774_v0 = vsel %vm8766_vm10, %v8731_v10, %v8733_v15 }
 0x9ca   : > { %v15980_v1 = vpop.permute.xlu1 %8736 }
 0x9cb   : > { %v8775_v13 = vsel %vm8766_vm10, %v15982_v5, %v15980_v1 }
 0x9ce   : > { %v15984_v44 = vpop.permute.xlu1 %8740 }
 0x9d2   : > { %v15988_v8 = vpop.permute.xlu1 %8744 }
 0x9d6   : > { %v15997_v7 = vpop.permute.xlu1 %8748 }
 0x9d7   : > { %v8778_v1 = vsel %vm8766_vm10, %v16001_v32, %v15997_v7 }
 0x9da   : > { %v16016_v26 = vpop.permute.xlu1 %8752 }
 0x9de   : > { %v8757_v63 = vpop.permute.xlu1 %8756 }
 0xa7c   : > { %v10965_v24 = vpop.f32.mrb[48].mxu0 }
 0xa7d   : > { %v8656_v46 = vadd.f32 %v10965_v24, %v15995_v27  ;;  %v8568_v56 = vpop.f32.mrb[49].mxu0  ;;  %v8777_v24 = vsel %vm8766_vm10, %v15990_v52, %v15988_v8 }
 0xa7e   : > { %v8654_v41 = vadd.f32 %v15995_v27, %v8568_v56  ;;  %v10966_v30 = vpop.f32.mrb[50].mxu0 }
 0xa7f   : > { %v16005_v16 = vadd.f32 %v8769_v9, %v8656_v46  ;;  %v8657_v29 = vadd.f32 %v10966_v30, %v15995_v27  ;;  %v8571_v17 = vpop.f32.mrb[51].mxu0  ;;  %v8761_v46 = vpop.permute.xlu1 %8760 }
 0xa80   : > { %v16009_v57 = vadd.f32 %v8767_v33, %v8654_v41  ;;  %v8655_v34 = vadd.f32 %v15995_v27, %v8571_v17 }
 0xa81   : > { %v8817_v53 = vsub.f32 0.0, %v16005_v16  ;;  %v16014_v48 = vadd.f32 %v8770_v43, %v8657_v29  ;;  %v8759_v43 = vpop.permute.xlu0 %8758 }
 0xa82   : > { %v8815_v61 = vsub.f32 0.0, %v16009_v57  ;;  %v16019_v51 = vadd.f32 %v8768_v23, %v8655_v34 }
 0xa83   : > { %v8835_v36 = vmul.f32 1.442695, %v8817_v53  ;;  %v8818_v28 = vsub.f32 0.0, %v16014_v48  ;;  %v8776_v53 = vsel %vm8766_vm10, %v15986_v45, %v15984_v44  ;;  %v8779_v44 = vsel %vm8766_vm10, %v16022_v39, %v16016_v26  ;;  %v8765_v45 = vpop.permute.xlu1 %8764 }
 0xa84   : > { %v8831_v19 = vmul.f32 1.442695, %v8815_v61  ;;  %v8816_v6 = vsub.f32 0.0, %v16019_v51  ;;  %v10969_v49 = vpop.f32.mrb[52].mxu0 }
 0xa85   : > { %12056 = vpow2.f32 %v8835_v36  ;;  %v8837_v47 = vmul.f32 1.442695, %v8818_v28  ;;  %v8660_v22 = vadd.f32 %v10969_v49, %v15995_v27  ;;  %v8584_v35 = vpop.f32.mrb[53].mxu0 }
 0xa86   : > { %12058 = vpow2.f32 %v8831_v19  ;;  %v8833_v12 = vmul.f32 1.442695, %v8816_v6  ;;  %v8658_v62 = vadd.f32 %v15995_v27, %v8584_v35  ;;  %v10970_v40 = vpop.f32.mrb[54].mxu0 }
 0xa87   : > { %12060 = vpow2.f32 %v8837_v47  ;;  %v16029_v14 = vadd.f32 %v8773_v3, %v8660_v22  ;;  %v8661_v4 = vadd.f32 %v10970_v40, %v15995_v27  ;;  %v8587_v54 = vpop.f32.mrb[55].mxu0 }
 0xa88   : > { %12062 = vpow2.f32 %v8833_v12  ;;  %v16033_v11 = vadd.f32 %v8771_v20, %v8658_v62  ;;  %v8659_v37 = vadd.f32 %v15995_v27, %v8587_v54  ;;  %v8780_v62 = vsel %vm8766_vm10, %v8755_v59, %v8757_v63 }
 0xa89   : > { %v8821_v42 = vsub.f32 0.0, %v16029_v14  ;;  %v16038_v18 = vadd.f32 %v8774_v0, %v8661_v4  ;;  %v8781_v54 = vsel %vm8766_vm10, %v8759_v43, %v8761_v46  ;;  %v8763_v0 = vpop.permute.xlu0 %8762 }
 0xa8a   : > { %v8819_v21 = vsub.f32 0.0, %v16033_v11  ;;  %v16041_v25 = vadd.f32 %v8772_v31, %v8659_v37 }
 0xa8b   : > { %v8843_v58 = vmul.f32 1.442695, %v8821_v42  ;;  %v8822_v50 = vsub.f32 0.0, %v16038_v18  ;;  %v8782_v42 = vsel %vm8766_vm10, %v8763_v0, %v8765_v45 }
 0xa8c   : > { %v8839_v60 = vmul.f32 1.442695, %v8819_v21  ;;  %v8820_v38 = vsub.f32 0.0, %v16041_v25  ;;  %v10973_v2 = vpop.f32.mrb[56].mxu0 }
 0xa8d   : > { %12064 = vpow2.f32 %v8843_v58  ;;  %v8845_v55 = vmul.f32 1.442695, %v8822_v50  ;;  %v8664_v15 = vadd.f32 %v10973_v2, %v15995_v27  ;;  %v8600_v10 = vpop.f32.mrb[57].mxu0 }
 0xa8e   : > { %12066 = vpow2.f32 %v8839_v60  ;;  %v8841_v56 = vmul.f32 1.442695, %v8820_v38  ;;  %v8662_v9 = vadd.f32 %v15995_v27, %v8600_v10  ;;  %v10974_v41 = vpop.f32.mrb[58].mxu0 }
 0xa8f   : > { %v12057_v30 = vpop.eup %12056  ;;  %12068 = vpow2.f32 %v8845_v55  ;;  %v16056_v5 = vadd.f32 %v8777_v24, %v8664_v15  ;;  %v8665_v33 = vadd.f32 %v10974_v41, %v15995_v27  ;;  %v8603_v29 = vpop.f32.mrb[59].mxu0 }
 0xa90   : > { %v12059_v17 = vpop.eup %12058  ;;  %v8865_v8 = vadd.f32 1.0, %v12057_v30  ;;  %12070 = vpow2.f32 %v8841_v56  ;;  %v16059_v52 = vadd.f32 %v8775_v13, %v8662_v9  ;;  %v8663_v34 = vadd.f32 %v15995_v27, %v8603_v29 }
 0xa91   : > { %v12061_v23 = vpop.eup %12060  ;;  %v8863_v7 = vadd.f32 1.0, %v12059_v17  ;;  %v8825_v32 = vsub.f32 0.0, %v16056_v5  ;;  %v16066_v61 = vadd.f32 %v8778_v1, %v8665_v33 }
 0xa92   : > { %v12063_v36 = vpop.eup %12062  ;;  %12072 = vrcp.f32 %v8865_v8  ;;  %v8866_v28 = vadd.f32 1.0, %v12061_v23  ;;  %v8823_v19 = vsub.f32 0.0, %v16059_v52  ;;  %v16069_v6 = vadd.f32 %v8776_v53, %v8663_v34 }
 0xa93   : > { %12074 = vrcp.f32 %v8863_v7  ;;  %v8864_v49 = vadd.f32 1.0, %v12063_v36  ;;  %v8851_v47 = vmul.f32 1.442695, %v8825_v32  ;;  %v8826_v22 = vsub.f32 0.0, %v16066_v61 }
 0xa94   : > { %12076 = vrcp.f32 %v8866_v28  ;;  %v8847_v35 = vmul.f32 1.442695, %v8823_v19  ;;  %v8824_v3 = vsub.f32 0.0, %v16069_v6  ;;  %v10977_v12 = vpop.f32.mrb[60].mxu0 }
 0xa95   : > { %12078 = vrcp.f32 %v8864_v49  ;;  %v8853_v40 = vmul.f32 1.442695, %v8826_v22  ;;  %v8668_v20 = vadd.f32 %v10977_v12, %v15995_v27  ;;  %v8616_v4 = vpop.f32.mrb[61].mxu0 }
 0xa96   : > { %12080 = vpow2.f32 %v8851_v47  ;;  %v8849_v37 = vmul.f32 1.442695, %v8824_v3  ;;  %v8666_v26 = vadd.f32 %v15995_v27, %v8616_v4  ;;  %v10978_v39 = vpop.f32.mrb[62].mxu0 }
 0xa97   : > { %v12065_v31 = vpop.eup %12064  ;;  %12082 = vpow2.f32 %v8847_v35  ;;  %v16081_v21 = vadd.f32 %v8781_v54, %v8668_v20  ;;  %v8669_v63 = vadd.f32 %v10978_v39, %v15995_v27  ;;  %v8619_v59 = vpop.f32.mrb[63].mxu0 }
 0xa98   : > { %v12067_v58 = vpop.eup %12066  ;;  %v8869_v50 = vadd.f32 1.0, %v12065_v31  ;;  %12084 = vpow2.f32 %v8853_v40  ;;  %v16084_v60 = vadd.f32 %v8779_v44, %v8666_v26  ;;  %v8667_v38 = vadd.f32 %v15995_v27, %v8619_v59 }
 0xa99   : > { %v12069_v2 = vpop.eup %12068  ;;  %v8867_v13 = vadd.f32 1.0, %v12067_v58  ;;  %12086 = vpow2.f32 %v8849_v37  ;;  %v8829_v55 = vsub.f32 0.0, %v16081_v21  ;;  %v16088_v15 = vadd.f32 %v8782_v42, %v8669_v63 }
 0xa9a   : > { %v12071_v10 = vpop.eup %12070  ;;  %12088 = vrcp.f32 %v8869_v50  ;;  %v8870_v24 = vadd.f32 1.0, %v12069_v2  ;;  %v8827_v46 = vsub.f32 0.0, %v16084_v60  ;;  %v16091_v56 = vadd.f32 %v8780_v62, %v8667_v38 }
 0xa9b   : > { %12090 = vrcp.f32 %v8867_v13  ;;  %v8868_v9 = vadd.f32 1.0, %v12071_v10  ;;  %v8859_v41 = vmul.f32 1.442695, %v8829_v55  ;;  %v8830_v27 = vsub.f32 0.0, %v16088_v15 }
 0xa9c   : > { %v12073_v30 = vpop.eup %12072  ;;  %12092 = vrcp.f32 %v8870_v24  ;;  %v8855_v1 = vmul.f32 1.442695, %v8827_v46  ;;  %v8828_v33 = vsub.f32 0.0, %v16091_v56 }
 0xa9d   : > { %v12075_v29 = vpop.eup %12074  ;;  %v8897_v17 = vmul.f32 %v12073_v30, %v16005_v16  ;;  %12094 = vrcp.f32 %v8868_v9  ;;  %v8861_v43 = vmul.f32 1.442695, %v8830_v27 }
 0xa9e   : > { %v12077_v8 = vpop.eup %12076  ;;  %v8895_v34 = vmul.f32 %v12075_v29, %v16009_v57  ;;  %12096 = vpow2.f32 %v8859_v41  ;;  %v8857_v23 = vmul.f32 1.442695, %v8828_v33 }
 0xa9f   : > { %v12079_v53 = vpop.eup %12078  ;;  %v9825_v7 = vpack.c.bf16 %v8897_v17, %v8897_v17  ;;  %v8898_v32 = vmul.f32 %v12077_v8, %v16014_v48  ;;  %12098 = vpow2.f32 %v8855_v1 }
 0xaa0   : > { %v12081_v16 = vpop.eup %12080  ;;  %v9823_v36 = vpack.c.bf16 %v8895_v34, %v8895_v34  ;;  %v8896_v28 = vmul.f32 %v12079_v53, %v16019_v51  ;;  %12100 = vpow2.f32 %v8861_v43 }
 0xaa1   : > { %v12083_v19 = vpop.eup %12082  ;;  %8978 = vst.msk [vmem:[%s16100_s19 + $0x8] sm:$0xf] %vm8975_vm11, %v9825_v7  ;;  %v9826_v49 = vpack.c.bf16 %v8898_v32, %v8898_v32  ;;  %v8873_v57 = vadd.f32 1.0, %v12081_v16  ;;  %12102 = vpow2.f32 %v8857_v23 }
 0xaa2   : > { %v12085_v47 = vpop.eup %12084  ;;  %8976 = vst.msk [vmem:[%s16100_s19] sm:$0xf] %vm8975_vm11, %v9823_v36  ;;  %v9824_v22 = vpack.c.bf16 %v8896_v28, %v8896_v28  ;;  %v8871_v44 = vadd.f32 1.0, %v12083_v19 }
 0xaa3   : > { %v12087_v48 = vpop.eup %12086  ;;  %8979 = vst.msk [vmem:[%s16100_s19 + $0xc] sm:$0xf] %vm8975_vm11, %v9826_v49  ;;  %12104 = vrcp.f32 %v8873_v57  ;;  %v8874_v45 = vadd.f32 1.0, %v12085_v47 }
 0xaa4   : > { %v12089_v35 = vpop.eup %12088  ;;  %8977 = vst.msk [vmem:[%s16100_s19 + $0x4] sm:$0xf] %vm8975_vm11, %v9824_v22  ;;  %12106 = vrcp.f32 %v8871_v44  ;;  %v8872_v51 = vadd.f32 1.0, %v12087_v48 }
 0xaa5   : > { %v12091_v3 = vpop.eup %12090  ;;  %v8901_v12 = vmul.f32 %v12089_v35, %v16029_v14  ;;  %12108 = vrcp.f32 %v8874_v45 }
 0xaa6   : > { %v12093_v62 = vpop.eup %12092  ;;  %v8899_v40 = vmul.f32 %v12091_v3, %v16033_v11  ;;  %12110 = vrcp.f32 %v8872_v51 }
 0xaa7   : > { %v12095_v20 = vpop.eup %12094  ;;  %v9829_v4 = vpack.c.bf16 %v8901_v12, %v8901_v12  ;;  %v8902_v54 = vmul.f32 %v12093_v62, %v16038_v18 }
 0xaa8   : > { %v12097_v0 = vpop.eup %12096  ;;  %v9827_v37 = vpack.c.bf16 %v8899_v40, %v8899_v40  ;;  %v8900_v26 = vmul.f32 %v12095_v20, %v16041_v25 }
 0xaa9   : > { %v12099_v39 = vpop.eup %12098  ;;  %8982 = vst.msk [vmem:[%s16100_s19 + $0x18] sm:$0xf] %vm8975_vm11, %v9829_v4  ;;  %v9830_v14 = vpack.c.bf16 %v8902_v54, %v8902_v54  ;;  %v8877_v31 = vadd.f32 1.0, %v12097_v0 }
 0xaaa   : > { %v12101_v42 = vpop.eup %12100  ;;  %8980 = vst.msk [vmem:[%s16100_s19 + $0x10] sm:$0xf] %vm8975_vm11, %v9827_v37  ;;  %v9828_v11 = vpack.c.bf16 %v8900_v26, %v8900_v26  ;;  %v8875_v63 = vadd.f32 1.0, %v12099_v39 }
 0xaab   : > { %v12103_v59 = vpop.eup %12102  ;;  %8983 = vst.msk [vmem:[%s16100_s19 + $0x1c] sm:$0xf] %vm8975_vm11, %v9830_v14  ;;  %12112 = vrcp.f32 %v8877_v31  ;;  %v8878_v18 = vadd.f32 1.0, %v12101_v42 }
 0xaac   : > { %8981 = vst.msk [vmem:[%s16100_s19 + $0x14] sm:$0xf] %vm8975_vm11, %v9828_v11  ;;  %12114 = vrcp.f32 %v8875_v63  ;;  %v8876_v25 = vadd.f32 1.0, %v12103_v59 }
 0xaad   : > { %v12105_v58 = vpop.eup %12104  ;;  %12116 = vrcp.f32 %v8878_v18 }
 0xaae   : > { %v12107_v50 = vpop.eup %12106  ;;  %v8905_v38 = vmul.f32 %v12105_v58, %v16056_v5  ;;  %12118 = vrcp.f32 %v8876_v25 }
 0xaaf   : > { %v12109_v2 = vpop.eup %12108  ;;  %v8903_v13 = vmul.f32 %v12107_v50, %v16059_v52 }
 0xab0   : > { %v12111_v55 = vpop.eup %12110  ;;  %v9833_v10 = vpack.c.bf16 %v8905_v38, %v8905_v38  ;;  %v8906_v24 = vmul.f32 %v12109_v2, %v16066_v61 }
 0xab1   : > { %v9831_v46 = vpack.c.bf16 %v8903_v13, %v8903_v13  ;;  %v8904_v9 = vmul.f32 %v12111_v55, %v16069_v6 }
 0xab2   : > { %8986 = vst.msk [vmem:[%s16100_s19 + $0x28] sm:$0xf] %vm8975_vm11, %v9833_v10  ;;  %v9834_v41 = vpack.c.bf16 %v8906_v24, %v8906_v24 }
 0xab3   : > { %8984 = vst.msk [vmem:[%s16100_s19 + $0x20] sm:$0xf] %vm8975_vm11, %v9831_v46  ;;  %v9832_v27 = vpack.c.bf16 %v8904_v9, %v8904_v9 }
 0xab4   : > { %8987 = vst.msk [vmem:[%s16100_s19 + $0x2c] sm:$0xf] %vm8975_vm11, %v9834_v41 }
 0xab5   : > { %v12113_v5 = vpop.eup %12112  ;;  %8985 = vst.msk [vmem:[%s16100_s19 + $0x24] sm:$0xf] %vm8975_vm11, %v9832_v27 }
 0xab6   : > { %v12115_v52 = vpop.eup %12114  ;;  %v8909_v61 = vmul.f32 %v12113_v5, %v16081_v21 }
 0xab7   : > { %v12117_v30 = vpop.eup %12116  ;;  %v8907_v6 = vmul.f32 %v12115_v52, %v16084_v60 }
 0xab8   : > { %v12119_v1 = vpop.eup %12118  ;;  %v9837_v33 = vpack.c.bf16 %v8909_v61, %v8909_v61  ;;  %v8910_v29 = vmul.f32 %v12117_v30, %v16088_v15 }
 0xab9   : > { %v9835_v17 = vpack.c.bf16 %v8907_v6, %v8907_v6  ;;  %v8908_v43 = vmul.f32 %v12119_v1, %v16091_v56 }
 0xaba   : > { %8990 = vst.msk [vmem:[%s16100_s19 + $0x38] sm:$0xf] %vm8975_vm11, %v9837_v33  ;;  %v9838_v8 = vpack.c.bf16 %v8910_v29, %v8910_v29 }
 0xabb   : > { %8988 = vst.msk [vmem:[%s16100_s19 + $0x30] sm:$0xf] %vm8975_vm11, %v9835_v17  ;;  %v9836_v34 = vpack.c.bf16 %v8908_v43, %v8908_v43 }
 0xabc   : > { %8991 = vst.msk [vmem:[%s16100_s19 + $0x3c] sm:$0xf] %vm8975_vm11, %v9838_v8 }
 0xabd   : > { %8989 = vst.msk [vmem:[%s16100_s19 + $0x34] sm:$0xf] %vm8975_vm11, %v9836_v34 }
 0xabe PF: > { %s25_s18 = sadd.s32 1, %s12126_s18  }
 0xabf   : > { %p22_p4 = scmp.ge.s32.totalorder %s25_s18, 4  }
 0xac1   :  { %24 = sbr.rel (!%p22_p4) target bundleno = 1 (0x1), region = 135 }

</bundles_post_ra>
